<compile_context>
chip_gen: v5e
topology: v5e:2x2
jax: 0.10.0
libtpu: 0.0.40
codegen_flags: <defaults>
</compile_context>

<pallas_src>
import functools

import jax
import jax.numpy as jnp
from jax import lax
from jax.experimental import pallas as pl
from jax.experimental.pallas import tpu as pltpu

LANES = 128
BF16 = jnp.bfloat16
F32 = jnp.float32


# ----------------------------------------------------------------------------
# The single fused kernel (one batch tile of NT images per grid step)
# ----------------------------------------------------------------------------
def _fused_kernel(NT, p1_ref, w1_ref, b1_ref, w2_ref, b2_ref,
                  wf1_ref, bf1_ref, wf2_ref, bf2_ref, out_ref,
                  y1p_ref, c2_ref):
    M1 = NT * 144                       # rows of the 12x12 conv1-pooled grid;
                                        # row index = (h*12 + w) * NT + n

    # ---- Stage 1: conv1 + 2x2 max-pool + bias + ReLU.
    # p1_ref[k] holds the conv1 im2col rows of 2x2-pool position k; the max of
    # the four dots is the pool (bias/ReLU after the max are exact).
    w1 = w1_ref[...]
    conv1 = jnp.maximum(
        jnp.maximum(jnp.dot(p1_ref[0], w1, preferred_element_type=F32),
                    jnp.dot(p1_ref[1], w1, preferred_element_type=F32)),
        jnp.maximum(jnp.dot(p1_ref[2], w1, preferred_element_type=F32),
                    jnp.dot(p1_ref[3], w1, preferred_element_type=F32)))
    y1 = jnp.maximum(conv1 + b1_ref[...], 0.0)          # (M1, 128) f32
    y1p_ref[pl.ds(0, M1), :] = y1.astype(BF16)
    pad_rows = y1p_ref.shape[0] - M1                    # >= 52*NT zero rows
    y1p_ref[pl.ds(M1, pad_rows), :] = jnp.zeros((pad_rows, LANES), BF16)

    # ---- Stage 2: conv2 as 25 accumulating dots over row-shifted y1 windows
    # (no im2col materialization).  Rows with h >= 8 or w >= 8 compute garbage
    # that is never read downstream.
    c2_ref[...] = jnp.dot(y1p_ref[pl.ds(0, M1), :], w2_ref[0],
                          preferred_element_type=F32)
    for ki in range(5):
        for kj in range(5):
            t = ki * 5 + kj
            if t == 0:
                continue
            sh = (ki * 12 + kj) * NT
            c2_ref[...] += jnp.dot(y1p_ref[pl.ds(sh, M1), :], w2_ref[t],
                                   preferred_element_type=F32)

    # ---- Stage 3: 2x2 max-pool + bias + ReLU + flatten + fc1, fused.
    # For each of the 16 pooled spatial positions t=(i2,j2), the 4 contributing
    # conv2 rows across the batch tile are contiguous (NT,128) slices; the
    # pooled activation feeds straight into an accumulating fc1 dot.
    b2 = b2_ref[...]
    h_acc = None
    for t in range(16):
        i2, j2 = divmod(t, 4)
        base = (24 * i2 + 2 * j2) * NT
        m = jnp.maximum(
            jnp.maximum(c2_ref[pl.ds(base, NT), :],
                        c2_ref[pl.ds(base + NT, NT), :]),
            jnp.maximum(c2_ref[pl.ds(base + 12 * NT, NT), :],
                        c2_ref[pl.ds(base + 13 * NT, NT), :]))
        y2_t = jnp.maximum(m + b2, 0.0).astype(BF16)    # (NT, 128)
        d = jnp.dot(y2_t, wf1_ref[t], preferred_element_type=F32)
        h_acc = d if h_acc is None else h_acc + d

    # ---- fc1 bias/ReLU, fc2, log_softmax (only the first 10 lanes are real).
    # TODO(synk): Dropout2d / F.dropout are identity in inference mode.
    hidden = jnp.maximum(h_acc + bf1_ref[...], 0.0)
    logits = jnp.dot(hidden.astype(BF16), wf2_ref[...],
                     preferred_element_type=F32) + bf2_ref[...]
    lane = lax.broadcasted_iota(jnp.int32, logits.shape, 1)
    neg = jnp.where(lane < 10, logits, -jnp.inf)
    mx = jnp.max(neg, axis=-1, keepdims=True)
    lse = jnp.log(jnp.sum(jnp.exp(neg - mx), axis=-1, keepdims=True))
    out_ref[...] = (logits - mx - lse).astype(out_ref.dtype)


@functools.lru_cache(maxsize=None)
def _build_call(NT, num_tiles):
    M1 = NT * 144
    pad_rows = ((52 * NT + 7) // 8) * 8
    c2d = lambda i: (0, 0)
    c3d = lambda i: (0, 0, 0)
    return pl.pallas_call(
        functools.partial(_fused_kernel, NT),
        out_shape=jax.ShapeDtypeStruct((num_tiles * NT, LANES), F32),
        grid=(num_tiles,),
        in_specs=[
            pl.BlockSpec((4, M1, 32), lambda i: (0, i, 0)),    # p1 (batch tile)
            pl.BlockSpec((32, LANES), c2d),                    # w1  (resident)
            pl.BlockSpec((1, LANES), c2d),                     # b1
            pl.BlockSpec((25, LANES, LANES), c3d),             # w2
            pl.BlockSpec((1, LANES), c2d),                     # b2
            pl.BlockSpec((16, LANES, LANES), c3d),             # wf1
            pl.BlockSpec((1, LANES), c2d),                     # bf1
            pl.BlockSpec((LANES, LANES), c2d),                 # wf2
            pl.BlockSpec((1, LANES), c2d),                     # bf2
        ],
        out_specs=pl.BlockSpec((NT, LANES), lambda i: (i, 0)),
        scratch_shapes=[
            pltpu.VMEM((M1 + pad_rows, LANES), BF16),  # y1 (+ zero pad rows)
            pltpu.VMEM((M1, LANES), F32),              # conv2 accumulator
        ],
        compiler_params=pltpu.CompilerParams(
            dimension_semantics=("parallel",)),
    )


# ----------------------------------------------------------------------------
# Forward pass (NCHW input, PyTorch eval-mode semantics)
# ----------------------------------------------------------------------------
@jax.jit
def net_forward(x_nchw, packed):
    N = x_nchw.shape[0]
    NT = N if N <= 8 else 8                 # batch tile per grid step
    num_tiles = -(-N // NT)
    Np = num_tiles * NT
    x2 = x_nchw.astype(F32).reshape(N, 28, 28)
    if Np != N:
        x2 = jnp.pad(x2, ((0, Np - N), (0, 0), (0, 0)))

    # conv1 im2col, partitioned by 2x2 pool position, rows ordered
    # (tile, h, w, n_in_tile) so every in-kernel gather is contiguous.
    # TODO(synk): this prep could move in-kernel (row shifts + pltpu.roll), but
    # XLA fuses it and it keeps the kernel input lane-dense.
    cols = [x2[:, a:a + 24, b:b + 24] for a in range(5) for b in range(5)]
    pat = jnp.stack(cols, axis=-1)                             # (Np,24,24,25)
    parts = jnp.stack([pat[:, ph::2, pw::2, :]
                       for ph in (0, 1) for pw in (0, 1)], axis=0)
    parts = parts.reshape(4, num_tiles, NT, 144, 25)
    p1 = jnp.transpose(parts, (0, 1, 3, 2, 4)).reshape(4, Np * 144, 25)
    p1 = jnp.pad(p1, ((0, 0), (0, 0), (0, 7))).astype(BF16)    # K 25 -> 32

    out = _build_call(NT, num_tiles)(
        p1, packed["w1"], packed["b1"], packed["w2"], packed["b2"],
        packed["wf1"], packed["bf1"], packed["wf2"], packed["bf2"])
    return out[:N, :10]


# ----------------------------------------------------------------------------
# Parameters: logical (PyTorch-layout) weights + lane-dense bf16 packing
# ----------------------------------------------------------------------------
def init_params(key):
    ks = jax.random.split(key, 8)

    def rnd(k, shape, fan_in):
        return jax.random.normal(k, shape, F32) / jnp.sqrt(fan_in)

    return {
        "conv1_w": rnd(ks[0], (10, 1, 5, 5), 25),
        "conv1_b": rnd(ks[1], (10,), 25),
        "conv2_w": rnd(ks[2], (20, 10, 5, 5), 250),
        "conv2_b": rnd(ks[3], (20,), 250),
        "fc1_w": rnd(ks[4], (50, 320), 320),
        "fc1_b": rnd(ks[5], (50,), 320),
        "fc2_w": rnd(ks[6], (10, 50), 50),
        "fc2_b": rnd(ks[7], (10,), 50),
    }


def pack_params(p):
    # conv1: (tap 25->32, out 10->128)
    w1 = jnp.zeros((32, 128), F32).at[:25, :10].set(
        jnp.transpose(p["conv1_w"], (2, 3, 1, 0)).reshape(25, 10))
    b1 = jnp.zeros((1, 128), F32).at[0, :10].set(p["conv1_b"])
    # conv2: one (cin 10->128, cout 20->128) block per tap t = ki*5 + kj.
    w2 = jnp.zeros((25, 128, 128), F32).at[:, :10, :20].set(
        jnp.transpose(p["conv2_w"], (2, 3, 1, 0)).reshape(25, 10, 20))
    b2 = jnp.zeros((1, 128), F32).at[0, :20].set(p["conv2_b"])
    # fc1: PyTorch flatten index = c*16 + (i2*4 + j2); one (c->128, out->128)
    # block per spatial position t = i2*4 + j2 (no runtime transpose).
    wf1_cto = p["fc1_w"].T.reshape(20, 16, 50)                 # (c, t, out)
    wf1 = jnp.zeros((16, 128, 128), F32).at[:, :20, :50].set(
        jnp.transpose(wf1_cto, (1, 0, 2)))
    bf1 = jnp.zeros((1, 128), F32).at[0, :50].set(p["fc1_b"])
    wf2 = jnp.zeros((128, 128), F32).at[:50, :10].set(p["fc2_w"].T)
    bf2 = jnp.zeros((1, 128), F32).at[0, :10].set(p["fc2_b"])
    return dict(w1=w1.astype(BF16), b1=b1, w2=w2.astype(BF16), b2=b2,
                wf1=wf1.astype(BF16), bf1=bf1, wf2=wf2.astype(BF16), bf2=bf2)


# ----------------------------------------------------------------------------
# Pure-JAX reference (PyTorch eval-mode semantics, all-f32)
# ----------------------------------------------------------------------------
def ref_forward(x_nchw, p):
    x = jnp.transpose(x_nchw, (0, 2, 3, 1)).astype(F32)

    def conv(inp, w_oihw, b):
        w = jnp.transpose(w_oihw, (2, 3, 1, 0))                # HWIO
        y = lax.conv_general_dilated(inp, w, (1, 1), "VALID",
                                     dimension_numbers=("NHWC", "HWIO", "NHWC"))
        return y + b.reshape(1, 1, 1, -1)

    def pool_relu(y):
        n, h, w, c = y.shape
        y = y.reshape(n, h // 2, 2, w // 2, 2, c).max(axis=(2, 4))
        return jnp.maximum(y, 0.0)

    y1 = pool_relu(conv(x, p["conv1_w"], p["conv1_b"]))
    y2 = pool_relu(conv(y1, p["conv2_w"], p["conv2_b"]))
    feat = jnp.transpose(y2, (0, 3, 1, 2)).reshape(x.shape[0], 320)
    h = jnp.maximum(feat @ p["fc1_w"].T + p["fc1_b"], 0.0)
    logits = h @ p["fc2_w"].T + p["fc2_b"]
    return jax.nn.log_softmax(logits, axis=-1)


# ----------------------------------------------------------------------------
if __name__ == "__main__":
    key = jax.random.PRNGKey(0)
    k_x, k_p = jax.random.split(key)
    # 28x28 input is required by the view(-1, 320) in Net.forward.
    x = jax.random.normal(k_x, (2, 1, 28, 28), jnp.float32)
    params = init_params(k_p)
    packed = pack_params(params)

    out = net_forward(x, packed)
    jax.block_until_ready(out)
    assert out.shape == (2, 10), out.shape

    ref = ref_forward(x, params)
    err = float(jnp.max(jnp.abs(out - ref)))
    # bf16 MXU operands vs all-f32 reference -> relaxed tolerance (real bugs
    # would show up as O(1) errors, far above this).
    assert jnp.allclose(out, ref, atol=1e-1, rtol=5e-2), err
    print("KERNEL_OK")
</pallas_src>

<mosaic_0001>
module attributes {stable_mosaic.version = 11 : i64} {
  func.func @_fused_kernel(%arg0: i32, %arg1: memref<4x288x32xbf16, #tpu.memory_space<vmem>>, %arg2: memref<32x128xbf16, #tpu.memory_space<vmem>>, %arg3: memref<1x128xf32, #tpu.memory_space<vmem>>, %arg4: memref<25x128x128xbf16, #tpu.memory_space<vmem>>, %arg5: memref<1x128xf32, #tpu.memory_space<vmem>>, %arg6: memref<16x128x128xbf16, #tpu.memory_space<vmem>>, %arg7: memref<1x128xf32, #tpu.memory_space<vmem>>, %arg8: memref<128x128xbf16, #tpu.memory_space<vmem>>, %arg9: memref<1x128xf32, #tpu.memory_space<vmem>>, %arg10: memref<2x128xf32, #tpu.memory_space<vmem>>, %arg11: memref<392x128xbf16, #tpu.memory_space<vmem>>, %arg12: memref<288x128xf32, #tpu.memory_space<vmem>>) attributes {dimension_semantics = [#tpu.dimension_semantics<parallel>], iteration_bounds = array<i64: 1>, scalar_prefetch = 0 : i64, scratch_operands = 2 : i64, tpu.core_type = #tpu.core_type<tc>, window_params = [{transform_indices = @transform_0, window_bounds = array<i64: 4, 288, 32>}, {pipeline_mode = #tpu.pipeline_mode<synchronous>, transform_indices = @transform_1, window_bounds = array<i64: 32, 128>}, {pipeline_mode = #tpu.pipeline_mode<synchronous>, transform_indices = @transform_2, window_bounds = array<i64: 1, 128>}, {pipeline_mode = #tpu.pipeline_mode<synchronous>, transform_indices = @transform_3, window_bounds = array<i64: 25, 128, 128>}, {pipeline_mode = #tpu.pipeline_mode<synchronous>, transform_indices = @transform_4, window_bounds = array<i64: 1, 128>}, {pipeline_mode = #tpu.pipeline_mode<synchronous>, transform_indices = @transform_5, window_bounds = array<i64: 16, 128, 128>}, {pipeline_mode = #tpu.pipeline_mode<synchronous>, transform_indices = @transform_6, window_bounds = array<i64: 1, 128>}, {pipeline_mode = #tpu.pipeline_mode<synchronous>, transform_indices = @transform_7, window_bounds = array<i64: 128, 128>}, {pipeline_mode = #tpu.pipeline_mode<synchronous>, transform_indices = @transform_8, window_bounds = array<i64: 1, 128>}, {transform_indices = @transform_9, window_bounds = array<i64: 2, 128>}]} {
    %c0 = arith.constant 0 : index
    %c0_0 = arith.constant 0 : index
    %0 = vector.load %arg2[%c0, %c0_0] : memref<32x128xbf16, #tpu.memory_space<vmem>>, vector<32x128xbf16>
    %c0_1 = arith.constant 0 : index
    %c0_2 = arith.constant 0 : index
    %c0_3 = arith.constant 0 : index
    %1 = vector.load %arg1[%c0_1, %c0_2, %c0_3] : memref<4x288x32xbf16, #tpu.memory_space<vmem>>, vector<1x288x32xbf16>
    %2 = vector.shape_cast %1 : vector<1x288x32xbf16> to vector<288x32xbf16>
    %cst = arith.constant dense<0.000000e+00> : vector<288x128xf32>
    %3 = tpu.matmul %2, %0, %cst {dimension_numbers = #tpu.dot_dimension_numbers<[1], [0], [0], [1], [0, 0, 1, 1], [], []>} : vector<288x32xbf16>, vector<32x128xbf16>, vector<288x128xf32> -> vector<288x128xf32>
    %c1 = arith.constant 1 : index
    %c0_4 = arith.constant 0 : index
    %c0_5 = arith.constant 0 : index
    %4 = vector.load %arg1[%c1, %c0_4, %c0_5] : memref<4x288x32xbf16, #tpu.memory_space<vmem>>, vector<1x288x32xbf16>
    %5 = vector.shape_cast %4 : vector<1x288x32xbf16> to vector<288x32xbf16>
    %cst_6 = arith.constant dense<0.000000e+00> : vector<288x128xf32>
    %6 = tpu.matmul %5, %0, %cst_6 {dimension_numbers = #tpu.dot_dimension_numbers<[1], [0], [0], [1], [0, 0, 1, 1], [], []>} : vector<288x32xbf16>, vector<32x128xbf16>, vector<288x128xf32> -> vector<288x128xf32>
    %7 = arith.maximumf %3, %6 : vector<288x128xf32>
    %c2 = arith.constant 2 : index
    %c0_7 = arith.constant 0 : index
    %c0_8 = arith.constant 0 : index
    %8 = vector.load %arg1[%c2, %c0_7, %c0_8] : memref<4x288x32xbf16, #tpu.memory_space<vmem>>, vector<1x288x32xbf16>
    %9 = vector.shape_cast %8 : vector<1x288x32xbf16> to vector<288x32xbf16>
    %cst_9 = arith.constant dense<0.000000e+00> : vector<288x128xf32>
    %10 = tpu.matmul %9, %0, %cst_9 {dimension_numbers = #tpu.dot_dimension_numbers<[1], [0], [0], [1], [0, 0, 1, 1], [], []>} : vector<288x32xbf16>, vector<32x128xbf16>, vector<288x128xf32> -> vector<288x128xf32>
    %c3 = arith.constant 3 : index
    %c0_10 = arith.constant 0 : index
    %c0_11 = arith.constant 0 : index
    %11 = vector.load %arg1[%c3, %c0_10, %c0_11] : memref<4x288x32xbf16, #tpu.memory_space<vmem>>, vector<1x288x32xbf16>
    %12 = vector.shape_cast %11 : vector<1x288x32xbf16> to vector<288x32xbf16>
    %cst_12 = arith.constant dense<0.000000e+00> : vector<288x128xf32>
    %13 = tpu.matmul %12, %0, %cst_12 {dimension_numbers = #tpu.dot_dimension_numbers<[1], [0], [0], [1], [0, 0, 1, 1], [], []>} : vector<288x32xbf16>, vector<32x128xbf16>, vector<288x128xf32> -> vector<288x128xf32>
    %14 = arith.maximumf %10, %13 : vector<288x128xf32>
    %15 = arith.maximumf %7, %14 : vector<288x128xf32>
    %c0_13 = arith.constant 0 : index
    %c0_14 = arith.constant 0 : index
    %16 = vector.load %arg3[%c0_13, %c0_14] : memref<1x128xf32, #tpu.memory_space<vmem>>, vector<1x128xf32>
    %17 = vector.broadcast %16 : vector<1x128xf32> to vector<288x128xf32>
    %18 = arith.addf %15, %17 : vector<288x128xf32>
    %cst_15 = arith.constant 0.000000e+00 : f32
    %19 = vector.broadcast %cst_15 : f32 to vector<288x128xf32>
    %20 = arith.maximumf %18, %19 : vector<288x128xf32>
    %21 = arith.truncf %20 : vector<288x128xf32> to vector<288x128xbf16>
    %c0_16 = arith.constant 0 : index
    %c0_17 = arith.constant 0 : index
    %22 = vector.load %arg11[%c0_16, %c0_17] : memref<392x128xbf16, #tpu.memory_space<vmem>>, vector<288x128xbf16>
    tpu.vector_store %arg11[%c0_16, %c0_17], %21 {strides = array<i32>} : memref<392x128xbf16, #tpu.memory_space<vmem>>, vector<288x128xbf16>,
    %cst_18 = arith.constant 0.000000e+00 : bf16
    %23 = vector.broadcast %cst_18 : bf16 to vector<104x128xbf16>
    %c288 = arith.constant 288 : index
    %c0_19 = arith.constant 0 : index
    %24 = vector.load %arg11[%c288, %c0_19] : memref<392x128xbf16, #tpu.memory_space<vmem>>, vector<104x128xbf16>
    tpu.vector_store %arg11[%c288, %c0_19], %23 {strides = array<i32>} : memref<392x128xbf16, #tpu.memory_space<vmem>>, vector<104x128xbf16>,
    %c0_20 = arith.constant 0 : index
    %c0_21 = arith.constant 0 : index
    %25 = vector.load %arg11[%c0_20, %c0_21] : memref<392x128xbf16, #tpu.memory_space<vmem>>, vector<288x128xbf16>
    %c0_22 = arith.constant 0 : index
    %c0_23 = arith.constant 0 : index
    %c0_24 = arith.constant 0 : index
    %26 = vector.load %arg4[%c0_22, %c0_23, %c0_24] : memref<25x128x128xbf16, #tpu.memory_space<vmem>>, vector<1x128x128xbf16>
    %27 = vector.shape_cast %26 : vector<1x128x128xbf16> to vector<128x128xbf16>
    %cst_25 = arith.constant dense<0.000000e+00> : vector<288x128xf32>
    %28 = tpu.matmul %25, %27, %cst_25 {dimension_numbers = #tpu.dot_dimension_numbers<[1], [0], [0], [1], [0, 0, 1, 1], [], []>} : vector<288x128xbf16>, vector<128x128xbf16>, vector<288x128xf32> -> vector<288x128xf32>
    %c0_26 = arith.constant 0 : index
    %c0_27 = arith.constant 0 : index
    %29 = vector.load %arg12[%c0_26, %c0_27] : memref<288x128xf32, #tpu.memory_space<vmem>>, vector<288x128xf32>
    tpu.vector_store %arg12[%c0_26, %c0_27], %28 {strides = array<i32>} : memref<288x128xf32, #tpu.memory_space<vmem>>, vector<288x128xf32>,
    %c0_28 = arith.constant 0 : index
    %c0_29 = arith.constant 0 : index
    %30 = vector.load %arg12[%c0_28, %c0_29] : memref<288x128xf32, #tpu.memory_space<vmem>>, vector<288x128xf32>
    %c2_30 = arith.constant 2 : index
    %c0_31 = arith.constant 0 : index
    %31 = vector.load %arg11[%c2_30, %c0_31] : memref<392x128xbf16, #tpu.memory_space<vmem>>, vector<288x128xbf16>
    %c1_32 = arith.constant 1 : index
    %c0_33 = arith.constant 0 : index
    %c0_34 = arith.constant 0 : index
    %32 = vector.load %arg4[%c1_32, %c0_33, %c0_34] : memref<25x128x128xbf16, #tpu.memory_space<vmem>>, vector<1x128x128xbf16>
    %33 = vector.shape_cast %32 : vector<1x128x128xbf16> to vector<128x128xbf16>
    %cst_35 = arith.constant dense<0.000000e+00> : vector<288x128xf32>
    %34 = tpu.matmul %31, %33, %cst_35 {dimension_numbers = #tpu.dot_dimension_numbers<[1], [0], [0], [1], [0, 0, 1, 1], [], []>} : vector<288x128xbf16>, vector<128x128xbf16>, vector<288x128xf32> -> vector<288x128xf32>
    %35 = arith.addf %30, %34 : vector<288x128xf32>
    %c0_36 = arith.constant 0 : index
    %c0_37 = arith.constant 0 : index
    %36 = vector.load %arg12[%c0_36, %c0_37] : memref<288x128xf32, #tpu.memory_space<vmem>>, vector<288x128xf32>
    tpu.vector_store %arg12[%c0_36, %c0_37], %35 {strides = array<i32>} : memref<288x128xf32, #tpu.memory_space<vmem>>, vector<288x128xf32>,
    %c0_38 = arith.constant 0 : index
    %c0_39 = arith.constant 0 : index
    %37 = vector.load %arg12[%c0_38, %c0_39] : memref<288x128xf32, #tpu.memory_space<vmem>>, vector<288x128xf32>
    %c4 = arith.constant 4 : index
    %c0_40 = arith.constant 0 : index
    %38 = vector.load %arg11[%c4, %c0_40] : memref<392x128xbf16, #tpu.memory_space<vmem>>, vector<288x128xbf16>
    %c2_41 = arith.constant 2 : index
    %c0_42 = arith.constant 0 : index
    %c0_43 = arith.constant 0 : index
    %39 = vector.load %arg4[%c2_41, %c0_42, %c0_43] : memref<25x128x128xbf16, #tpu.memory_space<vmem>>, vector<1x128x128xbf16>
    %40 = vector.shape_cast %39 : vector<1x128x128xbf16> to vector<128x128xbf16>
    %cst_44 = arith.constant dense<0.000000e+00> : vector<288x128xf32>
    %41 = tpu.matmul %38, %40, %cst_44 {dimension_numbers = #tpu.dot_dimension_numbers<[1], [0], [0], [1], [0, 0, 1, 1], [], []>} : vector<288x128xbf16>, vector<128x128xbf16>, vector<288x128xf32> -> vector<288x128xf32>
    %42 = arith.addf %37, %41 : vector<288x128xf32>
    %c0_45 = arith.constant 0 : index
    %c0_46 = arith.constant 0 : index
    %43 = vector.load %arg12[%c0_45, %c0_46] : memref<288x128xf32, #tpu.memory_space<vmem>>, vector<288x128xf32>
    tpu.vector_store %arg12[%c0_45, %c0_46], %42 {strides = array<i32>} : memref<288x128xf32, #tpu.memory_space<vmem>>, vector<288x128xf32>,
    %c0_47 = arith.constant 0 : index
    %c0_48 = arith.constant 0 : index
    %44 = vector.load %arg12[%c0_47, %c0_48] : memref<288x128xf32, #tpu.memory_space<vmem>>, vector<288x128xf32>
    %c6 = arith.constant 6 : index
    %c0_49 = arith.constant 0 : index
    %45 = vector.load %arg11[%c6, %c0_49] : memref<392x128xbf16, #tpu.memory_space<vmem>>, vector<288x128xbf16>
    %c3_50 = arith.constant 3 : index
    %c0_51 = arith.constant 0 : index
    %c0_52 = arith.constant 0 : index
    %46 = vector.load %arg4[%c3_50, %c0_51, %c0_52] : memref<25x128x128xbf16, #tpu.memory_space<vmem>>, vector<1x128x128xbf16>
    %47 = vector.shape_cast %46 : vector<1x128x128xbf16> to vector<128x128xbf16>
    %cst_53 = arith.constant dense<0.000000e+00> : vector<288x128xf32>
    %48 = tpu.matmul %45, %47, %cst_53 {dimension_numbers = #tpu.dot_dimension_numbers<[1], [0], [0], [1], [0, 0, 1, 1], [], []>} : vector<288x128xbf16>, vector<128x128xbf16>, vector<288x128xf32> -> vector<288x128xf32>
    %49 = arith.addf %44, %48 : vector<288x128xf32>
    %c0_54 = arith.constant 0 : index
    %c0_55 = arith.constant 0 : index
    %50 = vector.load %arg12[%c0_54, %c0_55] : memref<288x128xf32, #tpu.memory_space<vmem>>, vector<288x128xf32>
    tpu.vector_store %arg12[%c0_54, %c0_55], %49 {strides = array<i32>} : memref<288x128xf32, #tpu.memory_space<vmem>>, vector<288x128xf32>,
    %c0_56 = arith.constant 0 : index
    %c0_57 = arith.constant 0 : index
    %51 = vector.load %arg12[%c0_56, %c0_57] : memref<288x128xf32, #tpu.memory_space<vmem>>, vector<288x128xf32>
    %c8 = arith.constant 8 : index
    %c0_58 = arith.constant 0 : index
    %52 = vector.load %arg11[%c8, %c0_58] : memref<392x128xbf16, #tpu.memory_space<vmem>>, vector<288x128xbf16>
    %c4_59 = arith.constant 4 : index
    %c0_60 = arith.constant 0 : index
    %c0_61 = arith.constant 0 : index
    %53 = vector.load %arg4[%c4_59, %c0_60, %c0_61] : memref<25x128x128xbf16, #tpu.memory_space<vmem>>, vector<1x128x128xbf16>
    %54 = vector.shape_cast %53 : vector<1x128x128xbf16> to vector<128x128xbf16>
    %cst_62 = arith.constant dense<0.000000e+00> : vector<288x128xf32>
    %55 = tpu.matmul %52, %54, %cst_62 {dimension_numbers = #tpu.dot_dimension_numbers<[1], [0], [0], [1], [0, 0, 1, 1], [], []>} : vector<288x128xbf16>, vector<128x128xbf16>, vector<288x128xf32> -> vector<288x128xf32>
    %56 = arith.addf %51, %55 : vector<288x128xf32>
    %c0_63 = arith.constant 0 : index
    %c0_64 = arith.constant 0 : index
    %57 = vector.load %arg12[%c0_63, %c0_64] : memref<288x128xf32, #tpu.memory_space<vmem>>, vector<288x128xf32>
    tpu.vector_store %arg12[%c0_63, %c0_64], %56 {strides = array<i32>} : memref<288x128xf32, #tpu.memory_space<vmem>>, vector<288x128xf32>,
    %c0_65 = arith.constant 0 : index
    %c0_66 = arith.constant 0 : index
    %58 = vector.load %arg12[%c0_65, %c0_66] : memref<288x128xf32, #tpu.memory_space<vmem>>, vector<288x128xf32>
    %c24 = arith.constant 24 : index
    %c0_67 = arith.constant 0 : index
    %59 = vector.load %arg11[%c24, %c0_67] : memref<392x128xbf16, #tpu.memory_space<vmem>>, vector<288x128xbf16>
    %c5 = arith.constant 5 : index
    %c0_68 = arith.constant 0 : index
    %c0_69 = arith.constant 0 : index
    %60 = vector.load %arg4[%c5, %c0_68, %c0_69] : memref<25x128x128xbf16, #tpu.memory_space<vmem>>, vector<1x128x128xbf16>
    %61 = vector.shape_cast %60 : vector<1x128x128xbf16> to vector<128x128xbf16>
    %cst_70 = arith.constant dense<0.000000e+00> : vector<288x128xf32>
    %62 = tpu.matmul %59, %61, %cst_70 {dimension_numbers = #tpu.dot_dimension_numbers<[1], [0], [0], [1], [0, 0, 1, 1], [], []>} : vector<288x128xbf16>, vector<128x128xbf16>, vector<288x128xf32> -> vector<288x128xf32>
    %63 = arith.addf %58, %62 : vector<288x128xf32>
    %c0_71 = arith.constant 0 : index
    %c0_72 = arith.constant 0 : index
    %64 = vector.load %arg12[%c0_71, %c0_72] : memref<288x128xf32, #tpu.memory_space<vmem>>, vector<288x128xf32>
    tpu.vector_store %arg12[%c0_71, %c0_72], %63 {strides = array<i32>} : memref<288x128xf32, #tpu.memory_space<vmem>>, vector<288x128xf32>,
    %c0_73 = arith.constant 0 : index
    %c0_74 = arith.constant 0 : index
    %65 = vector.load %arg12[%c0_73, %c0_74] : memref<288x128xf32, #tpu.memory_space<vmem>>, vector<288x128xf32>
    %c26 = arith.constant 26 : index
    %c0_75 = arith.constant 0 : index
    %66 = vector.load %arg11[%c26, %c0_75] : memref<392x128xbf16, #tpu.memory_space<vmem>>, vector<288x128xbf16>
    %c6_76 = arith.constant 6 : index
    %c0_77 = arith.constant 0 : index
    %c0_78 = arith.constant 0 : index
    %67 = vector.load %arg4[%c6_76, %c0_77, %c0_78] : memref<25x128x128xbf16, #tpu.memory_space<vmem>>, vector<1x128x128xbf16>
    %68 = vector.shape_cast %67 : vector<1x128x128xbf16> to vector<128x128xbf16>
    %cst_79 = arith.constant dense<0.000000e+00> : vector<288x128xf32>
    %69 = tpu.matmul %66, %68, %cst_79 {dimension_numbers = #tpu.dot_dimension_numbers<[1], [0], [0], [1], [0, 0, 1, 1], [], []>} : vector<288x128xbf16>, vector<128x128xbf16>, vector<288x128xf32> -> vector<288x128xf32>
    %70 = arith.addf %65, %69 : vector<288x128xf32>
    %c0_80 = arith.constant 0 : index
    %c0_81 = arith.constant 0 : index
    %71 = vector.load %arg12[%c0_80, %c0_81] : memref<288x128xf32, #tpu.memory_space<vmem>>, vector<288x128xf32>
    tpu.vector_store %arg12[%c0_80, %c0_81], %70 {strides = array<i32>} : memref<288x128xf32, #tpu.memory_space<vmem>>, vector<288x128xf32>,
    %c0_82 = arith.constant 0 : index
    %c0_83 = arith.constant 0 : index
    %72 = vector.load %arg12[%c0_82, %c0_83] : memref<288x128xf32, #tpu.memory_space<vmem>>, vector<288x128xf32>
    %c28 = arith.constant 28 : index
    %c0_84 = arith.constant 0 : index
    %73 = vector.load %arg11[%c28, %c0_84] : memref<392x128xbf16, #tpu.memory_space<vmem>>, vector<288x128xbf16>
    %c7 = arith.constant 7 : index
    %c0_85 = arith.constant 0 : index
    %c0_86 = arith.constant 0 : index
    %74 = vector.load %arg4[%c7, %c0_85, %c0_86] : memref<25x128x128xbf16, #tpu.memory_space<vmem>>, vector<1x128x128xbf16>
    %75 = vector.shape_cast %74 : vector<1x128x128xbf16> to vector<128x128xbf16>
    %cst_87 = arith.constant dense<0.000000e+00> : vector<288x128xf32>
    %76 = tpu.matmul %73, %75, %cst_87 {dimension_numbers = #tpu.dot_dimension_numbers<[1], [0], [0], [1], [0, 0, 1, 1], [], []>} : vector<288x128xbf16>, vector<128x128xbf16>, vector<288x128xf32> -> vector<288x128xf32>
    %77 = arith.addf %72, %76 : vector<288x128xf32>
    %c0_88 = arith.constant 0 : index
    %c0_89 = arith.constant 0 : index
    %78 = vector.load %arg12[%c0_88, %c0_89] : memref<288x128xf32, #tpu.memory_space<vmem>>, vector<288x128xf32>
    tpu.vector_store %arg12[%c0_88, %c0_89], %77 {strides = array<i32>} : memref<288x128xf32, #tpu.memory_space<vmem>>, vector<288x128xf32>,
    %c0_90 = arith.constant 0 : index
    %c0_91 = arith.constant 0 : index
    %79 = vector.load %arg12[%c0_90, %c0_91] : memref<288x128xf32, #tpu.memory_space<vmem>>, vector<288x128xf32>
    %c30 = arith.constant 30 : index
    %c0_92 = arith.constant 0 : index
    %80 = vector.load %arg11[%c30, %c0_92] : memref<392x128xbf16, #tpu.memory_space<vmem>>, vector<288x128xbf16>
    %c8_93 = arith.constant 8 : index
    %c0_94 = arith.constant 0 : index
    %c0_95 = arith.constant 0 : index
    %81 = vector.load %arg4[%c8_93, %c0_94, %c0_95] : memref<25x128x128xbf16, #tpu.memory_space<vmem>>, vector<1x128x128xbf16>
    %82 = vector.shape_cast %81 : vector<1x128x128xbf16> to vector<128x128xbf16>
    %cst_96 = arith.constant dense<0.000000e+00> : vector<288x128xf32>
    %83 = tpu.matmul %80, %82, %cst_96 {dimension_numbers = #tpu.dot_dimension_numbers<[1], [0], [0], [1], [0, 0, 1, 1], [], []>} : vector<288x128xbf16>, vector<128x128xbf16>, vector<288x128xf32> -> vector<288x128xf32>
    %84 = arith.addf %79, %83 : vector<288x128xf32>
    %c0_97 = arith.constant 0 : index
    %c0_98 = arith.constant 0 : index
    %85 = vector.load %arg12[%c0_97, %c0_98] : memref<288x128xf32, #tpu.memory_space<vmem>>, vector<288x128xf32>
    tpu.vector_store %arg12[%c0_97, %c0_98], %84 {strides = array<i32>} : memref<288x128xf32, #tpu.memory_space<vmem>>, vector<288x128xf32>,
    %c0_99 = arith.constant 0 : index
    %c0_100 = arith.constant 0 : index
    %86 = vector.load %arg12[%c0_99, %c0_100] : memref<288x128xf32, #tpu.memory_space<vmem>>, vector<288x128xf32>
    %c32 = arith.constant 32 : index
    %c0_101 = arith.constant 0 : index
    %87 = vector.load %arg11[%c32, %c0_101] : memref<392x128xbf16, #tpu.memory_space<vmem>>, vector<288x128xbf16>
    %c9 = arith.constant 9 : index
    %c0_102 = arith.constant 0 : index
    %c0_103 = arith.constant 0 : index
    %88 = vector.load %arg4[%c9, %c0_102, %c0_103] : memref<25x128x128xbf16, #tpu.memory_space<vmem>>, vector<1x128x128xbf16>
    %89 = vector.shape_cast %88 : vector<1x128x128xbf16> to vector<128x128xbf16>
    %cst_104 = arith.constant dense<0.000000e+00> : vector<288x128xf32>
    %90 = tpu.matmul %87, %89, %cst_104 {dimension_numbers = #tpu.dot_dimension_numbers<[1], [0], [0], [1], [0, 0, 1, 1], [], []>} : vector<288x128xbf16>, vector<128x128xbf16>, vector<288x128xf32> -> vector<288x128xf32>
    %91 = arith.addf %86, %90 : vector<288x128xf32>
    %c0_105 = arith.constant 0 : index
    %c0_106 = arith.constant 0 : index
    %92 = vector.load %arg12[%c0_105, %c0_106] : memref<288x128xf32, #tpu.memory_space<vmem>>, vector<288x128xf32>
    tpu.vector_store %arg12[%c0_105, %c0_106], %91 {strides = array<i32>} : memref<288x128xf32, #tpu.memory_space<vmem>>, vector<288x128xf32>,
    %c0_107 = arith.constant 0 : index
    %c0_108 = arith.constant 0 : index
    %93 = vector.load %arg12[%c0_107, %c0_108] : memref<288x128xf32, #tpu.memory_space<vmem>>, vector<288x128xf32>
    %c48 = arith.constant 48 : index
    %c0_109 = arith.constant 0 : index
    %94 = vector.load %arg11[%c48, %c0_109] : memref<392x128xbf16, #tpu.memory_space<vmem>>, vector<288x128xbf16>
    %c10 = arith.constant 10 : index
    %c0_110 = arith.constant 0 : index
    %c0_111 = arith.constant 0 : index
    %95 = vector.load %arg4[%c10, %c0_110, %c0_111] : memref<25x128x128xbf16, #tpu.memory_space<vmem>>, vector<1x128x128xbf16>
    %96 = vector.shape_cast %95 : vector<1x128x128xbf16> to vector<128x128xbf16>
    %cst_112 = arith.constant dense<0.000000e+00> : vector<288x128xf32>
    %97 = tpu.matmul %94, %96, %cst_112 {dimension_numbers = #tpu.dot_dimension_numbers<[1], [0], [0], [1], [0, 0, 1, 1], [], []>} : vector<288x128xbf16>, vector<128x128xbf16>, vector<288x128xf32> -> vector<288x128xf32>
    %98 = arith.addf %93, %97 : vector<288x128xf32>
    %c0_113 = arith.constant 0 : index
    %c0_114 = arith.constant 0 : index
    %99 = vector.load %arg12[%c0_113, %c0_114] : memref<288x128xf32, #tpu.memory_space<vmem>>, vector<288x128xf32>
    tpu.vector_store %arg12[%c0_113, %c0_114], %98 {strides = array<i32>} : memref<288x128xf32, #tpu.memory_space<vmem>>, vector<288x128xf32>,
    %c0_115 = arith.constant 0 : index
    %c0_116 = arith.constant 0 : index
    %100 = vector.load %arg12[%c0_115, %c0_116] : memref<288x128xf32, #tpu.memory_space<vmem>>, vector<288x128xf32>
    %c50 = arith.constant 50 : index
    %c0_117 = arith.constant 0 : index
    %101 = vector.load %arg11[%c50, %c0_117] : memref<392x128xbf16, #tpu.memory_space<vmem>>, vector<288x128xbf16>
    %c11 = arith.constant 11 : index
    %c0_118 = arith.constant 0 : index
    %c0_119 = arith.constant 0 : index
    %102 = vector.load %arg4[%c11, %c0_118, %c0_119] : memref<25x128x128xbf16, #tpu.memory_space<vmem>>, vector<1x128x128xbf16>
    %103 = vector.shape_cast %102 : vector<1x128x128xbf16> to vector<128x128xbf16>
    %cst_120 = arith.constant dense<0.000000e+00> : vector<288x128xf32>
    %104 = tpu.matmul %101, %103, %cst_120 {dimension_numbers = #tpu.dot_dimension_numbers<[1], [0], [0], [1], [0, 0, 1, 1], [], []>} : vector<288x128xbf16>, vector<128x128xbf16>, vector<288x128xf32> -> vector<288x128xf32>
    %105 = arith.addf %100, %104 : vector<288x128xf32>
    %c0_121 = arith.constant 0 : index
    %c0_122 = arith.constant 0 : index
    %106 = vector.load %arg12[%c0_121, %c0_122] : memref<288x128xf32, #tpu.memory_space<vmem>>, vector<288x128xf32>
    tpu.vector_store %arg12[%c0_121, %c0_122], %105 {strides = array<i32>} : memref<288x128xf32, #tpu.memory_space<vmem>>, vector<288x128xf32>,
    %c0_123 = arith.constant 0 : index
    %c0_124 = arith.constant 0 : index
    %107 = vector.load %arg12[%c0_123, %c0_124] : memref<288x128xf32, #tpu.memory_space<vmem>>, vector<288x128xf32>
    %c52 = arith.constant 52 : index
    %c0_125 = arith.constant 0 : index
    %108 = vector.load %arg11[%c52, %c0_125] : memref<392x128xbf16, #tpu.memory_space<vmem>>, vector<288x128xbf16>
    %c12 = arith.constant 12 : index
    %c0_126 = arith.constant 0 : index
    %c0_127 = arith.constant 0 : index
    %109 = vector.load %arg4[%c12, %c0_126, %c0_127] : memref<25x128x128xbf16, #tpu.memory_space<vmem>>, vector<1x128x128xbf16>
    %110 = vector.shape_cast %109 : vector<1x128x128xbf16> to vector<128x128xbf16>
    %cst_128 = arith.constant dense<0.000000e+00> : vector<288x128xf32>
    %111 = tpu.matmul %108, %110, %cst_128 {dimension_numbers = #tpu.dot_dimension_numbers<[1], [0], [0], [1], [0, 0, 1, 1], [], []>} : vector<288x128xbf16>, vector<128x128xbf16>, vector<288x128xf32> -> vector<288x128xf32>
    %112 = arith.addf %107, %111 : vector<288x128xf32>
    %c0_129 = arith.constant 0 : index
    %c0_130 = arith.constant 0 : index
    %113 = vector.load %arg12[%c0_129, %c0_130] : memref<288x128xf32, #tpu.memory_space<vmem>>, vector<288x128xf32>
    tpu.vector_store %arg12[%c0_129, %c0_130], %112 {strides = array<i32>} : memref<288x128xf32, #tpu.memory_space<vmem>>, vector<288x128xf32>,
    %c0_131 = arith.constant 0 : index
    %c0_132 = arith.constant 0 : index
    %114 = vector.load %arg12[%c0_131, %c0_132] : memref<288x128xf32, #tpu.memory_space<vmem>>, vector<288x128xf32>
    %c54 = arith.constant 54 : index
    %c0_133 = arith.constant 0 : index
    %115 = vector.load %arg11[%c54, %c0_133] : memref<392x128xbf16, #tpu.memory_space<vmem>>, vector<288x128xbf16>
    %c13 = arith.constant 13 : index
    %c0_134 = arith.constant 0 : index
    %c0_135 = arith.constant 0 : index
    %116 = vector.load %arg4[%c13, %c0_134, %c0_135] : memref<25x128x128xbf16, #tpu.memory_space<vmem>>, vector<1x128x128xbf16>
    %117 = vector.shape_cast %116 : vector<1x128x128xbf16> to vector<128x128xbf16>
    %cst_136 = arith.constant dense<0.000000e+00> : vector<288x128xf32>
    %118 = tpu.matmul %115, %117, %cst_136 {dimension_numbers = #tpu.dot_dimension_numbers<[1], [0], [0], [1], [0, 0, 1, 1], [], []>} : vector<288x128xbf16>, vector<128x128xbf16>, vector<288x128xf32> -> vector<288x128xf32>
    %119 = arith.addf %114, %118 : vector<288x128xf32>
    %c0_137 = arith.constant 0 : index
    %c0_138 = arith.constant 0 : index
    %120 = vector.load %arg12[%c0_137, %c0_138] : memref<288x128xf32, #tpu.memory_space<vmem>>, vector<288x128xf32>
    tpu.vector_store %arg12[%c0_137, %c0_138], %119 {strides = array<i32>} : memref<288x128xf32, #tpu.memory_space<vmem>>, vector<288x128xf32>,
    %c0_139 = arith.constant 0 : index
    %c0_140 = arith.constant 0 : index
    %121 = vector.load %arg12[%c0_139, %c0_140] : memref<288x128xf32, #tpu.memory_space<vmem>>, vector<288x128xf32>
    %c56 = arith.constant 56 : index
    %c0_141 = arith.constant 0 : index
    %122 = vector.load %arg11[%c56, %c0_141] : memref<392x128xbf16, #tpu.memory_space<vmem>>, vector<288x128xbf16>
    %c14 = arith.constant 14 : index
    %c0_142 = arith.constant 0 : index
    %c0_143 = arith.constant 0 : index
    %123 = vector.load %arg4[%c14, %c0_142, %c0_143] : memref<25x128x128xbf16, #tpu.memory_space<vmem>>, vector<1x128x128xbf16>
    %124 = vector.shape_cast %123 : vector<1x128x128xbf16> to vector<128x128xbf16>
    %cst_144 = arith.constant dense<0.000000e+00> : vector<288x128xf32>
    %125 = tpu.matmul %122, %124, %cst_144 {dimension_numbers = #tpu.dot_dimension_numbers<[1], [0], [0], [1], [0, 0, 1, 1], [], []>} : vector<288x128xbf16>, vector<128x128xbf16>, vector<288x128xf32> -> vector<288x128xf32>
    %126 = arith.addf %121, %125 : vector<288x128xf32>
    %c0_145 = arith.constant 0 : index
    %c0_146 = arith.constant 0 : index
    %127 = vector.load %arg12[%c0_145, %c0_146] : memref<288x128xf32, #tpu.memory_space<vmem>>, vector<288x128xf32>
    tpu.vector_store %arg12[%c0_145, %c0_146], %126 {strides = array<i32>} : memref<288x128xf32, #tpu.memory_space<vmem>>, vector<288x128xf32>,
    %c0_147 = arith.constant 0 : index
    %c0_148 = arith.constant 0 : index
    %128 = vector.load %arg12[%c0_147, %c0_148] : memref<288x128xf32, #tpu.memory_space<vmem>>, vector<288x128xf32>
    %c72 = arith.constant 72 : index
    %c0_149 = arith.constant 0 : index
    %129 = vector.load %arg11[%c72, %c0_149] : memref<392x128xbf16, #tpu.memory_space<vmem>>, vector<288x128xbf16>
    %c15 = arith.constant 15 : index
    %c0_150 = arith.constant 0 : index
    %c0_151 = arith.constant 0 : index
    %130 = vector.load %arg4[%c15, %c0_150, %c0_151] : memref<25x128x128xbf16, #tpu.memory_space<vmem>>, vector<1x128x128xbf16>
    %131 = vector.shape_cast %130 : vector<1x128x128xbf16> to vector<128x128xbf16>
    %cst_152 = arith.constant dense<0.000000e+00> : vector<288x128xf32>
    %132 = tpu.matmul %129, %131, %cst_152 {dimension_numbers = #tpu.dot_dimension_numbers<[1], [0], [0], [1], [0, 0, 1, 1], [], []>} : vector<288x128xbf16>, vector<128x128xbf16>, vector<288x128xf32> -> vector<288x128xf32>
    %133 = arith.addf %128, %132 : vector<288x128xf32>
    %c0_153 = arith.constant 0 : index
    %c0_154 = arith.constant 0 : index
    %134 = vector.load %arg12[%c0_153, %c0_154] : memref<288x128xf32, #tpu.memory_space<vmem>>, vector<288x128xf32>
    tpu.vector_store %arg12[%c0_153, %c0_154], %133 {strides = array<i32>} : memref<288x128xf32, #tpu.memory_space<vmem>>, vector<288x128xf32>,
    %c0_155 = arith.constant 0 : index
    %c0_156 = arith.constant 0 : index
    %135 = vector.load %arg12[%c0_155, %c0_156] : memref<288x128xf32, #tpu.memory_space<vmem>>, vector<288x128xf32>
    %c74 = arith.constant 74 : index
    %c0_157 = arith.constant 0 : index
    %136 = vector.load %arg11[%c74, %c0_157] : memref<392x128xbf16, #tpu.memory_space<vmem>>, vector<288x128xbf16>
    %c16 = arith.constant 16 : index
    %c0_158 = arith.constant 0 : index
    %c0_159 = arith.constant 0 : index
    %137 = vector.load %arg4[%c16, %c0_158, %c0_159] : memref<25x128x128xbf16, #tpu.memory_space<vmem>>, vector<1x128x128xbf16>
    %138 = vector.shape_cast %137 : vector<1x128x128xbf16> to vector<128x128xbf16>
    %cst_160 = arith.constant dense<0.000000e+00> : vector<288x128xf32>
    %139 = tpu.matmul %136, %138, %cst_160 {dimension_numbers = #tpu.dot_dimension_numbers<[1], [0], [0], [1], [0, 0, 1, 1], [], []>} : vector<288x128xbf16>, vector<128x128xbf16>, vector<288x128xf32> -> vector<288x128xf32>
    %140 = arith.addf %135, %139 : vector<288x128xf32>
    %c0_161 = arith.constant 0 : index
    %c0_162 = arith.constant 0 : index
    %141 = vector.load %arg12[%c0_161, %c0_162] : memref<288x128xf32, #tpu.memory_space<vmem>>, vector<288x128xf32>
    tpu.vector_store %arg12[%c0_161, %c0_162], %140 {strides = array<i32>} : memref<288x128xf32, #tpu.memory_space<vmem>>, vector<288x128xf32>,
    %c0_163 = arith.constant 0 : index
    %c0_164 = arith.constant 0 : index
    %142 = vector.load %arg12[%c0_163, %c0_164] : memref<288x128xf32, #tpu.memory_space<vmem>>, vector<288x128xf32>
    %c76 = arith.constant 76 : index
    %c0_165 = arith.constant 0 : index
    %143 = vector.load %arg11[%c76, %c0_165] : memref<392x128xbf16, #tpu.memory_space<vmem>>, vector<288x128xbf16>
    %c17 = arith.constant 17 : index
    %c0_166 = arith.constant 0 : index
    %c0_167 = arith.constant 0 : index
    %144 = vector.load %arg4[%c17, %c0_166, %c0_167] : memref<25x128x128xbf16, #tpu.memory_space<vmem>>, vector<1x128x128xbf16>
    %145 = vector.shape_cast %144 : vector<1x128x128xbf16> to vector<128x128xbf16>
    %cst_168 = arith.constant dense<0.000000e+00> : vector<288x128xf32>
    %146 = tpu.matmul %143, %145, %cst_168 {dimension_numbers = #tpu.dot_dimension_numbers<[1], [0], [0], [1], [0, 0, 1, 1], [], []>} : vector<288x128xbf16>, vector<128x128xbf16>, vector<288x128xf32> -> vector<288x128xf32>
    %147 = arith.addf %142, %146 : vector<288x128xf32>
    %c0_169 = arith.constant 0 : index
    %c0_170 = arith.constant 0 : index
    %148 = vector.load %arg12[%c0_169, %c0_170] : memref<288x128xf32, #tpu.memory_space<vmem>>, vector<288x128xf32>
    tpu.vector_store %arg12[%c0_169, %c0_170], %147 {strides = array<i32>} : memref<288x128xf32, #tpu.memory_space<vmem>>, vector<288x128xf32>,
    %c0_171 = arith.constant 0 : index
    %c0_172 = arith.constant 0 : index
    %149 = vector.load %arg12[%c0_171, %c0_172] : memref<288x128xf32, #tpu.memory_space<vmem>>, vector<288x128xf32>
    %c78 = arith.constant 78 : index
    %c0_173 = arith.constant 0 : index
    %150 = vector.load %arg11[%c78, %c0_173] : memref<392x128xbf16, #tpu.memory_space<vmem>>, vector<288x128xbf16>
    %c18 = arith.constant 18 : index
    %c0_174 = arith.constant 0 : index
    %c0_175 = arith.constant 0 : index
    %151 = vector.load %arg4[%c18, %c0_174, %c0_175] : memref<25x128x128xbf16, #tpu.memory_space<vmem>>, vector<1x128x128xbf16>
    %152 = vector.shape_cast %151 : vector<1x128x128xbf16> to vector<128x128xbf16>
    %cst_176 = arith.constant dense<0.000000e+00> : vector<288x128xf32>
    %153 = tpu.matmul %150, %152, %cst_176 {dimension_numbers = #tpu.dot_dimension_numbers<[1], [0], [0], [1], [0, 0, 1, 1], [], []>} : vector<288x128xbf16>, vector<128x128xbf16>, vector<288x128xf32> -> vector<288x128xf32>
    %154 = arith.addf %149, %153 : vector<288x128xf32>
    %c0_177 = arith.constant 0 : index
    %c0_178 = arith.constant 0 : index
    %155 = vector.load %arg12[%c0_177, %c0_178] : memref<288x128xf32, #tpu.memory_space<vmem>>, vector<288x128xf32>
    tpu.vector_store %arg12[%c0_177, %c0_178], %154 {strides = array<i32>} : memref<288x128xf32, #tpu.memory_space<vmem>>, vector<288x128xf32>,
    %c0_179 = arith.constant 0 : index
    %c0_180 = arith.constant 0 : index
    %156 = vector.load %arg12[%c0_179, %c0_180] : memref<288x128xf32, #tpu.memory_space<vmem>>, vector<288x128xf32>
    %c80 = arith.constant 80 : index
    %c0_181 = arith.constant 0 : index
    %157 = vector.load %arg11[%c80, %c0_181] : memref<392x128xbf16, #tpu.memory_space<vmem>>, vector<288x128xbf16>
    %c19 = arith.constant 19 : index
    %c0_182 = arith.constant 0 : index
    %c0_183 = arith.constant 0 : index
    %158 = vector.load %arg4[%c19, %c0_182, %c0_183] : memref<25x128x128xbf16, #tpu.memory_space<vmem>>, vector<1x128x128xbf16>
    %159 = vector.shape_cast %158 : vector<1x128x128xbf16> to vector<128x128xbf16>
    %cst_184 = arith.constant dense<0.000000e+00> : vector<288x128xf32>
    %160 = tpu.matmul %157, %159, %cst_184 {dimension_numbers = #tpu.dot_dimension_numbers<[1], [0], [0], [1], [0, 0, 1, 1], [], []>} : vector<288x128xbf16>, vector<128x128xbf16>, vector<288x128xf32> -> vector<288x128xf32>
    %161 = arith.addf %156, %160 : vector<288x128xf32>
    %c0_185 = arith.constant 0 : index
    %c0_186 = arith.constant 0 : index
    %162 = vector.load %arg12[%c0_185, %c0_186] : memref<288x128xf32, #tpu.memory_space<vmem>>, vector<288x128xf32>
    tpu.vector_store %arg12[%c0_185, %c0_186], %161 {strides = array<i32>} : memref<288x128xf32, #tpu.memory_space<vmem>>, vector<288x128xf32>,
    %c0_187 = arith.constant 0 : index
    %c0_188 = arith.constant 0 : index
    %163 = vector.load %arg12[%c0_187, %c0_188] : memref<288x128xf32, #tpu.memory_space<vmem>>, vector<288x128xf32>
    %c96 = arith.constant 96 : index
    %c0_189 = arith.constant 0 : index
    %164 = vector.load %arg11[%c96, %c0_189] : memref<392x128xbf16, #tpu.memory_space<vmem>>, vector<288x128xbf16>
    %c20 = arith.constant 20 : index
    %c0_190 = arith.constant 0 : index
    %c0_191 = arith.constant 0 : index
    %165 = vector.load %arg4[%c20, %c0_190, %c0_191] : memref<25x128x128xbf16, #tpu.memory_space<vmem>>, vector<1x128x128xbf16>
    %166 = vector.shape_cast %165 : vector<1x128x128xbf16> to vector<128x128xbf16>
    %cst_192 = arith.constant dense<0.000000e+00> : vector<288x128xf32>
    %167 = tpu.matmul %164, %166, %cst_192 {dimension_numbers = #tpu.dot_dimension_numbers<[1], [0], [0], [1], [0, 0, 1, 1], [], []>} : vector<288x128xbf16>, vector<128x128xbf16>, vector<288x128xf32> -> vector<288x128xf32>
    %168 = arith.addf %163, %167 : vector<288x128xf32>
    %c0_193 = arith.constant 0 : index
    %c0_194 = arith.constant 0 : index
    %169 = vector.load %arg12[%c0_193, %c0_194] : memref<288x128xf32, #tpu.memory_space<vmem>>, vector<288x128xf32>
    tpu.vector_store %arg12[%c0_193, %c0_194], %168 {strides = array<i32>} : memref<288x128xf32, #tpu.memory_space<vmem>>, vector<288x128xf32>,
    %c0_195 = arith.constant 0 : index
    %c0_196 = arith.constant 0 : index
    %170 = vector.load %arg12[%c0_195, %c0_196] : memref<288x128xf32, #tpu.memory_space<vmem>>, vector<288x128xf32>
    %c98 = arith.constant 98 : index
    %c0_197 = arith.constant 0 : index
    %171 = vector.load %arg11[%c98, %c0_197] : memref<392x128xbf16, #tpu.memory_space<vmem>>, vector<288x128xbf16>
    %c21 = arith.constant 21 : index
    %c0_198 = arith.constant 0 : index
    %c0_199 = arith.constant 0 : index
    %172 = vector.load %arg4[%c21, %c0_198, %c0_199] : memref<25x128x128xbf16, #tpu.memory_space<vmem>>, vector<1x128x128xbf16>
    %173 = vector.shape_cast %172 : vector<1x128x128xbf16> to vector<128x128xbf16>
    %cst_200 = arith.constant dense<0.000000e+00> : vector<288x128xf32>
    %174 = tpu.matmul %171, %173, %cst_200 {dimension_numbers = #tpu.dot_dimension_numbers<[1], [0], [0], [1], [0, 0, 1, 1], [], []>} : vector<288x128xbf16>, vector<128x128xbf16>, vector<288x128xf32> -> vector<288x128xf32>
    %175 = arith.addf %170, %174 : vector<288x128xf32>
    %c0_201 = arith.constant 0 : index
    %c0_202 = arith.constant 0 : index
    %176 = vector.load %arg12[%c0_201, %c0_202] : memref<288x128xf32, #tpu.memory_space<vmem>>, vector<288x128xf32>
    tpu.vector_store %arg12[%c0_201, %c0_202], %175 {strides = array<i32>} : memref<288x128xf32, #tpu.memory_space<vmem>>, vector<288x128xf32>,
    %c0_203 = arith.constant 0 : index
    %c0_204 = arith.constant 0 : index
    %177 = vector.load %arg12[%c0_203, %c0_204] : memref<288x128xf32, #tpu.memory_space<vmem>>, vector<288x128xf32>
    %c100 = arith.constant 100 : index
    %c0_205 = arith.constant 0 : index
    %178 = vector.load %arg11[%c100, %c0_205] : memref<392x128xbf16, #tpu.memory_space<vmem>>, vector<288x128xbf16>
    %c22 = arith.constant 22 : index
    %c0_206 = arith.constant 0 : index
    %c0_207 = arith.constant 0 : index
    %179 = vector.load %arg4[%c22, %c0_206, %c0_207] : memref<25x128x128xbf16, #tpu.memory_space<vmem>>, vector<1x128x128xbf16>
    %180 = vector.shape_cast %179 : vector<1x128x128xbf16> to vector<128x128xbf16>
    %cst_208 = arith.constant dense<0.000000e+00> : vector<288x128xf32>
    %181 = tpu.matmul %178, %180, %cst_208 {dimension_numbers = #tpu.dot_dimension_numbers<[1], [0], [0], [1], [0, 0, 1, 1], [], []>} : vector<288x128xbf16>, vector<128x128xbf16>, vector<288x128xf32> -> vector<288x128xf32>
    %182 = arith.addf %177, %181 : vector<288x128xf32>
    %c0_209 = arith.constant 0 : index
    %c0_210 = arith.constant 0 : index
    %183 = vector.load %arg12[%c0_209, %c0_210] : memref<288x128xf32, #tpu.memory_space<vmem>>, vector<288x128xf32>
    tpu.vector_store %arg12[%c0_209, %c0_210], %182 {strides = array<i32>} : memref<288x128xf32, #tpu.memory_space<vmem>>, vector<288x128xf32>,
    %c0_211 = arith.constant 0 : index
    %c0_212 = arith.constant 0 : index
    %184 = vector.load %arg12[%c0_211, %c0_212] : memref<288x128xf32, #tpu.memory_space<vmem>>, vector<288x128xf32>
    %c102 = arith.constant 102 : index
    %c0_213 = arith.constant 0 : index
    %185 = vector.load %arg11[%c102, %c0_213] : memref<392x128xbf16, #tpu.memory_space<vmem>>, vector<288x128xbf16>
    %c23 = arith.constant 23 : index
    %c0_214 = arith.constant 0 : index
    %c0_215 = arith.constant 0 : index
    %186 = vector.load %arg4[%c23, %c0_214, %c0_215] : memref<25x128x128xbf16, #tpu.memory_space<vmem>>, vector<1x128x128xbf16>
    %187 = vector.shape_cast %186 : vector<1x128x128xbf16> to vector<128x128xbf16>
    %cst_216 = arith.constant dense<0.000000e+00> : vector<288x128xf32>
    %188 = tpu.matmul %185, %187, %cst_216 {dimension_numbers = #tpu.dot_dimension_numbers<[1], [0], [0], [1], [0, 0, 1, 1], [], []>} : vector<288x128xbf16>, vector<128x128xbf16>, vector<288x128xf32> -> vector<288x128xf32>
    %189 = arith.addf %184, %188 : vector<288x128xf32>
    %c0_217 = arith.constant 0 : index
    %c0_218 = arith.constant 0 : index
    %190 = vector.load %arg12[%c0_217, %c0_218] : memref<288x128xf32, #tpu.memory_space<vmem>>, vector<288x128xf32>
    tpu.vector_store %arg12[%c0_217, %c0_218], %189 {strides = array<i32>} : memref<288x128xf32, #tpu.memory_space<vmem>>, vector<288x128xf32>,
    %c0_219 = arith.constant 0 : index
    %c0_220 = arith.constant 0 : index
    %191 = vector.load %arg12[%c0_219, %c0_220] : memref<288x128xf32, #tpu.memory_space<vmem>>, vector<288x128xf32>
    %c104 = arith.constant 104 : index
    %c0_221 = arith.constant 0 : index
    %192 = vector.load %arg11[%c104, %c0_221] : memref<392x128xbf16, #tpu.memory_space<vmem>>, vector<288x128xbf16>
    %c24_222 = arith.constant 24 : index
    %c0_223 = arith.constant 0 : index
    %c0_224 = arith.constant 0 : index
    %193 = vector.load %arg4[%c24_222, %c0_223, %c0_224] : memref<25x128x128xbf16, #tpu.memory_space<vmem>>, vector<1x128x128xbf16>
    %194 = vector.shape_cast %193 : vector<1x128x128xbf16> to vector<128x128xbf16>
    %cst_225 = arith.constant dense<0.000000e+00> : vector<288x128xf32>
    %195 = tpu.matmul %192, %194, %cst_225 {dimension_numbers = #tpu.dot_dimension_numbers<[1], [0], [0], [1], [0, 0, 1, 1], [], []>} : vector<288x128xbf16>, vector<128x128xbf16>, vector<288x128xf32> -> vector<288x128xf32>
    %196 = arith.addf %191, %195 : vector<288x128xf32>
    %c0_226 = arith.constant 0 : index
    %c0_227 = arith.constant 0 : index
    %197 = vector.load %arg12[%c0_226, %c0_227] : memref<288x128xf32, #tpu.memory_space<vmem>>, vector<288x128xf32>
    tpu.vector_store %arg12[%c0_226, %c0_227], %196 {strides = array<i32>} : memref<288x128xf32, #tpu.memory_space<vmem>>, vector<288x128xf32>,
    %c0_228 = arith.constant 0 : index
    %c0_229 = arith.constant 0 : index
    %198 = vector.load %arg5[%c0_228, %c0_229] : memref<1x128xf32, #tpu.memory_space<vmem>>, vector<1x128xf32>
    %c0_230 = arith.constant 0 : index
    %c0_231 = arith.constant 0 : index
    %199 = vector.load %arg12[%c0_230, %c0_231] : memref<288x128xf32, #tpu.memory_space<vmem>>, vector<2x128xf32>
    %c2_232 = arith.constant 2 : index
    %c0_233 = arith.constant 0 : index
    %200 = vector.load %arg12[%c2_232, %c0_233] : memref<288x128xf32, #tpu.memory_space<vmem>>, vector<2x128xf32>
    %201 = arith.maximumf %199, %200 : vector<2x128xf32>
    %c24_234 = arith.constant 24 : index
    %c0_235 = arith.constant 0 : index
    %202 = vector.load %arg12[%c24_234, %c0_235] : memref<288x128xf32, #tpu.memory_space<vmem>>, vector<2x128xf32>
    %c26_236 = arith.constant 26 : index
    %c0_237 = arith.constant 0 : index
    %203 = vector.load %arg12[%c26_236, %c0_237] : memref<288x128xf32, #tpu.memory_space<vmem>>, vector<2x128xf32>
    %204 = arith.maximumf %202, %203 : vector<2x128xf32>
    %205 = arith.maximumf %201, %204 : vector<2x128xf32>
    %206 = vector.broadcast %198 : vector<1x128xf32> to vector<2x128xf32>
    %207 = arith.addf %205, %206 : vector<2x128xf32>
    %cst_238 = arith.constant 0.000000e+00 : f32
    %208 = vector.broadcast %cst_238 : f32 to vector<2x128xf32>
    %209 = arith.maximumf %207, %208 : vector<2x128xf32>
    %210 = arith.truncf %209 : vector<2x128xf32> to vector<2x128xbf16>
    %c0_239 = arith.constant 0 : index
    %c0_240 = arith.constant 0 : index
    %c0_241 = arith.constant 0 : index
    %211 = vector.load %arg6[%c0_239, %c0_240, %c0_241] : memref<16x128x128xbf16, #tpu.memory_space<vmem>>, vector<1x128x128xbf16>
    %212 = vector.shape_cast %211 : vector<1x128x128xbf16> to vector<128x128xbf16>
    %cst_242 = arith.constant dense<0.000000e+00> : vector<2x128xf32>
    %213 = tpu.matmul %210, %212, %cst_242 {dimension_numbers = #tpu.dot_dimension_numbers<[1], [0], [0], [1], [0, 0, 1, 1], [], []>} : vector<2x128xbf16>, vector<128x128xbf16>, vector<2x128xf32> -> vector<2x128xf32>
    %c4_243 = arith.constant 4 : index
    %c0_244 = arith.constant 0 : index
    %214 = vector.load %arg12[%c4_243, %c0_244] : memref<288x128xf32, #tpu.memory_space<vmem>>, vector<2x128xf32>
    %c6_245 = arith.constant 6 : index
    %c0_246 = arith.constant 0 : index
    %215 = vector.load %arg12[%c6_245, %c0_246] : memref<288x128xf32, #tpu.memory_space<vmem>>, vector<2x128xf32>
    %216 = arith.maximumf %214, %215 : vector<2x128xf32>
    %c28_247 = arith.constant 28 : index
    %c0_248 = arith.constant 0 : index
    %217 = vector.load %arg12[%c28_247, %c0_248] : memref<288x128xf32, #tpu.memory_space<vmem>>, vector<2x128xf32>
    %c30_249 = arith.constant 30 : index
    %c0_250 = arith.constant 0 : index
    %218 = vector.load %arg12[%c30_249, %c0_250] : memref<288x128xf32, #tpu.memory_space<vmem>>, vector<2x128xf32>
    %219 = arith.maximumf %217, %218 : vector<2x128xf32>
    %220 = arith.maximumf %216, %219 : vector<2x128xf32>
    %221 = vector.broadcast %198 : vector<1x128xf32> to vector<2x128xf32>
    %222 = arith.addf %220, %221 : vector<2x128xf32>
    %cst_251 = arith.constant 0.000000e+00 : f32
    %223 = vector.broadcast %cst_251 : f32 to vector<2x128xf32>
    %224 = arith.maximumf %222, %223 : vector<2x128xf32>
    %225 = arith.truncf %224 : vector<2x128xf32> to vector<2x128xbf16>
    %c1_252 = arith.constant 1 : index
    %c0_253 = arith.constant 0 : index
    %c0_254 = arith.constant 0 : index
    %226 = vector.load %arg6[%c1_252, %c0_253, %c0_254] : memref<16x128x128xbf16, #tpu.memory_space<vmem>>, vector<1x128x128xbf16>
    %227 = vector.shape_cast %226 : vector<1x128x128xbf16> to vector<128x128xbf16>
    %cst_255 = arith.constant dense<0.000000e+00> : vector<2x128xf32>
    %228 = tpu.matmul %225, %227, %cst_255 {dimension_numbers = #tpu.dot_dimension_numbers<[1], [0], [0], [1], [0, 0, 1, 1], [], []>} : vector<2x128xbf16>, vector<128x128xbf16>, vector<2x128xf32> -> vector<2x128xf32>
    %229 = arith.addf %213, %228 : vector<2x128xf32>
    %c8_256 = arith.constant 8 : index
    %c0_257 = arith.constant 0 : index
    %230 = vector.load %arg12[%c8_256, %c0_257] : memref<288x128xf32, #tpu.memory_space<vmem>>, vector<2x128xf32>
    %c10_258 = arith.constant 10 : index
    %c0_259 = arith.constant 0 : index
    %231 = vector.load %arg12[%c10_258, %c0_259] : memref<288x128xf32, #tpu.memory_space<vmem>>, vector<2x128xf32>
    %232 = arith.maximumf %230, %231 : vector<2x128xf32>
    %c32_260 = arith.constant 32 : index
    %c0_261 = arith.constant 0 : index
    %233 = vector.load %arg12[%c32_260, %c0_261] : memref<288x128xf32, #tpu.memory_space<vmem>>, vector<2x128xf32>
    %c34 = arith.constant 34 : index
    %c0_262 = arith.constant 0 : index
    %234 = vector.load %arg12[%c34, %c0_262] : memref<288x128xf32, #tpu.memory_space<vmem>>, vector<2x128xf32>
    %235 = arith.maximumf %233, %234 : vector<2x128xf32>
    %236 = arith.maximumf %232, %235 : vector<2x128xf32>
    %237 = vector.broadcast %198 : vector<1x128xf32> to vector<2x128xf32>
    %238 = arith.addf %236, %237 : vector<2x128xf32>
    %cst_263 = arith.constant 0.000000e+00 : f32
    %239 = vector.broadcast %cst_263 : f32 to vector<2x128xf32>
    %240 = arith.maximumf %238, %239 : vector<2x128xf32>
    %241 = arith.truncf %240 : vector<2x128xf32> to vector<2x128xbf16>
    %c2_264 = arith.constant 2 : index
    %c0_265 = arith.constant 0 : index
    %c0_266 = arith.constant 0 : index
    %242 = vector.load %arg6[%c2_264, %c0_265, %c0_266] : memref<16x128x128xbf16, #tpu.memory_space<vmem>>, vector<1x128x128xbf16>
    %243 = vector.shape_cast %242 : vector<1x128x128xbf16> to vector<128x128xbf16>
    %cst_267 = arith.constant dense<0.000000e+00> : vector<2x128xf32>
    %244 = tpu.matmul %241, %243, %cst_267 {dimension_numbers = #tpu.dot_dimension_numbers<[1], [0], [0], [1], [0, 0, 1, 1], [], []>} : vector<2x128xbf16>, vector<128x128xbf16>, vector<2x128xf32> -> vector<2x128xf32>
    %245 = arith.addf %229, %244 : vector<2x128xf32>
    %c12_268 = arith.constant 12 : index
    %c0_269 = arith.constant 0 : index
    %246 = vector.load %arg12[%c12_268, %c0_269] : memref<288x128xf32, #tpu.memory_space<vmem>>, vector<2x128xf32>
    %c14_270 = arith.constant 14 : index
    %c0_271 = arith.constant 0 : index
    %247 = vector.load %arg12[%c14_270, %c0_271] : memref<288x128xf32, #tpu.memory_space<vmem>>, vector<2x128xf32>
    %248 = arith.maximumf %246, %247 : vector<2x128xf32>
    %c36 = arith.constant 36 : index
    %c0_272 = arith.constant 0 : index
    %249 = vector.load %arg12[%c36, %c0_272] : memref<288x128xf32, #tpu.memory_space<vmem>>, vector<2x128xf32>
    %c38 = arith.constant 38 : index
    %c0_273 = arith.constant 0 : index
    %250 = vector.load %arg12[%c38, %c0_273] : memref<288x128xf32, #tpu.memory_space<vmem>>, vector<2x128xf32>
    %251 = arith.maximumf %249, %250 : vector<2x128xf32>
    %252 = arith.maximumf %248, %251 : vector<2x128xf32>
    %253 = vector.broadcast %198 : vector<1x128xf32> to vector<2x128xf32>
    %254 = arith.addf %252, %253 : vector<2x128xf32>
    %cst_274 = arith.constant 0.000000e+00 : f32
    %255 = vector.broadcast %cst_274 : f32 to vector<2x128xf32>
    %256 = arith.maximumf %254, %255 : vector<2x128xf32>
    %257 = arith.truncf %256 : vector<2x128xf32> to vector<2x128xbf16>
    %c3_275 = arith.constant 3 : index
    %c0_276 = arith.constant 0 : index
    %c0_277 = arith.constant 0 : index
    %258 = vector.load %arg6[%c3_275, %c0_276, %c0_277] : memref<16x128x128xbf16, #tpu.memory_space<vmem>>, vector<1x128x128xbf16>
    %259 = vector.shape_cast %258 : vector<1x128x128xbf16> to vector<128x128xbf16>
    %cst_278 = arith.constant dense<0.000000e+00> : vector<2x128xf32>
    %260 = tpu.matmul %257, %259, %cst_278 {dimension_numbers = #tpu.dot_dimension_numbers<[1], [0], [0], [1], [0, 0, 1, 1], [], []>} : vector<2x128xbf16>, vector<128x128xbf16>, vector<2x128xf32> -> vector<2x128xf32>
    %261 = arith.addf %245, %260 : vector<2x128xf32>
    %c48_279 = arith.constant 48 : index
    %c0_280 = arith.constant 0 : index
    %262 = vector.load %arg12[%c48_279, %c0_280] : memref<288x128xf32, #tpu.memory_space<vmem>>, vector<2x128xf32>
    %c50_281 = arith.constant 50 : index
    %c0_282 = arith.constant 0 : index
    %263 = vector.load %arg12[%c50_281, %c0_282] : memref<288x128xf32, #tpu.memory_space<vmem>>, vector<2x128xf32>
    %264 = arith.maximumf %262, %263 : vector<2x128xf32>
    %c72_283 = arith.constant 72 : index
    %c0_284 = arith.constant 0 : index
    %265 = vector.load %arg12[%c72_283, %c0_284] : memref<288x128xf32, #tpu.memory_space<vmem>>, vector<2x128xf32>
    %c74_285 = arith.constant 74 : index
    %c0_286 = arith.constant 0 : index
    %266 = vector.load %arg12[%c74_285, %c0_286] : memref<288x128xf32, #tpu.memory_space<vmem>>, vector<2x128xf32>
    %267 = arith.maximumf %265, %266 : vector<2x128xf32>
    %268 = arith.maximumf %264, %267 : vector<2x128xf32>
    %269 = vector.broadcast %198 : vector<1x128xf32> to vector<2x128xf32>
    %270 = arith.addf %268, %269 : vector<2x128xf32>
    %cst_287 = arith.constant 0.000000e+00 : f32
    %271 = vector.broadcast %cst_287 : f32 to vector<2x128xf32>
    %272 = arith.maximumf %270, %271 : vector<2x128xf32>
    %273 = arith.truncf %272 : vector<2x128xf32> to vector<2x128xbf16>
    %c4_288 = arith.constant 4 : index
    %c0_289 = arith.constant 0 : index
    %c0_290 = arith.constant 0 : index
    %274 = vector.load %arg6[%c4_288, %c0_289, %c0_290] : memref<16x128x128xbf16, #tpu.memory_space<vmem>>, vector<1x128x128xbf16>
    %275 = vector.shape_cast %274 : vector<1x128x128xbf16> to vector<128x128xbf16>
    %cst_291 = arith.constant dense<0.000000e+00> : vector<2x128xf32>
    %276 = tpu.matmul %273, %275, %cst_291 {dimension_numbers = #tpu.dot_dimension_numbers<[1], [0], [0], [1], [0, 0, 1, 1], [], []>} : vector<2x128xbf16>, vector<128x128xbf16>, vector<2x128xf32> -> vector<2x128xf32>
    %277 = arith.addf %261, %276 : vector<2x128xf32>
    %c52_292 = arith.constant 52 : index
    %c0_293 = arith.constant 0 : index
    %278 = vector.load %arg12[%c52_292, %c0_293] : memref<288x128xf32, #tpu.memory_space<vmem>>, vector<2x128xf32>
    %c54_294 = arith.constant 54 : index
    %c0_295 = arith.constant 0 : index
    %279 = vector.load %arg12[%c54_294, %c0_295] : memref<288x128xf32, #tpu.memory_space<vmem>>, vector<2x128xf32>
    %280 = arith.maximumf %278, %279 : vector<2x128xf32>
    %c76_296 = arith.constant 76 : index
    %c0_297 = arith.constant 0 : index
    %281 = vector.load %arg12[%c76_296, %c0_297] : memref<288x128xf32, #tpu.memory_space<vmem>>, vector<2x128xf32>
    %c78_298 = arith.constant 78 : index
    %c0_299 = arith.constant 0 : index
    %282 = vector.load %arg12[%c78_298, %c0_299] : memref<288x128xf32, #tpu.memory_space<vmem>>, vector<2x128xf32>
    %283 = arith.maximumf %281, %282 : vector<2x128xf32>
    %284 = arith.maximumf %280, %283 : vector<2x128xf32>
    %285 = vector.broadcast %198 : vector<1x128xf32> to vector<2x128xf32>
    %286 = arith.addf %284, %285 : vector<2x128xf32>
    %cst_300 = arith.constant 0.000000e+00 : f32
    %287 = vector.broadcast %cst_300 : f32 to vector<2x128xf32>
    %288 = arith.maximumf %286, %287 : vector<2x128xf32>
    %289 = arith.truncf %288 : vector<2x128xf32> to vector<2x128xbf16>
    %c5_301 = arith.constant 5 : index
    %c0_302 = arith.constant 0 : index
    %c0_303 = arith.constant 0 : index
    %290 = vector.load %arg6[%c5_301, %c0_302, %c0_303] : memref<16x128x128xbf16, #tpu.memory_space<vmem>>, vector<1x128x128xbf16>
    %291 = vector.shape_cast %290 : vector<1x128x128xbf16> to vector<128x128xbf16>
    %cst_304 = arith.constant dense<0.000000e+00> : vector<2x128xf32>
    %292 = tpu.matmul %289, %291, %cst_304 {dimension_numbers = #tpu.dot_dimension_numbers<[1], [0], [0], [1], [0, 0, 1, 1], [], []>} : vector<2x128xbf16>, vector<128x128xbf16>, vector<2x128xf32> -> vector<2x128xf32>
    %293 = arith.addf %277, %292 : vector<2x128xf32>
    %c56_305 = arith.constant 56 : index
    %c0_306 = arith.constant 0 : index
    %294 = vector.load %arg12[%c56_305, %c0_306] : memref<288x128xf32, #tpu.memory_space<vmem>>, vector<2x128xf32>
    %c58 = arith.constant 58 : index
    %c0_307 = arith.constant 0 : index
    %295 = vector.load %arg12[%c58, %c0_307] : memref<288x128xf32, #tpu.memory_space<vmem>>, vector<2x128xf32>
    %296 = arith.maximumf %294, %295 : vector<2x128xf32>
    %c80_308 = arith.constant 80 : index
    %c0_309 = arith.constant 0 : index
    %297 = vector.load %arg12[%c80_308, %c0_309] : memref<288x128xf32, #tpu.memory_space<vmem>>, vector<2x128xf32>
    %c82 = arith.constant 82 : index
    %c0_310 = arith.constant 0 : index
    %298 = vector.load %arg12[%c82, %c0_310] : memref<288x128xf32, #tpu.memory_space<vmem>>, vector<2x128xf32>
    %299 = arith.maximumf %297, %298 : vector<2x128xf32>
    %300 = arith.maximumf %296, %299 : vector<2x128xf32>
    %301 = vector.broadcast %198 : vector<1x128xf32> to vector<2x128xf32>
    %302 = arith.addf %300, %301 : vector<2x128xf32>
    %cst_311 = arith.constant 0.000000e+00 : f32
    %303 = vector.broadcast %cst_311 : f32 to vector<2x128xf32>
    %304 = arith.maximumf %302, %303 : vector<2x128xf32>
    %305 = arith.truncf %304 : vector<2x128xf32> to vector<2x128xbf16>
    %c6_312 = arith.constant 6 : index
    %c0_313 = arith.constant 0 : index
    %c0_314 = arith.constant 0 : index
    %306 = vector.load %arg6[%c6_312, %c0_313, %c0_314] : memref<16x128x128xbf16, #tpu.memory_space<vmem>>, vector<1x128x128xbf16>
    %307 = vector.shape_cast %306 : vector<1x128x128xbf16> to vector<128x128xbf16>
    %cst_315 = arith.constant dense<0.000000e+00> : vector<2x128xf32>
    %308 = tpu.matmul %305, %307, %cst_315 {dimension_numbers = #tpu.dot_dimension_numbers<[1], [0], [0], [1], [0, 0, 1, 1], [], []>} : vector<2x128xbf16>, vector<128x128xbf16>, vector<2x128xf32> -> vector<2x128xf32>
    %309 = arith.addf %293, %308 : vector<2x128xf32>
    %c60 = arith.constant 60 : index
    %c0_316 = arith.constant 0 : index
    %310 = vector.load %arg12[%c60, %c0_316] : memref<288x128xf32, #tpu.memory_space<vmem>>, vector<2x128xf32>
    %c62 = arith.constant 62 : index
    %c0_317 = arith.constant 0 : index
    %311 = vector.load %arg12[%c62, %c0_317] : memref<288x128xf32, #tpu.memory_space<vmem>>, vector<2x128xf32>
    %312 = arith.maximumf %310, %311 : vector<2x128xf32>
    %c84 = arith.constant 84 : index
    %c0_318 = arith.constant 0 : index
    %313 = vector.load %arg12[%c84, %c0_318] : memref<288x128xf32, #tpu.memory_space<vmem>>, vector<2x128xf32>
    %c86 = arith.constant 86 : index
    %c0_319 = arith.constant 0 : index
    %314 = vector.load %arg12[%c86, %c0_319] : memref<288x128xf32, #tpu.memory_space<vmem>>, vector<2x128xf32>
    %315 = arith.maximumf %313, %314 : vector<2x128xf32>
    %316 = arith.maximumf %312, %315 : vector<2x128xf32>
    %317 = vector.broadcast %198 : vector<1x128xf32> to vector<2x128xf32>
    %318 = arith.addf %316, %317 : vector<2x128xf32>
    %cst_320 = arith.constant 0.000000e+00 : f32
    %319 = vector.broadcast %cst_320 : f32 to vector<2x128xf32>
    %320 = arith.maximumf %318, %319 : vector<2x128xf32>
    %321 = arith.truncf %320 : vector<2x128xf32> to vector<2x128xbf16>
    %c7_321 = arith.constant 7 : index
    %c0_322 = arith.constant 0 : index
    %c0_323 = arith.constant 0 : index
    %322 = vector.load %arg6[%c7_321, %c0_322, %c0_323] : memref<16x128x128xbf16, #tpu.memory_space<vmem>>, vector<1x128x128xbf16>
    %323 = vector.shape_cast %322 : vector<1x128x128xbf16> to vector<128x128xbf16>
    %cst_324 = arith.constant dense<0.000000e+00> : vector<2x128xf32>
    %324 = tpu.matmul %321, %323, %cst_324 {dimension_numbers = #tpu.dot_dimension_numbers<[1], [0], [0], [1], [0, 0, 1, 1], [], []>} : vector<2x128xbf16>, vector<128x128xbf16>, vector<2x128xf32> -> vector<2x128xf32>
    %325 = arith.addf %309, %324 : vector<2x128xf32>
    %c96_325 = arith.constant 96 : index
    %c0_326 = arith.constant 0 : index
    %326 = vector.load %arg12[%c96_325, %c0_326] : memref<288x128xf32, #tpu.memory_space<vmem>>, vector<2x128xf32>
    %c98_327 = arith.constant 98 : index
    %c0_328 = arith.constant 0 : index
    %327 = vector.load %arg12[%c98_327, %c0_328] : memref<288x128xf32, #tpu.memory_space<vmem>>, vector<2x128xf32>
    %328 = arith.maximumf %326, %327 : vector<2x128xf32>
    %c120 = arith.constant 120 : index
    %c0_329 = arith.constant 0 : index
    %329 = vector.load %arg12[%c120, %c0_329] : memref<288x128xf32, #tpu.memory_space<vmem>>, vector<2x128xf32>
    %c122 = arith.constant 122 : index
    %c0_330 = arith.constant 0 : index
    %330 = vector.load %arg12[%c122, %c0_330] : memref<288x128xf32, #tpu.memory_space<vmem>>, vector<2x128xf32>
    %331 = arith.maximumf %329, %330 : vector<2x128xf32>
    %332 = arith.maximumf %328, %331 : vector<2x128xf32>
    %333 = vector.broadcast %198 : vector<1x128xf32> to vector<2x128xf32>
    %334 = arith.addf %332, %333 : vector<2x128xf32>
    %cst_331 = arith.constant 0.000000e+00 : f32
    %335 = vector.broadcast %cst_331 : f32 to vector<2x128xf32>
    %336 = arith.maximumf %334, %335 : vector<2x128xf32>
    %337 = arith.truncf %336 : vector<2x128xf32> to vector<2x128xbf16>
    %c8_332 = arith.constant 8 : index
    %c0_333 = arith.constant 0 : index
    %c0_334 = arith.constant 0 : index
    %338 = vector.load %arg6[%c8_332, %c0_333, %c0_334] : memref<16x128x128xbf16, #tpu.memory_space<vmem>>, vector<1x128x128xbf16>
    %339 = vector.shape_cast %338 : vector<1x128x128xbf16> to vector<128x128xbf16>
    %cst_335 = arith.constant dense<0.000000e+00> : vector<2x128xf32>
    %340 = tpu.matmul %337, %339, %cst_335 {dimension_numbers = #tpu.dot_dimension_numbers<[1], [0], [0], [1], [0, 0, 1, 1], [], []>} : vector<2x128xbf16>, vector<128x128xbf16>, vector<2x128xf32> -> vector<2x128xf32>
    %341 = arith.addf %325, %340 : vector<2x128xf32>
    %c100_336 = arith.constant 100 : index
    %c0_337 = arith.constant 0 : index
    %342 = vector.load %arg12[%c100_336, %c0_337] : memref<288x128xf32, #tpu.memory_space<vmem>>, vector<2x128xf32>
    %c102_338 = arith.constant 102 : index
    %c0_339 = arith.constant 0 : index
    %343 = vector.load %arg12[%c102_338, %c0_339] : memref<288x128xf32, #tpu.memory_space<vmem>>, vector<2x128xf32>
    %344 = arith.maximumf %342, %343 : vector<2x128xf32>
    %c124 = arith.constant 124 : index
    %c0_340 = arith.constant 0 : index
    %345 = vector.load %arg12[%c124, %c0_340] : memref<288x128xf32, #tpu.memory_space<vmem>>, vector<2x128xf32>
    %c126 = arith.constant 126 : index
    %c0_341 = arith.constant 0 : index
    %346 = vector.load %arg12[%c126, %c0_341] : memref<288x128xf32, #tpu.memory_space<vmem>>, vector<2x128xf32>
    %347 = arith.maximumf %345, %346 : vector<2x128xf32>
    %348 = arith.maximumf %344, %347 : vector<2x128xf32>
    %349 = vector.broadcast %198 : vector<1x128xf32> to vector<2x128xf32>
    %350 = arith.addf %348, %349 : vector<2x128xf32>
    %cst_342 = arith.constant 0.000000e+00 : f32
    %351 = vector.broadcast %cst_342 : f32 to vector<2x128xf32>
    %352 = arith.maximumf %350, %351 : vector<2x128xf32>
    %353 = arith.truncf %352 : vector<2x128xf32> to vector<2x128xbf16>
    %c9_343 = arith.constant 9 : index
    %c0_344 = arith.constant 0 : index
    %c0_345 = arith.constant 0 : index
    %354 = vector.load %arg6[%c9_343, %c0_344, %c0_345] : memref<16x128x128xbf16, #tpu.memory_space<vmem>>, vector<1x128x128xbf16>
    %355 = vector.shape_cast %354 : vector<1x128x128xbf16> to vector<128x128xbf16>
    %cst_346 = arith.constant dense<0.000000e+00> : vector<2x128xf32>
    %356 = tpu.matmul %353, %355, %cst_346 {dimension_numbers = #tpu.dot_dimension_numbers<[1], [0], [0], [1], [0, 0, 1, 1], [], []>} : vector<2x128xbf16>, vector<128x128xbf16>, vector<2x128xf32> -> vector<2x128xf32>
    %357 = arith.addf %341, %356 : vector<2x128xf32>
    %c104_347 = arith.constant 104 : index
    %c0_348 = arith.constant 0 : index
    %358 = vector.load %arg12[%c104_347, %c0_348] : memref<288x128xf32, #tpu.memory_space<vmem>>, vector<2x128xf32>
    %c106 = arith.constant 106 : index
    %c0_349 = arith.constant 0 : index
    %359 = vector.load %arg12[%c106, %c0_349] : memref<288x128xf32, #tpu.memory_space<vmem>>, vector<2x128xf32>
    %360 = arith.maximumf %358, %359 : vector<2x128xf32>
    %c128 = arith.constant 128 : index
    %c0_350 = arith.constant 0 : index
    %361 = vector.load %arg12[%c128, %c0_350] : memref<288x128xf32, #tpu.memory_space<vmem>>, vector<2x128xf32>
    %c130 = arith.constant 130 : index
    %c0_351 = arith.constant 0 : index
    %362 = vector.load %arg12[%c130, %c0_351] : memref<288x128xf32, #tpu.memory_space<vmem>>, vector<2x128xf32>
    %363 = arith.maximumf %361, %362 : vector<2x128xf32>
    %364 = arith.maximumf %360, %363 : vector<2x128xf32>
    %365 = vector.broadcast %198 : vector<1x128xf32> to vector<2x128xf32>
    %366 = arith.addf %364, %365 : vector<2x128xf32>
    %cst_352 = arith.constant 0.000000e+00 : f32
    %367 = vector.broadcast %cst_352 : f32 to vector<2x128xf32>
    %368 = arith.maximumf %366, %367 : vector<2x128xf32>
    %369 = arith.truncf %368 : vector<2x128xf32> to vector<2x128xbf16>
    %c10_353 = arith.constant 10 : index
    %c0_354 = arith.constant 0 : index
    %c0_355 = arith.constant 0 : index
    %370 = vector.load %arg6[%c10_353, %c0_354, %c0_355] : memref<16x128x128xbf16, #tpu.memory_space<vmem>>, vector<1x128x128xbf16>
    %371 = vector.shape_cast %370 : vector<1x128x128xbf16> to vector<128x128xbf16>
    %cst_356 = arith.constant dense<0.000000e+00> : vector<2x128xf32>
    %372 = tpu.matmul %369, %371, %cst_356 {dimension_numbers = #tpu.dot_dimension_numbers<[1], [0], [0], [1], [0, 0, 1, 1], [], []>} : vector<2x128xbf16>, vector<128x128xbf16>, vector<2x128xf32> -> vector<2x128xf32>
    %373 = arith.addf %357, %372 : vector<2x128xf32>
    %c108 = arith.constant 108 : index
    %c0_357 = arith.constant 0 : index
    %374 = vector.load %arg12[%c108, %c0_357] : memref<288x128xf32, #tpu.memory_space<vmem>>, vector<2x128xf32>
    %c110 = arith.constant 110 : index
    %c0_358 = arith.constant 0 : index
    %375 = vector.load %arg12[%c110, %c0_358] : memref<288x128xf32, #tpu.memory_space<vmem>>, vector<2x128xf32>
    %376 = arith.maximumf %374, %375 : vector<2x128xf32>
    %c132 = arith.constant 132 : index
    %c0_359 = arith.constant 0 : index
    %377 = vector.load %arg12[%c132, %c0_359] : memref<288x128xf32, #tpu.memory_space<vmem>>, vector<2x128xf32>
    %c134 = arith.constant 134 : index
    %c0_360 = arith.constant 0 : index
    %378 = vector.load %arg12[%c134, %c0_360] : memref<288x128xf32, #tpu.memory_space<vmem>>, vector<2x128xf32>
    %379 = arith.maximumf %377, %378 : vector<2x128xf32>
    %380 = arith.maximumf %376, %379 : vector<2x128xf32>
    %381 = vector.broadcast %198 : vector<1x128xf32> to vector<2x128xf32>
    %382 = arith.addf %380, %381 : vector<2x128xf32>
    %cst_361 = arith.constant 0.000000e+00 : f32
    %383 = vector.broadcast %cst_361 : f32 to vector<2x128xf32>
    %384 = arith.maximumf %382, %383 : vector<2x128xf32>
    %385 = arith.truncf %384 : vector<2x128xf32> to vector<2x128xbf16>
    %c11_362 = arith.constant 11 : index
    %c0_363 = arith.constant 0 : index
    %c0_364 = arith.constant 0 : index
    %386 = vector.load %arg6[%c11_362, %c0_363, %c0_364] : memref<16x128x128xbf16, #tpu.memory_space<vmem>>, vector<1x128x128xbf16>
    %387 = vector.shape_cast %386 : vector<1x128x128xbf16> to vector<128x128xbf16>
    %cst_365 = arith.constant dense<0.000000e+00> : vector<2x128xf32>
    %388 = tpu.matmul %385, %387, %cst_365 {dimension_numbers = #tpu.dot_dimension_numbers<[1], [0], [0], [1], [0, 0, 1, 1], [], []>} : vector<2x128xbf16>, vector<128x128xbf16>, vector<2x128xf32> -> vector<2x128xf32>
    %389 = arith.addf %373, %388 : vector<2x128xf32>
    %c144 = arith.constant 144 : index
    %c0_366 = arith.constant 0 : index
    %390 = vector.load %arg12[%c144, %c0_366] : memref<288x128xf32, #tpu.memory_space<vmem>>, vector<2x128xf32>
    %c146 = arith.constant 146 : index
    %c0_367 = arith.constant 0 : index
    %391 = vector.load %arg12[%c146, %c0_367] : memref<288x128xf32, #tpu.memory_space<vmem>>, vector<2x128xf32>
    %392 = arith.maximumf %390, %391 : vector<2x128xf32>
    %c168 = arith.constant 168 : index
    %c0_368 = arith.constant 0 : index
    %393 = vector.load %arg12[%c168, %c0_368] : memref<288x128xf32, #tpu.memory_space<vmem>>, vector<2x128xf32>
    %c170 = arith.constant 170 : index
    %c0_369 = arith.constant 0 : index
    %394 = vector.load %arg12[%c170, %c0_369] : memref<288x128xf32, #tpu.memory_space<vmem>>, vector<2x128xf32>
    %395 = arith.maximumf %393, %394 : vector<2x128xf32>
    %396 = arith.maximumf %392, %395 : vector<2x128xf32>
    %397 = vector.broadcast %198 : vector<1x128xf32> to vector<2x128xf32>
    %398 = arith.addf %396, %397 : vector<2x128xf32>
    %cst_370 = arith.constant 0.000000e+00 : f32
    %399 = vector.broadcast %cst_370 : f32 to vector<2x128xf32>
    %400 = arith.maximumf %398, %399 : vector<2x128xf32>
    %401 = arith.truncf %400 : vector<2x128xf32> to vector<2x128xbf16>
    %c12_371 = arith.constant 12 : index
    %c0_372 = arith.constant 0 : index
    %c0_373 = arith.constant 0 : index
    %402 = vector.load %arg6[%c12_371, %c0_372, %c0_373] : memref<16x128x128xbf16, #tpu.memory_space<vmem>>, vector<1x128x128xbf16>
    %403 = vector.shape_cast %402 : vector<1x128x128xbf16> to vector<128x128xbf16>
    %cst_374 = arith.constant dense<0.000000e+00> : vector<2x128xf32>
    %404 = tpu.matmul %401, %403, %cst_374 {dimension_numbers = #tpu.dot_dimension_numbers<[1], [0], [0], [1], [0, 0, 1, 1], [], []>} : vector<2x128xbf16>, vector<128x128xbf16>, vector<2x128xf32> -> vector<2x128xf32>
    %405 = arith.addf %389, %404 : vector<2x128xf32>
    %c148 = arith.constant 148 : index
    %c0_375 = arith.constant 0 : index
    %406 = vector.load %arg12[%c148, %c0_375] : memref<288x128xf32, #tpu.memory_space<vmem>>, vector<2x128xf32>
    %c150 = arith.constant 150 : index
    %c0_376 = arith.constant 0 : index
    %407 = vector.load %arg12[%c150, %c0_376] : memref<288x128xf32, #tpu.memory_space<vmem>>, vector<2x128xf32>
    %408 = arith.maximumf %406, %407 : vector<2x128xf32>
    %c172 = arith.constant 172 : index
    %c0_377 = arith.constant 0 : index
    %409 = vector.load %arg12[%c172, %c0_377] : memref<288x128xf32, #tpu.memory_space<vmem>>, vector<2x128xf32>
    %c174 = arith.constant 174 : index
    %c0_378 = arith.constant 0 : index
    %410 = vector.load %arg12[%c174, %c0_378] : memref<288x128xf32, #tpu.memory_space<vmem>>, vector<2x128xf32>
    %411 = arith.maximumf %409, %410 : vector<2x128xf32>
    %412 = arith.maximumf %408, %411 : vector<2x128xf32>
    %413 = vector.broadcast %198 : vector<1x128xf32> to vector<2x128xf32>
    %414 = arith.addf %412, %413 : vector<2x128xf32>
    %cst_379 = arith.constant 0.000000e+00 : f32
    %415 = vector.broadcast %cst_379 : f32 to vector<2x128xf32>
    %416 = arith.maximumf %414, %415 : vector<2x128xf32>
    %417 = arith.truncf %416 : vector<2x128xf32> to vector<2x128xbf16>
    %c13_380 = arith.constant 13 : index
    %c0_381 = arith.constant 0 : index
    %c0_382 = arith.constant 0 : index
    %418 = vector.load %arg6[%c13_380, %c0_381, %c0_382] : memref<16x128x128xbf16, #tpu.memory_space<vmem>>, vector<1x128x128xbf16>
    %419 = vector.shape_cast %418 : vector<1x128x128xbf16> to vector<128x128xbf16>
    %cst_383 = arith.constant dense<0.000000e+00> : vector<2x128xf32>
    %420 = tpu.matmul %417, %419, %cst_383 {dimension_numbers = #tpu.dot_dimension_numbers<[1], [0], [0], [1], [0, 0, 1, 1], [], []>} : vector<2x128xbf16>, vector<128x128xbf16>, vector<2x128xf32> -> vector<2x128xf32>
    %421 = arith.addf %405, %420 : vector<2x128xf32>
    %c152 = arith.constant 152 : index
    %c0_384 = arith.constant 0 : index
    %422 = vector.load %arg12[%c152, %c0_384] : memref<288x128xf32, #tpu.memory_space<vmem>>, vector<2x128xf32>
    %c154 = arith.constant 154 : index
    %c0_385 = arith.constant 0 : index
    %423 = vector.load %arg12[%c154, %c0_385] : memref<288x128xf32, #tpu.memory_space<vmem>>, vector<2x128xf32>
    %424 = arith.maximumf %422, %423 : vector<2x128xf32>
    %c176 = arith.constant 176 : index
    %c0_386 = arith.constant 0 : index
    %425 = vector.load %arg12[%c176, %c0_386] : memref<288x128xf32, #tpu.memory_space<vmem>>, vector<2x128xf32>
    %c178 = arith.constant 178 : index
    %c0_387 = arith.constant 0 : index
    %426 = vector.load %arg12[%c178, %c0_387] : memref<288x128xf32, #tpu.memory_space<vmem>>, vector<2x128xf32>
    %427 = arith.maximumf %425, %426 : vector<2x128xf32>
    %428 = arith.maximumf %424, %427 : vector<2x128xf32>
    %429 = vector.broadcast %198 : vector<1x128xf32> to vector<2x128xf32>
    %430 = arith.addf %428, %429 : vector<2x128xf32>
    %cst_388 = arith.constant 0.000000e+00 : f32
    %431 = vector.broadcast %cst_388 : f32 to vector<2x128xf32>
    %432 = arith.maximumf %430, %431 : vector<2x128xf32>
    %433 = arith.truncf %432 : vector<2x128xf32> to vector<2x128xbf16>
    %c14_389 = arith.constant 14 : index
    %c0_390 = arith.constant 0 : index
    %c0_391 = arith.constant 0 : index
    %434 = vector.load %arg6[%c14_389, %c0_390, %c0_391] : memref<16x128x128xbf16, #tpu.memory_space<vmem>>, vector<1x128x128xbf16>
    %435 = vector.shape_cast %434 : vector<1x128x128xbf16> to vector<128x128xbf16>
    %cst_392 = arith.constant dense<0.000000e+00> : vector<2x128xf32>
    %436 = tpu.matmul %433, %435, %cst_392 {dimension_numbers = #tpu.dot_dimension_numbers<[1], [0], [0], [1], [0, 0, 1, 1], [], []>} : vector<2x128xbf16>, vector<128x128xbf16>, vector<2x128xf32> -> vector<2x128xf32>
    %437 = arith.addf %421, %436 : vector<2x128xf32>
    %c156 = arith.constant 156 : index
    %c0_393 = arith.constant 0 : index
    %438 = vector.load %arg12[%c156, %c0_393] : memref<288x128xf32, #tpu.memory_space<vmem>>, vector<2x128xf32>
    %c158 = arith.constant 158 : index
    %c0_394 = arith.constant 0 : index
    %439 = vector.load %arg12[%c158, %c0_394] : memref<288x128xf32, #tpu.memory_space<vmem>>, vector<2x128xf32>
    %440 = arith.maximumf %438, %439 : vector<2x128xf32>
    %c180 = arith.constant 180 : index
    %c0_395 = arith.constant 0 : index
    %441 = vector.load %arg12[%c180, %c0_395] : memref<288x128xf32, #tpu.memory_space<vmem>>, vector<2x128xf32>
    %c182 = arith.constant 182 : index
    %c0_396 = arith.constant 0 : index
    %442 = vector.load %arg12[%c182, %c0_396] : memref<288x128xf32, #tpu.memory_space<vmem>>, vector<2x128xf32>
    %443 = arith.maximumf %441, %442 : vector<2x128xf32>
    %444 = arith.maximumf %440, %443 : vector<2x128xf32>
    %445 = vector.broadcast %198 : vector<1x128xf32> to vector<2x128xf32>
    %446 = arith.addf %444, %445 : vector<2x128xf32>
    %cst_397 = arith.constant 0.000000e+00 : f32
    %447 = vector.broadcast %cst_397 : f32 to vector<2x128xf32>
    %448 = arith.maximumf %446, %447 : vector<2x128xf32>
    %449 = arith.truncf %448 : vector<2x128xf32> to vector<2x128xbf16>
    %c15_398 = arith.constant 15 : index
    %c0_399 = arith.constant 0 : index
    %c0_400 = arith.constant 0 : index
    %450 = vector.load %arg6[%c15_398, %c0_399, %c0_400] : memref<16x128x128xbf16, #tpu.memory_space<vmem>>, vector<1x128x128xbf16>
    %451 = vector.shape_cast %450 : vector<1x128x128xbf16> to vector<128x128xbf16>
    %cst_401 = arith.constant dense<0.000000e+00> : vector<2x128xf32>
    %452 = tpu.matmul %449, %451, %cst_401 {dimension_numbers = #tpu.dot_dimension_numbers<[1], [0], [0], [1], [0, 0, 1, 1], [], []>} : vector<2x128xbf16>, vector<128x128xbf16>, vector<2x128xf32> -> vector<2x128xf32>
    %453 = arith.addf %437, %452 : vector<2x128xf32>
    %c0_402 = arith.constant 0 : index
    %c0_403 = arith.constant 0 : index
    %454 = vector.load %arg7[%c0_402, %c0_403] : memref<1x128xf32, #tpu.memory_space<vmem>>, vector<1x128xf32>
    %455 = vector.broadcast %454 : vector<1x128xf32> to vector<2x128xf32>
    %456 = arith.addf %453, %455 : vector<2x128xf32>
    %cst_404 = arith.constant 0.000000e+00 : f32
    %457 = vector.broadcast %cst_404 : f32 to vector<2x128xf32>
    %458 = arith.maximumf %456, %457 : vector<2x128xf32>
    %459 = arith.truncf %458 : vector<2x128xf32> to vector<2x128xbf16>
    %c0_405 = arith.constant 0 : index
    %c0_406 = arith.constant 0 : index
    %460 = vector.load %arg8[%c0_405, %c0_406] : memref<128x128xbf16, #tpu.memory_space<vmem>>, vector<128x128xbf16>
    %cst_407 = arith.constant dense<0.000000e+00> : vector<2x128xf32>
    %461 = tpu.matmul %459, %460, %cst_407 {dimension_numbers = #tpu.dot_dimension_numbers<[1], [0], [0], [1], [0, 0, 1, 1], [], []>} : vector<2x128xbf16>, vector<128x128xbf16>, vector<2x128xf32> -> vector<2x128xf32>
    %c0_408 = arith.constant 0 : index
    %c0_409 = arith.constant 0 : index
    %462 = vector.load %arg9[%c0_408, %c0_409] : memref<1x128xf32, #tpu.memory_space<vmem>>, vector<1x128xf32>
    %463 = vector.broadcast %462 : vector<1x128xf32> to vector<2x128xf32>
    %464 = arith.addf %461, %463 : vector<2x128xf32>
    %465 = tpu.iota {dimensions = array<i32: 1>} : vector<2x128xi32>
    %c10_i32 = arith.constant 10 : i32
    %466 = vector.broadcast %c10_i32 : i32 to vector<2x128xi32>
    %467 = arith.cmpi slt, %465, %466 : vector<2x128xi32>
    %cst_410 = arith.constant 0xFF800000 : f32
    %468 = vector.broadcast %cst_410 : f32 to vector<2x128xf32>
    %469 = arith.select %467, %464, %468 : vector<2x128xi1>, vector<2x128xf32>
    %cst_411 = arith.constant dense<0xFF800000> : vector<2xf32>
    %470 = vector.multi_reduction <maximumf>, %469, %cst_411 [1] : vector<2x128xf32> to vector<2xf32>
    %471 = vector.shape_cast %470 : vector<2xf32> to vector<2x1xf32>
    %472 = vector.broadcast %471 : vector<2x1xf32> to vector<2x128xf32>
    %473 = arith.subf %469, %472 : vector<2x128xf32>
    %474 = math.exp %473 : vector<2x128xf32>
    %cst_412 = arith.constant dense<0.000000e+00> : vector<2xf32>
    %475 = vector.multi_reduction <add>, %474, %cst_412 [1] : vector<2x128xf32> to vector<2xf32>
    %476 = vector.shape_cast %475 : vector<2xf32> to vector<2x1xf32>
    %477 = math.log %476 : vector<2x1xf32>
    %478 = vector.broadcast %471 : vector<2x1xf32> to vector<2x128xf32>
    %479 = arith.subf %464, %478 : vector<2x128xf32>
    %480 = vector.broadcast %477 : vector<2x1xf32> to vector<2x128xf32>
    %481 = arith.subf %479, %480 : vector<2x128xf32>
    %c0_413 = arith.constant 0 : index
    %c0_414 = arith.constant 0 : index
    %482 = vector.load %arg10[%c0_413, %c0_414] : memref<2x128xf32, #tpu.memory_space<vmem>>, vector<2x128xf32>
    tpu.vector_store %arg10[%c0_413, %c0_414], %481 {strides = array<i32>} : memref<2x128xf32, #tpu.memory_space<vmem>>, vector<2x128xf32>,
    return
  }
  func.func @transform_0(%arg0: i32) -> (i32, i32, i32) {
    %c0_i32 = arith.constant 0 : i32
    %c0_i32_0 = arith.constant 0 : i32
    %c0_i32_1 = arith.constant 0 : i32
    return %c0_i32, %arg0, %c0_i32_0 : i32, i32, i32
  }
  func.func @transform_1(%arg0: i32) -> (i32, i32) {
    %c0_i32 = arith.constant 0 : i32
    %c0_i32_0 = arith.constant 0 : i32
    %c0_i32_1 = arith.constant 0 : i32
    return %c0_i32, %c0_i32_0 : i32, i32
  }
  func.func @transform_2(%arg0: i32) -> (i32, i32) {
    %c0_i32 = arith.constant 0 : i32
    %c0_i32_0 = arith.constant 0 : i32
    %c0_i32_1 = arith.constant 0 : i32
    return %c0_i32, %c0_i32_0 : i32, i32
  }
  func.func @transform_3(%arg0: i32) -> (i32, i32, i32) {
    %c0_i32 = arith.constant 0 : i32
    %c0_i32_0 = arith.constant 0 : i32
    %c0_i32_1 = arith.constant 0 : i32
    %c0_i32_2 = arith.constant 0 : i32
    return %c0_i32, %c0_i32_0, %c0_i32_1 : i32, i32, i32
  }
  func.func @transform_4(%arg0: i32) -> (i32, i32) {
    %c0_i32 = arith.constant 0 : i32
    %c0_i32_0 = arith.constant 0 : i32
    %c0_i32_1 = arith.constant 0 : i32
    return %c0_i32, %c0_i32_0 : i32, i32
  }
  func.func @transform_5(%arg0: i32) -> (i32, i32, i32) {
    %c0_i32 = arith.constant 0 : i32
    %c0_i32_0 = arith.constant 0 : i32
    %c0_i32_1 = arith.constant 0 : i32
    %c0_i32_2 = arith.constant 0 : i32
    return %c0_i32, %c0_i32_0, %c0_i32_1 : i32, i32, i32
  }
  func.func @transform_6(%arg0: i32) -> (i32, i32) {
    %c0_i32 = arith.constant 0 : i32
    %c0_i32_0 = arith.constant 0 : i32
    %c0_i32_1 = arith.constant 0 : i32
    return %c0_i32, %c0_i32_0 : i32, i32
  }
  func.func @transform_7(%arg0: i32) -> (i32, i32) {
    %c0_i32 = arith.constant 0 : i32
    %c0_i32_0 = arith.constant 0 : i32
    %c0_i32_1 = arith.constant 0 : i32
    return %c0_i32, %c0_i32_0 : i32, i32
  }
  func.func @transform_8(%arg0: i32) -> (i32, i32) {
    %c0_i32 = arith.constant 0 : i32
    %c0_i32_0 = arith.constant 0 : i32
    %c0_i32_1 = arith.constant 0 : i32
    return %c0_i32, %c0_i32_0 : i32, i32
  }
  func.func @transform_9(%arg0: i32) -> (i32, i32) {
    %c0_i32 = arith.constant 0 : i32
    %c0_i32_0 = arith.constant 0 : i32
    return %arg0, %c0_i32 : i32, i32
  }
}

</mosaic_0001>

<bundles_post_ra>
// kernel: net_forward.1
= control target key start
LH: loop header
LB: loop body
LE: loop exit
PB: predicated region body
PF: predicated region fallthrough
CT: control target
= control target key end

     0   :  { %s23320_s0 = inlined_call_operand.vmem [shape: bf16[4,288,32], index: 0, kind: input, shape index: {}]   ;;  %s23321_s1 = inlined_call_operand.vmem [shape: bf16[32,128], index: 1, kind: input, shape index: {}]   ;;  %s23322_s2 = inlined_call_operand.vmem [shape: f32[1,128], index: 2, kind: input, shape index: {}]   ;;  %s23323_s3 = inlined_call_operand.vmem [shape: bf16[25,128,128], index: 3, kind: input, shape index: {}]   ;;  %s23324_s4 = inlined_call_operand.vmem [shape: f32[1,128], index: 4, kind: input, shape index: {}]   ;;  %s23325_s5 = inlined_call_operand.vmem [shape: bf16[16,128,128], index: 5, kind: input, shape index: {}]   ;;  %s23326_s6 = inlined_call_operand.vmem [shape: f32[1,128], index: 6, kind: input, shape index: {}]   ;;  %s23327_s7 = inlined_call_operand.vmem [shape: bf16[128,128], index: 7, kind: input, shape index: {}]   ;;  %s23328_s8 = inlined_call_operand.vmem [shape: f32[1,128], index: 8, kind: input, shape index: {}]   ;;  %s23329_s9 = inlined_call_operand.hbm [shape: f32[2,128], index: 9, kind: output, shape index: {}]  }
   0x1   :  { %v18177_v0 = vld [vmem:[%s23321_s1 + $0x8] sm:$0xff]  ;;  %v18176_v1 = vld [vmem:[%s23321_s1] sm:$0xff]  ;;  %v18192_v3 = vld [vmem:[%s23320_s0 + $0x70] sm:$0xff] }
   0x2   :  { %19143 = vmatpush.bf16.msra.mxu1 %v18177_v0  ;;  %19144 = vmatpush.bf16.msra.mxu3 %v18177_v0  ;;  %v18191_v2 = vld [vmem:[%s23320_s0 + $0x68] sm:$0xff] }
   0x3   :  { %833 = vmatpush.bf16.msra.mxu2 %v18177_v0  ;;  %237 = vmatpush.bf16.msra.mxu0 %v18177_v0 }
   0x4   :  { %14 = vsyncpa [#allocation5], 0  ;;  %vm176_vm0 = vcmask 261120   ;;  %v18214_v4 = vld [vmem:[%s23320_s0 + $0x120] sm:$0xff]  ;;  %v18275_v5 = vld [vmem:[%s23323_s3 + $0x38] sm:$0xff]  ;;  %vm2423_vm1 = vcmask 1045504  }
   0x5   :  { %v18178_v6 = vld [vmem:[%s23320_s0] sm:$0xff]  ;;  %v18274_v7 = vld [vmem:[%s23323_s3 + $0x30] sm:$0xff]  ;;  %v18193_v8 = vld [vmem:[%s23320_s0 + $0x78] sm:$0xff]  ;;  %vm1965_vm2 = vcmask 1046528   ;;  %vm2881_vm3 = vcmask 1044480   ;;  %vm13901_vm5 = vcmask 1041408  }
   0x6   :  { %19145 = vmatpush.bf16.msra.mxu1 %v18176_v1  ;;  %19146 = vmatpush.bf16.msra.mxu3 %v18176_v1  ;;  %v18196_v9 = vld [vmem:[%s23320_s0 + $0x90] sm:$0xff]  ;;  %v18215_v10 = vld [vmem:[%s23320_s0 + $0x128] sm:$0xff]  ;;  %v18194_v12 = vld [vmem:[%s23320_s0 + $0x80] sm:$0xff]  ;;  %s13923_s30 = sshll.u32 %s23329_s9, 4  ;;  %s13924_s30 = int_to_ptr.hbm [resolvable:$true] %s13923_s30 }
   0x7   :  { %834 = vmatpush.bf16.msra.mxu2 %v18176_v1  ;;  %238 = vmatpush.bf16.msra.mxu0 %v18176_v1  ;;  %v18179_v11 = vld [vmem:[%s23320_s0 + $0x8] sm:$0xff]  ;;  %v18197_v13 = vld [vmem:[%s23320_s0 + $0x98] sm:$0xff]  ;;  %v18216_v14 = vld [vmem:[%s23320_s0 + $0x130] sm:$0xff] }
   0x8   :  { %v18180_v15 = vld [vmem:[%s23320_s0 + $0x10] sm:$0xff]  ;;  %v18273_v16 = vld [vmem:[%s23323_s3 + $0x28] sm:$0xff]  ;;  %v18198_v18 = vld [vmem:[%s23320_s0 + $0xa0] sm:$0xff] }
   0x9   :  { %14025 = vmatmul.msk.bf16.vlgmr.msra.gmra.mxu1 %vm176_vm0, %v18191_v2  ;;  %14026 = vmatmul.msk.bf16.vlgmr.msra.gmra.mxu3 %vm176_vm0, %v18192_v3  ;;  %v18195_v17 = vld [vmem:[%s23320_s0 + $0x88] sm:$0xff]  ;;  %v18217_v19 = vld [vmem:[%s23320_s0 + $0x138] sm:$0xff]  ;;  %v18272_v21 = vld [vmem:[%s23323_s3 + $0x20] sm:$0xff] }
   0xa   :  { %1113 = vmatpush.bf16.msrb.mxu3 %v18177_v0  ;;  %517 = vmatpush.bf16.msrb.mxu1 %v18177_v0  ;;  %v18181_v20 = vld [vmem:[%s23320_s0 + $0x18] sm:$0xff]  ;;  %v18199_v22 = vld [vmem:[%s23320_s0 + $0xa8] sm:$0xff]  ;;  %v18232_v23 = vld [vmem:[%s23320_s0 + $0x1b0] sm:$0xff] }
   0xb   :  { %14264 = vmatmul.msk.bf16.vlgmr.msra.gmra.mxu2 %vm176_vm0, %v18214_v4  ;;  %1647 = vmatpush.bf16.msrb.mxu0 %v18275_v5  ;;  %v18218_v24 = vld [vmem:[%s23320_s0 + $0x140] sm:$0xff]  ;;  %v18200_v26 = vld [vmem:[%s23320_s0 + $0xb0] sm:$0xff]  ;;  %v18233_v27 = vld [vmem:[%s23320_s0 + $0x1b8] sm:$0xff] }
   0xc   :  { %14012 = vmatmul.msk.bf16.vlgmr.msra.gmra.mxu0 %vm176_vm0, %v18178_v6  ;;  %v18182_v25 = vld [vmem:[%s23320_s0 + $0x20] sm:$0xff]  ;;  %v18219_v28 = vld [vmem:[%s23320_s0 + $0x148] sm:$0xff]  ;;  %v18271_v30 = vld [vmem:[%s23323_s3 + $0x18] sm:$0xff] }
   0xd   :  { %v18183_v29 = vld [vmem:[%s23320_s0 + $0x28] sm:$0xff]  ;;  %v18201_v31 = vld [vmem:[%s23320_s0 + $0xb8] sm:$0xff]  ;;  %v18234_v32 = vld [vmem:[%s23320_s0 + $0x1c0] sm:$0xff] }
   0xe   :  { %1114 = vmatpush.bf16.msrb.mxu3 %v18176_v1  ;;  %518 = vmatpush.bf16.msrb.mxu1 %v18176_v1  ;;  %v18220_v33 = vld [vmem:[%s23320_s0 + $0x150] sm:$0xff]  ;;  %v18202_v35 = vld [vmem:[%s23320_s0 + $0xc0] sm:$0xff]  ;;  %v18235_v36 = vld [vmem:[%s23320_s0 + $0x1c8] sm:$0xff] }
   0xf   :  { %1648 = vmatpush.bf16.msrb.mxu0 %v18274_v7  ;;  %v18184_v34 = vld [vmem:[%s23320_s0 + $0x30] sm:$0xff]  ;;  %v18221_v37 = vld [vmem:[%s23320_s0 + $0x158] sm:$0xff]  ;;  %v18203_v40 = vld [vmem:[%s23320_s0 + $0xc8] sm:$0xff] }
  0x10   :  { %v18185_v38 = vld [vmem:[%s23320_s0 + $0x38] sm:$0xff]  ;;  %v18270_v39 = vld [vmem:[%s23323_s3 + $0x10] sm:$0xff]  ;;  %v18222_v43 = vld [vmem:[%s23320_s0 + $0x160] sm:$0xff] }
  0x11   :  { %v18236_v41 = vld [vmem:[%s23320_s0 + $0x1d0] sm:$0xff]  ;;  %v18186_v44 = vld [vmem:[%s23320_s0 + $0x40] sm:$0xff]  ;;  %v18237_v53 = vld [vmem:[%s23320_s0 + $0x1d8] sm:$0xff] }
  0x12   :  { %v18204_v52 = vld [vmem:[%s23320_s0 + $0xd0] sm:$0xff]  ;;  %v18269_v54 = vld [vmem:[%s23323_s3 + $0x8] sm:$0xff]  ;;  %v18301_v62 = vld [vmem:[%s23323_s3 + $0x78] sm:$0xff] }
  0x13   :  { %1649 = vmatpush.bf16.msrb.mxu0 %v18273_v16  ;;  %v18223_v56 = vld [vmem:[%s23320_s0 + $0x168] sm:$0xff]  ;;  %2069 = vmatpush.bf16.msra.mxu1 %v18301_v62  ;;  %v18205_v2 = vld [vmem:[%s23320_s0 + $0xd8] sm:$0xff]  ;;  %v18238_v3 = vld [vmem:[%s23320_s0 + $0x1e0] sm:$0xff] }
  0x14   :  { %v18187_v57 = vld [vmem:[%s23320_s0 + $0x48] sm:$0xff]  ;;  %v18224_v5 = vld [vmem:[%s23320_s0 + $0x170] sm:$0xff]  ;;  %v18241_v62 = vld [vmem:[%s23320_s0 + $0x1f8] sm:$0xff] }
  0x15   :  { %v18188_v6 = vld [vmem:[%s23320_s0 + $0x50] sm:$0xff] }
  0x17   :  { %1650 = vmatpush.bf16.msrb.mxu0 %v18272_v21  ;;  %v18189_v21 = vld [vmem:[%s23320_s0 + $0x58] sm:$0xff] }
  0x19   :  { %14027 = vmatmul.msk.bf16.gmra.mxu3 %vm176_vm0, %v18193_v8  ;;  %14138 = vmatmul.msk.bf16.vlgmr.msrb.gmra.mxu1 %vm176_vm0, %v18196_v9  ;;  %v18327_v8 = vld [vmem:[%s23323_s3 + $0xb8] sm:$0xff] }
  0x1a   :  { %v18353_v9 = vld [vmem:[%s23323_s3 + $0xf8] sm:$0xff]  ;;  %2527 = vmatpush.bf16.msrb.mxu2 %v18327_v8 }
  0x1b   :  { %14265 = vmatmul.msk.bf16.gmra.mxu2 %vm176_vm0, %v18215_v10  ;;  %1651 = vmatpush.bf16.msrb.mxu0 %v18271_v30  ;;  %v18240_v30 = vld [vmem:[%s23320_s0 + $0x1f0] sm:$0xff] }
  0x1c   :  { %14013 = vmatmul.msk.bf16.gmra.mxu0 %vm176_vm0, %v18179_v11  ;;  %2985 = vmatpush.bf16.msra.mxu3 %v18353_v9 }
  0x1f   :  { %1652 = vmatpush.bf16.msrb.mxu0 %v18270_v39  ;;  %v18300_v39 = vld [vmem:[%s23323_s3 + $0x70] sm:$0xff] }
  0x20   :  { %2070 = vmatpush.bf16.msra.mxu1 %v18300_v39  ;;  %v18209_v39 = vld [vmem:[%s23320_s0 + $0xf8] sm:$0xff] }
  0x23   :  { %1653 = vmatpush.bf16.msrb.mxu0 %v18269_v54 }
  0x29   :  { %14028 = vmatmul.msk.bf16.gmra.mxu3 %vm176_vm0, %v18194_v12  ;;  %14139 = vmatmul.msk.bf16.gmra.mxu1 %vm176_vm0, %v18197_v13 }
  0x2b   :  { %14266 = vmatmul.msk.bf16.gmra.mxu2 %vm176_vm0, %v18216_v14  ;;  %v18268_v14 = vld [vmem:[%s23323_s3] sm:$0xff] }
  0x2c   :  { %14014 = vmatmul.msk.bf16.gmra.mxu0 %vm176_vm0, %v18180_v15 }
  0x2d   :  { %1654 = vmatpush.bf16.msrb.mxu0 %v18268_v14 }
  0x39   :  { %14029 = vmatmul.msk.bf16.gmra.mxu3 %vm176_vm0, %v18195_v17  ;;  %14140 = vmatmul.msk.bf16.gmra.mxu1 %vm176_vm0, %v18198_v18  ;;  %v18206_v17 = vld [vmem:[%s23320_s0 + $0xe0] sm:$0xff]  ;;  %v18239_v18 = vld [vmem:[%s23320_s0 + $0x1e8] sm:$0xff] }
  0x3b   :  { %14267 = vmatmul.msk.bf16.gmra.mxu2 %vm176_vm0, %v18217_v19 }
  0x3c   :  { %14015 = vmatmul.msk.bf16.gmra.mxu0 %vm176_vm0, %v18181_v20  ;;  %v18225_v20 = vld [vmem:[%s23320_s0 + $0x178] sm:$0xff] }
  0x49   :  { %14141 = vmatmul.msk.bf16.gmra.mxu1 %vm176_vm0, %v18199_v22  ;;  %14390 = vmatmul.msk.bf16.vlgmr.msrb.gmra.mxu3 %vm176_vm0, %v18232_v23 }
  0x4b   :  { %14268 = vmatmul.msk.bf16.gmra.mxu2 %vm176_vm0, %v18218_v24 }
  0x4c   :  { %14016 = vmatmul.msk.bf16.gmra.mxu0 %vm176_vm0, %v18182_v25 }
  0x59   :  { %14142 = vmatmul.msk.bf16.gmra.mxu1 %vm176_vm0, %v18200_v26  ;;  %14391 = vmatmul.msk.bf16.gmra.mxu3 %vm176_vm0, %v18233_v27 }
  0x5b   :  { %14269 = vmatmul.msk.bf16.gmra.mxu2 %vm176_vm0, %v18219_v28 }
  0x5c   :  { %14017 = vmatmul.msk.bf16.gmra.mxu0 %vm176_vm0, %v18183_v29  ;;  %v18207_v29 = vld [vmem:[%s23320_s0 + $0xe8] sm:$0xff] }
  0x69   :  { %14143 = vmatmul.msk.bf16.gmra.mxu1 %vm176_vm0, %v18201_v31  ;;  %14392 = vmatmul.msk.bf16.gmra.mxu3 %vm176_vm0, %v18234_v32  ;;  %v18226_v32 = vld [vmem:[%s23320_s0 + $0x180] sm:$0xff] }
  0x6b   :  { %14270 = vmatmul.msk.bf16.gmra.mxu2 %vm176_vm0, %v18220_v33  ;;  %v18190_v33 = vld [vmem:[%s23320_s0 + $0x60] sm:$0xff] }
  0x6c   :  { %14018 = vmatmul.msk.bf16.gmra.mxu0 %vm176_vm0, %v18184_v34 }
  0x79   :  { %14144 = vmatmul.msk.bf16.gmra.mxu1 %vm176_vm0, %v18202_v35  ;;  %14393 = vmatmul.msk.bf16.gmra.mxu3 %vm176_vm0, %v18235_v36 }
  0x7b   :  { %14271 = vmatmul.msk.bf16.gmra.mxu2 %vm176_vm0, %v18221_v37 }
  0x7c   :  { %14019 = vmatmul.msk.bf16.gmra.mxu0 %vm176_vm0, %v18185_v38 }
  0x86   :  { %v19395_v42 = vpop.f32.mrf.mxu1 }
  0x89   :  { %v19403_v45 = vpop.f32.mrf.mxu0  ;;  %14145 = vmatmul.msk.bf16.gmra.mxu1 %vm176_vm0, %v18203_v40  ;;  %14394 = vmatmul.msk.bf16.gmra.mxu3 %vm176_vm0, %v18236_v41  ;;  %v18379_v40 = vld [vmem:[%s23323_s3 + $0x138] sm:$0xff] }
  0x8a   :  { %3401 = vmatpush.bf16.msra.mxu0 %v18379_v40 }
  0x8b   :  { %14272 = vmatmul.msk.bf16.gmra.mxu2 %vm176_vm0, %v18222_v43 }
  0x8c   :  { %14020 = vmatmul.msk.bf16.gmra.mxu0 %vm176_vm0, %v18186_v44  ;;  %v19409_v46 = vpop.f32.mrf.mxu3 }
  0x8e   :  { %v19411_v47 = vpop.f32.mrf.mxu2  ;;  %v19413_v48 = vpop.f32.mrf.mxu1 }
  0x91   :  { %v19415_v49 = vpop.f32.mrf.mxu0 }
  0x94   :  { %v19417_v50 = vpop.f32.mrf.mxu3 }
  0x96   :  { %v19419_v51 = vpop.f32.mrf.mxu2  ;;  %v19430_v55 = vpop.f32.mrf.mxu1 }
  0x97   :  { %v610_v43 = vmax.f32 %v19403_v45, %v19430_v55 }
  0x99   :  { %v19438_v58 = vpop.f32.mrf.mxu0  ;;  %14146 = vmatmul.msk.bf16.gmra.mxu1 %vm176_vm0, %v18204_v52  ;;  %14395 = vmatmul.msk.bf16.gmra.mxu3 %vm176_vm0, %v18237_v53  ;;  %v18326_v52 = vld [vmem:[%s23323_s3 + $0xb0] sm:$0xff] }
  0x9a   :  { %v18352_v53 = vld [vmem:[%s23323_s3 + $0xf0] sm:$0xff]  ;;  %2528 = vmatpush.bf16.msrb.mxu2 %v18326_v52 }
  0x9b   :  { %14273 = vmatmul.msk.bf16.gmra.mxu2 %vm176_vm0, %v18223_v56  ;;  %2986 = vmatpush.bf16.msra.mxu3 %v18352_v53 }
  0x9c   :  { %14021 = vmatmul.msk.bf16.gmra.mxu0 %vm176_vm0, %v18187_v57  ;;  %v19444_v59 = vpop.f32.mrf.mxu3  ;;  %v18208_v57 = vld [vmem:[%s23320_s0 + $0xf0] sm:$0xff] }
  0x9e   :  { %v19446_v60 = vpop.f32.mrf.mxu2  ;;  %v19448_v61 = vpop.f32.mrf.mxu1 }
  0x9f   :  { %v611_v45 = vmax.f32 %v19415_v49, %v19448_v61  ;;  %v18227_v49 = vld [vmem:[%s23320_s0 + $0x188] sm:$0xff] }
  0xa1   :  { %v19453_v63 = vpop.f32.mrf.mxu0 }
  0xa4   :  { %v19455_v0 = vpop.f32.mrf.mxu3 }
  0xa6   :  { %v19457_v1 = vpop.f32.mrf.mxu2  ;;  %v19465_v4 = vpop.f32.mrf.mxu1 }
  0xa9   :  { %v19473_v7 = vpop.f32.mrf.mxu0  ;;  %14147 = vmatmul.msk.bf16.gmra.mxu1 %vm176_vm0, %v18205_v2  ;;  %14396 = vmatmul.msk.bf16.gmra.mxu3 %vm176_vm0, %v18238_v3 }
  0xab   :  { %14274 = vmatmul.msk.bf16.gmra.mxu2 %vm176_vm0, %v18224_v5 }
  0xac   :  { %14022 = vmatmul.msk.bf16.gmra.mxu0 %vm176_vm0, %v18188_v6  ;;  %v19485_v10 = vpop.f32.mrf.mxu3 }
  0xae   :  { %v19487_v11 = vpop.f32.mrf.mxu2  ;;  %v19489_v12 = vpop.f32.mrf.mxu1 }
  0xb1   :  { %v19491_v13 = vpop.f32.mrf.mxu0 }
  0xb4   :  { %v19496_v15 = vpop.f32.mrf.mxu3 }
  0xb6   :  { %v19498_v16 = vpop.f32.mrf.mxu2  ;;  %v19506_v19 = vpop.f32.mrf.mxu1 }
  0xb9   :  { %v19514_v22 = vpop.f32.mrf.mxu0  ;;  %14148 = vmatmul.msk.bf16.gmra.mxu1 %vm176_vm0, %v18206_v17  ;;  %14397 = vmatmul.msk.bf16.gmra.mxu3 %vm176_vm0, %v18239_v18 }
  0xbb   :  { %14275 = vmatmul.msk.bf16.gmra.mxu2 %vm176_vm0, %v18225_v20 }
  0xbc   :  { %14023 = vmatmul.msk.bf16.gmra.mxu0 %vm176_vm0, %v18189_v21  ;;  %v19520_v23 = vpop.f32.mrf.mxu3 }
  0xbe   :  { %v19522_v24 = vpop.f32.mrf.mxu2  ;;  %v19524_v25 = vpop.f32.mrf.mxu1 }
  0xc1   :  { %v19526_v26 = vpop.f32.mrf.mxu0 }
  0xc4   :  { %v19528_v27 = vpop.f32.mrf.mxu3 }
  0xc6   :  { %v19530_v28 = vpop.f32.mrf.mxu2  ;;  %v19538_v31 = vpop.f32.mrf.mxu1 }
  0xc9   :  { %v19546_v34 = vpop.f32.mrf.mxu0  ;;  %14149 = vmatmul.msk.bf16.gmra.mxu1 %vm176_vm0, %v18207_v29  ;;  %14398 = vmatmul.msk.bf16.gmra.mxu3 %vm176_vm0, %v18240_v30  ;;  %v612_v29 = vmax.f32 %v19438_v58, %v19465_v4  ;;  %v18228_v58 = vld [vmem:[%s23320_s0 + $0x190] sm:$0xff] }
  0xcb   :  { %14276 = vmatmul.msk.bf16.gmra.mxu2 %vm176_vm0, %v18226_v32 }
  0xcc   :  { %14024 = vmatmul.msk.bf16.gmra.mxu0 %vm176_vm0, %v18190_v33  ;;  %v1116_v35 = vpop.f32.mrf.mxu3  ;;  %v613_v33 = vmax.f32 %v19453_v63, %v19489_v12 }
  0xcd   :  { %v1206_v38 = vmax.f32 %v19411_v47, %v1116_v35  ;;  %v19570_v47 = vld [vmem:[%s23322_s2] ss:$0 sm:$0xff] }
  0xce   :  { %v19552_v36 = vpop.f32.mrf.mxu2  ;;  %v19554_v37 = vpop.f32.mrf.mxu1 }
  0xcf   :  { %v1242_v44 = vmax.f32 %v610_v43, %v1206_v38 }
  0xd1   :  { %v19563_v41 = vpop.f32.mrf.mxu0  ;;  %v1282_v61 = vadd.f32 %v19570_v47, %v1242_v44 }
  0xd3   :  { %v1318_v6 = vmax.f32 %v1282_v61, 0.0  ;;  %v614_v61 = vmax.f32 %v19473_v7, %v19506_v19 }
  0xd4   :  { %v1118_v54 = vpop.f32.mrf.mxu3 }
  0xd5   :  { %v1207_v56 = vmax.f32 %v19419_v51, %v1118_v54 }
  0xd6   :  { %v19580_v55 = vpop.f32.mrf.mxu2  ;;  %v19589_v2 = vpop.f32.mrf.mxu1 }
  0xd7   :  { %v1243_v3 = vmax.f32 %v611_v45, %v1207_v56 }
  0xd9   :  { %v19595_v51 = vpop.f32.mrf.mxu0  ;;  %v1283_v5 = vadd.f32 %v19570_v47, %v1243_v3  ;;  %14150 = vmatmul.msk.bf16.gmra.mxu1 %vm176_vm0, %v18208_v57  ;;  %14399 = vmatmul.msk.bf16.gmra.mxu3 %vm176_vm0, %v18241_v62  ;;  %v18299_v62 = vld [vmem:[%s23323_s3 + $0x68] sm:$0xff] }
  0xda   :  { %2071 = vmatpush.bf16.msra.mxu1 %v18299_v62  ;;  %v18325_v3 = vld [vmem:[%s23323_s3 + $0xa8] sm:$0xff] }
  0xdb   :  { %14277 = vmatmul.msk.bf16.gmra.mxu2 %vm176_vm0, %v18227_v49  ;;  %v1319_v8 = vmax.f32 %v1283_v5, 0.0 }
  0xdc   :  { %v1121_v9 = vpop.f32.mrf.mxu3  ;;  %2529 = vmatpush.bf16.msrb.mxu2 %v18325_v3  ;;  %v18211_v3 = vld [vmem:[%s23320_s0 + $0x108] sm:$0xff] }
  0xdd   :  { %v19039_v14 = vpack.c.bf16 %v1319_v8, %v1318_v6  ;;  %v1208_v20 = vmax.f32 %v19446_v60, %v1121_v9  ;;  %v18242_v60 = vld [vmem:[%s23320_s0 + $0x200] sm:$0xff]  ;;  %v18378_v6 = vld [vmem:[%s23323_s3 + $0x130] sm:$0xff]  ;;  %v615_v9 = vmax.f32 %v19491_v13, %v19524_v25  ;;  %v18229_v13 = vld [vmem:[%s23320_s0 + $0x198] sm:$0xff] }
  0xde   :  { %v19601_v17 = vpop.f32.mrf.mxu2  ;;  %v19603_v18 = vpop.f32.mrf.mxu1  ;;  %3402 = vmatpush.bf16.msra.mxu0 %v18378_v6 }
  0xdf   :  { %19040 = vst [vmem:[#allocation2] sm:$0xff] %v19039_v14   ;;  %v1244_v30 = vmax.f32 %v612_v29, %v1208_v20  ;;  %v18210_v14 = vld [vmem:[%s23320_s0 + $0x100] sm:$0xff]  ;;  %v18243_v20 = vld [vmem:[%s23320_s0 + $0x208] sm:$0xff] }
  0xe0   :  { %v18324_v29 = vld [vmem:[%s23323_s3 + $0xa0] sm:$0xff] }
  0xe1   :  { %v19606_v21 = vpop.f32.mrf.mxu0  ;;  %v1284_v63 = vadd.f32 %v19570_v47, %v1244_v30  ;;  %2530 = vmatpush.bf16.msrb.mxu2 %v18324_v29 }
  0xe3   :  { %v1320_v44 = vmax.f32 %v1284_v63, 0.0 }
  0xe4   :  { %v1123_v32 = vpop.f32.mrf.mxu3 }
  0xe5   :  { %v1209_v38 = vmax.f32 %v19457_v1, %v1123_v32 }
  0xe6   :  { %v19612_v35 = vpop.f32.mrf.mxu2  ;;  %v19621_v40 = vpop.f32.mrf.mxu1  ;;  %v18250_v4 = vld [vmem:[#allocation2] sm:$0xff] }
  0xe7   :  { %v1245_v12 = vmax.f32 %v613_v33, %v1209_v38  ;;  %1655 = vmatmul.bf16.vlgmr.msrb.gmra.mxu0 %v18250_v4 }
  0xe9   :  { %v19627_v1 = vpop.f32.mrf.mxu0  ;;  %v1285_v43 = vadd.f32 %v19570_v47, %v1245_v12  ;;  %14151 = vmatmul.msk.bf16.gmra.mxu1 %vm176_vm0, %v18209_v39  ;;  %14400 = vmatmul.msk.bf16.gmra.mxu3 %vm176_vm0, %v18242_v60  ;;  %v18323_v39 = vld [vmem:[%s23323_s3 + $0x98] sm:$0xff] }
  0xea   :  { %2531 = vmatpush.bf16.msrb.mxu2 %v18323_v39 }
  0xeb   :  { %14278 = vmatmul.msk.bf16.gmra.mxu2 %vm176_vm0, %v18228_v58  ;;  %v1321_v52 = vmax.f32 %v1285_v43, 0.0  ;;  %v18322_v43 = vld [vmem:[%s23323_s3 + $0x90] sm:$0xff] }
  0xec   :  { %v1126_v53 = vpop.f32.mrf.mxu3 }
  0xed   :  { %v19044_v54 = vpack.c.bf16 %v1321_v52, %v1320_v44  ;;  %v1210_v57 = vmax.f32 %v19487_v11, %v1126_v53  ;;  %v18351_v11 = vld [vmem:[%s23323_s3 + $0xe8] sm:$0xff] }
  0xee   :  { %v19633_v45 = vpop.f32.mrf.mxu2  ;;  %v19635_v56 = vpop.f32.mrf.mxu1  ;;  %2987 = vmatpush.bf16.msra.mxu3 %v18351_v11  ;;  %2532 = vmatpush.bf16.msrb.mxu2 %v18322_v43  ;;  %v18320_v11 = vld [vmem:[%s23323_s3 + $0x80] sm:$0xff] }
  0xef   :  { %19126 = vst [vmem:[#allocation2 + $0x8] sm:$0xff] %v19044_v54   ;;  %v1246_v5 = vmax.f32 %v614_v61, %v1210_v57  ;;  %v616_v54 = vmax.f32 %v19514_v22, %v19538_v31  ;;  %v18321_v57 = vld [vmem:[%s23323_s3 + $0x88] sm:$0xff]  ;;  %v18244_v22 = vld [vmem:[%s23320_s0 + $0x210] sm:$0xff]  ;;  %v18298_v31 = vld [vmem:[%s23323_s3 + $0x60] sm:$0xff] }
  0xf0   :  { %2072 = vmatpush.bf16.msra.mxu1 %v18298_v31 }
  0xf1   :  { %v19641_v49 = vpop.f32.mrf.mxu0  ;;  %v1286_v25 = vadd.f32 %v19570_v47, %v1246_v5 }
  0xf2   :  { %2533 = vmatpush.bf16.msrb.mxu2 %v18321_v57 }
  0xf3   :  { %v1322_v60 = vmax.f32 %v1286_v25, 0.0 }
  0xf4   :  { %v1128_v8 = vpop.f32.mrf.mxu3 }
  0xf5   :  { %v1211_v19 = vmax.f32 %v19498_v16, %v1128_v8 }
  0xf6   :  { %v19656_v7 = vpop.f32.mrf.mxu2  ;;  %v19668_v30 = vpop.f32.mrf.mxu1  ;;  %v18251_v16 = vld [vmem:[#allocation2 + $0x8] sm:$0xff]  ;;  %2534 = vmatpush.bf16.msrb.mxu2 %v18320_v11 }
  0xf7   :  { %v1247_v32 = vmax.f32 %v615_v9, %v1211_v19  ;;  %1660 = vmatmul.bf16.gmra.mxu0 %v18251_v16 }
  0xf9   :  { %v19674_v33 = vpop.f32.mrf.mxu0  ;;  %v1287_v38 = vadd.f32 %v19570_v47, %v1247_v32  ;;  %14152 = vmatmul.msk.bf16.gmra.mxu1 %vm176_vm0, %v18210_v14  ;;  %14401 = vmatmul.msk.bf16.gmra.mxu3 %vm176_vm0, %v18243_v20  ;;  %v18297_v20 = vld [vmem:[%s23323_s3 + $0x58] sm:$0xff] }
  0xfa   :  { %2073 = vmatpush.bf16.msra.mxu1 %v18297_v20  ;;  %v18350_v20 = vld [vmem:[%s23323_s3 + $0xe0] sm:$0xff] }
  0xfb   :  { %14279 = vmatmul.msk.bf16.gmra.mxu2 %vm176_vm0, %v18229_v13  ;;  %v1323_v58 = vmax.f32 %v1287_v38, 0.0  ;;  %v18296_v38 = vld [vmem:[%s23323_s3 + $0x50] sm:$0xff]  ;;  %2988 = vmatpush.bf16.msra.mxu3 %v18350_v20  ;;  %v622_v20 = vmax.f32 %v19627_v1, %v19668_v30  ;;  %v18247_v1 = vld [vmem:[%s23320_s0 + $0x228] sm:$0xff] }
  0xfc   :  { %v1131_v4 = vpop.f32.mrf.mxu3 }
  0xfd   :  { %v19049_v63 = vpack.c.bf16 %v1323_v58, %v1322_v60  ;;  %v1212_v52 = vmax.f32 %v19522_v24, %v1131_v4  ;;  %v617_v24 = vmax.f32 %v19526_v26, %v19554_v37  ;;  %v18230_v26 = vld [vmem:[%s23320_s0 + $0x1a0] sm:$0xff]  ;;  %v618_v4 = vmax.f32 %v19546_v34, %v19589_v2  ;;  %v18212_v34 = vld [vmem:[%s23320_s0 + $0x110] sm:$0xff]  ;;  %v18245_v2 = vld [vmem:[%s23320_s0 + $0x218] sm:$0xff] }
  0xfe   :  { %v19683_v12 = vpop.f32.mrf.mxu2  ;;  %v19688_v44 = vpop.f32.mrf.mxu1  ;;  %2074 = vmatpush.bf16.msra.mxu1 %v18296_v38  ;;  %v18303_v38 = vld [vmem:[#allocation2 + $0x8] sm:$0xff] }
  0xff   :  { %19127 = vst [vmem:[#allocation2 + $0x10] sm:$0xff] %v19049_v63   ;;  %v1248_v62 = vmax.f32 %v616_v54, %v1212_v52  ;;  %v18295_v63 = vld [vmem:[%s23323_s3 + $0x48] sm:$0xff] }
 0x100   :  { %v18377_v52 = vld [vmem:[%s23323_s3 + $0x128] sm:$0xff] }
 0x101   :  { %v19691_v53 = vpop.f32.mrf.mxu0  ;;  %3403 = vmatpush.bf16.msra.mxu0 %v18377_v52 }
 0x102   :  { %2075 = vmatpush.bf16.msra.mxu1 %v18295_v63 }
 0x104   :  { %v1133_v61 = vpop.f32.mrf.mxu3 }
 0x105   :  { %v1213_v6 = vmax.f32 %v19530_v28, %v1133_v61  ;;  %v1288_v28 = vadd.f32 %v19570_v47, %v1248_v62  ;;  %v18294_v61 = vld [vmem:[%s23323_s3 + $0x40] sm:$0xff] }
 0x106   :  { %v19703_v5 = vpop.f32.mrf.mxu2  ;;  %v19715_v8 = vpop.f32.mrf.mxu1  ;;  %v18252_v37 = vld [vmem:[#allocation2 + $0x10] sm:$0xff]  ;;  %2076 = vmatpush.bf16.msra.mxu1 %v18294_v61 }
 0x107   :  { %v1249_v9 = vmax.f32 %v617_v24, %v1213_v6  ;;  %1665 = vmatmul.bf16.gmra.mxu0 %v18252_v37  ;;  %v1324_v29 = vmax.f32 %v1288_v28, 0.0 }
 0x109   :  { %v19721_v19 = vpop.f32.mrf.mxu0  ;;  %v1289_v14 = vadd.f32 %v19570_v47, %v1249_v9  ;;  %14153 = vmatmul.msk.bf16.gmra.mxu1 %vm176_vm0, %v18211_v3  ;;  %14402 = vmatmul.msk.bf16.gmra.mxu3 %vm176_vm0, %v18244_v22 }
 0x10b   :  { %14280 = vmatmul.msk.bf16.gmra.mxu2 %vm176_vm0, %v18230_v26  ;;  %v1325_v13 = vmax.f32 %v1289_v14, 0.0 }
 0x10c   :  { %v1136_v16 = vpop.f32.mrf.mxu3 }
 0x10d   :  { %v19054_v25 = vpack.c.bf16 %v1325_v13, %v1324_v29  ;;  %v1214_v60 = vmax.f32 %v19552_v36, %v1136_v16  ;;  %v619_v36 = vmax.f32 %v19563_v41, %v19603_v18  ;;  %v18231_v41 = vld [vmem:[%s23320_s0 + $0x1a8] sm:$0xff]  ;;  %v14650_v29 = vld [vmem:[#allocation2] sm:$0xc]  ;;  %v18302_v13 = vld [vmem:[#allocation2] sm:$0xf0]  ;;  %v620_v16 = vmax.f32 %v19595_v51, %v19621_v40 }
 0x10e   :  { %v19730_v32 = vpop.f32.mrf.mxu2  ;;  %v19735_v39 = vpop.f32.mrf.mxu1  ;;  %v18246_v51 = vld [vmem:[%s23320_s0 + $0x220] sm:$0xff]  ;;  %v2425_v40 = vrot.slane %v18303_v38, 2 }
 0x10f   :  { %19128 = vst [vmem:[#allocation2 + $0x18] sm:$0xff] %v19054_v25   ;;  %v1250_v43 = vmax.f32 %v618_v4, %v1214_v60  ;;  %v14651_v4 = vor.u32 %v18302_v13, %v14650_v29  ;;  %v19815_v29 = vld [vmem:[#allocation2 + $0x10] sm:$0xff] }
 0x110   :  { %v2427_v30 = vrot.slane %v19815_v29, 2  ;;  %v18347_v29 = vld [vmem:[%s23323_s3 + $0xc8] sm:$0xff] }
 0x111   :  { %v19738_v58 = vpop.f32.mrf.mxu0  ;;  %v1290_v18 = vadd.f32 %v19570_v47, %v1250_v43  ;;  %v621_v43 = vmax.f32 %v19606_v21, %v19635_v56  ;;  %v2424_v56 = vrot.slane %v14651_v4, 2  ;;  %v623_v4 = vmax.f32 %v19641_v49, %v19688_v44 }
 0x113   :  { %v1326_v31 = vmax.f32 %v1290_v18, 0.0 }
 0x114   :  { %v1138_v54 = vpop.f32.mrf.mxu3 }
 0x115   :  { %v1215_v62 = vmax.f32 %v19580_v55, %v1138_v54  ;;  %v18213_v54 = vld [vmem:[%s23320_s0 + $0x118] sm:$0xff] }
 0x116   :  { %v19750_v57 = vpop.f32.mrf.mxu2  ;;  %v19762_v3 = vpop.f32.mrf.mxu1  ;;  %v18253_v55 = vld [vmem:[#allocation2 + $0x18] sm:$0xff] }
 0x117   :  { %v1251_v24 = vmax.f32 %v619_v36, %v1215_v62  ;;  %1670 = vmatmul.bf16.gmra.mxu0 %v18253_v55 }
 0x119   :  { %v19768_v6 = vpop.f32.mrf.mxu0  ;;  %v1291_v22 = vadd.f32 %v19570_v47, %v1251_v24  ;;  %14154 = vmatmul.msk.bf16.gmra.mxu1 %vm176_vm0, %v18212_v34  ;;  %14403 = vmatmul.msk.bf16.gmra.mxu3 %vm176_vm0, %v18245_v2  ;;  %v2426_v2 = vsel %vm2423_vm1, %v2424_v56, %v2425_v40 }
 0x11b   :  { %14281 = vmatmul.msk.bf16.gmra.mxu2 %vm176_vm0, %v18231_v41  ;;  %v1327_v11 = vmax.f32 %v1291_v22, 0.0 }
 0x11c   :  { %v1141_v26 = vpop.f32.mrf.mxu3 }
 0x11d   :  { %v19059_v37 = vpack.c.bf16 %v1327_v11, %v1326_v31  ;;  %v1216_v14 = vmax.f32 %v19601_v17, %v1141_v26  ;;  %v14530_v26 = vld [vmem:[#allocation2] sm:$0xe] }
 0x11e   :  { %v19774_v28 = vpop.f32.mrf.mxu2  ;;  %v19776_v9 = vpop.f32.mrf.mxu1 }
 0x11f   :  { %19129 = vst [vmem:[#allocation2 + $0x20] sm:$0xff] %v19059_v37   ;;  %v1252_v60 = vmax.f32 %v620_v16, %v1216_v14  ;;  %v18276_v37 = vld [vmem:[#allocation2] sm:$0xf0]  ;;  %v19811_v14 = vld [vmem:[#allocation2 + $0x8] sm:$0xff] }
 0x120   :  { %v14531_v13 = vor.u32 %v18276_v37, %v14530_v26  ;;  %v18376_v26 = vld [vmem:[%s23323_s3 + $0x120] sm:$0xff]  ;;  %v18278_v37 = vld [vmem:[#allocation2 + $0x10] sm:$0xff] }
 0x121   :  { %v19784_v25 = vpop.f32.mrf.mxu0  ;;  %v1292_v34 = vadd.f32 %v19570_v47, %v1252_v60  ;;  %v1967_v60 = vrot.slane %v19811_v14, 1  ;;  %v624_v14 = vmax.f32 %v19674_v33, %v19715_v8  ;;  %3404 = vmatpush.bf16.msra.mxu0 %v18376_v26  ;;  %v18248_v33 = vld [vmem:[%s23320_s0 + $0x230] sm:$0xff] }
 0x123   :  { %v1328_v61 = vmax.f32 %v1292_v34, 0.0  ;;  %v2428_v34 = vsel %vm2423_vm1, %v2425_v40, %v2427_v30 }
 0x124   :  { %v1143_v63 = vpop.f32.mrf.mxu3 }
 0x125   :  { %v1217_v52 = vmax.f32 %v19612_v35, %v1143_v63 }
 0x126   :  { %v19788_v17 = vpop.f32.mrf.mxu2  ;;  %v19797_v36 = vpop.f32.mrf.mxu1  ;;  %v18254_v62 = vld [vmem:[#allocation2 + $0x20] sm:$0xff] }
 0x127   :  { %v1253_v21 = vmax.f32 %v621_v43, %v1217_v52  ;;  %1675 = vmatmul.bf16.gmra.mxu0 %v18254_v62 }
 0x129   :  { %v1293_v35 = vadd.f32 %v19570_v47, %v1253_v21  ;;  %14155 = vmatmul.msk.bf16.gmra.mxu1 %vm176_vm0, %v18213_v54  ;;  %14404 = vmatmul.msk.bf16.gmra.mxu3 %vm176_vm0, %v18246_v51  ;;  %v19804_v55 = vpop.f32.mrf.mxu0  ;;  %v1966_v51 = vrot.slane %v14531_v13, 1  ;;  %v18349_v21 = vld [vmem:[%s23323_s3 + $0xd8] sm:$0xff] }
 0x12a   :  { %2989 = vmatpush.bf16.msra.mxu3 %v18349_v21 }
 0x12b   :  { %2535 = vmatmul.bf16.vlgmr.msrb.gmra.mxu2 %v2426_v2  ;;  %v1329_v41 = vmax.f32 %v1293_v35, 0.0  ;;  %v1968_v44 = vsel %vm1965_vm2, %v1966_v51, %v1967_v60 }
 0x12c   :  { %v1146_v18 = vpop.f32.mrf.mxu3 }
 0x12d   :  { %v19064_v24 = vpack.c.bf16 %v1329_v41, %v1328_v61  ;;  %v1218_v11 = vmax.f32 %v19633_v45, %v1146_v18  ;;  %v18348_v18 = vld [vmem:[%s23323_s3 + $0xd0] sm:$0xff] }
 0x12e   :  { %v19806_v22 = vpop.f32.mrf.mxu2  ;;  %v19808_v31 = vpop.f32.mrf.mxu1  ;;  %2990 = vmatpush.bf16.msra.mxu3 %v18348_v18  ;;  %v626_v18 = vmax.f32 %v19721_v19, %v19762_v3 }
 0x12f   :  { %19130 = vst [vmem:[#allocation2 + $0x28] sm:$0xff] %v19064_v24   ;;  %v1254_v16 = vmax.f32 %v622_v20, %v1218_v11  ;;  %v18305_v20 = vld [vmem:[#allocation2 + $0x18] sm:$0xff] }
 0x130   :  { %v2429_v8 = vrot.slane %v18305_v20, 2  ;;  %v627_v20 = vmax.f32 %v19738_v58, %v19776_v9 }
 0x131   :  { %v19823_v43 = vpop.f32.mrf.mxu0  ;;  %v1294_v62 = vadd.f32 %v19570_v47, %v1254_v16  ;;  %v1969_v16 = vrot.slane %v18278_v37, 1 }
 0x132   :  { %2991 = vmatpush.bf16.msra.mxu3 %v18347_v29 }
 0x133   :  { %v1330_v56 = vmax.f32 %v1294_v62, 0.0 }
 0x134   :  { %v1148_v38 = vpop.f32.mrf.mxu3 }
 0x135   :  { %v1219_v45 = vmax.f32 %v19656_v7, %v1148_v38  ;;  %v625_v38 = vmax.f32 %v19691_v53, %v19735_v39  ;;  %v1970_v53 = vsel %vm1965_vm2, %v1967_v60, %v1969_v16 }
 0x136   :  { %v19820_v63 = vpop.f32.mrf.mxu2  ;;  %v19829_v52 = vpop.f32.mrf.mxu1  ;;  %v18255_v54 = vld [vmem:[#allocation2 + $0x28] sm:$0xff] }
 0x137   :  { %v1255_v49 = vmax.f32 %v623_v4, %v1219_v45  ;;  %1680 = vmatmul.bf16.gmra.mxu0 %v18255_v54 }
 0x139   :  { %v1295_v7 = vadd.f32 %v19570_v47, %v1255_v49  ;;  %14405 = vmatmul.msk.bf16.gmra.mxu3 %vm176_vm0, %v18247_v1  ;;  %2077 = vmatmul.bf16.vlgmr.msra.gmra.mxu1 %v1968_v44  ;;  %v19847_v11 = vpop.f32.mrf.mxu0  ;;  %v18346_v1 = vld [vmem:[%s23323_s3 + $0xc0] sm:$0xff]  ;;  %v2430_v44 = vsel %vm2423_vm1, %v2427_v30, %v2429_v8 }
 0x13a   :  { %2992 = vmatpush.bf16.msra.mxu3 %v18346_v1 }
 0x13b   :  { %2540 = vmatmul.bf16.gmra.mxu2 %v2428_v34  ;;  %v1331_v35 = vmax.f32 %v1295_v7, 0.0 }
 0x13c   :  { %v1151_v2 = vpop.f32.mrf.mxu3 }
 0x13d   :  { %v19069_v61 = vpack.c.bf16 %v1331_v35, %v1330_v56  ;;  %v1220_v40 = vmax.f32 %v19683_v12, %v1151_v2 }
 0x13e   :  { %v19839_v41 = vpop.f32.mrf.mxu2  ;;  %v19844_v24 = vpop.f32.mrf.mxu1 }
 0x13f   :  { %19131 = vst [vmem:[#allocation2 + $0x30] sm:$0xff] %v19069_v61   ;;  %v1256_v13 = vmax.f32 %v624_v14, %v1220_v40  ;;  %v18279_v61 = vld [vmem:[#allocation2 + $0x18] sm:$0xff]  ;;  %v18306_v40 = vld [vmem:[#allocation2 + $0x20] sm:$0xff] }
 0x140   :  { %v1971_v14 = vrot.slane %v18279_v61, 1 }
 0x141   :  { %v1296_v62 = vadd.f32 %v19570_v47, %v1256_v13  ;;  %v19873_v39 = vpop.f32.mrf.mxu0 }
 0x143   :  { %v1332_v7 = vmax.f32 %v1296_v62, 0.0 }
 0x144   :  { %v1153_v12 = vpop.f32.mrf.mxu3 }
 0x145   :  { %v1221_v45 = vmax.f32 %v19703_v5, %v1153_v12  ;;  %v2431_v12 = vrot.slane %v18306_v40, 2 }
 0x146   :  { %v19859_v4 = vpop.f32.mrf.mxu2  ;;  %v19868_v54 = vpop.f32.mrf.mxu1  ;;  %v18256_v51 = vld [vmem:[#allocation2 + $0x30] sm:$0xff] }
 0x147   :  { %v1257_v49 = vmax.f32 %v625_v38, %v1221_v45  ;;  %1685 = vmatmul.bf16.gmra.mxu0 %v18256_v51 }
 0x149   :  { %v1297_v5 = vadd.f32 %v19570_v47, %v1257_v49  ;;  %14406 = vmatmul.msk.bf16.gmra.mxu3 %vm176_vm0, %v18248_v33  ;;  %2082 = vmatmul.bf16.gmra.mxu1 %v1970_v53  ;;  %v19884_v37 = vpop.f32.mrf.mxu0  ;;  %v1972_v33 = vsel %vm1965_vm2, %v1969_v16, %v1971_v14 }
 0x14b   :  { %2545 = vmatmul.bf16.gmra.mxu2 %v2430_v44  ;;  %v1333_v34 = vmax.f32 %v1297_v5, 0.0  ;;  %v14770_v44 = vld [vmem:[#allocation2] sm:$0x8] }
 0x14c   :  { %v1156_v21 = vpop.f32.mrf.mxu3 }
 0x14d   :  { %v19074_v56 = vpack.c.bf16 %v1333_v34, %v1332_v7  ;;  %v1222_v60 = vmax.f32 %v19730_v32, %v1156_v21  ;;  %v18249_v32 = vld [vmem:[%s23320_s0 + $0x238] sm:$0xff]  ;;  %v18328_v7 = vld [vmem:[#allocation2] sm:$0xf0]  ;;  %v18329_v21 = vld [vmem:[#allocation2 + $0x8] sm:$0xff] }
 0x14e   :  { %v19877_v35 = vpop.f32.mrf.mxu2  ;;  %v19879_v2 = vpop.f32.mrf.mxu1  ;;  %v18280_v34 = vld [vmem:[#allocation2 + $0x20] sm:$0xff]  ;;  %v14771_v61 = vor.u32 %v18328_v7, %v14770_v44  ;;  %v18281_v7 = vld [vmem:[#allocation2 + $0x28] sm:$0xff] }
 0x14f   :  { %19132 = vst [vmem:[#allocation2 + $0x38] sm:$0xff] %v19074_v56   ;;  %v1258_v26 = vmax.f32 %v626_v18, %v1222_v60  ;;  %v628_v56 = vmax.f32 %v19768_v6, %v19797_v36  ;;  %v18307_v60 = vld [vmem:[#allocation2 + $0x28] sm:$0xff] }
 0x150   :  { %v2882_v36 = vrot.slane %v14771_v61, 3 }
 0x151   :  { %v1298_v3 = vadd.f32 %v19570_v47, %v1258_v26  ;;  %v19901_v49 = vpop.f32.mrf.mxu0  ;;  %v1973_v26 = vrot.slane %v18280_v34, 1  ;;  %v18308_v34 = vld [vmem:[#allocation2 + $0x30] sm:$0xff] }
 0x153   :  { %v1334_v9 = vmax.f32 %v1298_v3, 0.0 }
 0x154   :  { %v1158_v30 = vpop.f32.mrf.mxu3 }
 0x155   :  { %v1223_v13 = vmax.f32 %v19750_v57, %v1158_v30  ;;  %v2432_v57 = vsel %vm2423_vm1, %v2429_v8, %v2431_v12  ;;  %v18375_v8 = vld [vmem:[%s23323_s3 + $0x118] sm:$0xff]  ;;  %v2883_v30 = vrot.slane %v18329_v21, 3 }
 0x156   :  { %v19888_v29 = vpop.f32.mrf.mxu2  ;;  %v19894_v38 = vpop.f32.mrf.mxu1  ;;  %v18257_v19 = vld [vmem:[#allocation2 + $0x38] sm:$0xff]  ;;  %3405 = vmatpush.bf16.msra.mxu0 %v18375_v8  ;;  %v18330_v8 = vld [vmem:[#allocation2 + $0x10] sm:$0xff] }
 0x157   :  { %v1259_v45 = vmax.f32 %v627_v20, %v1223_v13  ;;  %1690 = vmatmul.bf16.gmra.mxu0 %v18257_v19  ;;  %v2433_v19 = vrot.slane %v18307_v60, 2  ;;  %v1975_v60 = vrot.slane %v18281_v7, 1  ;;  %v2885_v61 = vrot.slane %v18330_v8, 3  ;;  %v18374_v7 = vld [vmem:[%s23323_s3 + $0x110] sm:$0xff] }
 0x159   :  { %v1299_v58 = vadd.f32 %v19570_v47, %v1259_v45  ;;  %14407 = vmatmul.msk.bf16.gmra.mxu3 %vm176_vm0, %v18249_v32  ;;  %2087 = vmatmul.bf16.gmra.mxu1 %v1972_v33 }
 0x15a   :  { %3406 = vmatpush.bf16.msra.mxu0 %v18374_v7 }
 0x15b   :  { %2550 = vmatmul.bf16.gmra.mxu2 %v2432_v57  ;;  %v1335_v1 = vmax.f32 %v1299_v58, 0.0  ;;  %v1974_v58 = vsel %vm1965_vm2, %v1971_v14, %v1973_v26 }
 0x15c   :  { %v1161_v51 = vpop.f32.mrf.mxu3 }
 0x15d   :  { %v19079_v62 = vpack.c.bf16 %v1335_v1, %v1334_v9  ;;  %v1224_v16 = vmax.f32 %v19774_v28, %v1161_v51  ;;  %v629_v28 = vmax.f32 %v19784_v25, %v19808_v31  ;;  %v2884_v25 = vsel %vm2881_vm3, %v2882_v36, %v2883_v30 }
 0x15e   :  { %v19903_v53 = vpop.f32.mrf.mxu2  ;;  %v19905_v5 = vpop.f32.mrf.mxu1 }
 0x15f   :  { %19133 = vst [vmem:[#allocation2 + $0x40] sm:$0xff] %v19079_v62   ;;  %v1260_v18 = vmax.f32 %v628_v56, %v1224_v16 }
 0x161   :  { %v1300_v45 = vadd.f32 %v19570_v47, %v1260_v18  ;;  %v631_v18 = vmax.f32 %v19823_v43, %v19844_v24 }
 0x163   :  { %v1336_v57 = vmax.f32 %v1300_v45, 0.0  ;;  %v1976_v45 = vsel %vm1965_vm2, %v1973_v26, %v1975_v60 }
 0x164   :  { %v1163_v40 = vpop.f32.mrf.mxu3  ;;  %v19918_v32 = vpop.f32.mrf.mxu0 }
 0x165   :  { %v1225_v13 = vmax.f32 %v19788_v17, %v1163_v40  ;;  %v2434_v17 = vsel %vm2423_vm1, %v2431_v12, %v2433_v19  ;;  %v630_v12 = vmax.f32 %v19804_v55, %v19829_v52 }
 0x166   :  { %v19915_v20 = vpop.f32.mrf.mxu2  ;;  %v19920_v3 = vpop.f32.mrf.mxu1  ;;  %v18258_v6 = vld [vmem:[#allocation2 + $0x40] sm:$0xff] }
 0x167   :  { %v1261_v33 = vmax.f32 %v629_v28, %v1225_v13  ;;  %1695 = vmatmul.bf16.gmra.mxu0 %v18258_v6 }
 0x169   :  { %v1301_v31 = vadd.f32 %v19570_v47, %v1261_v33  ;;  %2092 = vmatmul.bf16.gmra.mxu1 %v1974_v58  ;;  %2993 = vmatmul.bf16.vlgmr.msra.gmra.mxu3 %v2884_v25  ;;  %v2886_v33 = vsel %vm2881_vm3, %v2883_v30, %v2885_v61  ;;  %v18282_v30 = vld [vmem:[#allocation2 + $0x30] sm:$0xff] }
 0x16b   :  { %2555 = vmatmul.bf16.gmra.mxu2 %v2434_v17  ;;  %v1337_v9 = vmax.f32 %v1301_v31, 0.0 }
 0x16c   :  { %v1166_v1 = vpop.f32.mrf.mxu3  ;;  %v19929_v16 = vpop.f32.mrf.mxu0 }
 0x16d   :  { %v19084_v51 = vpack.c.bf16 %v1337_v9, %v1336_v57  ;;  %v1226_v14 = vmax.f32 %v19806_v22, %v1166_v1  ;;  %v2435_v22 = vrot.slane %v18308_v34, 2  ;;  %v18331_v1 = vld [vmem:[#allocation2 + $0x18] sm:$0xff] }
 0x16e   :  { %v19927_v62 = vpop.f32.mrf.mxu2  ;;  %v19931_v44 = vpop.f32.mrf.mxu1  ;;  %v2887_v34 = vrot.slane %v18331_v1, 3 }
 0x16f   :  { %19134 = vst [vmem:[#allocation2 + $0x48] sm:$0xff] %v19084_v51   ;;  %v1262_v21 = vmax.f32 %v630_v12, %v1226_v14  ;;  %v2436_v24 = vsel %vm2423_vm1, %v2433_v19, %v2435_v22  ;;  %v632_v19 = vmax.f32 %v19847_v11, %v19868_v54  ;;  %v18309_v51 = vld [vmem:[#allocation2 + $0x38] sm:$0xff]  ;;  %v1977_v12 = vrot.slane %v18282_v30, 1 }
 0x171   :  { %v1302_v55 = vadd.f32 %v19570_v47, %v1262_v21  ;;  %v633_v21 = vmax.f32 %v19873_v39, %v19879_v2 }
 0x174   :  { %v1168_v56 = vpop.f32.mrf.mxu3  ;;  %v19941_v13 = vpop.f32.mrf.mxu0 }
 0x175   :  { %v1227_v28 = vmax.f32 %v19820_v63, %v1168_v56  ;;  %v1338_v63 = vmax.f32 %v1302_v55, 0.0 }
 0x176   :  { %v19938_v40 = vpop.f32.mrf.mxu2  ;;  %v19943_v6 = vpop.f32.mrf.mxu1  ;;  %v18259_v36 = vld [vmem:[#allocation2 + $0x48] sm:$0xff] }
 0x177   :  { %v1263_v52 = vmax.f32 %v631_v18, %v1227_v28  ;;  %1700 = vmatmul.bf16.gmra.mxu0 %v18259_v36  ;;  %v2437_v28 = vrot.slane %v18309_v51, 2 }
 0x179   :  { %v1303_v43 = vadd.f32 %v19570_v47, %v1263_v52  ;;  %2097 = vmatmul.bf16.gmra.mxu1 %v1976_v45  ;;  %2998 = vmatmul.bf16.gmra.mxu3 %v2886_v33  ;;  %v1978_v52 = vsel %vm1965_vm2, %v1975_v60, %v1977_v12  ;;  %v2888_v45 = vsel %vm2881_vm3, %v2885_v61, %v2887_v34  ;;  %v18283_v61 = vld [vmem:[#allocation2 + $0x38] sm:$0xff] }
 0x17b   :  { %2560 = vmatmul.bf16.gmra.mxu2 %v2436_v24  ;;  %v1339_v58 = vmax.f32 %v1303_v43, 0.0 }
 0x17c   :  { %v1171_v25 = vpop.f32.mrf.mxu3  ;;  %v19952_v57 = vpop.f32.mrf.mxu0 }
 0x17d   :  { %v19089_v31 = vpack.c.bf16 %v1339_v58, %v1338_v63  ;;  %v1228_v26 = vmax.f32 %v19839_v41, %v1171_v25 }
 0x17e   :  { %v19950_v17 = vpop.f32.mrf.mxu2  ;;  %v19954_v9 = vpop.f32.mrf.mxu1 }
 0x17f   :  { %19135 = vst [vmem:[#allocation2 + $0x50] sm:$0xff] %v19089_v31   ;;  %v1264_v14 = vmax.f32 %v632_v19, %v1228_v26  ;;  %v18332_v31 = vld [vmem:[#allocation2 + $0x20] sm:$0xff]  ;;  %v1979_v19 = vrot.slane %v18283_v61, 1  ;;  %v18373_v61 = vld [vmem:[%s23323_s3 + $0x108] sm:$0xff] }
 0x180   :  { %v18310_v26 = vld [vmem:[#allocation2 + $0x40] sm:$0xff]  ;;  %v2889_v51 = vrot.slane %v18332_v31, 3  ;;  %3407 = vmatpush.bf16.msra.mxu0 %v18373_v61 }
 0x181   :  { %v1304_v36 = vadd.f32 %v19570_v47, %v1264_v14  ;;  %v635_v14 = vmax.f32 %v19901_v49, %v19905_v5 }
 0x183   :  { %v1340_v2 = vmax.f32 %v1304_v36, 0.0  ;;  %v1980_v36 = vsel %vm1965_vm2, %v1977_v12, %v1979_v19 }
 0x184   :  { %v1173_v8 = vpop.f32.mrf.mxu3  ;;  %v19967_v18 = vpop.f32.mrf.mxu0 }
 0x185   :  { %v1229_v41 = vmax.f32 %v19859_v4, %v1173_v8  ;;  %v2438_v4 = vsel %vm2423_vm1, %v2435_v22, %v2437_v28  ;;  %v634_v22 = vmax.f32 %v19884_v37, %v19894_v38 }
 0x186   :  { %v19964_v56 = vpop.f32.mrf.mxu2  ;;  %v19969_v11 = vpop.f32.mrf.mxu1  ;;  %v18260_v54 = vld [vmem:[#allocation2 + $0x50] sm:$0xff] }
 0x187   :  { %v1265_v55 = vmax.f32 %v633_v21, %v1229_v41  ;;  %1705 = vmatmul.bf16.gmra.mxu0 %v18260_v54 }
 0x189   :  { %v1305_v39 = vadd.f32 %v19570_v47, %v1265_v55  ;;  %2102 = vmatmul.bf16.gmra.mxu1 %v1978_v52  ;;  %3003 = vmatmul.bf16.gmra.mxu3 %v2888_v45  ;;  %v2890_v55 = vsel %vm2881_vm3, %v2887_v34, %v2889_v51  ;;  %v18284_v34 = vld [vmem:[#allocation2 + $0x40] sm:$0xff] }
 0x18b   :  { %2565 = vmatmul.bf16.gmra.mxu2 %v2438_v4  ;;  %v1341_v33 = vmax.f32 %v1305_v39, 0.0 }
 0x18c   :  { %v1176_v43 = vpop.f32.mrf.mxu3  ;;  %v19978_v58 = vpop.f32.mrf.mxu0 }
 0x18d   :  { %v19094_v24 = vpack.c.bf16 %v1341_v33, %v1340_v2  ;;  %v1230_v60 = vmax.f32 %v19877_v35, %v1176_v43  ;;  %v2439_v35 = vrot.slane %v18310_v26, 2  ;;  %v18333_v43 = vld [vmem:[#allocation2 + $0x28] sm:$0xff] }
 0x18e   :  { %v19976_v63 = vpop.f32.mrf.mxu2  ;;  %v19980_v25 = vpop.f32.mrf.mxu1  ;;  %v2891_v26 = vrot.slane %v18333_v43, 3 }
 0x18f   :  { %19136 = vst [vmem:[#allocation2 + $0x58] sm:$0xff] %v19094_v24   ;;  %v1266_v30 = vmax.f32 %v634_v22, %v1230_v60  ;;  %v2440_v5 = vsel %vm2423_vm1, %v2437_v28, %v2439_v35  ;;  %v636_v28 = vmax.f32 %v19395_v42, %v19920_v3  ;;  %v18311_v24 = vld [vmem:[#allocation2 + $0x48] sm:$0xff]  ;;  %v1981_v22 = vrot.slane %v18284_v34, 1 }
 0x191   :  { %v1306_v37 = vadd.f32 %v19570_v47, %v1266_v30  ;;  %v637_v30 = vmax.f32 %v19413_v48, %v19931_v44 }
 0x194   :  { %v1178_v1 = vpop.f32.mrf.mxu3  ;;  %v19990_v21 = vpop.f32.mrf.mxu0 }
 0x195   :  { %v1231_v8 = vmax.f32 %v19888_v29, %v1178_v1  ;;  %v1342_v29 = vmax.f32 %v1306_v37, 0.0 }
 0x196   :  { %v19987_v7 = vpop.f32.mrf.mxu2  ;;  %v19992_v41 = vpop.f32.mrf.mxu1  ;;  %v18261_v54 = vld [vmem:[#allocation2 + $0x58] sm:$0xff] }
 0x197   :  { %v1267_v38 = vmax.f32 %v635_v14, %v1231_v8  ;;  %1710 = vmatmul.bf16.gmra.mxu0 %v18261_v54  ;;  %v2441_v8 = vrot.slane %v18311_v24, 2  ;;  %v639_v24 = vmax.f32 %v19417_v50, %v19954_v9 }
 0x199   :  { %v1307_v49 = vadd.f32 %v19570_v47, %v1267_v38  ;;  %2107 = vmatmul.bf16.gmra.mxu1 %v1980_v36  ;;  %3008 = vmatmul.bf16.gmra.mxu3 %v2890_v55  ;;  %v1982_v38 = vsel %vm1965_vm2, %v1979_v19, %v1981_v22  ;;  %v2892_v36 = vsel %vm2881_vm3, %v2889_v51, %v2891_v26  ;;  %v18285_v51 = vld [vmem:[#allocation2 + $0x48] sm:$0xff] }
 0x19a   :  { %v1983_v43 = vrot.slane %v18285_v51, 1  ;;  %v18405_v51 = vld [vmem:[%s23323_s3 + $0x178] sm:$0xff] }
 0x19b   :  { %2570 = vmatmul.bf16.gmra.mxu2 %v2440_v5  ;;  %v1343_v52 = vmax.f32 %v1307_v49, 0.0  ;;  %3817 = vmatpush.bf16.msrb.mxu1 %v18405_v51 }
 0x19c   :  { %v1181_v45 = vpop.f32.mrf.mxu3  ;;  %v20001_v2 = vpop.f32.mrf.mxu0  ;;  %v1984_v50 = vsel %vm1965_vm2, %v1981_v22, %v1983_v43 }
 0x19d   :  { %v19099_v39 = vpack.c.bf16 %v1343_v52, %v1342_v29  ;;  %v1232_v12 = vmax.f32 %v19903_v53, %v1181_v45 }
 0x19e   :  { %v19999_v4 = vpop.f32.mrf.mxu2  ;;  %v20003_v33 = vpop.f32.mrf.mxu1 }
 0x19f   :  { %19137 = vst [vmem:[#allocation2 + $0x60] sm:$0xff] %v19099_v39   ;;  %v1268_v60 = vmax.f32 %v636_v28, %v1232_v12  ;;  %v18312_v39 = vld [vmem:[#allocation2 + $0x50] sm:$0xff] }
 0x1a1   :  { %v1308_v54 = vadd.f32 %v19570_v47, %v1268_v60 }
 0x1a3   :  { %v1344_v44 = vmax.f32 %v1308_v54, 0.0 }
 0x1a4   :  { %v1183_v31 = vpop.f32.mrf.mxu3  ;;  %v20016_v14 = vpop.f32.mrf.mxu0 }
 0x1a5   :  { %v1233_v53 = vmax.f32 %v19915_v20, %v1183_v31  ;;  %v2442_v20 = vsel %vm2423_vm1, %v2439_v35, %v2441_v8  ;;  %v638_v35 = vmax.f32 %v19409_v46, %v19943_v6  ;;  %v20046_v46 = vld [vmem:[%s23322_s2] ss:$0 sm:$0xff] }
 0x1a6   :  { %v20013_v1 = vpop.f32.mrf.mxu2  ;;  %v20018_v42 = vpop.f32.mrf.mxu1  ;;  %v18262_v3 = vld [vmem:[#allocation2 + $0x60] sm:$0xff] }
 0x1a7   :  { %v1269_v37 = vmax.f32 %v637_v30, %v1233_v53  ;;  %1715 = vmatmul.bf16.gmra.mxu0 %v18262_v3 }
 0x1a9   :  { %v1309_v48 = vadd.f32 %v19570_v47, %v1269_v37  ;;  %2112 = vmatmul.bf16.gmra.mxu1 %v1982_v38  ;;  %3013 = vmatmul.bf16.gmra.mxu3 %v2892_v36  ;;  %v18334_v47 = vld [vmem:[#allocation2 + $0x30] sm:$0xff] }
 0x1aa   :  { %v2893_v28 = vrot.slane %v18334_v47, 3 }
 0x1ab   :  { %2575 = vmatmul.bf16.gmra.mxu2 %v2442_v20  ;;  %v1345_v55 = vmax.f32 %v1309_v48, 0.0 }
 0x1ac   :  { %v1186_v49 = vpop.f32.mrf.mxu3  ;;  %v20027_v52 = vpop.f32.mrf.mxu0 }
 0x1ad   :  { %v19104_v5 = vpack.c.bf16 %v1345_v55, %v1344_v44  ;;  %v1234_v19 = vmax.f32 %v19927_v62, %v1186_v49  ;;  %v2443_v62 = vrot.slane %v18312_v39, 2  ;;  %v20062_v49 = vld [vmem:[#allocation2 + $0x38] sm:$0xff] }
 0x1ae   :  { %v20025_v29 = vpop.f32.mrf.mxu2  ;;  %v20029_v45 = vpop.f32.mrf.mxu1  ;;  %v2895_v39 = vrot.slane %v20062_v49, 3 }
 0x1af   :  { %19138 = vst [vmem:[#allocation2 + $0x68] sm:$0xff] %v19104_v5   ;;  %v1270_v12 = vmax.f32 %v638_v35, %v1234_v19  ;;  %v2444_v54 = vsel %vm2423_vm1, %v2441_v8, %v2443_v62  ;;  %v640_v8 = vmax.f32 %v19444_v59, %v19969_v11  ;;  %v20066_v5 = vld [vmem:[#allocation2 + $0x58] sm:$0xff] }
 0x1b0   :  { %v2445_v11 = vrot.slane %v20066_v5, 2  ;;  %v19185_v5 = vmov 0  }
 0x1b1   :  { %v1310_v6 = vadd.f32 %v20046_v46, %v1270_v12  ;;  %1426 = vst [vmem:[#allocation2 + $0x90] sm:$0xf] %v19185_v5 }
 0x1b2   :  { %1427 = vst [vmem:[#allocation2 + $0x94] sm:$0xf] %v19185_v5 }
 0x1b3   :  { %v1346_v37 = vmax.f32 %v1310_v6, 0.0  ;;  %1428 = vst [vmem:[#allocation2 + $0x98] sm:$0xf] %v19185_v5 }
 0x1b4   :  { %v1188_v34 = vpop.f32.mrf.mxu3  ;;  %v20039_v31 = vpop.f32.mrf.mxu0  ;;  %1429 = vst [vmem:[#allocation2 + $0x9c] sm:$0xf] %v19185_v5 }
 0x1b5   :  { %v1235_v60 = vmax.f32 %v19938_v40, %v1188_v34  ;;  %v2894_v40 = vsel %vm2881_vm3, %v2891_v26, %v2893_v28  ;;  %v20060_v26 = vld [vmem:[#allocation2 + $0x50] sm:$0xff]  ;;  %1430 = vst [vmem:[#allocation2 + $0xa0] sm:$0xf] %v19185_v5 }
 0x1b6   :  { %v20037_v61 = vpop.f32.mrf.mxu2  ;;  %v20041_v30 = vpop.f32.mrf.mxu1  ;;  %v18263_v53 = vld [vmem:[#allocation2 + $0x68] sm:$0xff]  ;;  %v1985_v35 = vrot.slane %v20060_v26, 1  ;;  %1431 = vst [vmem:[#allocation2 + $0xa4] sm:$0xf] %v19185_v5 }
 0x1b7   :  { %v1271_v3 = vmax.f32 %v639_v24, %v1235_v60  ;;  %1720 = vmatmul.bf16.gmra.mxu0 %v18263_v53  ;;  %1432 = vst [vmem:[#allocation2 + $0xa8] sm:$0xf] %v19185_v5 }
 0x1b8   :  { %1433 = vst [vmem:[#allocation2 + $0xac] sm:$0xf] %v19185_v5 }
 0x1b9   :  { %v1311_v9 = vadd.f32 %v20046_v46, %v1271_v3  ;;  %2117 = vmatmul.bf16.gmra.mxu1 %v1984_v50  ;;  %3018 = vmatmul.bf16.gmra.mxu3 %v2894_v40  ;;  %v2446_v3 = vsel %vm2423_vm1, %v2443_v62, %v2445_v11  ;;  %v18431_v62 = vld [vmem:[%s23323_s3 + $0x1b8] sm:$0xff]  ;;  %1434 = vst [vmem:[#allocation2 + $0xb0] sm:$0xf] %v19185_v5 }
 0x1ba   :  { %4274 = vmatpush.bf16.msra.mxu2 %v18431_v62  ;;  %1435 = vst [vmem:[#allocation2 + $0xb4] sm:$0xf] %v19185_v5  ;;  %v644_v62 = vmax.f32 %v19520_v23, %v20018_v42 }
 0x1bb   :  { %2580 = vmatmul.bf16.gmra.mxu2 %v2444_v54  ;;  %v1347_v38 = vmax.f32 %v1311_v9, 0.0  ;;  %1436 = vst [vmem:[#allocation2 + $0xb8] sm:$0xf] %v19185_v5 }
 0x1bc   :  { %v1191_v36 = vpop.f32.mrf.mxu3  ;;  %v20055_v44 = vpop.f32.mrf.mxu0  ;;  %1437 = vst [vmem:[#allocation2 + $0xbc] sm:$0xf] %v19185_v5 }
 0x1bd   :  { %v19109_v48 = vpack.c.bf16 %v1347_v38, %v1346_v37  ;;  %v1236_v22 = vmax.f32 %v19950_v17, %v1191_v36  ;;  %v641_v17 = vmax.f32 %v19455_v0, %v19980_v25  ;;  %v1986_v0 = vsel %vm1965_vm2, %v1983_v43, %v1985_v35  ;;  %v18372_v36 = vld [vmem:[%s23323_s3 + $0x100] sm:$0xff]  ;;  %1438 = vst [vmem:[#allocation2 + $0xc0] sm:$0xf] %v19185_v5 }
 0x1be   :  { %v20053_v20 = vpop.f32.mrf.mxu2  ;;  %v20057_v55 = vpop.f32.mrf.mxu1  ;;  %3408 = vmatpush.bf16.msra.mxu0 %v18372_v36  ;;  %v20146_v36 = vld [vmem:[#allocation2 + $0x48] sm:$0xff] }
 0x1bf   :  { %19139 = vst [vmem:[#allocation2 + $0x70] sm:$0xff] %v19109_v48   ;;  %v1272_v19 = vmax.f32 %v640_v8, %v1236_v22  ;;  %v18457_v48 = vld [vmem:[%s23323_s3 + $0x1f8] sm:$0xff]  ;;  %v20110_v8 = vld [vmem:[#allocation2 + $0x40] sm:$0xff] }
 0x1c0   :  { %v20108_v22 = vld [vmem:[#allocation2 + $0x58] sm:$0xff]  ;;  %4731 = vmatpush.bf16.msrb.mxu3 %v18457_v48  ;;  %v20150_v48 = vld [vmem:[#allocation2 + $0x68] sm:$0xff] }
 0x1c1   :  { %v1312_v53 = vadd.f32 %v20046_v46, %v1272_v19  ;;  %v20114_v19 = vld [vmem:[#allocation2 + $0x60] sm:$0xff] }
 0x1c3   :  { %v1348_v50 = vmax.f32 %v1312_v53, 0.0 }
 0x1c4   :  { %v1193_v47 = vpop.f32.mrf.mxu3  ;;  %v20078_v59 = vpop.f32.mrf.mxu0 }
 0x1c5   :  { %v1237_v12 = vmax.f32 %v19964_v56, %v1193_v47  ;;  %v2896_v56 = vsel %vm2881_vm3, %v2893_v28, %v2895_v39 }
 0x1c6   :  { %v20076_v34 = vpop.f32.mrf.mxu2  ;;  %v20081_v24 = vpop.f32.mrf.mxu1  ;;  %v18264_v60 = vld [vmem:[#allocation2 + $0x70] sm:$0xff] }
 0x1c7   :  { %v1273_v6 = vmax.f32 %v641_v17, %v1237_v12  ;;  %1725 = vmatmul.bf16.gmra.mxu0 %v18264_v60  ;;  %v1987_v17 = vrot.slane %v20108_v22, 1  ;;  %v2897_v12 = vrot.slane %v20110_v8, 3  ;;  %v643_v60 = vmax.f32 %v19496_v15, %v20003_v33 }
 0x1c9   :  { %v1313_v25 = vadd.f32 %v20046_v46, %v1273_v6  ;;  %2122 = vmatmul.bf16.gmra.mxu1 %v1986_v0  ;;  %3023 = vmatmul.bf16.gmra.mxu3 %v2896_v56  ;;  %v2447_v6 = vrot.slane %v20114_v19, 2  ;;  %v1988_v15 = vsel %vm1965_vm2, %v1985_v35, %v1987_v17  ;;  %v645_v19 = vmax.f32 %v19528_v27, %v20029_v45 }
 0x1cb   :  { %2585 = vmatmul.bf16.gmra.mxu2 %v2446_v3  ;;  %v1349_v40 = vmax.f32 %v1313_v25, 0.0 }
 0x1cc   :  { %v1196_v9 = vpop.f32.mrf.mxu3  ;;  %v20094_v38 = vpop.f32.mrf.mxu0 }
 0x1cd   :  { %v19114_v54 = vpack.c.bf16 %v1349_v40, %v1348_v50  ;;  %v1238_v28 = vmax.f32 %v19976_v63, %v1196_v9  ;;  %v642_v63 = vmax.f32 %v19485_v10, %v19992_v41  ;;  %v2448_v50 = vsel %vm2423_vm1, %v2445_v11, %v2447_v6  ;;  %v20144_v11 = vld [vmem:[#allocation2 + $0x60] sm:$0xff] }
 0x1ce   :  { %v20092_v37 = vpop.f32.mrf.mxu2  ;;  %v20096_v43 = vpop.f32.mrf.mxu1  ;;  %v1989_v5 = vrot.slane %v20144_v11, 1  ;;  %v18456_v11 = vld [vmem:[%s23323_s3 + $0x1f0] sm:$0xff] }
 0x1cf   :  { %19140 = vst [vmem:[#allocation2 + $0x78] sm:$0xff] %v19114_v54   ;;  %v1274_v51 = vmax.f32 %v642_v63, %v1238_v28  ;;  %v2899_v63 = vrot.slane %v20146_v36, 3  ;;  %4732 = vmatpush.bf16.msrb.mxu3 %v18456_v11 }
 0x1d0   :  { %v1990_v27 = vsel %vm1965_vm2, %v1987_v17, %v1989_v5 }
 0x1d1   :  { %v1314_v25 = vadd.f32 %v20046_v46, %v1274_v51 }
 0x1d3   :  { %v1350_v40 = vmax.f32 %v1314_v25, 0.0 }
 0x1d4   :  { %v1198_v47 = vpop.f32.mrf.mxu3  ;;  %v20123_v53 = vpop.f32.mrf.mxu0 }
 0x1d5   :  { %v1239_v10 = vmax.f32 %v19987_v7, %v1198_v47  ;;  %v2898_v7 = vsel %vm2881_vm3, %v2895_v39, %v2897_v12 }
 0x1d6   :  { %v20121_v41 = vpop.f32.mrf.mxu2  ;;  %v20126_v0 = vpop.f32.mrf.mxu1  ;;  %v18265_v56 = vld [vmem:[#allocation2 + $0x78] sm:$0xff] }
 0x1d7   :  { %v1275_v3 = vmax.f32 %v643_v60, %v1239_v10  ;;  %1730 = vmatmul.bf16.gmra.mxu0 %v18265_v56  ;;  %v2449_v60 = vrot.slane %v20150_v48, 2  ;;  %v2168_v10 = vadd.f32 %v20041_v30, %v19918_v32  ;;  %v18483_v32 = vld [vmem:[%s23323_s3 + $0x238] sm:$0xff] }
 0x1d8   :  { %5188 = vmatpush.bf16.msrb.mxu0 %v18483_v32  ;;  %v18317_v32 = vld [vmem:[#allocation2 + $0x78] sm:$0xff] }
 0x1d9   :  { %v1315_v33 = vadd.f32 %v20046_v46, %v1275_v3  ;;  %2127 = vmatmul.bf16.gmra.mxu1 %v1988_v15  ;;  %3028 = vmatmul.bf16.gmra.mxu3 %v2898_v7  ;;  %v2450_v3 = vsel %vm2423_vm1, %v2447_v6, %v2449_v60  ;;  %v18404_v15 = vld [vmem:[%s23323_s3 + $0x170] sm:$0xff]  ;;  %v2626_v30 = vadd.f32 %v20025_v29, %v2168_v10 }
 0x1da   :  { %3818 = vmatpush.bf16.msrb.mxu1 %v18404_v15  ;;  %v18430_v29 = vld [vmem:[%s23323_s3 + $0x1b0] sm:$0xff]  ;;  %v2170_v10 = vadd.f32 %v20081_v24, %v19941_v13  ;;  %v2171_v24 = vadd.f32 %v20096_v43, %v19952_v57  ;;  %v2172_v57 = vadd.f32 %v20126_v0, %v19967_v18 }
 0x1db   :  { %2590 = vmatmul.bf16.gmra.mxu2 %v2448_v50  ;;  %v1351_v9 = vmax.f32 %v1315_v33, 0.0 }
 0x1dc   :  { %v1201_v26 = vpop.f32.mrf.mxu3  ;;  %v20139_v49 = vpop.f32.mrf.mxu0  ;;  %4275 = vmatpush.bf16.msra.mxu2 %v18430_v29  ;;  %v18354_v29 = vld [vmem:[#allocation2 + $0x4] sm:$0xff] }
 0x1dd   :  { %v19119_v35 = vpack.c.bf16 %v1351_v9, %v1350_v40  ;;  %v1240_v28 = vmax.f32 %v19999_v4, %v1201_v26  ;;  %v2169_v9 = vadd.f32 %v20057_v55, %v19929_v16  ;;  %v18289_v26 = vld [vmem:[#allocation2 + $0x68] sm:$0xff] }
 0x1de   :  { %v20137_v54 = vpop.f32.mrf.mxu2  ;;  %v20141_v39 = vpop.f32.mrf.mxu1  ;;  %v1991_v48 = vrot.slane %v18289_v26, 1 }
 0x1df   :  { %19141 = vst [vmem:[#allocation2 + $0x80] sm:$0xff] %v19119_v35   ;;  %v1276_v22 = vmax.f32 %v644_v62, %v1240_v28  ;;  %v18338_v35 = vld [vmem:[#allocation2 + $0x50] sm:$0xff]  ;;  %v2627_v36 = vadd.f32 %v20037_v61, %v2169_v9 }
 0x1e0   :  { %v18316_v28 = vld [vmem:[#allocation2 + $0x70] sm:$0xff]  ;;  %v2901_v16 = vrot.slane %v18338_v35, 3  ;;  %v1992_v61 = vsel %vm1965_vm2, %v1989_v5, %v1991_v48  ;;  %v18403_v35 = vld [vmem:[%s23323_s3 + $0x168] sm:$0xff] }
 0x1e1   :  { %v1316_v56 = vadd.f32 %v20046_v46, %v1276_v22  ;;  %v18290_v5 = vld [vmem:[#allocation2 + $0x70] sm:$0xff]  ;;  %3819 = vmatpush.bf16.msrb.mxu1 %v18403_v35 }
 0x1e3   :  { %v1352_v17 = vmax.f32 %v1316_v56, 0.0  ;;  %v2902_v56 = vsel %vm2881_vm3, %v2899_v63, %v2901_v16 }
 0x1e4   :  { %v1203_v8 = vpop.f32.mrf.mxu3  ;;  %v20159_v47 = vpop.f32.mrf.mxu0 }
 0x1e5   :  { %v1241_v4 = vmax.f32 %v20013_v1, %v1203_v8  ;;  %v2900_v1 = vsel %vm2881_vm3, %v2897_v12, %v2899_v63  ;;  %v18339_v63 = vld [vmem:[#allocation2 + $0x58] sm:$0xff] }
 0x1e6   :  { %v20157_v51 = vpop.f32.mrf.mxu2  ;;  %v20162_v23 = vpop.f32.mrf.mxu1  ;;  %v18266_v42 = vld [vmem:[#allocation2 + $0x80] sm:$0xff] }
 0x1e7   :  { %v1277_v25 = vmax.f32 %v645_v19, %v1241_v4  ;;  %1735 = vmatmul.bf16.gmra.mxu0 %v18266_v42  ;;  %v2451_v19 = vrot.slane %v18316_v28, 2  ;;  %v2630_v28 = vadd.f32 %v20092_v37, %v2172_v57  ;;  %v20242_v37 = vld [vmem:[#allocation2 + $0x60] sm:$0xff] }
 0x1e9   :  { %v1317_v45 = vadd.f32 %v20046_v46, %v1277_v25  ;;  %2132 = vmatmul.bf16.gmra.mxu1 %v1990_v27  ;;  %3033 = vmatmul.bf16.gmra.mxu3 %v2900_v1  ;;  %v2452_v25 = vsel %vm2423_vm1, %v2449_v60, %v2451_v19  ;;  %v2628_v27 = vadd.f32 %v20053_v20, %v2170_v10  ;;  %v2903_v20 = vrot.slane %v18339_v63, 3  ;;  %v18428_v63 = vld [vmem:[%s23323_s3 + $0x1a0] sm:$0xff] }
 0x1ea   :  { %v2629_v60 = vadd.f32 %v20076_v34, %v2171_v24 }
 0x1eb   :  { %2595 = vmatmul.bf16.gmra.mxu2 %v2450_v3  ;;  %v1353_v7 = vmax.f32 %v1317_v45, 0.0  ;;  %v2904_v34 = vsel %vm2881_vm3, %v2901_v16, %v2903_v20  ;;  %v18482_v16 = vld [vmem:[%s23323_s3 + $0x230] sm:$0xff] }
 0x1ec   :  { %v2994_v12 = vpop.f32.mrf.mxu3  ;;  %v20180_v50 = vpop.f32.mrf.mxu0  ;;  %5189 = vmatpush.bf16.msrb.mxu0 %v18482_v16 }
 0x1ed   :  { %v19124_v46 = vpack.c.bf16 %v1353_v7, %v1352_v17  ;;  %v3084_v6 = vadd.f32 %v2994_v12, %v2626_v30  ;;  %v1993_v17 = vrot.slane %v18290_v5, 1  ;;  %v18355_v5 = vld [vmem:[#allocation2 + $0xc] sm:$0xff] }
 0x1ee   :  { %v20178_v33 = vpop.f32.mrf.mxu2  ;;  %v20182_v40 = vpop.f32.mrf.mxu1 }
 0x1ef   :  { %19142 = vst [vmem:[#allocation2 + $0x88] sm:$0xff] %v19124_v46   ;;  %v1994_v43 = vsel %vm1965_vm2, %v1991_v48, %v1993_v17  ;;  %v2173_v48 = vadd.f32 %v20141_v39, %v19978_v58  ;;  %v18455_v58 = vld [vmem:[%s23323_s3 + $0x1e8] sm:$0xff] }
 0x1f0   :  { %3120 = vst [vmem:[#allocation3] sm:$0xff] %v3084_v6  ;;  %v2453_v6 = vrot.slane %v18317_v32, 2  ;;  %4733 = vmatpush.bf16.msrb.mxu3 %v18455_v58  ;;  %v18402_v58 = vld [vmem:[%s23323_s3 + $0x160] sm:$0xff] }
 0x1f1   :  { %v2631_v39 = vadd.f32 %v20121_v41, %v2173_v48  ;;  %v2174_v41 = vadd.f32 %v20162_v23, %v19990_v21  ;;  %v18427_v21 = vld [vmem:[%s23323_s3 + $0x198] sm:$0xff]  ;;  %3820 = vmatpush.bf16.msrb.mxu1 %v18402_v58  ;;  %v18454_v58 = vld [vmem:[%s23323_s3 + $0x1e0] sm:$0xff] }
 0x1f2   :  { %v2454_v26 = vsel %vm2423_vm1, %v2451_v19, %v2453_v6  ;;  %v20244_v19 = vld [vmem:[#allocation2 + $0x80] sm:$0xff] }
 0x1f4   :  { %v2996_v62 = vpop.f32.mrf.mxu3  ;;  %v20195_v8 = vpop.f32.mrf.mxu0  ;;  %4734 = vmatpush.bf16.msrb.mxu3 %v18454_v58 }
 0x1f5   :  { %v3085_v22 = vadd.f32 %v2996_v62, %v2627_v36 }
 0x1f6   :  { %v20193_v55 = vpop.f32.mrf.mxu2  ;;  %v20197_v4 = vpop.f32.mrf.mxu1  ;;  %v18267_v42 = vld [vmem:[#allocation2 + $0x88] sm:$0xff] }
 0x1f7   :  { %3121 = vst [vmem:[#allocation3 + $0x8] sm:$0xff] %v3085_v22  ;;  %1740 = vmatmul.bf16.gmra.mxu0 %v18267_v42  ;;  %v20240_v22 = vld [vmem:[#allocation2 + $0x78] sm:$0xff]  ;;  %v18429_v42 = vld [vmem:[%s23323_s3 + $0x1a8] sm:$0xff] }
 0x1f8   :  { %4276 = vmatpush.bf16.msra.mxu2 %v18429_v42 }
 0x1f9   :  { %2137 = vmatmul.bf16.gmra.mxu1 %v1992_v61  ;;  %3038 = vmatmul.bf16.gmra.mxu3 %v2902_v56  ;;  %v1995_v61 = vrot.slane %v20240_v22, 1  ;;  %v2905_v56 = vrot.slane %v20242_v37, 3 }
 0x1fb   :  { %2600 = vmatmul.bf16.gmra.mxu2 %v2452_v25  ;;  %v1996_v32 = vsel %vm1965_vm2, %v1993_v17, %v1995_v61 }
 0x1fc   :  { %v2999_v1 = vpop.f32.mrf.mxu3  ;;  %v20207_v15 = vpop.f32.mrf.mxu0  ;;  %4277 = vmatpush.bf16.msra.mxu2 %v18428_v63 }
 0x1fd   :  { %v3086_v3 = vadd.f32 %v2999_v1, %v2628_v27 }
 0x1fe   :  { %v20205_v45 = vpop.f32.mrf.mxu2  ;;  %v20209_v13 = vpop.f32.mrf.mxu1 }
 0x1ff   :  { %3122 = vst [vmem:[#allocation3 + $0x10] sm:$0xff] %v3086_v3  ;;  %v2455_v3 = vrot.slane %v20244_v19, 2  ;;  %v18356_v19 = vld [vmem:[#allocation2 + $0x14] sm:$0xff] }
 0x200   :  { %4278 = vmatpush.bf16.msra.mxu2 %v18427_v21  ;;  %v18342_v21 = vld [vmem:[#allocation2 + $0x70] sm:$0xff] }
 0x204   :  { %v3001_v30 = vpop.f32.mrf.mxu3  ;;  %v20216_v46 = vpop.f32.mrf.mxu0 }
 0x205   :  { %v3087_v12 = vadd.f32 %v3001_v30, %v2629_v60  ;;  %v2906_v60 = vsel %vm2881_vm3, %v2903_v20, %v2905_v56  ;;  %v2456_v30 = vsel %vm2423_vm1, %v2453_v6, %v2455_v3  ;;  %v2175_v20 = vadd.f32 %v20182_v40, %v20001_v2  ;;  %v20283_v6 = vld [vmem:[#allocation2 + $0x80] sm:$0xff] }
 0x206   :  { %v20214_v7 = vpop.f32.mrf.mxu2  ;;  %v20218_v9 = vpop.f32.mrf.mxu1  ;;  %v1997_v40 = vrot.slane %v20283_v6, 1 }
 0x207   :  { %3123 = vst [vmem:[#allocation3 + $0x18] sm:$0xff] %v3087_v12  ;;  %3409 = vmatmul.bf16.vlgmr.msra.gmra.mxu0 %v18354_v29  ;;  %v2632_v12 = vadd.f32 %v20137_v54, %v2174_v41  ;;  %v18426_v54 = vld [vmem:[%s23323_s3 + $0x190] sm:$0xff]  ;;  %v2633_v35 = vadd.f32 %v20157_v51, %v2175_v20  ;;  %v2176_v51 = vadd.f32 %v20197_v4, %v20016_v14  ;;  %v18401_v4 = vld [vmem:[%s23323_s3 + $0x158] sm:$0xff] }
 0x208   :  { %4279 = vmatpush.bf16.msra.mxu2 %v18426_v54  ;;  %3821 = vmatpush.bf16.msrb.mxu1 %v18401_v4  ;;  %v2909_v54 = vrot.slane %v18342_v21, 3  ;;  %v18406_v4 = vld [vmem:[#allocation2 + $0xc] sm:$0xf0] }
 0x209   :  { %2142 = vmatmul.bf16.gmra.mxu1 %v1994_v43  ;;  %3043 = vmatmul.bf16.gmra.mxu3 %v2904_v34  ;;  %v20285_v34 = vld [vmem:[#allocation2 + $0x68] sm:$0xff]  ;;  %v2634_v41 = vadd.f32 %v20178_v33, %v2176_v51 }
 0x20a   :  { %v18293_v33 = vld [vmem:[#allocation2 + $0x88] sm:$0xff] }
 0x20b   :  { %2605 = vmatmul.bf16.gmra.mxu2 %v2454_v26  ;;  %v20287_v26 = vld [vmem:[#allocation2 + $0x88] sm:$0xff] }
 0x20c   :  { %v3004_v11 = vpop.f32.mrf.mxu3  ;;  %v20231_v36 = vpop.f32.mrf.mxu0  ;;  %v2457_v22 = vrot.slane %v20287_v26, 2 }
 0x20d   :  { %v3088_v0 = vadd.f32 %v3004_v11, %v2630_v28  ;;  %v18425_v28 = vld [vmem:[%s23323_s3 + $0x188] sm:$0xff]  ;;  %v2907_v11 = vrot.slane %v20285_v34, 3 }
 0x20e   :  { %v20229_v18 = vpop.f32.mrf.mxu2  ;;  %v20233_v62 = vpop.f32.mrf.mxu1  ;;  %4280 = vmatpush.bf16.msra.mxu2 %v18425_v28  ;;  %v2458_v14 = vsel %vm2423_vm1, %v2455_v3, %v2457_v22  ;;  %v2177_v3 = vadd.f32 %v20209_v13, %v20027_v52  ;;  %v1999_v13 = vrot.slane %v18293_v33, 1 }
 0x20f   :  { %3124 = vst [vmem:[#allocation3 + $0x20] sm:$0xff] %v3088_v0 }
 0x210   :  { %v2635_v20 = vadd.f32 %v20193_v55, %v2177_v3  ;;  %v18398_v55 = vld [vmem:[%s23323_s3 + $0x140] sm:$0xff] }
 0x214   :  { %v3006_v10 = vpop.f32.mrf.mxu3  ;;  %v20257_v1 = vpop.f32.mrf.mxu0 }
 0x215   :  { %v3089_v27 = vadd.f32 %v3006_v10, %v2631_v39  ;;  %v18424_v39 = vld [vmem:[%s23323_s3 + $0x180] sm:$0xff]  ;;  %v1998_v10 = vsel %vm1965_vm2, %v1995_v61, %v1997_v40 }
 0x216   :  { %v20255_v25 = vpop.f32.mrf.mxu2  ;;  %v20260_v24 = vpop.f32.mrf.mxu1  ;;  %4281 = vmatpush.bf16.msra.mxu2 %v18424_v39 }
 0x217   :  { %3125 = vst [vmem:[#allocation3 + $0x28] sm:$0xff] %v3089_v27  ;;  %3414 = vmatmul.bf16.gmra.mxu0 %v18355_v5  ;;  %v2908_v27 = vsel %vm2881_vm3, %v2905_v56, %v2907_v11 }
 0x219   :  { %2147 = vmatmul.bf16.gmra.mxu1 %v1996_v32  ;;  %3048 = vmatmul.bf16.gmra.mxu3 %v2906_v60 }
 0x21b   :  { %2610 = vmatmul.bf16.gmra.mxu2 %v2456_v30 }
 0x21c   :  { %v3009_v23 = vpop.f32.mrf.mxu3  ;;  %v20274_v43 = vpop.f32.mrf.mxu0 }
 0x21d   :  { %v3090_v57 = vadd.f32 %v3009_v23, %v2632_v12  ;;  %v18400_v12 = vld [vmem:[%s23323_s3 + $0x150] sm:$0xff] }
 0x21e   :  { %v2571_v29 = vpop.f32.mrf.mxu2  ;;  %v20276_v17 = vpop.f32.mrf.mxu1  ;;  %3822 = vmatpush.bf16.msrb.mxu1 %v18400_v12 }
 0x21f   :  { %3126 = vst [vmem:[#allocation3 + $0x30] sm:$0xff] %v3090_v57  ;;  %v18399_v57 = vld [vmem:[%s23323_s3 + $0x148] sm:$0xff] }
 0x222   :  { %3823 = vmatpush.bf16.msrb.mxu1 %v18399_v57 }
 0x224   :  { %v3011_v2 = vpop.f32.mrf.mxu3  ;;  %v20297_v16 = vpop.f32.mrf.mxu0 }
 0x225   :  { %v3091_v48 = vadd.f32 %v3011_v2, %v2633_v35  ;;  %v18357_v2 = vld [vmem:[#allocation2 + $0x1c] sm:$0xff] }
 0x226   :  { %v20295_v0 = vpop.f32.mrf.mxu2  ;;  %v2113_v37 = vpop.f32.mrf.mxu1  ;;  %3824 = vmatpush.bf16.msrb.mxu1 %v18398_v55 }
 0x227   :  { %3127 = vst [vmem:[#allocation3 + $0x38] sm:$0xff] %v3091_v48  ;;  %v2182_v42 = vadd.f32 %v2113_v37, %v20123_v53  ;;  %3419 = vmatmul.bf16.gmra.mxu0 %v18356_v19  ;;  %v2312_v53 = vld [vmem:[#allocation2 + $0x90] sm:$0x3]  ;;  %v2178_v48 = vadd.f32 %v20218_v9, %v20039_v31  ;;  %v2000_v37 = vsel %vm1965_vm2, %v1997_v40, %v1999_v13 }
 0x228   :  { %v2403_v60 = vunpack.c.l.b16 %v2312_v53  ;;  %v2910_v19 = vsel %vm2881_vm3, %v2907_v11, %v2909_v54  ;;  %v18343_v53 = vld [vmem:[#allocation2 + $0x78] sm:$0xff] }
 0x229   :  { %v20311_v5 = vadd.f32 %v2571_v29, %v2182_v42  ;;  %2152 = vmatmul.bf16.gmra.mxu1 %v1998_v10  ;;  %3053 = vmatmul.bf16.gmra.mxu3 %v2908_v27  ;;  %v18481_v29 = vld [vmem:[%s23323_s3 + $0x228] sm:$0xff]  ;;  %v1854_v42 = vld [vmem:[#allocation2 + $0x90] sm:$0x1]  ;;  %v2636_v31 = vadd.f32 %v20205_v45, %v2178_v48  ;;  %v2911_v12 = vrot.slane %v18343_v53, 3 }
 0x22a   :  { %v2422_v23 = vpack.c.b16 %v2403_v60, %v2403_v60  ;;  %5190 = vmatpush.bf16.msrb.mxu0 %v18481_v29  ;;  %v1945_v39 = vunpack.c.l.b16 %v1854_v42 }
 0x22b   :  { %2615 = vmatmul.bf16.gmra.mxu2 %v2458_v14 }
 0x22c   :  { %v3014_v61 = vpop.f32.mrf.mxu3  ;;  %v20320_v32 = vpop.f32.mrf.mxu0  ;;  %v2459_v35 = vrot.slane %v2422_v23, 2  ;;  %v1964_v14 = vpack.c.b16 %v1945_v39, %v1945_v39 }
 0x22d   :  { %v3092_v56 = vadd.f32 %v3014_v61, %v2634_v41  ;;  %v18407_v41 = vld [vmem:[#allocation2 + $0x14] sm:$0xff]  ;;  %v15130_v61 = vld [vmem:[#allocation2 + $0xc] sm:$0xe] }
 0x22e   :  { %v20318_v63 = vpop.f32.mrf.mxu2  ;;  %v20322_v30 = vpop.f32.mrf.mxu1  ;;  %v2460_v51 = vsel %vm2423_vm1, %v2457_v22, %v2459_v35  ;;  %v2179_v22 = vadd.f32 %v20233_v62, %v20055_v44  ;;  %v2001_v3 = vrot.slane %v1964_v14, 1  ;;  %v4172_v29 = vrot.slane %v18407_v41, 1  ;;  %v18358_v44 = vld [vmem:[#allocation2 + $0x24] sm:$0xff]  ;;  %v18453_v14 = vld [vmem:[%s23323_s3 + $0x1d8] sm:$0xff] }
 0x22f   :  { %3128 = vst [vmem:[#allocation3 + $0x40] sm:$0xff] %v3092_v56  ;;  %v15131_v56 = vor.u32 %v18406_v4, %v15130_v61  ;;  %v2180_v62 = vadd.f32 %v20260_v24, %v20078_v59  ;;  %v2181_v24 = vadd.f32 %v20276_v17, %v20094_v38  ;;  %v18480_v38 = vld [vmem:[%s23323_s3 + $0x220] sm:$0xff]  ;;  %4735 = vmatpush.bf16.msrb.mxu3 %v18453_v14 }
 0x230   :  { %v2637_v45 = vadd.f32 %v20214_v7, %v2179_v22  ;;  %v2002_v7 = vsel %vm1965_vm2, %v1999_v13, %v2001_v3  ;;  %v18344_v13 = vld [vmem:[#allocation2 + $0x80] sm:$0xff]  ;;  %v18380_v22 = vld [vmem:[#allocation2 + $0xc] sm:$0xff]  ;;  %5191 = vmatpush.bf16.msrb.mxu0 %v18480_v38 }
 0x231   :  { %v2638_v35 = vadd.f32 %v20229_v18, %v2180_v62  ;;  %v2913_v42 = vrot.slane %v18344_v13, 3  ;;  %v18345_v3 = vld [vmem:[#allocation2 + $0x88] sm:$0xff] }
 0x233   :  { %v2914_v17 = vsel %vm2881_vm3, %v2911_v12, %v2913_v42 }
 0x234   :  { %v3016_v52 = vpop.f32.mrf.mxu3  ;;  %v20338_v26 = vpop.f32.mrf.mxu0 }
 0x235   :  { %v3093_v34 = vadd.f32 %v3016_v52, %v2635_v20  ;;  %v4171_v20 = vrot.slane %v15131_v56, 1  ;;  %v2912_v52 = vsel %vm2881_vm3, %v2909_v54, %v2911_v12  ;;  %v18408_v54 = vld [vmem:[#allocation2 + $0x1c] sm:$0xff]  ;;  %v2183_v56 = vadd.f32 %v20322_v30, %v20139_v49  ;;  %v18409_v12 = vld [vmem:[#allocation2 + $0x24] sm:$0xff] }
 0x236   :  { %v20336_v6 = vpop.f32.mrf.mxu2  ;;  %v20340_v28 = vpop.f32.mrf.mxu1  ;;  %v4176_v49 = vrot.slane %v18409_v12, 1  ;;  %v18479_v12 = vld [vmem:[%s23323_s3 + $0x218] sm:$0xff] }
 0x237   :  { %3129 = vst [vmem:[#allocation3 + $0x48] sm:$0xff] %v3093_v34  ;;  %3424 = vmatmul.bf16.gmra.mxu0 %v18357_v2  ;;  %v4173_v34 = vsel %vm1965_vm2, %v4171_v20, %v4172_v29 }
 0x238   :  { %5192 = vmatpush.bf16.msrb.mxu0 %v18479_v12 }
 0x239   :  { %2157 = vmatmul.bf16.gmra.mxu1 %v2000_v37  ;;  %3058 = vmatmul.bf16.gmra.mxu3 %v2910_v19  ;;  %v2639_v19 = vadd.f32 %v20255_v25, %v2181_v24  ;;  %v2770_v24 = vld [vmem:[#allocation2 + $0x90] sm:$0x7] }
 0x23b   :  { %2620 = vmatmul.bf16.gmra.mxu2 %v2460_v51 }
 0x23c   :  { %v3019_v9 = vpop.f32.mrf.mxu3  ;;  %v20356_v10 = vpop.f32.mrf.mxu0 }
 0x23d   :  { %v3094_v11 = vadd.f32 %v3019_v9, %v2636_v31  ;;  %v4174_v9 = vrot.slane %v18408_v54, 1 }
 0x23e   :  { %v20354_v40 = vpop.f32.mrf.mxu2  ;;  %v20358_v27 = vpop.f32.mrf.mxu1 }
 0x23f   :  { %3130 = vst [vmem:[#allocation3 + $0x50] sm:$0xff] %v3094_v11  ;;  %v18359_v11 = vld [vmem:[#allocation2 + $0x2c] sm:$0xff]  ;;  %v4175_v25 = vsel %vm1965_vm2, %v4172_v29, %v4174_v9 }
 0x244   :  { %v3021_v60 = vpop.f32.mrf.mxu3  ;;  %v20365_v23 = vpop.f32.mrf.mxu0 }
 0x245   :  { %v3095_v21 = vadd.f32 %v3021_v60, %v2637_v45  ;;  %v18452_v60 = vld [vmem:[%s23323_s3 + $0x1d0] sm:$0xff] }
 0x246   :  { %v20363_v33 = vpop.f32.mrf.mxu2  ;;  %v20367_v57 = vpop.f32.mrf.mxu1  ;;  %4736 = vmatpush.bf16.msrb.mxu3 %v18452_v60  ;;  %v18361_v60 = vld [vmem:[#allocation2 + $0x3c] sm:$0xff] }
 0x247   :  { %3131 = vst [vmem:[#allocation3 + $0x58] sm:$0xff] %v3095_v21  ;;  %3429 = vmatmul.bf16.gmra.mxu0 %v18358_v44  ;;  %v18451_v21 = vld [vmem:[%s23323_s3 + $0x1c8] sm:$0xff]  ;;  %v2915_v44 = vrot.slane %v18345_v3, 3  ;;  %v2186_v3 = vadd.f32 %v20367_v57, %v20195_v8 }
 0x249   :  { %2162 = vmatmul.bf16.gmra.mxu1 %v2002_v7  ;;  %3063 = vmatmul.bf16.gmra.mxu3 %v2912_v52  ;;  %v18360_v52 = vld [vmem:[#allocation2 + $0x34] sm:$0xff] }
 0x24a   :  { %4737 = vmatpush.bf16.msrb.mxu3 %v18451_v21  ;;  %v2644_v21 = vadd.f32 %v20354_v40, %v2186_v3 }
 0x24b   :  { %4282 = vmatmul.bf16.vlgmr.msra.gmra.mxu2 %v4173_v34  ;;  %v2184_v34 = vadd.f32 %v20340_v28, %v20159_v47  ;;  %v2861_v47 = vunpack.c.l.b16 %v2770_v24 }
 0x24c   :  { %v3024_v2 = vpop.f32.mrf.mxu3  ;;  %v20377_v37 = vpop.f32.mrf.mxu0 }
 0x24d   :  { %v3096_v55 = vadd.f32 %v3024_v2, %v2638_v35  ;;  %v18381_v35 = vld [vmem:[#allocation2 + $0x14] sm:$0xff]  ;;  %v2916_v2 = vsel %vm2881_vm3, %v2913_v42, %v2915_v44  ;;  %v2642_v13 = vadd.f32 %v20318_v63, %v2184_v34  ;;  %v2185_v42 = vadd.f32 %v20358_v27, %v20180_v50  ;;  %v18382_v50 = vld [vmem:[#allocation2 + $0x1c] sm:$0xff] }
 0x24e   :  { %v20375_v48 = vpop.f32.mrf.mxu2  ;;  %v20379_v59 = vpop.f32.mrf.mxu1  ;;  %v18411_v34 = vld [vmem:[#allocation2 + $0x34] sm:$0xff] }
 0x24f   :  { %3132 = vst [vmem:[#allocation3 + $0x60] sm:$0xff] %v3096_v55  ;;  %v4177_v55 = vsel %vm1965_vm2, %v4174_v9, %v4176_v49  ;;  %v18410_v9 = vld [vmem:[#allocation2 + $0x2c] sm:$0xff] }
 0x254   :  { %v3026_v51 = vpop.f32.mrf.mxu3  ;;  %v20386_v31 = vpop.f32.mrf.mxu0 }
 0x255   :  { %v3097_v18 = vadd.f32 %v3026_v51, %v2639_v19 }
 0x256   :  { %v20384_v58 = vpop.f32.mrf.mxu2  ;;  %v20388_v39 = vpop.f32.mrf.mxu1 }
 0x257   :  { %3133 = vst [vmem:[#allocation3 + $0x68] sm:$0xff] %v3097_v18  ;;  %3434 = vmatmul.bf16.gmra.mxu0 %v18359_v11  ;;  %v2880_v11 = vpack.c.b16 %v2861_v47, %v2861_v47  ;;  %v4180_v47 = vrot.slane %v18411_v34, 1 }
 0x259   :  { %3068 = vmatmul.bf16.gmra.mxu3 %v2914_v17  ;;  %3825 = vmatmul.bf16.vlgmr.msrb.gmra.mxu1 %v18380_v22  ;;  %v2643_v22 = vadd.f32 %v20336_v6, %v2185_v42  ;;  %v2917_v17 = vrot.slane %v2880_v11, 3  ;;  %v18362_v42 = vld [vmem:[#allocation2 + $0x44] sm:$0xff] }
 0x25a   :  { %v18383_v11 = vld [vmem:[#allocation2 + $0x24] sm:$0xff] }
 0x25b   :  { %4287 = vmatmul.bf16.gmra.mxu2 %v4175_v25  ;;  %v2918_v27 = vsel %vm2881_vm3, %v2915_v44, %v2917_v17 }
 0x25c   :  { %v3029_v53 = vpop.f32.mrf.mxu3  ;;  %v20403_v61 = vpop.f32.mrf.mxu0 }
 0x25d   :  { %v20401_v41 = vadd.f32 %v3029_v53, %v20311_v5  ;;  %v2641_v5 = vadd.f32 %v20295_v0, %v2183_v56  ;;  %v18450_v0 = vld [vmem:[%s23323_s3 + $0x1c0] sm:$0xff]  ;;  %v4178_v53 = vrot.slane %v18410_v9, 1 }
 0x25e   :  { %v20398_v4 = vpop.f32.mrf.mxu2  ;;  %v20405_v45 = vpop.f32.mrf.mxu1  ;;  %4738 = vmatpush.bf16.msrb.mxu3 %v18450_v0 }
 0x25f   :  { %v4179_v6 = vsel %vm1965_vm2, %v4176_v49, %v4178_v53  ;;  %v18432_v49 = vld [vmem:[#allocation2 + $0xc] sm:$0xf0]  ;;  %v4181_v9 = vsel %vm1965_vm2, %v4178_v53, %v4180_v47 }
 0x264   :  { %v3031_v29 = vpop.f32.mrf.mxu3  ;;  %v20418_v7 = vpop.f32.mrf.mxu0 }
 0x265   :  { %v3099_v20 = vadd.f32 %v3031_v29, %v2641_v5 }
 0x266   :  { %v20416_v62 = vpop.f32.mrf.mxu2  ;;  %v20420_v30 = vpop.f32.mrf.mxu1 }
 0x267   :  { %3135 = vst [vmem:[#allocation3 + $0x78] sm:$0xff] %v3099_v20  ;;  %3439 = vmatmul.bf16.gmra.mxu0 %v18360_v52  ;;  %v2187_v20 = vadd.f32 %v20379_v59, %v20207_v15  ;;  %v18433_v52 = vld [vmem:[#allocation2 + $0x14] sm:$0xff]  ;;  %v2188_v59 = vadd.f32 %v20388_v39, %v20216_v46  ;;  %v2189_v46 = vadd.f32 %v20405_v45, %v20231_v36  ;;  %v18434_v39 = vld [vmem:[#allocation2 + $0x1c] sm:$0xff]  ;;  %v18384_v36 = vld [vmem:[#allocation2 + $0x2c] sm:$0xff] }
 0x269   :  { %3073 = vmatmul.bf16.gmra.mxu3 %v2916_v2  ;;  %3830 = vmatmul.bf16.gmra.mxu1 %v18381_v35  ;;  %v15250_v35 = vld [vmem:[#allocation2 + $0xc] sm:$0xc]  ;;  %v2645_v40 = vadd.f32 %v20363_v33, %v2187_v20  ;;  %v2647_v53 = vadd.f32 %v20384_v58, %v2189_v46 }
 0x26a   :  { %v15251_v0 = vor.u32 %v18432_v49, %v15250_v35  ;;  %v18363_v20 = vld [vmem:[#allocation2 + $0x4c] sm:$0xff]  ;;  %v2190_v49 = vadd.f32 %v20420_v30, %v20257_v1 }
 0x26b   :  { %4292 = vmatmul.bf16.gmra.mxu2 %v4177_v55  ;;  %v4629_v55 = vrot.slane %v18433_v52, 2  ;;  %v18478_v30 = vld [vmem:[%s23323_s3 + $0x210] sm:$0xff] }
 0x26c   :  { %v3034_v54 = vpop.f32.mrf.mxu3  ;;  %v20432_v51 = vpop.f32.mrf.mxu0  ;;  %v4628_v15 = vrot.slane %v15251_v0, 2  ;;  %v2648_v52 = vadd.f32 %v20398_v4, %v2190_v49  ;;  %5193 = vmatpush.bf16.msrb.mxu0 %v18478_v30 }
 0x26d   :  { %v3100_v19 = vadd.f32 %v3034_v54, %v2642_v13 }
 0x26e   :  { %v20430_v28 = vpop.f32.mrf.mxu2  ;;  %v20434_v18 = vpop.f32.mrf.mxu1  ;;  %v4630_v33 = vsel %vm2423_vm1, %v4628_v15, %v4629_v55 }
 0x26f   :  { %3136 = vst [vmem:[#allocation3 + $0x80] sm:$0xff] %v3100_v19  ;;  %v2191_v1 = vadd.f32 %v20434_v18, %v20274_v43  ;;  %v18364_v43 = vld [vmem:[#allocation2 + $0x54] sm:$0xff] }
 0x271   :  { %v2649_v4 = vadd.f32 %v20416_v62, %v2191_v1 }
 0x274   :  { %v3036_v38 = vpop.f32.mrf.mxu3  ;;  %v20441_v14 = vpop.f32.mrf.mxu0 }
 0x275   :  { %v3101_v25 = vadd.f32 %v3036_v38, %v2643_v22  ;;  %v2646_v22 = vadd.f32 %v20375_v48, %v2188_v59 }
 0x276   :  { %v20439_v63 = vpop.f32.mrf.mxu2  ;;  %v20443_v56 = vpop.f32.mrf.mxu1 }
 0x277   :  { %3137 = vst [vmem:[#allocation3 + $0x88] sm:$0xff] %v3101_v25  ;;  %3444 = vmatmul.bf16.gmra.mxu0 %v18361_v60  ;;  %v2192_v18 = vadd.f32 %v20443_v56, %v20297_v16  ;;  %v18436_v56 = vld [vmem:[#allocation2 + $0x2c] sm:$0xff] }
 0x279   :  { %3078 = vmatmul.bf16.gmra.mxu3 %v2918_v27  ;;  %3835 = vmatmul.bf16.gmra.mxu1 %v18382_v50  ;;  %v18412_v50 = vld [vmem:[#allocation2 + $0x3c] sm:$0xff] }
 0x27b   :  { %4297 = vmatmul.bf16.gmra.mxu2 %v4179_v6  ;;  %v4631_v6 = vrot.slane %v18434_v39, 2 }
 0x27c   :  { %v3039_v5 = vpop.f32.mrf.mxu3  ;;  %v20455_v57 = vpop.f32.mrf.mxu0 }
 0x27d   :  { %v3102_v8 = vadd.f32 %v3039_v5, %v2644_v21  ;;  %v4182_v5 = vrot.slane %v18412_v50, 1  ;;  %v4632_v45 = vsel %vm2423_vm1, %v4629_v55, %v4631_v6  ;;  %v18435_v55 = vld [vmem:[#allocation2 + $0x24] sm:$0xff] }
 0x27e   :  { %v20453_v29 = vpop.f32.mrf.mxu2  ;;  %v20457_v44 = vpop.f32.mrf.mxu1 }
 0x27f   :  { %3138 = vst [vmem:[#allocation3 + $0x90] sm:$0xff] %v3102_v8  ;;  %v4183_v58 = vsel %vm1965_vm2, %v4180_v47, %v4182_v5  ;;  %v2193_v16 = vadd.f32 %v20457_v44, %v20320_v32  ;;  %v18386_v32 = vld [vmem:[#allocation2 + $0x3c] sm:$0xff] }
 0x284   :  { %v3041_v2 = vpop.f32.mrf.mxu3  ;;  %v20464_v54 = vpop.f32.mrf.mxu0 }
 0x285   :  { %v3103_v13 = vadd.f32 %v3041_v2, %v2645_v40 }
 0x286   :  { %v20462_v24 = vpop.f32.mrf.mxu2  ;;  %v20466_v19 = vpop.f32.mrf.mxu1 }
 0x287   :  { %3139 = vst [vmem:[#allocation3 + $0x98] sm:$0xff] %v3103_v13  ;;  %3449 = vmatmul.bf16.gmra.mxu0 %v18362_v42  ;;  %v18413_v13 = vld [vmem:[#allocation2 + $0x44] sm:$0xff]  ;;  %v4633_v42 = vrot.slane %v18435_v55, 2 }
 0x289   :  { %3840 = vmatmul.bf16.gmra.mxu1 %v18383_v11  ;;  %4739 = vmatmul.bf16.vlgmr.msrb.gmra.mxu3 %v4630_v33  ;;  %v4184_v33 = vrot.slane %v18413_v13, 1 }
 0x28b   :  { %4302 = vmatmul.bf16.gmra.mxu2 %v4181_v9  ;;  %v4185_v62 = vsel %vm1965_vm2, %v4182_v5, %v4184_v33 }
 0x28c   :  { %v3044_v38 = vpop.f32.mrf.mxu3  ;;  %v20475_v60 = vpop.f32.mrf.mxu0 }
 0x28d   :  { %v3104_v25 = vadd.f32 %v3044_v38, %v2646_v22  ;;  %v18385_v22 = vld [vmem:[#allocation2 + $0x34] sm:$0xff]  ;;  %v4634_v38 = vsel %vm2423_vm1, %v4631_v6, %v4633_v42  ;;  %v18414_v6 = vld [vmem:[#allocation2 + $0x4c] sm:$0xff] }
 0x28e   :  { %v20473_v17 = vpop.f32.mrf.mxu2  ;;  %v20477_v3 = vpop.f32.mrf.mxu1 }
 0x28f   :  { %3140 = vst [vmem:[#allocation3 + $0xa0] sm:$0xff] %v3104_v25  ;;  %v2650_v25 = vadd.f32 %v20430_v28, %v2192_v18 }
 0x294   :  { %v3046_v27 = vpop.f32.mrf.mxu3  ;;  %v20484_v21 = vpop.f32.mrf.mxu0 }
 0x295   :  { %v3105_v48 = vadd.f32 %v3046_v27, %v2647_v53 }
 0x296   :  { %v20482_v12 = vpop.f32.mrf.mxu2  ;;  %v20486_v8 = vpop.f32.mrf.mxu1 }
 0x297   :  { %3141 = vst [vmem:[#allocation3 + $0xa8] sm:$0xff] %v3105_v48  ;;  %3454 = vmatmul.bf16.gmra.mxu0 %v18363_v20  ;;  %v2651_v48 = vadd.f32 %v20439_v63, %v2193_v16  ;;  %v4635_v20 = vrot.slane %v18436_v56, 2 }
 0x299   :  { %3845 = vmatmul.bf16.gmra.mxu1 %v18384_v36  ;;  %4744 = vmatmul.bf16.gmra.mxu3 %v4632_v45  ;;  %v4186_v45 = vrot.slane %v18414_v6, 1  ;;  %v4636_v44 = vsel %vm2423_vm1, %v4633_v42, %v4635_v20  ;;  %v18477_v42 = vld [vmem:[%s23323_s3 + $0x208] sm:$0xff] }
 0x29a   :  { %5194 = vmatpush.bf16.msrb.mxu0 %v18477_v42 }
 0x29b   :  { %4307 = vmatmul.bf16.gmra.mxu2 %v4183_v58  ;;  %v4187_v63 = vsel %vm1965_vm2, %v4184_v33, %v4186_v45 }
 0x29c   :  { %v3049_v34 = vpop.f32.mrf.mxu3  ;;  %v20495_v40 = vpop.f32.mrf.mxu0 }
 0x29d   :  { %v3106_v0 = vadd.f32 %v3049_v34, %v2648_v52  ;;  %v18365_v52 = vld [vmem:[#allocation2 + $0x5c] sm:$0xff]  ;;  %v2194_v34 = vadd.f32 %v20466_v19, %v20338_v26  ;;  %v2195_v26 = vadd.f32 %v20477_v3, %v20356_v10  ;;  %v18437_v19 = vld [vmem:[#allocation2 + $0x34] sm:$0xff]  ;;  %v18366_v10 = vld [vmem:[#allocation2 + $0x64] sm:$0xff]  ;;  %v2196_v3 = vadd.f32 %v20486_v8, %v20365_v23 }
 0x29e   :  { %v20493_v35 = vpop.f32.mrf.mxu2  ;;  %v20497_v2 = vpop.f32.mrf.mxu1  ;;  %v4637_v33 = vrot.slane %v18437_v19, 2  ;;  %v18438_v8 = vld [vmem:[#allocation2 + $0x3c] sm:$0xff] }
 0x29f   :  { %3142 = vst [vmem:[#allocation3 + $0xb0] sm:$0xff] %v3106_v0  ;;  %v2652_v0 = vadd.f32 %v20453_v29, %v2194_v34  ;;  %v2653_v29 = vadd.f32 %v20462_v24, %v2195_v26  ;;  %v2197_v23 = vadd.f32 %v20497_v2, %v20377_v37  ;;  %v18388_v37 = vld [vmem:[#allocation2 + $0x4c] sm:$0xff] }
 0x2a0   :  { %v4638_v24 = vsel %vm2423_vm1, %v4635_v20, %v4637_v33  ;;  %v18416_v20 = vld [vmem:[#allocation2 + $0x5c] sm:$0xff] }
 0x2a4   :  { %v3051_v47 = vpop.f32.mrf.mxu3  ;;  %v20507_v11 = vpop.f32.mrf.mxu0 }
 0x2a5   :  { %v3107_v59 = vadd.f32 %v3051_v47, %v2649_v4  ;;  %v18415_v47 = vld [vmem:[#allocation2 + $0x54] sm:$0xff] }
 0x2a6   :  { %v20505_v15 = vpop.f32.mrf.mxu2  ;;  %v20509_v9 = vpop.f32.mrf.mxu1 }
 0x2a7   :  { %3143 = vst [vmem:[#allocation3 + $0xb8] sm:$0xff] %v3107_v59  ;;  %3459 = vmatmul.bf16.gmra.mxu0 %v18364_v43 }
 0x2a9   :  { %3850 = vmatmul.bf16.gmra.mxu1 %v18385_v22  ;;  %4749 = vmatmul.bf16.gmra.mxu3 %v4634_v38  ;;  %v4188_v38 = vrot.slane %v18415_v47, 1 }
 0x2ab   :  { %4312 = vmatmul.bf16.gmra.mxu2 %v4185_v62 }
 0x2ac   :  { %v3054_v46 = vpop.f32.mrf.mxu3  ;;  %v20518_v53 = vpop.f32.mrf.mxu0 }
 0x2ad   :  { %v3108_v50 = vadd.f32 %v3054_v46, %v2650_v25  ;;  %v18387_v25 = vld [vmem:[#allocation2 + $0x44] sm:$0xff]  ;;  %v4189_v46 = vsel %vm1965_vm2, %v4186_v45, %v4188_v38 }
 0x2ae   :  { %v20516_v39 = vpop.f32.mrf.mxu2  ;;  %v20520_v27 = vpop.f32.mrf.mxu1 }
 0x2af   :  { %3144 = vst [vmem:[#allocation3 + $0xc0] sm:$0xff] %v3108_v50  ;;  %v2654_v50 = vadd.f32 %v20473_v17, %v2196_v3 }
 0x2b4   :  { %v3056_v5 = vpop.f32.mrf.mxu3  ;;  %v20527_v36 = vpop.f32.mrf.mxu0 }
 0x2b5   :  { %v3109_v28 = vadd.f32 %v3056_v5, %v2651_v48 }
 0x2b6   :  { %v20525_v49 = vpop.f32.mrf.mxu2  ;;  %v20529_v58 = vpop.f32.mrf.mxu1 }
 0x2b7   :  { %3145 = vst [vmem:[#allocation3 + $0xc8] sm:$0xff] %v3109_v28  ;;  %3464 = vmatmul.bf16.gmra.mxu0 %v18365_v52  ;;  %v2655_v28 = vadd.f32 %v20482_v12, %v2197_v23  ;;  %v4639_v52 = vrot.slane %v18438_v8, 2  ;;  %v18535_v23 = vld [vmem:[%s23323_s3 + $0x2b8] sm:$0xff] }
 0x2b8   :  { %6020 = vmatpush.bf16.msrb.mxu2 %v18535_v23 }
 0x2b9   :  { %3855 = vmatmul.bf16.gmra.mxu1 %v18386_v32  ;;  %4754 = vmatmul.bf16.gmra.mxu3 %v4636_v44  ;;  %v4190_v44 = vrot.slane %v18416_v20, 1  ;;  %v4640_v2 = vsel %vm2423_vm1, %v4637_v33, %v4639_v52  ;;  %v18509_v33 = vld [vmem:[%s23323_s3 + $0x278] sm:$0xff] }
 0x2ba   :  { %5604 = vmatpush.bf16.msra.mxu1 %v18509_v33 }
 0x2bb   :  { %4317 = vmatmul.bf16.gmra.mxu2 %v4187_v63  ;;  %v4191_v12 = vsel %vm1965_vm2, %v4188_v38, %v4190_v44 }
 0x2bc   :  { %v3059_v1 = vpop.f32.mrf.mxu3  ;;  %v20538_v13 = vpop.f32.mrf.mxu0 }
 0x2bd   :  { %v3110_v55 = vadd.f32 %v3059_v1, %v2652_v0  ;;  %v18367_v0 = vld [vmem:[#allocation2 + $0x6c] sm:$0xff]  ;;  %v2198_v1 = vadd.f32 %v20509_v9, %v20386_v31  ;;  %v2199_v31 = vadd.f32 %v20520_v27, %v20403_v61  ;;  %v18439_v9 = vld [vmem:[#allocation2 + $0x44] sm:$0xff]  ;;  %v18368_v61 = vld [vmem:[#allocation2 + $0x74] sm:$0xff]  ;;  %v2200_v27 = vadd.f32 %v20529_v58, %v20418_v7 }
 0x2be   :  { %v20536_v30 = vpop.f32.mrf.mxu2  ;;  %v20540_v4 = vpop.f32.mrf.mxu1  ;;  %v4641_v38 = vrot.slane %v18439_v9, 2  ;;  %v18561_v7 = vld [vmem:[%s23323_s3 + $0x2f8] sm:$0xff] }
 0x2bf   :  { %3146 = vst [vmem:[#allocation3 + $0xd0] sm:$0xff] %v3110_v55  ;;  %v2656_v55 = vadd.f32 %v20493_v35, %v2198_v1  ;;  %v2657_v35 = vadd.f32 %v20505_v15, %v2199_v31  ;;  %v18476_v15 = vld [vmem:[%s23323_s3 + $0x200] sm:$0xff]  ;;  %v2658_v58 = vadd.f32 %v20516_v39, %v2200_v27  ;;  %6477 = vmatpush.bf16.msra.mxu3 %v18561_v7 }
 0x2c0   :  { %5195 = vmatpush.bf16.msrb.mxu0 %v18476_v15  ;;  %v18369_v9 = vld [vmem:[#allocation2 + $0x7c] sm:$0xff]  ;;  %v3156_v27 = vld [vmem:[#allocation3] sm:$0xff] }
 0x2c4   :  { %v3061_v59 = vpop.f32.mrf.mxu3  ;;  %v20550_v22 = vpop.f32.mrf.mxu0 }
 0x2c5   :  { %v3111_v18 = vadd.f32 %v3061_v59, %v2653_v29  ;;  %v18417_v59 = vld [vmem:[#allocation2 + $0x64] sm:$0xff] }
 0x2c6   :  { %v20548_v43 = vpop.f32.mrf.mxu2  ;;  %v20552_v62 = vpop.f32.mrf.mxu1 }
 0x2c7   :  { %3147 = vst [vmem:[#allocation3 + $0xd8] sm:$0xff] %v3111_v18  ;;  %3469 = vmatmul.bf16.gmra.mxu0 %v18366_v10 }
 0x2c9   :  { %3860 = vmatmul.bf16.gmra.mxu1 %v18387_v25  ;;  %4759 = vmatmul.bf16.gmra.mxu3 %v4638_v24  ;;  %v4192_v24 = vrot.slane %v18417_v59, 1 }
 0x2cb   :  { %4322 = vmatmul.bf16.gmra.mxu2 %v4189_v46 }
 0x2cc   :  { %v3064_v16 = vpop.f32.mrf.mxu3  ;;  %v20561_v48 = vpop.f32.mrf.mxu0 }
 0x2cd   :  { %v3112_v56 = vadd.f32 %v3064_v16, %v2654_v50  ;;  %v18389_v50 = vld [vmem:[#allocation2 + $0x54] sm:$0xff]  ;;  %v4642_v16 = vsel %vm2423_vm1, %v4639_v52, %v4641_v38 }
 0x2ce   :  { %v20559_v6 = vpop.f32.mrf.mxu2  ;;  %v20563_v5 = vpop.f32.mrf.mxu1 }
 0x2cf   :  { %3148 = vst [vmem:[#allocation3 + $0xe0] sm:$0xff] %v3112_v56  ;;  %v4193_v56 = vsel %vm1965_vm2, %v4190_v44, %v4192_v24  ;;  %v18440_v44 = vld [vmem:[#allocation2 + $0x4c] sm:$0xff] }
 0x2d0   :  { %v4643_v39 = vrot.slane %v18440_v44, 2  ;;  %v3157_v44 = vld [vmem:[#allocation3 + $0x8] sm:$0xff] }
 0x2d4   :  { %v3066_v45 = vpop.f32.mrf.mxu3  ;;  %v20570_v32 = vpop.f32.mrf.mxu0 }
 0x2d5   :  { %v3113_v34 = vadd.f32 %v3066_v45, %v2655_v28 }
 0x2d6   :  { %v20568_v17 = vpop.f32.mrf.mxu2  ;;  %v20572_v63 = vpop.f32.mrf.mxu1 }
 0x2d7   :  { %3149 = vst [vmem:[#allocation3 + $0xe8] sm:$0xff] %v3113_v34  ;;  %3474 = vmatmul.bf16.gmra.mxu0 %v18367_v0  ;;  %v2201_v34 = vadd.f32 %v20540_v4, %v20432_v51  ;;  %v18418_v0 = vld [vmem:[#allocation2 + $0x6c] sm:$0xff]  ;;  %v2202_v51 = vadd.f32 %v20552_v62, %v20441_v14  ;;  %v18390_v4 = vld [vmem:[#allocation2 + $0x5c] sm:$0xff]  ;;  %v2203_v14 = vadd.f32 %v20563_v5, %v20455_v57  ;;  %v18441_v62 = vld [vmem:[#allocation2 + $0x54] sm:$0xff] }
 0x2d8   :  { %v4645_v15 = vrot.slane %v18441_v62, 2  ;;  %v18391_v5 = vld [vmem:[#allocation2 + $0x64] sm:$0xff] }
 0x2d9   :  { %3865 = vmatmul.bf16.gmra.mxu1 %v18388_v37  ;;  %4764 = vmatmul.bf16.gmra.mxu3 %v4640_v2  ;;  %v2659_v1 = vadd.f32 %v20525_v49, %v2201_v34  ;;  %v4644_v49 = vsel %vm2423_vm1, %v4641_v38, %v4643_v39  ;;  %v2660_v33 = vadd.f32 %v20536_v30, %v2202_v51  ;;  %v18419_v38 = vld [vmem:[#allocation2 + $0x74] sm:$0xff]  ;;  %v18420_v51 = vld [vmem:[#allocation2 + $0x7c] sm:$0xff] }
 0x2da   :  { %v3500_v30 = vadd.f32 %v20464_v54, %v3156_v27  ;;  %v4196_v7 = vrot.slane %v18419_v38, 1  ;;  %v18508_v54 = vld [vmem:[%s23323_s3 + $0x270] sm:$0xff]  ;;  %v18587_v34 = vld [vmem:[%s23323_s3 + $0x338] sm:$0xff]  ;;  %v4198_v62 = vrot.slane %v18420_v51, 1 }
 0x2db   :  { %4327 = vmatmul.bf16.gmra.mxu2 %v4191_v12  ;;  %5605 = vmatpush.bf16.msra.mxu1 %v18508_v54  ;;  %v18458_v54 = vld [vmem:[#allocation2 + $0xc] sm:$0xf0] }
 0x2dc   :  { %v3069_v26 = vpop.f32.mrf.mxu3  ;;  %v20581_v42 = vpop.f32.mrf.mxu0  ;;  %v3916_v57 = vadd.f32 %v20572_v63, %v3500_v30  ;;  %6934 = vmatpush.bf16.msra.mxu0 %v18587_v34  ;;  %v4199_v30 = vsel %vm1965_vm2, %v4196_v7, %v4198_v62  ;;  %v20694_v34 = vld [vmem:[#allocation2 + $0x64] sm:$0xff] }
 0x2dd   :  { %v3114_v19 = vadd.f32 %v3069_v26, %v2656_v55  ;;  %v4194_v26 = vrot.slane %v18418_v0, 1 }
 0x2de   :  { %v20579_v47 = vpop.f32.mrf.mxu2  ;;  %v20583_v29 = vpop.f32.mrf.mxu1  ;;  %v4373_v63 = vadd.f32 %v20559_v6, %v3916_v57  ;;  %v18534_v6 = vld [vmem:[%s23323_s3 + $0x2b0] sm:$0xff] }
 0x2df   :  { %3150 = vst [vmem:[#allocation3 + $0xf0] sm:$0xff] %v3114_v19  ;;  %v4195_v59 = vsel %vm1965_vm2, %v4192_v24, %v4194_v26  ;;  %v2661_v24 = vadd.f32 %v20548_v43, %v2203_v14  ;;  %v4646_v43 = vsel %vm2423_vm1, %v4643_v39, %v4645_v15  ;;  %6021 = vmatpush.bf16.msrb.mxu2 %v18534_v6 }
 0x2e4   :  { %v3071_v18 = vpop.f32.mrf.mxu3  ;;  %v20593_v25 = vpop.f32.mrf.mxu0 }
 0x2e5   :  { %v3115_v10 = vadd.f32 %v3071_v18, %v2657_v35 }
 0x2e6   :  { %v20591_v3 = vpop.f32.mrf.mxu2  ;;  %v20595_v46 = vpop.f32.mrf.mxu1 }
 0x2e7   :  { %3151 = vst [vmem:[#allocation3 + $0xf8] sm:$0xff] %v3115_v10  ;;  %3479 = vmatmul.bf16.gmra.mxu0 %v18368_v61 }
 0x2e9   :  { %3870 = vmatmul.bf16.gmra.mxu1 %v18389_v50  ;;  %4769 = vmatmul.bf16.gmra.mxu3 %v4642_v16 }
 0x2eb   :  { %4332 = vmatmul.bf16.gmra.mxu2 %v4193_v56 }
 0x2ec   :  { %v3074_v8 = vpop.f32.mrf.mxu3  ;;  %v20613_v45 = vpop.f32.mrf.mxu0 }
 0x2ed   :  { %v3116_v20 = vadd.f32 %v3074_v8, %v2658_v58  ;;  %v18370_v8 = vld [vmem:[#allocation2 + $0x84] sm:$0xff] }
 0x2ee   :  { %v20611_v28 = vpop.f32.mrf.mxu2  ;;  %v20615_v52 = vpop.f32.mrf.mxu1 }
 0x2ef   :  { %3152 = vst [vmem:[#allocation3 + $0x100] sm:$0xff] %v3116_v20  ;;  %v4197_v20 = vsel %vm1965_vm2, %v4194_v26, %v4196_v7  ;;  %v20692_v7 = vld [vmem:[#allocation2 + $0x14] sm:$0xff] }
 0x2f4   :  { %v3076_v37 = vpop.f32.mrf.mxu3  ;;  %v3445_v55 = vpop.f32.mrf.mxu0 }
 0x2f5   :  { %v3117_v2 = vadd.f32 %v3076_v37, %v2659_v1  ;;  %v20623_v19 = vadd.f32 %v3445_v55, %v20401_v41  ;;  %v3501_v1 = vadd.f32 %v20475_v60, %v3157_v44  ;;  %v18560_v60 = vld [vmem:[%s23323_s3 + $0x2f0] sm:$0xff] }
 0x2f6   :  { %v20620_v12 = vpop.f32.mrf.mxu2  ;;  %v20625_v31 = vpop.f32.mrf.mxu1  ;;  %6478 = vmatpush.bf16.msra.mxu3 %v18560_v60 }
 0x2f7   :  { %3153 = vst [vmem:[#allocation3 + $0x108] sm:$0xff] %v3117_v2  ;;  %3484 = vmatmul.bf16.gmra.mxu0 %v18369_v9  ;;  %v3917_v26 = vadd.f32 %v20583_v29, %v3501_v1  ;;  %v18442_v9 = vld [vmem:[#allocation2 + $0x5c] sm:$0xff]  ;;  %v3160_v1 = vld [vmem:[#allocation3 + $0x20] sm:$0xff] }
 0x2f8   :  { %v3504_v6 = vadd.f32 %v20507_v11, %v3160_v1 }
 0x2f9   :  { %3875 = vmatmul.bf16.gmra.mxu1 %v18390_v4  ;;  %4774 = vmatmul.bf16.gmra.mxu3 %v4644_v49  ;;  %v4374_v4 = vadd.f32 %v20568_v17, %v3917_v26  ;;  %v3158_v49 = vld [vmem:[#allocation3 + $0x10] sm:$0xff]  ;;  %v4649_v26 = vrot.slane %v20694_v34, 2 }
 0x2fa   :  { %v3502_v29 = vadd.f32 %v20484_v21, %v3158_v49 }
 0x2fb   :  { %4337 = vmatmul.bf16.gmra.mxu2 %v4195_v59 }
 0x2fc   :  { %v3079_v41 = vpop.f32.mrf.mxu3  ;;  %v20634_v10 = vpop.f32.mrf.mxu0  ;;  %v3918_v27 = vadd.f32 %v20595_v46, %v3502_v29 }
 0x2fd   :  { %v3118_v35 = vadd.f32 %v3079_v41, %v2660_v33  ;;  %v4647_v33 = vrot.slane %v18442_v9, 2 }
 0x2fe   :  { %v20632_v18 = vpop.f32.mrf.mxu2  ;;  %v20636_v61 = vpop.f32.mrf.mxu1  ;;  %v4375_v21 = vadd.f32 %v20579_v47, %v3918_v27  ;;  %v15370_v47 = vld [vmem:[#allocation2 + $0xc] sm:$0x8] }
 0x2ff   :  { %3154 = vst [vmem:[#allocation3 + $0x110] sm:$0xff] %v3118_v35  ;;  %v4648_v17 = vsel %vm2423_vm1, %v4645_v15, %v4647_v33  ;;  %v15371_v44 = vor.u32 %v18458_v54, %v15370_v47 }
 0x304   :  { %v3081_v50 = vpop.f32.mrf.mxu3  ;;  %v20644_v23 = vpop.f32.mrf.mxu0 }
 0x305   :  { %v3119_v16 = vadd.f32 %v3081_v50, %v2661_v24  ;;  %v18371_v24 = vld [vmem:[#allocation2 + $0x8c] sm:$0xff] }
 0x306   :  { %v20642_v56 = vpop.f32.mrf.mxu2  ;;  %v20646_v58 = vpop.f32.mrf.mxu1  ;;  %v18392_v50 = vld [vmem:[#allocation2 + $0x6c] sm:$0xff] }
 0x307   :  { %3155 = vst [vmem:[#allocation3 + $0x118] sm:$0xff] %v3119_v16  ;;  %3489 = vmatmul.bf16.gmra.mxu0 %v18370_v8  ;;  %v3159_v16 = vld [vmem:[#allocation3 + $0x18] sm:$0xff] }
 0x308   :  { %v3503_v57 = vadd.f32 %v20495_v40, %v3159_v16 }
 0x309   :  { %3880 = vmatmul.bf16.gmra.mxu1 %v18391_v5  ;;  %4779 = vmatmul.bf16.gmra.mxu3 %v4646_v43 }
 0x30a   :  { %v3919_v15 = vadd.f32 %v20615_v52, %v3503_v57  ;;  %v20730_v57 = vld [vmem:[#allocation2 + $0x6c] sm:$0xff] }
 0x30b   :  { %4342 = vmatmul.bf16.gmra.mxu2 %v4197_v20  ;;  %v4651_v47 = vrot.slane %v20730_v57, 2 }
 0x30c   :  { %v4740_v0 = vpop.f32.mrf.mxu3  ;;  %v20661_v2 = vpop.f32.mrf.mxu0  ;;  %v4376_v40 = vadd.f32 %v20591_v3, %v3919_v15  ;;  %v3920_v3 = vadd.f32 %v20625_v31, %v3504_v6 }
 0x30d   :  { %v4830_v39 = vadd.f32 %v4740_v0, %v4373_v63  ;;  %v20696_v63 = vld [vmem:[#allocation2 + $0x84] sm:$0xff]  ;;  %v5086_v0 = vrot.slane %v20692_v7, 3  ;;  %v3162_v7 = vld [vmem:[#allocation3 + $0x30] sm:$0xff] }
 0x30e   :  { %v20659_v37 = vpop.f32.mrf.mxu2  ;;  %v20663_v55 = vpop.f32.mrf.mxu1  ;;  %v4200_v60 = vrot.slane %v20696_v63, 1  ;;  %v4377_v27 = vadd.f32 %v20611_v28, %v3920_v3  ;;  %v18586_v28 = vld [vmem:[%s23323_s3 + $0x330] sm:$0xff]  ;;  %v3506_v63 = vadd.f32 %v20527_v36, %v3162_v7  ;;  %v4652_v3 = vsel %vm2423_vm1, %v4649_v26, %v4651_v47  ;;  %v18532_v36 = vld [vmem:[%s23323_s3 + $0x2a0] sm:$0xff] }
 0x30f   :  { %4866 = vst [vmem:[#allocation3] sm:$0xff] %v4830_v39  ;;  %6935 = vmatpush.bf16.msra.mxu0 %v18586_v28 }
 0x310   :  { %v4201_v11 = vsel %vm1965_vm2, %v4198_v62, %v4200_v60 }
 0x314   :  { %v4742_v59 = vpop.f32.mrf.mxu3  ;;  %v20676_v14 = vpop.f32.mrf.mxu0 }
 0x315   :  { %v4831_v35 = vadd.f32 %v4742_v59, %v4374_v4  ;;  %v5085_v4 = vrot.slane %v15371_v44, 3  ;;  %v18393_v59 = vld [vmem:[#allocation2 + $0x74] sm:$0xff] }
 0x316   :  { %v20674_v41 = vpop.f32.mrf.mxu2  ;;  %v20678_v38 = vpop.f32.mrf.mxu1 }
 0x317   :  { %4867 = vst [vmem:[#allocation3 + $0x8] sm:$0xff] %v4831_v35  ;;  %3494 = vmatmul.bf16.gmra.mxu0 %v18371_v24  ;;  %v5087_v29 = vsel %vm2881_vm3, %v5085_v4, %v5086_v0  ;;  %v4650_v35 = vsel %vm2423_vm1, %v4647_v33, %v4649_v26  ;;  %v18507_v24 = vld [vmem:[%s23323_s3 + $0x268] sm:$0xff] }
 0x318   :  { %5606 = vmatpush.bf16.msra.mxu1 %v18507_v24 }
 0x319   :  { %3885 = vmatmul.bf16.gmra.mxu1 %v18392_v50  ;;  %4784 = vmatmul.bf16.gmra.mxu3 %v4648_v17  ;;  %v3161_v50 = vld [vmem:[#allocation3 + $0x28] sm:$0xff] }
 0x31a   :  { %v3505_v17 = vadd.f32 %v20518_v53, %v3161_v50  ;;  %v18533_v53 = vld [vmem:[%s23323_s3 + $0x2a8] sm:$0xff] }
 0x31b   :  { %4347 = vmatmul.bf16.gmra.mxu2 %v4199_v30 }
 0x31c   :  { %v4745_v8 = vpop.f32.mrf.mxu3  ;;  %v20687_v46 = vpop.f32.mrf.mxu0  ;;  %v3921_v62 = vadd.f32 %v20636_v61, %v3505_v17  ;;  %v18559_v61 = vld [vmem:[%s23323_s3 + $0x2e8] sm:$0xff]  ;;  %6022 = vmatpush.bf16.msrb.mxu2 %v18533_v53  ;;  %v18530_v17 = vld [vmem:[%s23323_s3 + $0x290] sm:$0xff] }
 0x31d   :  { %v4832_v43 = vadd.f32 %v4745_v8, %v4375_v21  ;;  %v20725_v8 = vld [vmem:[#allocation2 + $0x1c] sm:$0xff]  ;;  %6479 = vmatpush.bf16.msra.mxu3 %v18559_v61 }
 0x31e   :  { %v20685_v5 = vpop.f32.mrf.mxu2  ;;  %v20689_v20 = vpop.f32.mrf.mxu1  ;;  %v4378_v54 = vadd.f32 %v20620_v12, %v3921_v62  ;;  %v5088_v15 = vrot.slane %v20725_v8, 3  ;;  %v3922_v12 = vadd.f32 %v20646_v58, %v3506_v63  ;;  %v18531_v58 = vld [vmem:[%s23323_s3 + $0x298] sm:$0xff]  ;;  %v3164_v8 = vld [vmem:[#allocation3 + $0x40] sm:$0xff] }
 0x31f   :  { %4868 = vst [vmem:[#allocation3 + $0x10] sm:$0xff] %v4832_v43  ;;  %v20732_v43 = vld [vmem:[#allocation2 + $0x8c] sm:$0xff] }
 0x320   :  { %v5089_v4 = vsel %vm2881_vm3, %v5086_v0, %v5088_v15  ;;  %6023 = vmatpush.bf16.msrb.mxu2 %v18532_v36  ;;  %v3163_v0 = vld [vmem:[#allocation3 + $0x38] sm:$0xff] }
 0x321   :  { %v3507_v26 = vadd.f32 %v20538_v13, %v3163_v0 }
 0x324   :  { %v4747_v39 = vpop.f32.mrf.mxu3  ;;  %v20704_v51 = vpop.f32.mrf.mxu0  ;;  %6024 = vmatpush.bf16.msrb.mxu2 %v18531_v58 }
 0x325   :  { %v4833_v9 = vadd.f32 %v4747_v39, %v4376_v40  ;;  %v4202_v39 = vrot.slane %v20732_v43, 1  ;;  %v3508_v43 = vadd.f32 %v20550_v22, %v3164_v8  ;;  %v3166_v8 = vld [vmem:[#allocation3 + $0x50] sm:$0xff] }
 0x326   :  { %v20702_v52 = vpop.f32.mrf.mxu2  ;;  %v20707_v49 = vpop.f32.mrf.mxu1 }
 0x327   :  { %4869 = vst [vmem:[#allocation3 + $0x18] sm:$0xff] %v4833_v9  ;;  %5196 = vmatmul.bf16.vlgmr.msrb.gmra.mxu0 %v5087_v29  ;;  %v18394_v9 = vld [vmem:[#allocation2 + $0x7c] sm:$0xff]  ;;  %v4379_v29 = vadd.f32 %v20632_v18, %v3922_v12  ;;  %v20770_v18 = vld [vmem:[#allocation2 + $0x74] sm:$0xff] }
 0x328   :  { %6025 = vmatpush.bf16.msrb.mxu2 %v18530_v17  ;;  %v4653_v57 = vrot.slane %v20770_v18, 2  ;;  %v18504_v17 = vld [vmem:[%s23323_s3 + $0x250] sm:$0xff]  ;;  %v3167_v18 = vld [vmem:[#allocation3 + $0x58] sm:$0xff] }
 0x329   :  { %3890 = vmatmul.bf16.gmra.mxu1 %v18393_v59  ;;  %4789 = vmatmul.bf16.gmra.mxu3 %v4650_v35  ;;  %v4203_v59 = vsel %vm1965_vm2, %v4200_v60, %v4202_v39  ;;  %v3923_v60 = vadd.f32 %v20663_v55, %v3507_v26  ;;  %v18529_v55 = vld [vmem:[%s23323_s3 + $0x288] sm:$0xff] }
 0x32a   :  { %v4654_v22 = vsel %vm2423_vm1, %v4651_v47, %v4653_v57  ;;  %v18505_v47 = vld [vmem:[%s23323_s3 + $0x258] sm:$0xff] }
 0x32b   :  { %4352 = vmatmul.bf16.gmra.mxu2 %v4201_v11  ;;  %v4380_v13 = vadd.f32 %v20642_v56, %v3923_v60  ;;  %v20816_v60 = vld [vmem:[#allocation2 + $0x2c] sm:$0xff] }
 0x32c   :  { %v4750_v31 = vpop.f32.mrf.mxu3  ;;  %v20720_v21 = vpop.f32.mrf.mxu0  ;;  %6026 = vmatpush.bf16.msrb.mxu2 %v18529_v55  ;;  %v5092_v55 = vrot.slane %v20816_v60, 3 }
 0x32d   :  { %v4834_v33 = vadd.f32 %v4750_v31, %v4377_v27  ;;  %v20768_v31 = vld [vmem:[#allocation2 + $0x24] sm:$0xff] }
 0x32e   :  { %v20718_v30 = vpop.f32.mrf.mxu2  ;;  %v20722_v16 = vpop.f32.mrf.mxu1  ;;  %v5090_v62 = vrot.slane %v20768_v31, 3 }
 0x32f   :  { %4870 = vst [vmem:[#allocation3 + $0x20] sm:$0xff] %v4834_v33  ;;  %v20775_v33 = vld [vmem:[#allocation2 + $0x94] sm:$0xff] }
 0x330   :  { %v4204_v56 = vrot.slane %v20775_v33, 1  ;;  %v5091_v12 = vsel %vm2881_vm3, %v5088_v15, %v5090_v62  ;;  %v18503_v33 = vld [vmem:[%s23323_s3 + $0x248] sm:$0xff] }
 0x332   :  { %v4205_v15 = vsel %vm1965_vm2, %v4202_v39, %v4204_v56 }
 0x334   :  { %v4752_v34 = vpop.f32.mrf.mxu3  ;;  %v20746_v1 = vpop.f32.mrf.mxu0 }
 0x335   :  { %v4835_v40 = vadd.f32 %v4752_v34, %v4378_v54  ;;  %v3924_v34 = vadd.f32 %v20678_v38, %v3508_v43 }
 0x336   :  { %v20744_v44 = vpop.f32.mrf.mxu2  ;;  %v20749_v6 = vpop.f32.mrf.mxu1 }
 0x337   :  { %4871 = vst [vmem:[#allocation3 + $0x28] sm:$0xff] %v4835_v40  ;;  %5201 = vmatmul.bf16.gmra.mxu0 %v5089_v4  ;;  %v18395_v40 = vld [vmem:[#allocation2 + $0x84] sm:$0xff] }
 0x338   :  { %v18506_v4 = vld [vmem:[%s23323_s3 + $0x260] sm:$0xff] }
 0x339   :  { %3895 = vmatmul.bf16.gmra.mxu1 %v18394_v9  ;;  %4794 = vmatmul.bf16.gmra.mxu3 %v4652_v3  ;;  %v4060_v9 = vld [vmem:[#allocation2 + $0x9c] sm:$0x1]  ;;  %v4381_v3 = vadd.f32 %v20659_v37, %v3924_v34 }
 0x33a   :  { %5607 = vmatpush.bf16.msra.mxu1 %v18506_v4  ;;  %v4151_v36 = vunpack.c.l.b16 %v4060_v9  ;;  %v20818_v37 = vld [vmem:[#allocation2 + $0x7c] sm:$0xff]  ;;  %v18396_v4 = vld [vmem:[#allocation2 + $0x8c] sm:$0xff] }
 0x33b   :  { %4357 = vmatmul.bf16.gmra.mxu2 %v4203_v59  ;;  %v3165_v59 = vld [vmem:[#allocation3 + $0x48] sm:$0xff] }
 0x33c   :  { %v4755_v35 = vpop.f32.mrf.mxu3  ;;  %v20763_v27 = vpop.f32.mrf.mxu0  ;;  %v3509_v58 = vadd.f32 %v20561_v48, %v3165_v59  ;;  %v18585_v48 = vld [vmem:[%s23323_s3 + $0x328] sm:$0xff] }
 0x33d   :  { %v4836_v24 = vadd.f32 %v4755_v35, %v4379_v29  ;;  %6936 = vmatpush.bf16.msra.mxu0 %v18585_v48 }
 0x33e   :  { %v4318_v11 = vpop.f32.mrf.mxu2  ;;  %v20765_v50 = vpop.f32.mrf.mxu1  ;;  %5608 = vmatpush.bf16.msra.mxu1 %v18505_v47 }
 0x33f   :  { %4872 = vst [vmem:[#allocation3 + $0x30] sm:$0xff] %v4836_v24  ;;  %v4170_v24 = vpack.c.b16 %v4151_v36, %v4151_v36 }
 0x342   :  { %5609 = vmatpush.bf16.msra.mxu1 %v18504_v17 }
 0x344   :  { %v4757_v28 = vpop.f32.mrf.mxu3  ;;  %v20786_v54 = vpop.f32.mrf.mxu0 }
 0x345   :  { %v4837_v61 = vadd.f32 %v4757_v28, %v4380_v13  ;;  %v4206_v13 = vrot.slane %v4170_v24, 1  ;;  %v3172_v28 = vld [vmem:[#allocation3 + $0x80] sm:$0xff]  ;;  %v3174_v24 = vld [vmem:[#allocation3 + $0x90] sm:$0xff] }
 0x346   :  { %v20784_v53 = vpop.f32.mrf.mxu2  ;;  %v3861_v7 = vpop.f32.mrf.mxu1  ;;  %v3516_v34 = vadd.f32 %v20644_v23, %v3172_v28  ;;  %5610 = vmatpush.bf16.msra.mxu1 %v18503_v33  ;;  %v3518_v17 = vadd.f32 %v20676_v14, %v3174_v24 }
 0x347   :  { %4873 = vst [vmem:[#allocation3 + $0x38] sm:$0xff] %v4837_v61  ;;  %v3930_v63 = vadd.f32 %v3861_v7, %v20623_v19  ;;  %5206 = vmatmul.bf16.gmra.mxu0 %v5091_v12  ;;  %v18528_v19 = vld [vmem:[%s23323_s3 + $0x280] sm:$0xff]  ;;  %v4655_v61 = vrot.slane %v20818_v37, 2  ;;  %v3510_v7 = vadd.f32 %v20570_v32, %v3166_v8  ;;  %v5093_v32 = vsel %vm2881_vm3, %v5090_v62, %v5092_v55 }
 0x348   :  { %6027 = vmatpush.bf16.msrb.mxu2 %v18528_v19  ;;  %v4207_v19 = vsel %vm1965_vm2, %v4204_v56, %v4206_v13 }
 0x349   :  { %v20803_v38 = vadd.f32 %v4318_v11, %v3930_v63  ;;  %3900 = vmatmul.bf16.gmra.mxu1 %v18395_v40  ;;  %4799 = vmatmul.bf16.gmra.mxu3 %v4654_v22  ;;  %v3925_v11 = vadd.f32 %v20689_v20, %v3509_v58  ;;  %v4656_v23 = vsel %vm2423_vm1, %v4653_v57, %v4655_v61  ;;  %v18463_v58 = vld [vmem:[#allocation2 + $0x34] sm:$0xff] }
 0x34a   :  { %v3511_v57 = vadd.f32 %v20581_v42, %v3167_v18 }
 0x34b   :  { %4362 = vmatmul.bf16.gmra.mxu2 %v4205_v15  ;;  %v4382_v20 = vadd.f32 %v20674_v41, %v3925_v11  ;;  %v3926_v41 = vadd.f32 %v20707_v49, %v3510_v7  ;;  %v18502_v15 = vld [vmem:[%s23323_s3 + $0x240] sm:$0xff]  ;;  %v5094_v11 = vrot.slane %v18463_v58, 3  ;;  %v18510_v7 = vld [vmem:[#allocation2 + $0x18] sm:$0xff] }
 0x34c   :  { %v4760_v29 = vpop.f32.mrf.mxu3  ;;  %v20811_v26 = vpop.f32.mrf.mxu0  ;;  %v18558_v49 = vld [vmem:[%s23323_s3 + $0x2e0] sm:$0xff]  ;;  %5611 = vmatpush.bf16.msra.mxu1 %v18502_v15 }
 0x34d   :  { %v4838_v35 = vadd.f32 %v4760_v29, %v4381_v3  ;;  %v4383_v31 = vadd.f32 %v20685_v5, %v3926_v41  ;;  %6480 = vmatpush.bf16.msra.mxu3 %v18558_v49  ;;  %v3927_v29 = vadd.f32 %v20722_v16, %v3511_v57  ;;  %v3168_v5 = vld [vmem:[#allocation3 + $0x60] sm:$0xff]  ;;  %v18397_v16 = vld [vmem:[#allocation2 + $0x94] sm:$0xff]  ;;  %v5095_v28 = vsel %vm2881_vm3, %v5092_v55, %v5094_v11 }
 0x34e   :  { %v4323_v0 = vpop.f32.mrf.mxu2  ;;  %v20813_v39 = vpop.f32.mrf.mxu1  ;;  %v3512_v42 = vadd.f32 %v20593_v25, %v3168_v5  ;;  %v3176_v15 = vld [vmem:[#allocation3 + $0xa0] sm:$0xff] }
 0x34f   :  { %4874 = vst [vmem:[#allocation3 + $0x40] sm:$0xff] %v4838_v35  ;;  %v4384_v35 = vadd.f32 %v20702_v52, %v3927_v29  ;;  %v18511_v58 = vld [vmem:[#allocation2 + $0x20] sm:$0xff] }
 0x350   :  { %v3928_v8 = vadd.f32 %v20749_v6, %v3512_v42 }
 0x352   :  { %v4385_v14 = vadd.f32 %v20718_v30, %v3928_v8 }
 0x354   :  { %v4762_v43 = vpop.f32.mrf.mxu3  ;;  %v20836_v12 = vpop.f32.mrf.mxu0 }
 0x355   :  { %v4839_v40 = vadd.f32 %v4762_v43, %v4382_v20 }
 0x356   :  { %v20834_v63 = vpop.f32.mrf.mxu2  ;;  %v3866_v22 = vpop.f32.mrf.mxu1 }
 0x357   :  { %4875 = vst [vmem:[#allocation3 + $0x48] sm:$0xff] %v4839_v40  ;;  %v3932_v9 = vadd.f32 %v3866_v22, %v3516_v34  ;;  %5211 = vmatmul.bf16.gmra.mxu0 %v5093_v32  ;;  %v3169_v34 = vld [vmem:[#allocation3 + $0x68] sm:$0xff] }
 0x358   :  { %v3513_v22 = vadd.f32 %v20613_v45, %v3169_v34 }
 0x359   :  { %v20849_v47 = vadd.f32 %v4323_v0, %v3932_v9  ;;  %3905 = vmatmul.bf16.gmra.mxu1 %v18396_v4  ;;  %4804 = vmatmul.bf16.gmra.mxu3 %v4656_v23  ;;  %v18447_v0 = vld [vmem:[#allocation2 + $0x84] sm:$0xff]  ;;  %v18464_v4 = vld [vmem:[#allocation2 + $0x3c] sm:$0xff] }
 0x35a   :  { %v4657_v37 = vrot.slane %v18447_v0, 2  ;;  %v5096_v23 = vrot.slane %v18464_v4, 3  ;;  %v18557_v0 = vld [vmem:[%s23323_s3 + $0x2d8] sm:$0xff]  ;;  %v18512_v4 = vld [vmem:[#allocation2 + $0x28] sm:$0xff] }
 0x35b   :  { %4367 = vmatmul.bf16.gmra.mxu2 %v4207_v19  ;;  %v18448_v19 = vld [vmem:[#allocation2 + $0x8c] sm:$0xff]  ;;  %6481 = vmatpush.bf16.msra.mxu3 %v18557_v0  ;;  %v3180_v0 = vld [vmem:[#allocation3 + $0xc0] sm:$0xff] }
 0x35c   :  { %v4765_v62 = vpop.f32.mrf.mxu3  ;;  %v20856_v36 = vpop.f32.mrf.mxu0  ;;  %v4658_v43 = vsel %vm2423_vm1, %v4655_v61, %v4657_v37  ;;  %v3929_v61 = vadd.f32 %v20765_v50, %v3513_v22  ;;  %v4659_v49 = vrot.slane %v18448_v19, 2  ;;  %v5097_v50 = vsel %vm2881_vm3, %v5094_v11, %v5096_v23 }
 0x35d   :  { %v4840_v3 = vadd.f32 %v4765_v62, %v4383_v31  ;;  %v3520_v31 = vadd.f32 %v20704_v51, %v3176_v15  ;;  %v3173_v15 = vld [vmem:[#allocation3 + $0x88] sm:$0xff] }
 0x35e   :  { %v4328_v56 = vpop.f32.mrf.mxu2  ;;  %v20858_v59 = vpop.f32.mrf.mxu1  ;;  %v4386_v32 = vadd.f32 %v20744_v44, %v3929_v61  ;;  %v18584_v44 = vld [vmem:[%s23323_s3 + $0x320] sm:$0xff]  ;;  %v4660_v29 = vsel %vm2423_vm1, %v4657_v37, %v4659_v49  ;;  %v4517_v61 = vld [vmem:[#allocation2 + $0x9c] sm:$0x3] }
 0x35f   :  { %4876 = vst [vmem:[#allocation3 + $0x50] sm:$0xff] %v4840_v3  ;;  %v18484_v3 = vld [vmem:[#allocation2 + $0x10] sm:$0xff]  ;;  %6937 = vmatpush.bf16.msra.mxu0 %v18584_v44 }
 0x364   :  { %v4767_v60 = vpop.f32.mrf.mxu3  ;;  %v20866_v20 = vpop.f32.mrf.mxu0 }
 0x365   :  { %v4841_v33 = vadd.f32 %v4767_v60, %v4384_v35  ;;  %v3171_v35 = vld [vmem:[#allocation3 + $0x78] sm:$0xff] }
 0x366   :  { %v20864_v48 = vpop.f32.mrf.mxu2  ;;  %v3871_v13 = vpop.f32.mrf.mxu1  ;;  %v3515_v5 = vadd.f32 %v20634_v10, %v3171_v35  ;;  %v18555_v10 = vld [vmem:[%s23323_s3 + $0x2c8] sm:$0xff] }
 0x367   :  { %4877 = vst [vmem:[#allocation3 + $0x58] sm:$0xff] %v4841_v33  ;;  %v3934_v52 = vadd.f32 %v3871_v13, %v3518_v17  ;;  %5216 = vmatmul.bf16.gmra.mxu0 %v5095_v28  ;;  %v18465_v33 = vld [vmem:[#allocation2 + $0x44] sm:$0xff]  ;;  %v18556_v13 = vld [vmem:[%s23323_s3 + $0x2d0] sm:$0xff] }
 0x368   :  { %v3931_v17 = vadd.f32 %v20813_v39, %v3515_v5  ;;  %6482 = vmatpush.bf16.msra.mxu3 %v18556_v13  ;;  %v5098_v8 = vrot.slane %v18465_v33, 3 }
 0x369   :  { %v20871_v25 = vadd.f32 %v4328_v56, %v3934_v52  ;;  %3910 = vmatmul.bf16.gmra.mxu1 %v18397_v16  ;;  %4809 = vmatmul.bf16.gmra.mxu3 %v4658_v43  ;;  %v18449_v16 = vld [vmem:[#allocation2 + $0x94] sm:$0xff] }
 0x36a   :  { %v3178_v52 = vld [vmem:[#allocation3 + $0xb0] sm:$0xff]  ;;  %v4661_v43 = vrot.slane %v18449_v16, 2  ;;  %v18486_v16 = vld [vmem:[#allocation2 + $0x20] sm:$0xff] }
 0x36b   :  { %6028 = vmatmul.bf16.vlgmr.msrb.gmra.mxu2 %v18510_v7  ;;  %v3522_v7 = vadd.f32 %v20746_v1, %v3178_v52  ;;  %v18554_v1 = vld [vmem:[%s23323_s3 + $0x2c0] sm:$0xff] }
 0x36c   :  { %v4770_v40 = vpop.f32.mrf.mxu3  ;;  %v20875_v9 = vpop.f32.mrf.mxu0  ;;  %6483 = vmatpush.bf16.msra.mxu3 %v18555_v10  ;;  %v3175_v10 = vld [vmem:[#allocation3 + $0x98] sm:$0xff] }
 0x36d   :  { %v4842_v41 = vadd.f32 %v4770_v40, %v4385_v14  ;;  %v3519_v52 = vadd.f32 %v20687_v46, %v3175_v10 }
 0x36e   :  { %v4333_v6 = vpop.f32.mrf.mxu2  ;;  %v20877_v55 = vpop.f32.mrf.mxu1 }
 0x36f   :  { %4878 = vst [vmem:[#allocation3 + $0x60] sm:$0xff] %v4842_v41  ;;  %v18485_v41 = vld [vmem:[#allocation2 + $0x18] sm:$0xff] }
 0x370   :  { %6484 = vmatpush.bf16.msra.mxu3 %v18554_v1 }
 0x374   :  { %v4772_v30 = vpop.f32.mrf.mxu3  ;;  %v20884_v62 = vpop.f32.mrf.mxu0 }
 0x375   :  { %v4843_v18 = vadd.f32 %v4772_v30, %v4386_v32  ;;  %v4608_v32 = vunpack.c.l.b16 %v4517_v61 }
 0x376   :  { %v20882_v45 = vpop.f32.mrf.mxu2  ;;  %v3876_v57 = vpop.f32.mrf.mxu1 }
 0x377   :  { %4879 = vst [vmem:[#allocation3 + $0x68] sm:$0xff] %v4843_v18  ;;  %v3936_v56 = vadd.f32 %v3876_v57, %v3520_v31  ;;  %5221 = vmatmul.bf16.gmra.mxu0 %v5097_v50 }
 0x379   :  { %v20891_v51 = vadd.f32 %v4333_v6, %v3936_v56  ;;  %4814 = vmatmul.bf16.gmra.mxu3 %v4660_v29  ;;  %5612 = vmatmul.bf16.vlgmr.msra.gmra.mxu1 %v18484_v3  ;;  %v5099_v6 = vsel %vm2881_vm3, %v5096_v23, %v5098_v8  ;;  %v3517_v23 = vadd.f32 %v20661_v2, %v3173_v15  ;;  %v18466_v3 = vld [vmem:[#allocation2 + $0x4c] sm:$0xff] }
 0x37a   :  { %v4627_v56 = vpack.c.b16 %v4608_v32, %v4608_v32  ;;  %v3524_v2 = vadd.f32 %v20786_v54, %v3180_v0  ;;  %v18583_v54 = vld [vmem:[%s23323_s3 + $0x318] sm:$0xff] }
 0x37b   :  { %6033 = vmatmul.bf16.gmra.mxu2 %v18511_v58  ;;  %v3933_v50 = vadd.f32 %v20858_v59, %v3517_v23  ;;  %v5100_v58 = vrot.slane %v18466_v3, 3  ;;  %6938 = vmatpush.bf16.msra.mxu0 %v18583_v54 }
 0x37c   :  { %v4775_v11 = vpop.f32.mrf.mxu3  ;;  %v20900_v37 = vpop.f32.mrf.mxu0  ;;  %v4663_v44 = vrot.slane %v4627_v56, 2  ;;  %v18514_v56 = vld [vmem:[#allocation2 + $0x38] sm:$0xff] }
 0x37d   :  { %v20898_v60 = vadd.f32 %v4775_v11, %v20803_v38  ;;  %v4388_v38 = vadd.f32 %v20784_v53, %v3931_v17  ;;  %v4662_v53 = vsel %vm2423_vm1, %v4659_v49, %v4661_v43  ;;  %v4390_v29 = vadd.f32 %v20834_v63, %v3933_v50  ;;  %v18513_v63 = vld [vmem:[#allocation2 + $0x30] sm:$0xff] }
 0x37e   :  { %v4338_v24 = vpop.f32.mrf.mxu2  ;;  %v20902_v42 = vpop.f32.mrf.mxu1  ;;  %v4664_v17 = vsel %vm2423_vm1, %v4661_v43, %v4663_v44  ;;  %v5101_v59 = vsel %vm2881_vm3, %v5098_v8, %v5100_v58 }
 0x384   :  { %v4777_v28 = vpop.f32.mrf.mxu3  ;;  %v20915_v34 = vpop.f32.mrf.mxu0 }
 0x385   :  { %v4845_v14 = vadd.f32 %v4777_v28, %v4388_v38 }
 0x386   :  { %v20913_v39 = vpop.f32.mrf.mxu2  ;;  %v3881_v40 = vpop.f32.mrf.mxu1 }
 0x387   :  { %4881 = vst [vmem:[#allocation3 + $0x78] sm:$0xff] %v4845_v14  ;;  %v3938_v22 = vadd.f32 %v3881_v40, %v3522_v7  ;;  %5226 = vmatmul.bf16.gmra.mxu0 %v5099_v6  ;;  %v3935_v14 = vadd.f32 %v20877_v55, %v3519_v52  ;;  %v18467_v40 = vld [vmem:[#allocation2 + $0x54] sm:$0xff]  ;;  %v18536_v6 = vld [vmem:[#allocation2 + $0x18] sm:$0xf0] }
 0x389   :  { %v20922_v19 = vadd.f32 %v4338_v24, %v3938_v22  ;;  %4819 = vmatmul.bf16.gmra.mxu3 %v4662_v53  ;;  %5617 = vmatmul.bf16.gmra.mxu1 %v18485_v41  ;;  %v15730_v22 = vld [vmem:[#allocation2 + $0x18] sm:$0xe]  ;;  %v18537_v41 = vld [vmem:[#allocation2 + $0x20] sm:$0xff]  ;;  %v4392_v53 = vadd.f32 %v20864_v48, %v3935_v14  ;;  %v3177_v48 = vld [vmem:[#allocation3 + $0xa8] sm:$0xff] }
 0x38a   :  { %v15731_v61 = vor.u32 %v18536_v6, %v15730_v22  ;;  %v6375_v1 = vrot.slane %v18537_v41, 1  ;;  %v3521_v44 = vadd.f32 %v20720_v21, %v3177_v48  ;;  %v18489_v48 = vld [vmem:[#allocation2 + $0x38] sm:$0xff] }
 0x38b   :  { %6038 = vmatmul.bf16.gmra.mxu2 %v18512_v4  ;;  %v5102_v4 = vrot.slane %v18467_v40, 3 }
 0x38c   :  { %v4780_v30 = vpop.f32.mrf.mxu3  ;;  %v20928_v18 = vpop.f32.mrf.mxu0  ;;  %v6374_v23 = vrot.slane %v15731_v61, 1 }
 0x38d   :  { %v20926_v49 = vadd.f32 %v4780_v30, %v20849_v47  ;;  %v5103_v55 = vsel %vm2881_vm3, %v5100_v58, %v5102_v4 }
 0x38e   :  { %v4343_v31 = vpop.f32.mrf.mxu2  ;;  %v20930_v57 = vpop.f32.mrf.mxu1  ;;  %v6376_v50 = vsel %vm1965_vm2, %v6374_v23, %v6375_v1 }
 0x394   :  { %v4782_v35 = vpop.f32.mrf.mxu3  ;;  %v20937_v5 = vpop.f32.mrf.mxu0 }
 0x395   :  { %v4847_v47 = vadd.f32 %v4782_v35, %v4390_v29 }
 0x396   :  { %v20935_v11 = vpop.f32.mrf.mxu2  ;;  %v3886_v24 = vpop.f32.mrf.mxu1 }
 0x397   :  { %4883 = vst [vmem:[#allocation3 + $0x88] sm:$0xff] %v4847_v47  ;;  %v3940_v33 = vadd.f32 %v3886_v24, %v3524_v2  ;;  %5231 = vmatmul.bf16.gmra.mxu0 %v5101_v59  ;;  %v3937_v2 = vadd.f32 %v20902_v42, %v3521_v44  ;;  %v18468_v47 = vld [vmem:[#allocation2 + $0x5c] sm:$0xff]  ;;  %v18538_v24 = vld [vmem:[#allocation2 + $0x28] sm:$0xff] }
 0x398   :  { %v18515_v42 = vld [vmem:[#allocation2 + $0x40] sm:$0xff] }
 0x399   :  { %v20941_v13 = vadd.f32 %v4343_v31, %v3940_v33  ;;  %4824 = vmatmul.bf16.gmra.mxu3 %v4664_v17  ;;  %5622 = vmatmul.bf16.gmra.mxu1 %v18486_v16  ;;  %v18487_v31 = vld [vmem:[#allocation2 + $0x28] sm:$0xff]  ;;  %v4394_v17 = vadd.f32 %v20882_v45, %v3937_v2  ;;  %v5104_v33 = vrot.slane %v18468_v47, 3  ;;  %v6377_v16 = vrot.slane %v18538_v24, 1  ;;  %v3179_v45 = vld [vmem:[#allocation3 + $0xb8] sm:$0xff] }
 0x39a   :  { %v3523_v40 = vadd.f32 %v20763_v27, %v3179_v45 }
 0x39b   :  { %6043 = vmatmul.bf16.gmra.mxu2 %v18513_v63  ;;  %v5105_v10 = vsel %vm2881_vm3, %v5102_v4, %v5104_v33  ;;  %v6378_v52 = vsel %vm1965_vm2, %v6375_v1, %v6377_v16  ;;  %v18469_v4 = vld [vmem:[#allocation2 + $0x64] sm:$0xff]  ;;  %v18539_v1 = vld [vmem:[#allocation2 + $0x30] sm:$0xff] }
 0x39c   :  { %v4785_v38 = vpop.f32.mrf.mxu3  ;;  %v20952_v43 = vpop.f32.mrf.mxu0 }
 0x39d   :  { %v20950_v8 = vadd.f32 %v4785_v38, %v20871_v25  ;;  %v18488_v38 = vld [vmem:[#allocation2 + $0x30] sm:$0xff] }
 0x39e   :  { %v20947_v28 = vpop.f32.mrf.mxu2  ;;  %v20954_v7 = vpop.f32.mrf.mxu1 }
 0x3a4   :  { %v4787_v46 = vpop.f32.mrf.mxu3  ;;  %v20960_v15 = vpop.f32.mrf.mxu0 }
 0x3a5   :  { %v4849_v25 = vadd.f32 %v4787_v46, %v4392_v53  ;;  %v3939_v53 = vadd.f32 %v20930_v57, %v3523_v40  ;;  %v18582_v46 = vld [vmem:[%s23323_s3 + $0x310] sm:$0xff] }
 0x3a6   :  { %v20958_v32 = vpop.f32.mrf.mxu2  ;;  %v20962_v30 = vpop.f32.mrf.mxu1  ;;  %6939 = vmatpush.bf16.msra.mxu0 %v18582_v46 }
 0x3a7   :  { %4885 = vst [vmem:[#allocation3 + $0x98] sm:$0xff] %v4849_v25  ;;  %5236 = vmatmul.bf16.gmra.mxu0 %v5103_v55  ;;  %v4396_v27 = vadd.f32 %v20913_v39, %v3939_v53  ;;  %v5106_v25 = vrot.slane %v18469_v4, 3  ;;  %v6379_v55 = vrot.slane %v18539_v1, 1  ;;  %v3181_v39 = vld [vmem:[#allocation3 + $0xc8] sm:$0xff]  ;;  %v18490_v1 = vld [vmem:[#allocation2 + $0x40] sm:$0xff] }
 0x3a8   :  { %v3525_v47 = vadd.f32 %v20811_v26, %v3181_v39  ;;  %v18581_v39 = vld [vmem:[%s23323_s3 + $0x308] sm:$0xff] }
 0x3a9   :  { %5627 = vmatmul.bf16.gmra.mxu1 %v18487_v31  ;;  %6485 = vmatmul.bf16.vlgmr.msra.gmra.mxu3 %v6376_v50  ;;  %v5107_v57 = vsel %vm2881_vm3, %v5104_v33, %v5106_v25  ;;  %v6380_v44 = vsel %vm1965_vm2, %v6377_v16, %v6379_v55  ;;  %v18540_v16 = vld [vmem:[#allocation2 + $0x38] sm:$0xff] }
 0x3aa   :  { %6940 = vmatpush.bf16.msra.mxu0 %v18581_v39 }
 0x3ab   :  { %6048 = vmatmul.bf16.gmra.mxu2 %v18514_v56 }
 0x3ac   :  { %v4790_v3 = vpop.f32.mrf.mxu3  ;;  %v20972_v35 = vpop.f32.mrf.mxu0 }
 0x3ad   :  { %v20970_v0 = vadd.f32 %v4790_v3, %v20891_v51  ;;  %v18516_v3 = vld [vmem:[#allocation2 + $0x48] sm:$0xff] }
 0x3ae   :  { %v20967_v29 = vpop.f32.mrf.mxu2  ;;  %v20974_v58 = vpop.f32.mrf.mxu1 }
 0x3b4   :  { %v4792_v59 = vpop.f32.mrf.mxu3  ;;  %v20980_v54 = vpop.f32.mrf.mxu0 }
 0x3b5   :  { %v4851_v21 = vadd.f32 %v4792_v59, %v4394_v17 }
 0x3b6   :  { %v20978_v63 = vpop.f32.mrf.mxu2  ;;  %v20982_v51 = vpop.f32.mrf.mxu1 }
 0x3b7   :  { %4887 = vst [vmem:[#allocation3 + $0xa8] sm:$0xff] %v4851_v21  ;;  %5241 = vmatmul.bf16.gmra.mxu0 %v5105_v10  ;;  %v3941_v21 = vadd.f32 %v20954_v7, %v3525_v47  ;;  %v18470_v10 = vld [vmem:[#allocation2 + $0x6c] sm:$0xff]  ;;  %v3184_v47 = vld [vmem:[#allocation3 + $0xe0] sm:$0xff] }
 0x3b9   :  { %5632 = vmatmul.bf16.gmra.mxu1 %v18488_v38  ;;  %6490 = vmatmul.bf16.gmra.mxu3 %v6378_v52  ;;  %v4398_v38 = vadd.f32 %v20935_v11, %v3941_v21  ;;  %v3182_v52 = vld [vmem:[#allocation3 + $0xd0] sm:$0xff] }
 0x3ba   :  { %v3526_v26 = vadd.f32 %v20836_v12, %v3182_v52  ;;  %v18517_v11 = vld [vmem:[#allocation2 + $0x50] sm:$0xff] }
 0x3bb   :  { %6053 = vmatmul.bf16.gmra.mxu2 %v18515_v42  ;;  %v5108_v42 = vrot.slane %v18470_v10, 3 }
 0x3bc   :  { %v4795_v14 = vpop.f32.mrf.mxu3  ;;  %v20992_v41 = vpop.f32.mrf.mxu0  ;;  %v3942_v46 = vadd.f32 %v20962_v30, %v3526_v26 }
 0x3bd   :  { %v20990_v6 = vadd.f32 %v4795_v14, %v20922_v19  ;;  %v6381_v14 = vrot.slane %v18540_v16, 1  ;;  %v5109_v7 = vsel %vm2881_vm3, %v5106_v25, %v5108_v42  ;;  %v3528_v16 = vadd.f32 %v20866_v20, %v3184_v47 }
 0x3be   :  { %v20987_v22 = vpop.f32.mrf.mxu2  ;;  %v20994_v61 = vpop.f32.mrf.mxu1  ;;  %v4399_v12 = vadd.f32 %v20947_v28, %v3942_v46  ;;  %v18541_v28 = vld [vmem:[#allocation2 + $0x40] sm:$0xff]  ;;  %v18491_v46 = vld [vmem:[#allocation2 + $0x48] sm:$0xff] }
 0x3bf   :  { %v6383_v10 = vrot.slane %v18541_v28, 1  ;;  %v3944_v26 = vadd.f32 %v20982_v51, %v3528_v16 }
 0x3c1   :  { %v4401_v20 = vadd.f32 %v20967_v29, %v3944_v26  ;;  %v3186_v29 = vld [vmem:[#allocation3 + $0xf0] sm:$0xff] }
 0x3c4   :  { %v4797_v23 = vpop.f32.mrf.mxu3  ;;  %v21003_v56 = vpop.f32.mrf.mxu0 }
 0x3c5   :  { %v4853_v31 = vadd.f32 %v4797_v23, %v4396_v27  ;;  %v6382_v27 = vsel %vm1965_vm2, %v6379_v55, %v6381_v14  ;;  %v3183_v23 = vld [vmem:[#allocation3 + $0xd8] sm:$0xff]  ;;  %v18471_v55 = vld [vmem:[#allocation2 + $0x74] sm:$0xff] }
 0x3c6   :  { %v21001_v19 = vpop.f32.mrf.mxu2  ;;  %v21005_v50 = vpop.f32.mrf.mxu1 }
 0x3c7   :  { %4889 = vst [vmem:[#allocation3 + $0xb8] sm:$0xff] %v4853_v31  ;;  %5246 = vmatmul.bf16.gmra.mxu0 %v5107_v57  ;;  %v3527_v57 = vadd.f32 %v20856_v36, %v3183_v23  ;;  %v5110_v36 = vrot.slane %v18471_v55, 3 }
 0x3c9   :  { %5637 = vmatmul.bf16.gmra.mxu1 %v18489_v48  ;;  %6495 = vmatmul.bf16.gmra.mxu3 %v6380_v44  ;;  %v3943_v44 = vadd.f32 %v20974_v58, %v3527_v57  ;;  %v18542_v57 = vld [vmem:[#allocation2 + $0x48] sm:$0xff] }
 0x3ca   :  { %v6385_v39 = vrot.slane %v18542_v57, 1 }
 0x3cb   :  { %6058 = vmatmul.bf16.gmra.mxu2 %v18516_v3 }
 0x3cc   :  { %v4800_v2 = vpop.f32.mrf.mxu3  ;;  %v21015_v59 = vpop.f32.mrf.mxu0  ;;  %v6386_v26 = vsel %vm1965_vm2, %v6383_v10, %v6385_v39 }
 0x3cd   :  { %v21013_v17 = vadd.f32 %v4800_v2, %v20941_v13  ;;  %v4400_v2 = vadd.f32 %v20958_v32, %v3943_v44  ;;  %v18518_v32 = vld [vmem:[#allocation2 + $0x58] sm:$0xff] }
 0x3ce   :  { %v21010_v24 = vpop.f32.mrf.mxu2  ;;  %v21017_v33 = vpop.f32.mrf.mxu1 }
 0x3d4   :  { %v4802_v45 = vpop.f32.mrf.mxu3  ;;  %v21024_v53 = vpop.f32.mrf.mxu0 }
 0x3d5   :  { %v4855_v13 = vadd.f32 %v4802_v45, %v4398_v38 }
 0x3d6   :  { %v21022_v40 = vpop.f32.mrf.mxu2  ;;  %v21026_v4 = vpop.f32.mrf.mxu1 }
 0x3d7   :  { %4891 = vst [vmem:[#allocation3 + $0xc8] sm:$0xff] %v4855_v13  ;;  %5251 = vmatmul.bf16.gmra.mxu0 %v5109_v7  ;;  %v5111_v13 = vsel %vm2881_vm3, %v5108_v42, %v5110_v36  ;;  %v6384_v7 = vsel %vm1965_vm2, %v6381_v14, %v6383_v10  ;;  %v18472_v14 = vld [vmem:[#allocation2 + $0x7c] sm:$0xff]  ;;  %v18473_v10 = vld [vmem:[#allocation2 + $0x84] sm:$0xff] }
 0x3d8   :  { %v5112_v44 = vrot.slane %v18472_v14, 3 }
 0x3d9   :  { %5642 = vmatmul.bf16.gmra.mxu1 %v18490_v1  ;;  %6500 = vmatmul.bf16.gmra.mxu3 %v6382_v27  ;;  %v3185_v1 = vld [vmem:[#allocation3 + $0xe8] sm:$0xff] }
 0x3da   :  { %v3529_v27 = vadd.f32 %v20875_v9, %v3185_v1  ;;  %v3530_v9 = vadd.f32 %v20884_v62, %v3186_v29  ;;  %v5113_v16 = vsel %vm2881_vm3, %v5110_v36, %v5112_v44 }
 0x3db   :  { %6063 = vmatmul.bf16.gmra.mxu2 %v18517_v11 }
 0x3dc   :  { %v4805_v31 = vpop.f32.mrf.mxu3  ;;  %v21035_v3 = vpop.f32.mrf.mxu0 }
 0x3dd   :  { %v4856_v30 = vadd.f32 %v4805_v31, %v4399_v12  ;;  %v3945_v31 = vadd.f32 %v20994_v61, %v3529_v27  ;;  %v3946_v61 = vadd.f32 %v21005_v50, %v3530_v9 }
 0x3de   :  { %v21033_v48 = vpop.f32.mrf.mxu2  ;;  %v21037_v25 = vpop.f32.mrf.mxu1 }
 0x3df   :  { %4892 = vst [vmem:[#allocation3 + $0xd0] sm:$0xff] %v4856_v30  ;;  %v4402_v30 = vadd.f32 %v20978_v63, %v3945_v31  ;;  %v18519_v63 = vld [vmem:[#allocation2 + $0x60] sm:$0xff]  ;;  %v4403_v62 = vadd.f32 %v20987_v22, %v3946_v61  ;;  %v18543_v22 = vld [vmem:[#allocation2 + $0x50] sm:$0xff]  ;;  %v18493_v61 = vld [vmem:[#allocation2 + $0x58] sm:$0xff] }
 0x3e0   :  { %v6387_v14 = vrot.slane %v18543_v22, 1  ;;  %v3190_v22 = vld [vmem:[#allocation3 + $0x110] sm:$0xff] }
 0x3e4   :  { %v4807_v21 = vpop.f32.mrf.mxu3  ;;  %v21047_v58 = vpop.f32.mrf.mxu0 }
 0x3e5   :  { %v4857_v52 = vadd.f32 %v4807_v21, %v4400_v2 }
 0x3e6   :  { %v21045_v38 = vpop.f32.mrf.mxu2  ;;  %v21049_v45 = vpop.f32.mrf.mxu1 }
 0x3e7   :  { %4893 = vst [vmem:[#allocation3 + $0xd8] sm:$0xff] %v4857_v52  ;;  %5256 = vmatmul.bf16.gmra.mxu0 %v5111_v13  ;;  %v18492_v52 = vld [vmem:[#allocation2 + $0x50] sm:$0xff]  ;;  %v3187_v13 = vld [vmem:[#allocation3 + $0xf8] sm:$0xff] }
 0x3e9   :  { %5647 = vmatmul.bf16.gmra.mxu1 %v18491_v46  ;;  %6505 = vmatmul.bf16.gmra.mxu3 %v6384_v7 }
 0x3eb   :  { %6068 = vmatmul.bf16.gmra.mxu2 %v18518_v32  ;;  %v3531_v32 = vadd.f32 %v20900_v37, %v3187_v13  ;;  %v5114_v37 = vrot.slane %v18473_v10, 3  ;;  %v18544_v10 = vld [vmem:[#allocation2 + $0x58] sm:$0xff] }
 0x3ec   :  { %v4810_v11 = vpop.f32.mrf.mxu3  ;;  %v21058_v51 = vpop.f32.mrf.mxu0 }
 0x3ed   :  { %v4858_v12 = vadd.f32 %v4810_v11, %v4401_v20  ;;  %v3947_v1 = vadd.f32 %v21017_v33, %v3531_v32  ;;  %v18613_v11 = vld [vmem:[%s23323_s3 + $0x378] sm:$0xff] }
 0x3ee   :  { %v21056_v23 = vpop.f32.mrf.mxu2  ;;  %v21060_v42 = vpop.f32.mrf.mxu1  ;;  %7391 = vmatpush.bf16.msrb.mxu1 %v18613_v11 }
 0x3ef   :  { %4894 = vst [vmem:[#allocation3 + $0xe0] sm:$0xff] %v4858_v12  ;;  %v4404_v27 = vadd.f32 %v21001_v19, %v3947_v1  ;;  %v3188_v12 = vld [vmem:[#allocation3 + $0x100] sm:$0xff]  ;;  %v18474_v1 = vld [vmem:[#allocation2 + $0x8c] sm:$0xff] }
 0x3f0   :  { %v3532_v57 = vadd.f32 %v20915_v34, %v3188_v12  ;;  %v18580_v19 = vld [vmem:[%s23323_s3 + $0x300] sm:$0xff]  ;;  %v6388_v34 = vsel %vm1965_vm2, %v6385_v39, %v6387_v14  ;;  %v5116_v11 = vrot.slane %v18474_v1, 3  ;;  %v6389_v12 = vrot.slane %v18544_v10, 1 }
 0x3f1   :  { %6941 = vmatpush.bf16.msra.mxu0 %v18580_v19  ;;  %v18521_v19 = vld [vmem:[#allocation2 + $0x70] sm:$0xff] }
 0x3f2   :  { %v3948_v9 = vadd.f32 %v21026_v4, %v3532_v57  ;;  %v18639_v4 = vld [vmem:[%s23323_s3 + $0x3b8] sm:$0xff] }
 0x3f3   :  { %7807 = vmatpush.bf16.msra.mxu2 %v18639_v4 }
 0x3f4   :  { %v4812_v55 = vpop.f32.mrf.mxu3  ;;  %v21067_v47 = vpop.f32.mrf.mxu0 }
 0x3f5   :  { %v4859_v28 = vadd.f32 %v4812_v55, %v4402_v30 }
 0x3f6   :  { %v21065_v2 = vpop.f32.mrf.mxu2  ;;  %v21069_v21 = vpop.f32.mrf.mxu1 }
 0x3f7   :  { %4895 = vst [vmem:[#allocation3 + $0xe8] sm:$0xff] %v4859_v28  ;;  %5261 = vmatmul.bf16.gmra.mxu0 %v5113_v16  ;;  %v5115_v28 = vsel %vm2881_vm3, %v5112_v44, %v5114_v37  ;;  %v18520_v16 = vld [vmem:[#allocation2 + $0x68] sm:$0xff]  ;;  %v18665_v44 = vld [vmem:[%s23323_s3 + $0x3f8] sm:$0xff] }
 0x3f8   :  { %8223 = vmatpush.bf16.msrb.mxu3 %v18665_v44 }
 0x3f9   :  { %5652 = vmatmul.bf16.gmra.mxu1 %v18492_v52  ;;  %6510 = vmatmul.bf16.gmra.mxu3 %v6386_v26  ;;  %v4405_v52 = vadd.f32 %v21010_v24, %v3948_v9 }
 0x3fb   :  { %6073 = vmatmul.bf16.gmra.mxu2 %v18519_v63  ;;  %v3189_v63 = vld [vmem:[#allocation3 + $0x108] sm:$0xff] }
 0x3fc   :  { %v4815_v46 = vpop.f32.mrf.mxu3  ;;  %v21078_v50 = vpop.f32.mrf.mxu0  ;;  %v3533_v39 = vadd.f32 %v20928_v18, %v3189_v63  ;;  %v3534_v18 = vadd.f32 %v20937_v5, %v3190_v22 }
 0x3fd   :  { %v4860_v7 = vadd.f32 %v4815_v46, %v4403_v62 }
 0x3fe   :  { %v21076_v20 = vpop.f32.mrf.mxu2  ;;  %v21080_v36 = vpop.f32.mrf.mxu1 }
 0x3ff   :  { %4896 = vst [vmem:[#allocation3 + $0xf0] sm:$0xff] %v4860_v7  ;;  %v3949_v7 = vadd.f32 %v21037_v25, %v3533_v39  ;;  %v3950_v25 = vadd.f32 %v21049_v45, %v3534_v18  ;;  %v4974_v18 = vld [vmem:[#allocation2 + $0x9c] sm:$0x7] }
 0x401   :  { %v4406_v24 = vadd.f32 %v21022_v40, %v3949_v7  ;;  %v5117_v40 = vsel %vm2881_vm3, %v5114_v37, %v5116_v11  ;;  %v4407_v5 = vadd.f32 %v21033_v48, %v3950_v25  ;;  %v18522_v25 = vld [vmem:[#allocation2 + $0x78] sm:$0xff] }
 0x404   :  { %v4817_v31 = vpop.f32.mrf.mxu3  ;;  %v21090_v33 = vpop.f32.mrf.mxu0 }
 0x405   :  { %v4861_v30 = vadd.f32 %v4817_v31, %v4404_v27 }
 0x406   :  { %v21088_v29 = vpop.f32.mrf.mxu2  ;;  %v21092_v55 = vpop.f32.mrf.mxu1 }
 0x407   :  { %4897 = vst [vmem:[#allocation3 + $0xf8] sm:$0xff] %v4861_v30  ;;  %5266 = vmatmul.bf16.gmra.mxu0 %v5115_v28 }
 0x409   :  { %5657 = vmatmul.bf16.gmra.mxu1 %v18493_v61  ;;  %6515 = vmatmul.bf16.gmra.mxu3 %v6388_v34  ;;  %v18494_v61 = vld [vmem:[#allocation2 + $0x60] sm:$0xff] }
 0x40a   :  { %v3191_v34 = vld [vmem:[#allocation3 + $0x118] sm:$0xff] }
 0x40b   :  { %6078 = vmatmul.bf16.gmra.mxu2 %v18520_v16  ;;  %v6390_v16 = vsel %vm1965_vm2, %v6387_v14, %v6389_v12  ;;  %v3535_v4 = vadd.f32 %v20952_v43, %v3191_v34  ;;  %v18475_v14 = vld [vmem:[#allocation2 + $0x94] sm:$0xff] }
 0x40c   :  { %v4820_v26 = vpop.f32.mrf.mxu3  ;;  %v21110_v46 = vpop.f32.mrf.mxu0  ;;  %v5118_v48 = vrot.slane %v18475_v14, 3 }
 0x40d   :  { %v4862_v62 = vadd.f32 %v4820_v26, %v4405_v52  ;;  %v3951_v63 = vadd.f32 %v21060_v42, %v3535_v4  ;;  %v21136_v26 = vld [vmem:[#allocation2 + $0x60] sm:$0xff] }
 0x40e   :  { %v21108_v13 = vpop.f32.mrf.mxu2  ;;  %v21112_v32 = vpop.f32.mrf.mxu1  ;;  %v6391_v43 = vrot.slane %v21136_v26, 1 }
 0x40f   :  { %4898 = vst [vmem:[#allocation3 + $0x100] sm:$0xff] %v4862_v62  ;;  %v4408_v39 = vadd.f32 %v21045_v38, %v3951_v63  ;;  %v4902_v62 = vld [vmem:[#allocation3] sm:$0xff]  ;;  %v5119_v38 = vsel %vm2881_vm3, %v5116_v11, %v5118_v48  ;;  %v18664_v63 = vld [vmem:[%s23323_s3 + $0x3f0] sm:$0xff] }
 0x410   :  { %v5287_v1 = vadd.f32 %v20960_v15, %v4902_v62  ;;  %v18612_v15 = vld [vmem:[%s23323_s3 + $0x370] sm:$0xff]  ;;  %8224 = vmatpush.bf16.msrb.mxu3 %v18664_v63 }
 0x411   :  { %7392 = vmatpush.bf16.msrb.mxu1 %v18612_v15  ;;  %v18523_v15 = vld [vmem:[#allocation2 + $0x80] sm:$0xff] }
 0x414   :  { %v4822_v27 = vpop.f32.mrf.mxu3  ;;  %v5232_v30 = vpop.f32.mrf.mxu0 }
 0x415   :  { %v4863_v31 = vadd.f32 %v4822_v27, %v4406_v24  ;;  %v21120_v9 = vadd.f32 %v5232_v30, %v20898_v60  ;;  %v18495_v30 = vld [vmem:[#allocation2 + $0x68] sm:$0xff] }
 0x416   :  { %v21117_v57 = vpop.f32.mrf.mxu2  ;;  %v21122_v28 = vpop.f32.mrf.mxu1 }
 0x417   :  { %4899 = vst [vmem:[#allocation3 + $0x108] sm:$0xff] %v4863_v31  ;;  %5271 = vmatmul.bf16.gmra.mxu0 %v5117_v40  ;;  %v5703_v31 = vadd.f32 %v21069_v21, %v5287_v1  ;;  %v6392_v40 = vsel %vm1965_vm2, %v6389_v12, %v6391_v43  ;;  %v18691_v21 = vld [vmem:[%s23323_s3 + $0x438] sm:$0xff] }
 0x418   :  { %8680 = vmatpush.bf16.msrb.mxu0 %v18691_v21 }
 0x419   :  { %5662 = vmatmul.bf16.gmra.mxu1 %v18494_v61  ;;  %6520 = vmatmul.bf16.gmra.mxu3 %v6390_v16  ;;  %v6119_v11 = vadd.f32 %v21056_v23, %v5703_v31  ;;  %v4903_v61 = vld [vmem:[#allocation3 + $0x8] sm:$0xff] }
 0x41a   :  { %v5288_v16 = vadd.f32 %v20972_v35, %v4903_v61  ;;  %v18638_v23 = vld [vmem:[%s23323_s3 + $0x3b0] sm:$0xff]  ;;  %v18546_v35 = vld [vmem:[#allocation2 + $0x68] sm:$0xff]  ;;  %v15850_v61 = vld [vmem:[#allocation2 + $0x18] sm:$0xc] }
 0x41b   :  { %6083 = vmatmul.bf16.gmra.mxu2 %v18521_v19 }
 0x41c   :  { %v4825_v60 = vpop.f32.mrf.mxu3  ;;  %v21131_v45 = vpop.f32.mrf.mxu0  ;;  %7808 = vmatpush.bf16.msra.mxu2 %v18638_v23 }
 0x41d   :  { %v4864_v44 = vadd.f32 %v4825_v60, %v4407_v5 }
 0x41e   :  { %v21129_v52 = vpop.f32.mrf.mxu2  ;;  %v21133_v37 = vpop.f32.mrf.mxu1 }
 0x41f   :  { %4900 = vst [vmem:[#allocation3 + $0x110] sm:$0xff] %v4864_v44  ;;  %v5704_v44 = vadd.f32 %v21080_v36, %v5288_v16  ;;  %v18563_v16 = vld [vmem:[#allocation2 + $0x20] sm:$0xff] }
 0x421   :  { %v6120_v26 = vadd.f32 %v21065_v2, %v5704_v44  ;;  %v18496_v2 = vld [vmem:[#allocation2 + $0x70] sm:$0xff]  ;;  %v6832_v44 = vrot.slane %v18563_v16, 2 }
 0x424   :  { %v4827_v7 = vpop.f32.mrf.mxu3  ;;  %v5237_v22 = vpop.f32.mrf.mxu0 }
 0x425   :  { %v4865_v10 = vadd.f32 %v4827_v7, %v4408_v39  ;;  %v21144_v27 = vadd.f32 %v5237_v22, %v20926_v49  ;;  %v5065_v49 = vunpack.c.l.b16 %v4974_v18  ;;  %v4904_v39 = vld [vmem:[#allocation3 + $0x10] sm:$0xff]  ;;  %v6393_v7 = vrot.slane %v18546_v35, 1 }
 0x426   :  { %v21141_v24 = vpop.f32.mrf.mxu2  ;;  %v21146_v42 = vpop.f32.mrf.mxu1  ;;  %v5289_v36 = vadd.f32 %v20980_v54, %v4904_v39 }
 0x427   :  { %4901 = vst [vmem:[#allocation3 + $0x118] sm:$0xff] %v4865_v10  ;;  %5276 = vmatmul.bf16.gmra.mxu0 %v5119_v38  ;;  %v5084_v60 = vpack.c.b16 %v5065_v49, %v5065_v49 }
 0x429   :  { %5667 = vmatmul.bf16.gmra.mxu1 %v18495_v30  ;;  %6525 = vmatmul.bf16.gmra.mxu3 %v6392_v40  ;;  %v5120_v14 = vrot.slane %v5084_v60, 3  ;;  %v5705_v30 = vadd.f32 %v21092_v55, %v5289_v36  ;;  %v4905_v40 = vld [vmem:[#allocation3 + $0x18] sm:$0xff] }
 0x42b   :  { %6088 = vmatmul.bf16.gmra.mxu2 %v18522_v25  ;;  %v5121_v18 = vsel %vm2881_vm3, %v5118_v48, %v5120_v14  ;;  %v6394_v25 = vsel %vm1965_vm2, %v6391_v43, %v6393_v7  ;;  %v6121_v54 = vadd.f32 %v21076_v20, %v5705_v30 }
 0x42c   :  { %v6486_v19 = vpop.f32.mrf.mxu3  ;;  %v21161_v12 = vpop.f32.mrf.mxu0 }
 0x42d   :  { %v6576_v34 = vadd.f32 %v6486_v19, %v6119_v11  ;;  %v18562_v19 = vld [vmem:[#allocation2 + $0x18] sm:$0xf0] }
 0x42e   :  { %v21159_v5 = vpop.f32.mrf.mxu2  ;;  %v21163_v4 = vpop.f32.mrf.mxu1  ;;  %v15851_v20 = vor.u32 %v18562_v19, %v15850_v61  ;;  %v21231_v61 = vld [vmem:[#allocation2 + $0x78] sm:$0xff] }
 0x42f   :  { %6612 = vst [vmem:[#allocation3] sm:$0xff] %v6576_v34  ;;  %v21193_v34 = vld [vmem:[#allocation2 + $0x70] sm:$0xff] }
 0x430   :  { %v6395_v63 = vrot.slane %v21193_v34, 1  ;;  %v6397_v34 = vrot.slane %v21231_v61, 1 }
 0x432   :  { %v6396_v30 = vsel %vm1965_vm2, %v6393_v7, %v6395_v63 }
 0x434   :  { %v6488_v62 = vpop.f32.mrf.mxu3  ;;  %v5242_v22 = vpop.f32.mrf.mxu0 }
 0x435   :  { %v6577_v10 = vadd.f32 %v6488_v62, %v6120_v26  ;;  %v21178_v31 = vadd.f32 %v5242_v22, %v20950_v8  ;;  %v5290_v8 = vadd.f32 %v20992_v41, %v4905_v40  ;;  %v4906_v41 = vld [vmem:[#allocation3 + $0x20] sm:$0xff]  ;;  %v6831_v62 = vrot.slane %v15851_v20, 2 }
 0x436   :  { %v21174_v1 = vpop.f32.mrf.mxu2  ;;  %v21180_v38 = vpop.f32.mrf.mxu1  ;;  %v5291_v35 = vadd.f32 %v21003_v56, %v4906_v41 }
 0x437   :  { %6613 = vst [vmem:[#allocation3 + $0x8] sm:$0xff] %v6577_v10  ;;  %5281 = vmatmul.bf16.gmra.mxu0 %v5121_v18  ;;  %v5706_v43 = vadd.f32 %v21112_v32, %v5290_v8  ;;  %v6833_v22 = vsel %vm2423_vm1, %v6831_v62, %v6832_v44  ;;  %v18524_v18 = vld [vmem:[#allocation2 + $0x88] sm:$0xff]  ;;  %v18498_v62 = vld [vmem:[#allocation2 + $0x80] sm:$0xff] }
 0x438   :  { %v5707_v10 = vadd.f32 %v21122_v28, %v5291_v35 }
 0x439   :  { %5672 = vmatmul.bf16.gmra.mxu1 %v18496_v2  ;;  %6530 = vmatmul.bf16.gmra.mxu3 %v6394_v25  ;;  %v6122_v60 = vadd.f32 %v21088_v29, %v5706_v43  ;;  %v18497_v29 = vld [vmem:[#allocation2 + $0x78] sm:$0xff]  ;;  %v4907_v2 = vld [vmem:[#allocation3 + $0x28] sm:$0xff] }
 0x43a   :  { %v6123_v56 = vadd.f32 %v21108_v13, %v5707_v10  ;;  %v5292_v28 = vadd.f32 %v21015_v59, %v4907_v2  ;;  %v18690_v13 = vld [vmem:[%s23323_s3 + $0x430] sm:$0xff]  ;;  %v18637_v59 = vld [vmem:[%s23323_s3 + $0x3a8] sm:$0xff] }
 0x43b   :  { %6093 = vmatmul.bf16.gmra.mxu2 %v18523_v15  ;;  %8681 = vmatpush.bf16.msrb.mxu0 %v18690_v13  ;;  %v4908_v43 = vld [vmem:[#allocation3 + $0x30] sm:$0xff] }
 0x43c   :  { %v6491_v48 = vpop.f32.mrf.mxu3  ;;  %v21188_v11 = vpop.f32.mrf.mxu0  ;;  %v5708_v8 = vadd.f32 %v21133_v37, %v5292_v28  ;;  %7809 = vmatpush.bf16.msra.mxu2 %v18637_v59  ;;  %v5293_v20 = vadd.f32 %v21024_v53, %v4908_v43  ;;  %v18636_v53 = vld [vmem:[%s23323_s3 + $0x3a0] sm:$0xff] }
 0x43d   :  { %v6578_v21 = vadd.f32 %v6491_v48, %v6121_v54  ;;  %v21219_v48 = vld [vmem:[#allocation2 + $0x28] sm:$0xff]  ;;  %v21267_v28 = vld [vmem:[#allocation2 + $0x80] sm:$0xff] }
 0x43e   :  { %v21186_v49 = vpop.f32.mrf.mxu2  ;;  %v21190_v55 = vpop.f32.mrf.mxu1  ;;  %v6124_v37 = vadd.f32 %v21117_v57, %v5708_v8  ;;  %v6834_v19 = vrot.slane %v21219_v48, 2  ;;  %v5709_v57 = vadd.f32 %v21146_v42, %v5293_v20  ;;  %v18635_v42 = vld [vmem:[%s23323_s3 + $0x398] sm:$0xff]  ;;  %v18633_v48 = vld [vmem:[%s23323_s3 + $0x388] sm:$0xff]  ;;  %v6399_v13 = vrot.slane %v21267_v28, 1 }
 0x43f   :  { %6614 = vst [vmem:[#allocation3 + $0x10] sm:$0xff] %v6578_v21  ;;  %v18663_v21 = vld [vmem:[%s23323_s3 + $0x3e8] sm:$0xff] }
 0x440   :  { %8225 = vmatpush.bf16.msrb.mxu3 %v18663_v21  ;;  %v6835_v10 = vsel %vm2423_vm1, %v6832_v44, %v6834_v19  ;;  %7810 = vmatpush.bf16.msra.mxu2 %v18636_v53 }
 0x444   :  { %v6493_v23 = vpop.f32.mrf.mxu3  ;;  %v5247_v39 = vpop.f32.mrf.mxu0  ;;  %7811 = vmatpush.bf16.msra.mxu2 %v18635_v42 }
 0x445   :  { %v6579_v26 = vadd.f32 %v6493_v23, %v6122_v60  ;;  %v21201_v32 = vadd.f32 %v5247_v39, %v20970_v0  ;;  %v18611_v0 = vld [vmem:[%s23323_s3 + $0x368] sm:$0xff]  ;;  %v18525_v39 = vld [vmem:[#allocation2 + $0x90] sm:$0xff] }
 0x446   :  { %v21198_v14 = vpop.f32.mrf.mxu2  ;;  %v21203_v36 = vpop.f32.mrf.mxu1  ;;  %7393 = vmatpush.bf16.msrb.mxu1 %v18611_v0 }
 0x447   :  { %6615 = vst [vmem:[#allocation3 + $0x18] sm:$0xff] %v6579_v26  ;;  %6942 = vmatmul.bf16.vlgmr.msra.gmra.mxu0 %v6833_v22  ;;  %v4909_v22 = vld [vmem:[#allocation3 + $0x38] sm:$0xff] }
 0x448   :  { %v5294_v44 = vadd.f32 %v21035_v3, %v4909_v22  ;;  %v18566_v22 = vld [vmem:[#allocation2 + $0x38] sm:$0xff] }
 0x449   :  { %5677 = vmatmul.bf16.gmra.mxu1 %v18497_v29  ;;  %6535 = vmatmul.bf16.gmra.mxu3 %v6396_v30  ;;  %v6398_v29 = vsel %vm1965_vm2, %v6395_v63, %v6397_v34 }
 0x44a   :  { %v5710_v2 = vadd.f32 %v21163_v4, %v5294_v44  ;;  %v4910_v4 = vld [vmem:[#allocation3 + $0x40] sm:$0xff] }
 0x44b   :  { %6098 = vmatmul.bf16.gmra.mxu2 %v18524_v18  ;;  %v5295_v59 = vadd.f32 %v21047_v58, %v4910_v4  ;;  %v18610_v58 = vld [vmem:[%s23323_s3 + $0x360] sm:$0xff]  ;;  %v18607_v44 = vld [vmem:[%s23323_s3 + $0x348] sm:$0xff] }
 0x44c   :  { %v6496_v15 = vpop.f32.mrf.mxu3  ;;  %v21215_v40 = vpop.f32.mrf.mxu0  ;;  %v6126_v3 = vadd.f32 %v21141_v24, %v5710_v2  ;;  %7394 = vmatpush.bf16.msrb.mxu1 %v18610_v58  ;;  %v4912_v2 = vld [vmem:[#allocation3 + $0x50] sm:$0xff] }
 0x44d   :  { %v6580_v54 = vadd.f32 %v6496_v15, %v6123_v56  ;;  %v18634_v15 = vld [vmem:[%s23323_s3 + $0x390] sm:$0xff]  ;;  %v5711_v20 = vadd.f32 %v21180_v38, %v5295_v59  ;;  %v18609_v38 = vld [vmem:[%s23323_s3 + $0x358] sm:$0xff]  ;;  %v5297_v28 = vadd.f32 %v21067_v47, %v4912_v2  ;;  %v18662_v47 = vld [vmem:[%s23323_s3 + $0x3e0] sm:$0xff] }
 0x44e   :  { %v21213_v25 = vpop.f32.mrf.mxu2  ;;  %v21217_v7 = vpop.f32.mrf.mxu1  ;;  %7812 = vmatpush.bf16.msra.mxu2 %v18634_v15  ;;  %8226 = vmatpush.bf16.msrb.mxu3 %v18662_v47  ;;  %v18614_v2 = vld [vmem:[#allocation2 + $0x1c] sm:$0xff] }
 0x44f   :  { %6616 = vst [vmem:[#allocation3 + $0x20] sm:$0xff] %v6580_v54  ;;  %v18588_v47 = vld [vmem:[#allocation2 + $0x18] sm:$0xf0] }
 0x450   :  { %7395 = vmatpush.bf16.msrb.mxu1 %v18609_v38 }
 0x452   :  { %7813 = vmatpush.bf16.msra.mxu2 %v18633_v48 }
 0x454   :  { %v6498_v16 = vpop.f32.mrf.mxu3  ;;  %v5252_v23 = vpop.f32.mrf.mxu0 }
 0x455   :  { %v6581_v41 = vadd.f32 %v6498_v16, %v6124_v37  ;;  %v21240_v35 = vadd.f32 %v5252_v23, %v20990_v6  ;;  %v6125_v6 = vadd.f32 %v21129_v52, %v5709_v57  ;;  %v21262_v52 = vld [vmem:[#allocation2 + $0x30] sm:$0xff]  ;;  %v18526_v16 = vld [vmem:[#allocation2 + $0x98] sm:$0xff] }
 0x456   :  { %v21237_v60 = vpop.f32.mrf.mxu2  ;;  %v21242_v26 = vpop.f32.mrf.mxu1  ;;  %v6836_v54 = vrot.slane %v21262_v52, 2  ;;  %v4911_v57 = vld [vmem:[#allocation3 + $0x48] sm:$0xff] }
 0x457   :  { %6617 = vst [vmem:[#allocation3 + $0x28] sm:$0xff] %v6581_v41  ;;  %6947 = vmatmul.bf16.gmra.mxu0 %v6835_v10  ;;  %v18499_v41 = vld [vmem:[#allocation2 + $0x88] sm:$0xff]  ;;  %v5296_v10 = vadd.f32 %v21058_v51, %v4911_v57  ;;  %v18551_v57 = vld [vmem:[#allocation2 + $0x90] sm:$0xff] }
 0x458   :  { %v6837_v23 = vsel %vm2423_vm1, %v6834_v19, %v6836_v54  ;;  %v6127_v19 = vadd.f32 %v21159_v5, %v5711_v20  ;;  %v18608_v5 = vld [vmem:[%s23323_s3 + $0x350] sm:$0xff]  ;;  %v18689_v51 = vld [vmem:[%s23323_s3 + $0x428] sm:$0xff] }
 0x459   :  { %5682 = vmatmul.bf16.gmra.mxu1 %v18498_v62  ;;  %6540 = vmatmul.bf16.gmra.mxu3 %v6398_v29  ;;  %v5712_v42 = vadd.f32 %v21190_v55, %v5296_v10  ;;  %v6838_v55 = vrot.slane %v18566_v22, 2  ;;  %v4914_v10 = vld [vmem:[#allocation3 + $0x60] sm:$0xff] }
 0x45a   :  { %8682 = vmatpush.bf16.msrb.mxu0 %v18689_v51  ;;  %7396 = vmatpush.bf16.msrb.mxu1 %v18608_v5 }
 0x45b   :  { %6103 = vmatmul.bf16.gmra.mxu2 %v18525_v39  ;;  %v18632_v39 = vld [vmem:[%s23323_s3 + $0x380] sm:$0xff] }
 0x45c   :  { %v6501_v18 = vpop.f32.mrf.mxu3  ;;  %v21257_v56 = vpop.f32.mrf.mxu0  ;;  %7814 = vmatpush.bf16.msra.mxu2 %v18632_v39 }
 0x45d   :  { %v6582_v0 = vadd.f32 %v6501_v18, %v6125_v6  ;;  %v18550_v18 = vld [vmem:[#allocation2 + $0x88] sm:$0xff] }
 0x45e   :  { %v21255_v30 = vpop.f32.mrf.mxu2  ;;  %v21259_v63 = vpop.f32.mrf.mxu1  ;;  %v6401_v15 = vrot.slane %v18550_v18, 1  ;;  %7397 = vmatpush.bf16.msrb.mxu1 %v18607_v44  ;;  %v18501_v18 = vld [vmem:[#allocation2 + $0x98] sm:$0xff] }
 0x45f   :  { %6618 = vst [vmem:[#allocation3 + $0x30] sm:$0xff] %v6582_v0  ;;  %v6128_v0 = vadd.f32 %v21174_v1, %v5712_v42  ;;  %v6839_v1 = vsel %vm2423_vm1, %v6836_v54, %v6838_v55  ;;  %v6403_v42 = vrot.slane %v18551_v57, 1 }
 0x460   :  { %v6402_v20 = vsel %vm1965_vm2, %v6399_v13, %v6401_v15 }
 0x464   :  { %v6503_v8 = vpop.f32.mrf.mxu3  ;;  %v5257_v37 = vpop.f32.mrf.mxu0 }
 0x465   :  { %v6583_v61 = vadd.f32 %v6503_v8, %v6126_v3  ;;  %v21279_v43 = vadd.f32 %v5257_v37, %v21013_v17  ;;  %v6400_v17 = vsel %vm1965_vm2, %v6397_v34, %v6399_v13  ;;  %v18500_v8 = vld [vmem:[#allocation2 + $0x90] sm:$0xff]  ;;  %v5713_v37 = vadd.f32 %v21203_v36, %v5297_v28 }
 0x466   :  { %v21276_v21 = vpop.f32.mrf.mxu2  ;;  %v21281_v24 = vpop.f32.mrf.mxu1 }
 0x467   :  { %6619 = vst [vmem:[#allocation3 + $0x38] sm:$0xff] %v6583_v61  ;;  %6952 = vmatmul.bf16.gmra.mxu0 %v6837_v23  ;;  %v18527_v61 = vld [vmem:[#allocation2 + $0xa0] sm:$0xff]  ;;  %v6129_v36 = vadd.f32 %v21186_v49, %v5713_v37 }
 0x469   :  { %5687 = vmatmul.bf16.gmra.mxu1 %v18499_v41  ;;  %6545 = vmatmul.bf16.gmra.mxu3 %v6400_v17  ;;  %v4913_v41 = vld [vmem:[#allocation3 + $0x58] sm:$0xff] }
 0x46a   :  { %v5298_v23 = vadd.f32 %v21078_v50, %v4913_v41  ;;  %v5299_v50 = vadd.f32 %v21090_v33, %v4914_v10  ;;  %v5717_v10 = vadd.f32 %v21281_v24, %v21120_v9  ;;  %v4917_v24 = vld [vmem:[#allocation3 + $0x78] sm:$0xff] }
 0x46b   :  { %6108 = vmatmul.bf16.gmra.mxu2 %v18526_v16  ;;  %v18606_v16 = vld [vmem:[%s23323_s3 + $0x340] sm:$0xff] }
 0x46c   :  { %v6506_v62 = vpop.f32.mrf.mxu3  ;;  %v21299_v34 = vpop.f32.mrf.mxu0  ;;  %7398 = vmatpush.bf16.msrb.mxu1 %v18606_v16  ;;  %v5714_v13 = vadd.f32 %v21217_v7, %v5298_v23  ;;  %v5715_v7 = vadd.f32 %v21242_v26, %v5299_v50  ;;  %v15970_v16 = vld [vmem:[#allocation2 + $0x18] sm:$0x8]  ;;  %v6133_v9 = vadd.f32 %v21255_v30, %v5717_v10  ;;  %v18660_v30 = vld [vmem:[%s23323_s3 + $0x3d0] sm:$0xff] }
 0x46d   :  { %v6584_v29 = vadd.f32 %v6506_v62, %v6127_v19  ;;  %v18567_v19 = vld [vmem:[#allocation2 + $0x40] sm:$0xff]  ;;  %v18616_v10 = vld [vmem:[#allocation2 + $0x2c] sm:$0xff] }
 0x46e   :  { %v21297_v53 = vpop.f32.mrf.mxu2  ;;  %v21301_v6 = vpop.f32.mrf.mxu1  ;;  %v6130_v62 = vadd.f32 %v21198_v14, %v5714_v13  ;;  %v6840_v49 = vrot.slane %v18567_v19, 2  ;;  %v6404_v14 = vsel %vm1965_vm2, %v6401_v15, %v6403_v42  ;;  %v6131_v33 = vadd.f32 %v21213_v25, %v5715_v7 }
 0x46f   :  { %6620 = vst [vmem:[#allocation3 + $0x40] sm:$0xff] %v6584_v29 }
 0x474   :  { %v6508_v52 = vpop.f32.mrf.mxu3  ;;  %v21317_v4 = vpop.f32.mrf.mxu0 }
 0x475   :  { %v6585_v48 = vadd.f32 %v6508_v52, %v6128_v0  ;;  %v6841_v0 = vsel %vm2423_vm1, %v6838_v55, %v6840_v49  ;;  %v4915_v52 = vld [vmem:[#allocation3 + $0x68] sm:$0xff]  ;;  %v18552_v55 = vld [vmem:[#allocation2 + $0x98] sm:$0xff] }
 0x476   :  { %v21315_v3 = vpop.f32.mrf.mxu2  ;;  %v21319_v59 = vpop.f32.mrf.mxu1  ;;  %v6405_v25 = vrot.slane %v18552_v55, 1 }
 0x477   :  { %6621 = vst [vmem:[#allocation3 + $0x48] sm:$0xff] %v6585_v48  ;;  %6957 = vmatmul.bf16.gmra.mxu0 %v6839_v1  ;;  %v5300_v48 = vadd.f32 %v21110_v46, %v4915_v52  ;;  %v18568_v1 = vld [vmem:[#allocation2 + $0x48] sm:$0xff] }
 0x478   :  { %v6842_v46 = vrot.slane %v18568_v1, 2 }
 0x479   :  { %5692 = vmatmul.bf16.gmra.mxu1 %v18500_v8  ;;  %6550 = vmatmul.bf16.gmra.mxu3 %v6402_v20  ;;  %v5716_v15 = vadd.f32 %v21259_v63, %v5300_v48  ;;  %v18589_v20 = vld [vmem:[#allocation2 + $0x20] sm:$0xff]  ;;  %v6406_v63 = vsel %vm1965_vm2, %v6403_v42, %v6405_v25  ;;  %v18661_v42 = vld [vmem:[%s23323_s3 + $0x3d8] sm:$0xff]  ;;  %v18590_v48 = vld [vmem:[#allocation2 + $0x28] sm:$0xff] }
 0x47a   :  { %v7289_v23 = vrot.slane %v18589_v20, 3  ;;  %8227 = vmatpush.bf16.msrb.mxu3 %v18661_v42 }
 0x47b   :  { %6113 = vmatmul.bf16.gmra.mxu2 %v18527_v61  ;;  %v6132_v41 = vadd.f32 %v21237_v60, %v5716_v15  ;;  %v18688_v60 = vld [vmem:[%s23323_s3 + $0x420] sm:$0xff] }
 0x47c   :  { %v6511_v54 = vpop.f32.mrf.mxu3  ;;  %v21334_v17 = vpop.f32.mrf.mxu0  ;;  %8683 = vmatpush.bf16.msrb.mxu0 %v18688_v60 }
 0x47d   :  { %v6586_v39 = vadd.f32 %v6511_v54, %v6129_v36  ;;  %v15971_v36 = vor.u32 %v18588_v47, %v15970_v16  ;;  %v7291_v16 = vrot.slane %v18590_v48, 3 }
 0x47e   :  { %v21332_v58 = vpop.f32.mrf.mxu2  ;;  %v21336_v38 = vpop.f32.mrf.mxu1  ;;  %8228 = vmatpush.bf16.msrb.mxu3 %v18660_v30 }
 0x47f   :  { %6622 = vst [vmem:[#allocation3 + $0x50] sm:$0xff] %v6586_v39 }
 0x484   :  { %v6513_v29 = vpop.f32.mrf.mxu3  ;;  %v21343_v51 = vpop.f32.mrf.mxu0 }
 0x485   :  { %v6587_v5 = vadd.f32 %v6513_v29, %v6130_v62  ;;  %v7288_v62 = vrot.slane %v15971_v36, 3  ;;  %v6843_v29 = vsel %vm2423_vm1, %v6840_v49, %v6842_v46 }
 0x486   :  { %v21341_v22 = vpop.f32.mrf.mxu2  ;;  %v21345_v44 = vpop.f32.mrf.mxu1 }
 0x487   :  { %6623 = vst [vmem:[#allocation3 + $0x58] sm:$0xff] %v6587_v5  ;;  %6962 = vmatmul.bf16.gmra.mxu0 %v6841_v0  ;;  %v7290_v50 = vsel %vm2881_vm3, %v7288_v62, %v7289_v23  ;;  %v18615_v5 = vld [vmem:[#allocation2 + $0x24] sm:$0xff]  ;;  %v7292_v62 = vsel %vm2881_vm3, %v7289_v23, %v7291_v16 }
 0x489   :  { %5697 = vmatmul.bf16.gmra.mxu1 %v18501_v18  ;;  %6555 = vmatmul.bf16.gmra.mxu3 %v6404_v14  ;;  %v5302_v18 = vadd.f32 %v21131_v45, %v4917_v24  ;;  %v18659_v45 = vld [vmem:[%s23323_s3 + $0x3c8] sm:$0xff]  ;;  %v18570_v24 = vld [vmem:[#allocation2 + $0x58] sm:$0xff] }
 0x48a   :  { %8229 = vmatpush.bf16.msrb.mxu3 %v18659_v45 }
 0x48b   :  { %7815 = vmatmul.bf16.vlgmr.msra.gmra.mxu2 %v18614_v2  ;;  %v5718_v52 = vadd.f32 %v21301_v6, %v5302_v18 }
 0x48c   :  { %v6516_v28 = vpop.f32.mrf.mxu3  ;;  %v21354_v26 = vpop.f32.mrf.mxu0 }
 0x48d   :  { %v6588_v61 = vadd.f32 %v6516_v28, %v6131_v33  ;;  %v18553_v33 = vld [vmem:[#allocation2 + $0xa0] sm:$0xff]  ;;  %v18569_v28 = vld [vmem:[#allocation2 + $0x50] sm:$0xff]  ;;  %v6134_v55 = vadd.f32 %v21276_v21, %v5718_v52  ;;  %v6263_v21 = vld [vmem:[#allocation2 + $0xa8] sm:$0x1] }
 0x48e   :  { %v21352_v8 = vpop.f32.mrf.mxu2  ;;  %v21356_v37 = vpop.f32.mrf.mxu1  ;;  %v6844_v15 = vrot.slane %v18569_v28, 2 }
 0x48f   :  { %6624 = vst [vmem:[#allocation3 + $0x60] sm:$0xff] %v6588_v61  ;;  %v6407_v61 = vrot.slane %v18553_v33, 1 }
 0x494   :  { %v6518_v54 = vpop.f32.mrf.mxu3  ;;  %v21362_v19 = vpop.f32.mrf.mxu0 }
 0x495   :  { %v6589_v13 = vadd.f32 %v6518_v54, %v6132_v41  ;;  %v6408_v41 = vsel %vm1965_vm2, %v6405_v25, %v6407_v61  ;;  %v5719_v54 = vadd.f32 %v21319_v59, %v21144_v27  ;;  %v4919_v27 = vld [vmem:[#allocation3 + $0x88] sm:$0xff] }
 0x496   :  { %v21360_v39 = vpop.f32.mrf.mxu2  ;;  %v21364_v57 = vpop.f32.mrf.mxu1 }
 0x497   :  { %6625 = vst [vmem:[#allocation3 + $0x68] sm:$0xff] %v6589_v13  ;;  %6967 = vmatmul.bf16.gmra.mxu0 %v6843_v29  ;;  %v6845_v13 = vsel %vm2423_vm1, %v6842_v46, %v6844_v15  ;;  %v6354_v29 = vunpack.c.l.b16 %v6263_v21  ;;  %v6135_v25 = vadd.f32 %v21297_v53, %v5719_v54  ;;  %v5304_v46 = vadd.f32 %v21161_v12, %v4919_v27 }
 0x499   :  { %6560 = vmatmul.bf16.gmra.mxu3 %v6406_v63  ;;  %7399 = vmatmul.bf16.vlgmr.msrb.gmra.mxu1 %v7290_v50  ;;  %v18658_v63 = vld [vmem:[%s23323_s3 + $0x3c0] sm:$0xff]  ;;  %v6373_v23 = vpack.c.b16 %v6354_v29, %v6354_v29 }
 0x49a   :  { %8230 = vmatpush.bf16.msrb.mxu3 %v18658_v63  ;;  %v18571_v63 = vld [vmem:[#allocation2 + $0x60] sm:$0xff] }
 0x49b   :  { %7820 = vmatmul.bf16.gmra.mxu2 %v18615_v5  ;;  %v6409_v18 = vrot.slane %v6373_v23, 1  ;;  %v18640_v23 = vld [vmem:[#allocation2 + $0x24] sm:$0xff] }
 0x49c   :  { %v6521_v49 = vpop.f32.mrf.mxu3  ;;  %v21381_v14 = vpop.f32.mrf.mxu0 }
 0x49d   :  { %v6590_v0 = vadd.f32 %v6521_v49, %v6133_v9  ;;  %v5720_v9 = vadd.f32 %v21336_v38, %v5304_v46  ;;  %v18591_v49 = vld [vmem:[#allocation2 + $0x30] sm:$0xff]  ;;  %v6410_v45 = vsel %vm1965_vm2, %v6407_v61, %v6409_v18  ;;  %v5721_v38 = vadd.f32 %v21345_v44, %v21178_v31  ;;  %v4921_v61 = vld [vmem:[#allocation3 + $0x98] sm:$0xff] }
 0x49e   :  { %v21379_v7 = vpop.f32.mrf.mxu2  ;;  %v21383_v2 = vpop.f32.mrf.mxu1  ;;  %v7293_v52 = vrot.slane %v18591_v49, 3  ;;  %v5306_v31 = vadd.f32 %v21188_v11, %v4921_v61  ;;  %v4923_v49 = vld [vmem:[#allocation3 + $0xa8] sm:$0xff] }
 0x49f   :  { %6626 = vst [vmem:[#allocation3 + $0x70] sm:$0xff] %v6590_v0  ;;  %v6136_v53 = vadd.f32 %v21315_v3, %v5720_v9  ;;  %v6846_v0 = vrot.slane %v18570_v24, 2  ;;  %v18618_v9 = vld [vmem:[#allocation2 + $0x3c] sm:$0xff] }
 0x4a0   :  { %v7294_v3 = vsel %vm2881_vm3, %v7291_v16, %v7293_v52  ;;  %v5722_v21 = vadd.f32 %v21356_v37, %v5306_v31  ;;  %v18619_v31 = vld [vmem:[#allocation2 + $0x44] sm:$0xff] }
 0x4a4   :  { %v6523_v1 = vpop.f32.mrf.mxu3  ;;  %v21395_v20 = vpop.f32.mrf.mxu0 }
 0x4a5   :  { %v6591_v6 = vadd.f32 %v6523_v1, %v6134_v55  ;;  %v6847_v55 = vsel %vm2423_vm1, %v6844_v15, %v6846_v0  ;;  %v18617_v1 = vld [vmem:[#allocation2 + $0x34] sm:$0xff] }
 0x4a6   :  { %v21393_v47 = vpop.f32.mrf.mxu2  ;;  %v21397_v36 = vpop.f32.mrf.mxu1 }
 0x4a7   :  { %6627 = vst [vmem:[#allocation3 + $0x78] sm:$0xff] %v6591_v6  ;;  %6972 = vmatmul.bf16.gmra.mxu0 %v6845_v13  ;;  %v18687_v6 = vld [vmem:[%s23323_s3 + $0x418] sm:$0xff]  ;;  %v5725_v61 = vadd.f32 %v21397_v36, %v21240_v35 }
 0x4a8   :  { %8684 = vmatpush.bf16.msrb.mxu0 %v18687_v6 }
 0x4a9   :  { %6565 = vmatmul.bf16.gmra.mxu3 %v6408_v41  ;;  %7404 = vmatmul.bf16.gmra.mxu1 %v7292_v62  ;;  %v6137_v41 = vadd.f32 %v21332_v58, %v5721_v38  ;;  %v18592_v62 = vld [vmem:[#allocation2 + $0x38] sm:$0xff]  ;;  %v6848_v58 = vrot.slane %v18571_v63, 2 }
 0x4ab   :  { %7825 = vmatmul.bf16.gmra.mxu2 %v18616_v10  ;;  %v6138_v10 = vadd.f32 %v21341_v22, %v5722_v21  ;;  %v6849_v37 = vsel %vm2423_vm1, %v6846_v0, %v6848_v58  ;;  %v4925_v21 = vld [vmem:[#allocation3 + $0xb8] sm:$0xff] }
 0x4ac   :  { %v6526_v59 = vpop.f32.mrf.mxu3  ;;  %v21411_v5 = vpop.f32.mrf.mxu0 }
 0x4ad   :  { %v6592_v50 = vadd.f32 %v6526_v59, %v6135_v25  ;;  %v7295_v25 = vrot.slane %v18592_v62, 3  ;;  %v5310_v62 = vadd.f32 %v21257_v56, %v4925_v21 }
 0x4ae   :  { %v21409_v60 = vpop.f32.mrf.mxu2  ;;  %v21413_v42 = vpop.f32.mrf.mxu1 }
 0x4af   :  { %6628 = vst [vmem:[#allocation3 + $0x80] sm:$0xff] %v6592_v50  ;;  %v5723_v50 = vadd.f32 %v21364_v57, %v21201_v32  ;;  %v7296_v22 = vsel %vm2881_vm3, %v7293_v52, %v7295_v25  ;;  %v18572_v52 = vld [vmem:[#allocation2 + $0x68] sm:$0xff] }
 0x4b1   :  { %v6139_v24 = vadd.f32 %v21352_v8, %v5723_v50 }
 0x4b4   :  { %v6528_v33 = vpop.f32.mrf.mxu3  ;;  %v21419_v30 = vpop.f32.mrf.mxu0 }
 0x4b5   :  { %v6593_v28 = vadd.f32 %v6528_v33, %v6136_v53  ;;  %v5308_v53 = vadd.f32 %v21215_v40, %v4923_v49 }
 0x4b6   :  { %v21417_v12 = vpop.f32.mrf.mxu2  ;;  %v21421_v48 = vpop.f32.mrf.mxu1 }
 0x4b7   :  { %6629 = vst [vmem:[#allocation3 + $0x88] sm:$0xff] %v6593_v28  ;;  %6977 = vmatmul.bf16.gmra.mxu0 %v6847_v55  ;;  %v5724_v28 = vadd.f32 %v21383_v2, %v5308_v53  ;;  %v6850_v55 = vrot.slane %v18572_v52, 2  ;;  %v18642_v53 = vld [vmem:[#allocation2 + $0x34] sm:$0xff]  ;;  %v4927_v52 = vld [vmem:[#allocation3 + $0xc8] sm:$0xff] }
 0x4b9   :  { %6570 = vmatmul.bf16.gmra.mxu3 %v6410_v45  ;;  %7409 = vmatmul.bf16.gmra.mxu1 %v7294_v3  ;;  %v18593_v45 = vld [vmem:[#allocation2 + $0x40] sm:$0xff]  ;;  %v6140_v38 = vadd.f32 %v21360_v39, %v5724_v28  ;;  %v6851_v2 = vsel %vm2423_vm1, %v6848_v58, %v6850_v55 }
 0x4ba   :  { %v7297_v3 = vrot.slane %v18593_v45, 3 }
 0x4bb   :  { %7830 = vmatmul.bf16.gmra.mxu2 %v18617_v1 }
 0x4bc   :  { %v6531_v54 = vpop.f32.mrf.mxu3  ;;  %v21435_v13 = vpop.f32.mrf.mxu0  ;;  %v7298_v39 = vsel %vm2881_vm3, %v7295_v25, %v7297_v3  ;;  %v18573_v25 = vld [vmem:[#allocation2 + $0x70] sm:$0xff] }
 0x4bd   :  { %v6594_v15 = vadd.f32 %v6531_v54, %v6137_v41  ;;  %v18641_v54 = vld [vmem:[#allocation2 + $0x2c] sm:$0xff]  ;;  %v6852_v56 = vrot.slane %v18573_v25, 2  ;;  %v18621_v25 = vld [vmem:[#allocation2 + $0x54] sm:$0xff] }
 0x4be   :  { %v21433_v44 = vpop.f32.mrf.mxu2  ;;  %v21437_v16 = vpop.f32.mrf.mxu1 }
 0x4bf   :  { %6630 = vst [vmem:[#allocation3 + $0x90] sm:$0xff] %v6594_v15  ;;  %v6141_v15 = vadd.f32 %v21379_v7, %v5725_v61  ;;  %v18594_v7 = vld [vmem:[#allocation2 + $0x48] sm:$0xff]  ;;  %v18595_v61 = vld [vmem:[#allocation2 + $0x50] sm:$0xff] }
 0x4c4   :  { %v6533_v29 = vpop.f32.mrf.mxu3  ;;  %v21443_v59 = vpop.f32.mrf.mxu0 }
 0x4c5   :  { %v6595_v11 = vadd.f32 %v6533_v29, %v6138_v10  ;;  %v5726_v29 = vadd.f32 %v21413_v42, %v5310_v62  ;;  %v5727_v42 = vadd.f32 %v21421_v48, %v21279_v43 }
 0x4c6   :  { %v21441_v27 = vpop.f32.mrf.mxu2  ;;  %v21445_v46 = vpop.f32.mrf.mxu1 }
 0x4c7   :  { %6631 = vst [vmem:[#allocation3 + $0x98] sm:$0xff] %v6595_v11  ;;  %6982 = vmatmul.bf16.gmra.mxu0 %v6849_v37  ;;  %v18686_v11 = vld [vmem:[%s23323_s3 + $0x410] sm:$0xff]  ;;  %v6142_v50 = vadd.f32 %v21393_v47, %v5726_v29  ;;  %v6143_v28 = vadd.f32 %v21409_v60, %v5727_v42  ;;  %v18643_v29 = vld [vmem:[#allocation2 + $0x3c] sm:$0xff] }
 0x4c8   :  { %8685 = vmatpush.bf16.msrb.mxu0 %v18686_v11  ;;  %v4928_v60 = vld [vmem:[#allocation3 + $0xd0] sm:$0xff]  ;;  %v4929_v11 = vld [vmem:[#allocation3 + $0xd8] sm:$0xff] }
 0x4c9   :  { %7414 = vmatmul.bf16.gmra.mxu1 %v7296_v22  ;;  %8231 = vmatmul.bf16.vlgmr.msrb.gmra.mxu3 %v18640_v23  ;;  %v7299_v23 = vrot.slane %v18594_v7, 3 }
 0x4cb   :  { %7835 = vmatmul.bf16.gmra.mxu2 %v18618_v9  ;;  %v7300_v47 = vsel %vm2881_vm3, %v7297_v3, %v7299_v23  ;;  %v18574_v3 = vld [vmem:[#allocation2 + $0x78] sm:$0xff] }
 0x4cc   :  { %v6536_v18 = vpop.f32.mrf.mxu3  ;;  %v21455_v57 = vpop.f32.mrf.mxu0 }
 0x4cd   :  { %v6596_v32 = vadd.f32 %v6536_v18, %v6139_v24  ;;  %v6853_v18 = vsel %vm2423_vm1, %v6850_v55, %v6852_v56 }
 0x4ce   :  { %v21453_v33 = vpop.f32.mrf.mxu2  ;;  %v21457_v0 = vpop.f32.mrf.mxu1 }
 0x4cf   :  { %6632 = vst [vmem:[#allocation3 + $0xa0] sm:$0xff] %v6596_v32  ;;  %v18620_v32 = vld [vmem:[#allocation2 + $0x4c] sm:$0xff] }
 0x4d4   :  { %v6538_v8 = vpop.f32.mrf.mxu3  ;;  %v21463_v6 = vpop.f32.mrf.mxu0 }
 0x4d5   :  { %v6597_v40 = vadd.f32 %v6538_v8, %v6140_v38  ;;  %v5312_v38 = vadd.f32 %v21299_v34, %v4927_v52  ;;  %v5313_v34 = vadd.f32 %v21317_v4, %v4928_v60  ;;  %v4931_v60 = vld [vmem:[#allocation3 + $0xe8] sm:$0xff] }
 0x4d6   :  { %v21461_v1 = vpop.f32.mrf.mxu2  ;;  %v21465_v41 = vpop.f32.mrf.mxu1 }
 0x4d7   :  { %6633 = vst [vmem:[#allocation3 + $0xa8] sm:$0xff] %v6597_v40  ;;  %6987 = vmatmul.bf16.gmra.mxu0 %v6851_v2  ;;  %v5728_v40 = vadd.f32 %v21437_v16, %v5312_v38  ;;  %v5729_v16 = vadd.f32 %v21445_v46, %v5313_v34  ;;  %v5316_v34 = vadd.f32 %v21354_v26, %v4931_v60 }
 0x4d9   :  { %7419 = vmatmul.bf16.gmra.mxu1 %v7298_v39  ;;  %8236 = vmatmul.bf16.gmra.mxu3 %v18641_v54  ;;  %v6144_v2 = vadd.f32 %v21417_v12, %v5728_v40  ;;  %v6854_v54 = vrot.slane %v18574_v3, 2  ;;  %v6145_v4 = vadd.f32 %v21433_v44, %v5729_v16  ;;  %v18596_v44 = vld [vmem:[#allocation2 + $0x58] sm:$0xff] }
 0x4db   :  { %7840 = vmatmul.bf16.gmra.mxu2 %v18619_v31  ;;  %v7301_v31 = vrot.slane %v18595_v61, 3  ;;  %v18644_v61 = vld [vmem:[#allocation2 + $0x44] sm:$0xff] }
 0x4dc   :  { %v6541_v63 = vpop.f32.mrf.mxu3  ;;  %v21475_v36 = vpop.f32.mrf.mxu0 }
 0x4dd   :  { %v6598_v35 = vadd.f32 %v6541_v63, %v6141_v15  ;;  %v7302_v12 = vsel %vm2881_vm3, %v7299_v23, %v7301_v31  ;;  %v18575_v23 = vld [vmem:[#allocation2 + $0x80] sm:$0xff] }
 0x4de   :  { %v21473_v10 = vpop.f32.mrf.mxu2  ;;  %v21477_v58 = vpop.f32.mrf.mxu1 }
 0x4df   :  { %6634 = vst [vmem:[#allocation3 + $0xb0] sm:$0xff] %v6598_v35  ;;  %v6855_v35 = vsel %vm2423_vm1, %v6852_v56, %v6854_v54 }
 0x4e4   :  { %v6543_v37 = vpop.f32.mrf.mxu3  ;;  %v21486_v24 = vpop.f32.mrf.mxu0 }
 0x4e5   :  { %v6599_v9 = vadd.f32 %v6543_v37, %v6142_v50  ;;  %v5314_v50 = vadd.f32 %v21334_v17, %v4929_v11  ;;  %v6856_v17 = vrot.slane %v18575_v23, 2 }
 0x4e6   :  { %v21484_v22 = vpop.f32.mrf.mxu2  ;;  %v21488_v49 = vpop.f32.mrf.mxu1 }
 0x4e7   :  { %6635 = vst [vmem:[#allocation3 + $0xb8] sm:$0xff] %v6599_v9  ;;  %6992 = vmatmul.bf16.gmra.mxu0 %v6853_v18  ;;  %v5730_v42 = vadd.f32 %v21457_v0, %v5314_v50  ;;  %v18685_v18 = vld [vmem:[%s23323_s3 + $0x408] sm:$0xff]  ;;  %v6857_v3 = vsel %vm2423_vm1, %v6854_v54, %v6856_v17 }
 0x4e8   :  { %8686 = vmatpush.bf16.msrb.mxu0 %v18685_v18  ;;  %v18645_v18 = vld [vmem:[#allocation2 + $0x4c] sm:$0xff] }
 0x4e9   :  { %7424 = vmatmul.bf16.gmra.mxu1 %v7300_v47  ;;  %8241 = vmatmul.bf16.gmra.mxu3 %v18642_v53  ;;  %v6146_v53 = vadd.f32 %v21441_v27, %v5730_v42  ;;  %v4930_v47 = vld [vmem:[#allocation3 + $0xe0] sm:$0xff] }
 0x4ea   :  { %v5315_v52 = vadd.f32 %v21343_v51, %v4930_v47 }
 0x4eb   :  { %7845 = vmatmul.bf16.gmra.mxu2 %v18620_v32 }
 0x4ec   :  { %v6546_v45 = vpop.f32.mrf.mxu3  ;;  %v21498_v48 = vpop.f32.mrf.mxu0  ;;  %v5731_v40 = vadd.f32 %v21465_v41, %v5315_v52 }
 0x4ed   :  { %v6600_v43 = vadd.f32 %v6546_v45, %v6143_v28  ;;  %v7303_v28 = vrot.slane %v18596_v44, 3  ;;  %v18623_v44 = vld [vmem:[#allocation2 + $0x64] sm:$0xff] }
 0x4ee   :  { %v21496_v8 = vpop.f32.mrf.mxu2  ;;  %v21500_v55 = vpop.f32.mrf.mxu1  ;;  %v6147_v51 = vadd.f32 %v21453_v33, %v5731_v40  ;;  %v4932_v33 = vld [vmem:[#allocation3 + $0xf0] sm:$0xff] }
 0x4ef   :  { %6636 = vst [vmem:[#allocation3 + $0xc0] sm:$0xff] %v6600_v43  ;;  %v7304_v27 = vsel %vm2881_vm3, %v7301_v31, %v7303_v28  ;;  %v18576_v31 = vld [vmem:[#allocation2 + $0x88] sm:$0xff]  ;;  %v5317_v26 = vadd.f32 %v21362_v19, %v4932_v33 }
 0x4f4   :  { %v6548_v39 = vpop.f32.mrf.mxu3  ;;  %v21507_v63 = vpop.f32.mrf.mxu0 }
 0x4f5   :  { %v6601_v21 = vadd.f32 %v6548_v39, %v6144_v2  ;;  %v18622_v2 = vld [vmem:[#allocation2 + $0x5c] sm:$0xff] }
 0x4f6   :  { %v21505_v15 = vpop.f32.mrf.mxu2  ;;  %v21509_v62 = vpop.f32.mrf.mxu1 }
 0x4f7   :  { %6637 = vst [vmem:[#allocation3 + $0xc8] sm:$0xff] %v6601_v21  ;;  %6997 = vmatmul.bf16.gmra.mxu0 %v6855_v35  ;;  %v5732_v35 = vadd.f32 %v21477_v58, %v5316_v34  ;;  %v5733_v58 = vadd.f32 %v21488_v49, %v5317_v26 }
 0x4f9   :  { %7429 = vmatmul.bf16.gmra.mxu1 %v7302_v12  ;;  %8246 = vmatmul.bf16.gmra.mxu3 %v18643_v29  ;;  %v18597_v29 = vld [vmem:[#allocation2 + $0x60] sm:$0xff]  ;;  %v6148_v12 = vadd.f32 %v21461_v1, %v5732_v35  ;;  %v6149_v19 = vadd.f32 %v21473_v10, %v5733_v58  ;;  %v18598_v10 = vld [vmem:[#allocation2 + $0x68] sm:$0xff] }
 0x4fa   :  { %v7305_v11 = vrot.slane %v18597_v29, 3  ;;  %v18646_v29 = vld [vmem:[#allocation2 + $0x54] sm:$0xff] }
 0x4fb   :  { %7850 = vmatmul.bf16.gmra.mxu2 %v18621_v25  ;;  %v6858_v25 = vrot.slane %v18576_v31, 2 }
 0x4fc   :  { %v6551_v7 = vpop.f32.mrf.mxu3  ;;  %v21518_v9 = vpop.f32.mrf.mxu0  ;;  %v7306_v1 = vsel %vm2881_vm3, %v7303_v28, %v7305_v11  ;;  %v18577_v28 = vld [vmem:[#allocation2 + $0x90] sm:$0xff] }
 0x4fd   :  { %v6602_v46 = vadd.f32 %v6551_v7, %v6145_v4  ;;  %v6859_v23 = vsel %vm2423_vm1, %v6856_v17, %v6858_v25 }
 0x4fe   :  { %v21516_v37 = vpop.f32.mrf.mxu2  ;;  %v21520_v56 = vpop.f32.mrf.mxu1 }
 0x4ff   :  { %6638 = vst [vmem:[#allocation3 + $0xd0] sm:$0xff] %v6602_v46 }
 0x504   :  { %v6553_v32 = vpop.f32.mrf.mxu3  ;;  %v21530_v0 = vpop.f32.mrf.mxu0 }
 0x505   :  { %v6603_v38 = vadd.f32 %v6553_v32, %v6146_v53  ;;  %v4933_v53 = vld [vmem:[#allocation3 + $0xf8] sm:$0xff] }
 0x506   :  { %v21528_v45 = vpop.f32.mrf.mxu2  ;;  %v21532_v43 = vpop.f32.mrf.mxu1  ;;  %v5318_v32 = vadd.f32 %v21381_v14, %v4933_v53  ;;  %v6860_v14 = vrot.slane %v18577_v28, 2 }
 0x507   :  { %6639 = vst [vmem:[#allocation3 + $0xd8] sm:$0xff] %v6603_v38  ;;  %7002 = vmatmul.bf16.gmra.mxu0 %v6857_v3  ;;  %v18717_v3 = vld [vmem:[%s23323_s3 + $0x478] sm:$0xff] }
 0x508   :  { %v5734_v40 = vadd.f32 %v21500_v55, %v5318_v32  ;;  %9137 = vmatpush.bf16.msra.mxu1 %v18717_v3  ;;  %v6861_v31 = vsel %vm2423_vm1, %v6858_v25, %v6860_v14  ;;  %v18769_v25 = vld [vmem:[%s23323_s3 + $0x4f8] sm:$0xff] }
 0x509   :  { %7434 = vmatmul.bf16.gmra.mxu1 %v7304_v27  ;;  %8251 = vmatmul.bf16.gmra.mxu3 %v18644_v61  ;;  %v4934_v27 = vld [vmem:[#allocation3 + $0x100] sm:$0xff] }
 0x50a   :  { %v6150_v61 = vadd.f32 %v21484_v22, %v5734_v40  ;;  %v5319_v60 = vadd.f32 %v21395_v20, %v4934_v27  ;;  %v18684_v22 = vld [vmem:[%s23323_s3 + $0x400] sm:$0xff]  ;;  %10010 = vmatpush.bf16.msra.mxu3 %v18769_v25 }
 0x50b   :  { %7855 = vmatmul.bf16.gmra.mxu2 %v18622_v2  ;;  %8687 = vmatpush.bf16.msrb.mxu0 %v18684_v22  ;;  %v18647_v27 = vld [vmem:[#allocation2 + $0x5c] sm:$0xff] }
 0x50c   :  { %v6556_v39 = vpop.f32.mrf.mxu3  ;;  %v21541_v41 = vpop.f32.mrf.mxu0  ;;  %v5735_v35 = vadd.f32 %v21509_v62, %v5319_v60  ;;  %v18743_v62 = vld [vmem:[%s23323_s3 + $0x4b8] sm:$0xff] }
 0x50d   :  { %v6604_v21 = vadd.f32 %v6556_v39, %v6147_v51  ;;  %v7307_v51 = vrot.slane %v18598_v10, 3  ;;  %9594 = vmatpush.bf16.msrb.mxu2 %v18743_v62  ;;  %v4937_v60 = vld [vmem:[#allocation3 + $0x118] sm:$0xff] }
 0x50e   :  { %v21539_v16 = vpop.f32.mrf.mxu2  ;;  %v21543_v54 = vpop.f32.mrf.mxu1  ;;  %v6151_v33 = vadd.f32 %v21496_v8, %v5735_v35  ;;  %v5322_v35 = vadd.f32 %v21435_v13, %v4937_v60 }
 0x50f   :  { %6640 = vst [vmem:[#allocation3 + $0xe0] sm:$0xff] %v6604_v21  ;;  %v7308_v20 = vsel %vm2881_vm3, %v7305_v11, %v7307_v51 }
 0x514   :  { %v6558_v4 = vpop.f32.mrf.mxu3  ;;  %v21550_v46 = vpop.f32.mrf.mxu0 }
 0x515   :  { %v6605_v7 = vadd.f32 %v6558_v4, %v6148_v12  ;;  %v18624_v12 = vld [vmem:[#allocation2 + $0x6c] sm:$0xff] }
 0x516   :  { %v21548_v50 = vpop.f32.mrf.mxu2  ;;  %v21552_v42 = vpop.f32.mrf.mxu1  ;;  %v4935_v4 = vld [vmem:[#allocation3 + $0x108] sm:$0xff] }
 0x517   :  { %6641 = vst [vmem:[#allocation3 + $0xe8] sm:$0xff] %v6605_v7  ;;  %7007 = vmatmul.bf16.gmra.mxu0 %v6859_v23  ;;  %v5320_v11 = vadd.f32 %v21411_v5, %v4935_v4 }
 0x519   :  { %7439 = vmatmul.bf16.gmra.mxu1 %v7306_v1  ;;  %8256 = vmatmul.bf16.gmra.mxu3 %v18645_v18  ;;  %v18578_v18 = vld [vmem:[#allocation2 + $0x98] sm:$0xff] }
 0x51a   :  { %v6862_v53 = vrot.slane %v18578_v18, 2 }
 0x51b   :  { %7860 = vmatmul.bf16.gmra.mxu2 %v18623_v44  ;;  %v5736_v44 = vadd.f32 %v21520_v56, %v5320_v11 }
 0x51c   :  { %v6561_v47 = vpop.f32.mrf.mxu3  ;;  %v21561_v49 = vpop.f32.mrf.mxu0  ;;  %v6863_v10 = vsel %vm2423_vm1, %v6860_v14, %v6862_v53 }
 0x51d   :  { %v6606_v52 = vadd.f32 %v6561_v47, %v6149_v19  ;;  %v18599_v19 = vld [vmem:[#allocation2 + $0x70] sm:$0xff]  ;;  %v6152_v8 = vadd.f32 %v21505_v15, %v5736_v44 }
 0x51e   :  { %v21559_v38 = vpop.f32.mrf.mxu2  ;;  %v21563_v17 = vpop.f32.mrf.mxu1  ;;  %v4936_v47 = vld [vmem:[#allocation3 + $0x110] sm:$0xff] }
 0x51f   :  { %6642 = vst [vmem:[#allocation3 + $0xf0] sm:$0xff] %v6606_v52  ;;  %v7309_v52 = vrot.slane %v18599_v19, 3  ;;  %v5321_v5 = vadd.f32 %v21419_v30, %v4936_v47  ;;  %v18648_v19 = vld [vmem:[#allocation2 + $0x64] sm:$0xff] }
 0x521   :  { %v5737_v56 = vadd.f32 %v21532_v43, %v5321_v5  ;;  %v7310_v15 = vsel %vm2881_vm3, %v7307_v51, %v7309_v52  ;;  %v18579_v43 = vld [vmem:[#allocation2 + $0xa0] sm:$0xff]  ;;  %v5738_v51 = vadd.f32 %v21543_v54, %v5322_v35  ;;  %v6720_v54 = vld [vmem:[#allocation2 + $0xa8] sm:$0x3]  ;;  %v6650_v35 = vld [vmem:[#allocation3 + $0x10] sm:$0xff] }
 0x522   :  { %v6811_v47 = vunpack.c.l.b16 %v6720_v54  ;;  %v6651_v54 = vld [vmem:[#allocation3 + $0x18] sm:$0xff] }
 0x523   :  { %v6153_v30 = vadd.f32 %v21516_v37, %v5737_v56  ;;  %v6154_v62 = vadd.f32 %v21528_v45, %v5738_v51  ;;  %v6648_v37 = vld [vmem:[#allocation3] sm:$0xff]  ;;  %v18716_v45 = vld [vmem:[%s23323_s3 + $0x470] sm:$0xff] }
 0x524   :  { %v6563_v2 = vpop.f32.mrf.mxu3  ;;  %v21573_v55 = vpop.f32.mrf.mxu0  ;;  %v7033_v13 = vadd.f32 %v21443_v59, %v6648_v37  ;;  %9138 = vmatpush.bf16.msra.mxu1 %v18716_v45 }
 0x525   :  { %v6607_v39 = vadd.f32 %v6563_v2, %v6150_v61  ;;  %v18625_v2 = vld [vmem:[#allocation2 + $0x74] sm:$0xff] }
 0x526   :  { %v21571_v34 = vpop.f32.mrf.mxu2  ;;  %v21575_v21 = vpop.f32.mrf.mxu1  ;;  %v7490_v44 = vadd.f32 %v21552_v42, %v7033_v13 }
 0x527   :  { %6643 = vst [vmem:[#allocation3 + $0xf8] sm:$0xff] %v6607_v39  ;;  %7012 = vmatmul.bf16.gmra.mxu0 %v6861_v31 }
 0x528   :  { %v7906_v42 = vadd.f32 %v21539_v16, %v7490_v44  ;;  %v18742_v16 = vld [vmem:[%s23323_s3 + $0x4b0] sm:$0xff] }
 0x529   :  { %7444 = vmatmul.bf16.gmra.mxu1 %v7308_v20  ;;  %8261 = vmatmul.bf16.gmra.mxu3 %v18646_v29  ;;  %v18600_v20 = vld [vmem:[#allocation2 + $0x78] sm:$0xff] }
 0x52a   :  { %9595 = vmatpush.bf16.msrb.mxu2 %v18742_v16 }
 0x52b   :  { %7865 = vmatmul.bf16.gmra.mxu2 %v18624_v12  ;;  %v6864_v12 = vrot.slane %v18579_v43, 2 }
 0x52c   :  { %v6566_v26 = vpop.f32.mrf.mxu3  ;;  %v21593_v23 = vpop.f32.mrf.mxu0 }
 0x52d   :  { %v6608_v7 = vadd.f32 %v6566_v26, %v6151_v33  ;;  %v7311_v33 = vrot.slane %v18600_v20, 3 }
 0x52e   :  { %v21591_v58 = vpop.f32.mrf.mxu2  ;;  %v21595_v1 = vpop.f32.mrf.mxu1 }
 0x52f   :  { %6644 = vst [vmem:[#allocation3 + $0x100] sm:$0xff] %v6608_v7  ;;  %v6865_v7 = vsel %vm2423_vm1, %v6862_v53, %v6864_v12  ;;  %v7312_v59 = vsel %vm2881_vm3, %v7309_v52, %v7311_v33  ;;  %v18795_v53 = vld [vmem:[%s23323_s3 + $0x538] sm:$0xff] }
 0x530   :  { %10426 = vmatpush.bf16.msra.mxu0 %v18795_v53  ;;  %v18602_v53 = vld [vmem:[#allocation2 + $0x88] sm:$0xff] }
 0x534   :  { %v6568_v32 = vpop.f32.mrf.mxu3  ;;  %v21602_v3 = vpop.f32.mrf.mxu0 }
 0x535   :  { %v6609_v40 = vadd.f32 %v6568_v32, %v6152_v8  ;;  %v18626_v8 = vld [vmem:[#allocation2 + $0x7c] sm:$0xff]  ;;  %v6649_v32 = vld [vmem:[#allocation3 + $0x8] sm:$0xff] }
 0x536   :  { %v21600_v28 = vpop.f32.mrf.mxu2  ;;  %v21605_v61 = vpop.f32.mrf.mxu1 }
 0x537   :  { %6645 = vst [vmem:[#allocation3 + $0x108] sm:$0xff] %v6609_v40  ;;  %7017 = vmatmul.bf16.gmra.mxu0 %v6863_v10  ;;  %v7034_v40 = vadd.f32 %v21455_v57, %v6649_v32  ;;  %v18601_v57 = vld [vmem:[#allocation2 + $0x80] sm:$0xff] }
 0x538   :  { %v7313_v43 = vrot.slane %v18601_v57, 3 }
 0x539   :  { %7449 = vmatmul.bf16.gmra.mxu1 %v7310_v15  ;;  %8266 = vmatmul.bf16.gmra.mxu3 %v18647_v27  ;;  %v6830_v27 = vpack.c.b16 %v6811_v47, %v6811_v47  ;;  %v18667_v47 = vld [vmem:[#allocation2 + $0x2c] sm:$0xff] }
 0x53b   :  { %7870 = vmatmul.bf16.gmra.mxu2 %v18625_v2  ;;  %v7491_v2 = vadd.f32 %v21563_v17, %v7034_v40  ;;  %v6866_v60 = vrot.slane %v6830_v27, 2  ;;  %v7035_v17 = vadd.f32 %v21463_v6, %v6650_v35  ;;  %v6652_v40 = vld [vmem:[#allocation3 + $0x20] sm:$0xff] }
 0x53c   :  { %v6571_v39 = vpop.f32.mrf.mxu3  ;;  %v21613_v29 = vpop.f32.mrf.mxu0  ;;  %v7037_v27 = vadd.f32 %v21486_v24, %v6652_v40  ;;  %v18715_v24 = vld [vmem:[%s23323_s3 + $0x468] sm:$0xff]  ;;  %v18629_v40 = vld [vmem:[#allocation2 + $0x94] sm:$0xff] }
 0x53d   :  { %v6610_v14 = vadd.f32 %v6571_v39, %v6153_v30  ;;  %v18768_v30 = vld [vmem:[%s23323_s3 + $0x4f0] sm:$0xff]  ;;  %v7907_v39 = vadd.f32 %v21548_v50, %v7491_v2  ;;  %v6867_v37 = vsel %vm2423_vm1, %v6864_v12, %v6866_v60  ;;  %v7492_v13 = vadd.f32 %v21575_v21, %v7035_v17  ;;  %9139 = vmatpush.bf16.msra.mxu1 %v18715_v24  ;;  %v21730_v24 = vld [vmem:[#allocation2 + $0x98] sm:$0xff] }
 0x53e   :  { %v21611_v31 = vpop.f32.mrf.mxu2  ;;  %v21615_v22 = vpop.f32.mrf.mxu1  ;;  %10011 = vmatpush.bf16.msra.mxu3 %v18768_v30  ;;  %v7314_v50 = vsel %vm2881_vm3, %v7311_v33, %v7313_v43  ;;  %v7494_v60 = vadd.f32 %v21605_v61, %v7037_v27  ;;  %v18651_v27 = vld [vmem:[#allocation2 + $0x7c] sm:$0xff] }
 0x53f   :  { %6646 = vst [vmem:[#allocation3 + $0x110] sm:$0xff] %v6610_v14  ;;  %v7908_v6 = vadd.f32 %v21559_v38, %v7492_v13 }
 0x540   :  { %v7910_v17 = vadd.f32 %v21591_v58, %v7494_v60  ;;  %v18794_v58 = vld [vmem:[%s23323_s3 + $0x530] sm:$0xff]  ;;  %v6655_v60 = vld [vmem:[#allocation3 + $0x38] sm:$0xff] }
 0x541   :  { %10427 = vmatpush.bf16.msra.mxu0 %v18794_v58 }
 0x544   :  { %v6573_v25 = vpop.f32.mrf.mxu3  ;;  %v21622_v11 = vpop.f32.mrf.mxu0 }
 0x545   :  { %v6611_v4 = vadd.f32 %v6573_v25, %v6154_v62 }
 0x546   :  { %v21620_v26 = vpop.f32.mrf.mxu2  ;;  %v21625_v18 = vpop.f32.mrf.mxu1 }
 0x547   :  { %6647 = vst [vmem:[#allocation3 + $0x118] sm:$0xff] %v6611_v4  ;;  %7022 = vmatmul.bf16.gmra.mxu0 %v6865_v7  ;;  %v18649_v4 = vld [vmem:[#allocation2 + $0x6c] sm:$0xff]  ;;  %v18627_v7 = vld [vmem:[#allocation2 + $0x84] sm:$0xff] }
 0x549   :  { %7454 = vmatmul.bf16.gmra.mxu1 %v7312_v59  ;;  %8271 = vmatmul.bf16.gmra.mxu3 %v18648_v19  ;;  %v7036_v19 = vadd.f32 %v21475_v36, %v6651_v54  ;;  %v18767_v54 = vld [vmem:[%s23323_s3 + $0x4e8] sm:$0xff] }
 0x54a   :  { %10012 = vmatpush.bf16.msra.mxu3 %v18767_v54 }
 0x54b   :  { %7875 = vmatmul.bf16.gmra.mxu2 %v18626_v8  ;;  %v18666_v8 = vld [vmem:[#allocation2 + $0x24] sm:$0xf0]  ;;  %v7493_v33 = vadd.f32 %v21595_v1, %v7036_v19 }
 0x54c   :  { %v8232_v5 = vpop.f32.mrf.mxu3  ;;  %v21639_v56 = vpop.f32.mrf.mxu0 }
 0x54d   :  { %v8322_v52 = vadd.f32 %v8232_v5, %v7906_v42  ;;  %v16330_v42 = vld [vmem:[#allocation2 + $0x24] sm:$0xe]  ;;  %v7909_v38 = vadd.f32 %v21571_v34, %v7493_v33  ;;  %v8578_v5 = vrot.slane %v18667_v47, 1 }
 0x54e   :  { %v21637_v10 = vpop.f32.mrf.mxu2  ;;  %v21641_v15 = vpop.f32.mrf.mxu1  ;;  %v16331_v32 = vor.u32 %v18666_v8, %v16330_v42 }
 0x54f   :  { %8358 = vst [vmem:[#allocation3] sm:$0xff] %v8322_v52  ;;  %v7315_v52 = vrot.slane %v18602_v53, 3 }
 0x550   :  { %v8577_v57 = vrot.slane %v16331_v32, 1 }
 0x551   :  { %v7316_v35 = vsel %vm2881_vm3, %v7313_v43, %v7315_v52 }
 0x552   :  { %v8579_v34 = vsel %vm1965_vm2, %v8577_v57, %v8578_v5 }
 0x554   :  { %v8234_v14 = vpop.f32.mrf.mxu3  ;;  %v21654_v62 = vpop.f32.mrf.mxu0 }
 0x555   :  { %v8323_v20 = vadd.f32 %v8234_v14, %v7907_v39  ;;  %v18650_v39 = vld [vmem:[#allocation2 + $0x74] sm:$0xff]  ;;  %v18628_v14 = vld [vmem:[#allocation2 + $0x8c] sm:$0xff] }
 0x556   :  { %v21652_v51 = vpop.f32.mrf.mxu2  ;;  %v21657_v25 = vpop.f32.mrf.mxu1 }
 0x557   :  { %8359 = vst [vmem:[#allocation3 + $0x8] sm:$0xff] %v8323_v20  ;;  %7027 = vmatmul.bf16.gmra.mxu0 %v6867_v37  ;;  %v6653_v20 = vld [vmem:[#allocation3 + $0x28] sm:$0xff] }
 0x558   :  { %v7038_v61 = vadd.f32 %v21498_v48, %v6653_v20  ;;  %v18741_v48 = vld [vmem:[%s23323_s3 + $0x4a8] sm:$0xff]  ;;  %v18738_v20 = vld [vmem:[%s23323_s3 + $0x490] sm:$0xff] }
 0x559   :  { %7459 = vmatmul.bf16.gmra.mxu1 %v7314_v50  ;;  %8276 = vmatmul.bf16.gmra.mxu3 %v18649_v4 }
 0x55a   :  { %9596 = vmatpush.bf16.msrb.mxu2 %v18741_v48 }
 0x55b   :  { %7880 = vmatmul.bf16.gmra.mxu2 %v18627_v7  ;;  %v21692_v7 = vld [vmem:[#allocation2 + $0x34] sm:$0xff] }
 0x55c   :  { %v8237_v44 = vpop.f32.mrf.mxu3  ;;  %v21665_v59 = vpop.f32.mrf.mxu0 }
 0x55d   :  { %v8324_v45 = vadd.f32 %v8237_v44, %v7908_v6  ;;  %v7495_v6 = vadd.f32 %v21615_v22, %v7038_v61  ;;  %v18603_v44 = vld [vmem:[#allocation2 + $0x90] sm:$0xff]  ;;  %v8580_v22 = vrot.slane %v21692_v7, 1 }
 0x55e   :  { %v21663_v12 = vpop.f32.mrf.mxu2  ;;  %v21667_v21 = vpop.f32.mrf.mxu1  ;;  %v7317_v33 = vrot.slane %v18603_v44, 3 }
 0x55f   :  { %8360 = vst [vmem:[#allocation3 + $0x10] sm:$0xff] %v8324_v45  ;;  %v7911_v19 = vadd.f32 %v21600_v28, %v7495_v6  ;;  %v6654_v45 = vld [vmem:[#allocation3 + $0x30] sm:$0xff]  ;;  %v8581_v28 = vsel %vm1965_vm2, %v8578_v5, %v8580_v22  ;;  %v7040_v5 = vadd.f32 %v21518_v9, %v6655_v60  ;;  %v7319_v9 = vrot.slane %v21730_v24, 3  ;;  %v21774_v60 = vld [vmem:[#allocation2 + $0x44] sm:$0xff] }
 0x560   :  { %v7039_v47 = vadd.f32 %v21507_v63, %v6654_v45  ;;  %v7318_v63 = vsel %vm2881_vm3, %v7315_v52, %v7317_v33  ;;  %v6658_v24 = vld [vmem:[#allocation3 + $0x50] sm:$0xff] }
 0x564   :  { %v8239_v36 = vpop.f32.mrf.mxu3  ;;  %v21674_v30 = vpop.f32.mrf.mxu0 }
 0x565   :  { %v8325_v16 = vadd.f32 %v8239_v36, %v7909_v38  ;;  %v7496_v36 = vadd.f32 %v21625_v18, %v7039_v47  ;;  %v18739_v18 = vld [vmem:[%s23323_s3 + $0x498] sm:$0xff] }
 0x566   :  { %v21672_v2 = vpop.f32.mrf.mxu2  ;;  %v21676_v1 = vpop.f32.mrf.mxu1 }
 0x567   :  { %8361 = vst [vmem:[#allocation3 + $0x18] sm:$0xff] %v8325_v16  ;;  %8688 = vmatmul.bf16.vlgmr.msrb.gmra.mxu0 %v8579_v34  ;;  %v18740_v16 = vld [vmem:[%s23323_s3 + $0x4a0] sm:$0xff]  ;;  %v7912_v57 = vadd.f32 %v21611_v31, %v7496_v36  ;;  %v7497_v31 = vadd.f32 %v21641_v15, %v7040_v5  ;;  %v18711_v5 = vld [vmem:[%s23323_s3 + $0x448] sm:$0xff] }
 0x568   :  { %9597 = vmatpush.bf16.msrb.mxu2 %v18740_v16  ;;  %v6656_v15 = vld [vmem:[#allocation3 + $0x40] sm:$0xff] }
 0x569   :  { %7464 = vmatmul.bf16.gmra.mxu1 %v7316_v35  ;;  %8281 = vmatmul.bf16.gmra.mxu3 %v18650_v39  ;;  %v7041_v6 = vadd.f32 %v21530_v0, %v6656_v15  ;;  %v18714_v0 = vld [vmem:[%s23323_s3 + $0x460] sm:$0xff] }
 0x56a   :  { %9140 = vmatpush.bf16.msra.mxu1 %v18714_v0 }
 0x56b   :  { %7885 = vmatmul.bf16.gmra.mxu2 %v18628_v14  ;;  %v7498_v45 = vadd.f32 %v21657_v25, %v7041_v6  ;;  %v18713_v25 = vld [vmem:[%s23323_s3 + $0x458] sm:$0xff]  ;;  %v18631_v6 = vld [vmem:[#allocation2 + $0xa4] sm:$0xff] }
 0x56c   :  { %v8242_v37 = vpop.f32.mrf.mxu3  ;;  %v21688_v43 = vpop.f32.mrf.mxu0  ;;  %9598 = vmatpush.bf16.msrb.mxu2 %v18739_v18 }
 0x56d   :  { %v8326_v4 = vadd.f32 %v8242_v37, %v7910_v17  ;;  %v21733_v17 = vld [vmem:[#allocation2 + $0x3c] sm:$0xff]  ;;  %v7913_v37 = vadd.f32 %v21620_v26, %v7497_v31  ;;  %v7320_v26 = vsel %vm2881_vm3, %v7317_v33, %v7319_v9  ;;  %v6657_v33 = vld [vmem:[#allocation3 + $0x48] sm:$0xff] }
 0x56e   :  { %v21686_v13 = vpop.f32.mrf.mxu2  ;;  %v21690_v50 = vpop.f32.mrf.mxu1  ;;  %v8582_v61 = vrot.slane %v21733_v17, 1  ;;  %v7042_v36 = vadd.f32 %v21541_v41, %v6657_v33  ;;  %9141 = vmatpush.bf16.msra.mxu1 %v18713_v25  ;;  %v18793_v41 = vld [vmem:[%s23323_s3 + $0x528] sm:$0xff]  ;;  %v7043_v17 = vadd.f32 %v21550_v46, %v6658_v24  ;;  %v18710_v46 = vld [vmem:[%s23323_s3 + $0x440] sm:$0xff] }
 0x56f   :  { %8362 = vst [vmem:[#allocation3 + $0x20] sm:$0xff] %v8326_v4  ;;  %v18737_v4 = vld [vmem:[%s23323_s3 + $0x488] sm:$0xff]  ;;  %10428 = vmatpush.bf16.msra.mxu0 %v18793_v41 }
 0x570   :  { %9599 = vmatpush.bf16.msrb.mxu2 %v18738_v20  ;;  %v8583_v47 = vsel %vm1965_vm2, %v8580_v22, %v8582_v61  ;;  %v7914_v22 = vadd.f32 %v21637_v10, %v7498_v45  ;;  %v7499_v18 = vadd.f32 %v21667_v21, %v7042_v36  ;;  %v18712_v10 = vld [vmem:[%s23323_s3 + $0x450] sm:$0xff]  ;;  %v18766_v45 = vld [vmem:[%s23323_s3 + $0x4e0] sm:$0xff] }
 0x571   :  { %10013 = vmatpush.bf16.msra.mxu3 %v18766_v45  ;;  %v18671_v36 = vld [vmem:[#allocation2 + $0x4c] sm:$0xff]  ;;  %v6660_v41 = vld [vmem:[#allocation3 + $0x60] sm:$0xff] }
 0x572   :  { %9142 = vmatpush.bf16.msra.mxu1 %v18712_v10  ;;  %v7915_v21 = vadd.f32 %v21652_v51, %v7499_v18  ;;  %v7500_v51 = vadd.f32 %v21676_v1, %v7043_v17  ;;  %v16570_v18 = vld [vmem:[#allocation2 + $0x24] sm:$0x8] }
 0x574   :  { %v8244_v8 = vpop.f32.mrf.mxu3  ;;  %v21709_v32 = vpop.f32.mrf.mxu0  ;;  %9600 = vmatpush.bf16.msrb.mxu2 %v18737_v4  ;;  %v7916_v1 = vadd.f32 %v21663_v12, %v7500_v51 }
 0x575   :  { %v8327_v42 = vadd.f32 %v8244_v8, %v7911_v19  ;;  %v18630_v19 = vld [vmem:[#allocation2 + $0x9c] sm:$0xff]  ;;  %v18652_v8 = vld [vmem:[#allocation2 + $0x84] sm:$0xff] }
 0x576   :  { %v21707_v53 = vpop.f32.mrf.mxu2  ;;  %v21711_v38 = vpop.f32.mrf.mxu1  ;;  %9143 = vmatpush.bf16.msra.mxu1 %v18711_v5 }
 0x577   :  { %8363 = vst [vmem:[#allocation3 + $0x28] sm:$0xff] %v8327_v42  ;;  %8693 = vmatmul.bf16.gmra.mxu0 %v8581_v28  ;;  %v18736_v42 = vld [vmem:[%s23323_s3 + $0x480] sm:$0xff] }
 0x578   :  { %9601 = vmatpush.bf16.msrb.mxu2 %v18736_v42 }
 0x579   :  { %7469 = vmatmul.bf16.gmra.mxu1 %v7318_v63  ;;  %8286 = vmatmul.bf16.gmra.mxu3 %v18651_v27 }
 0x57a   :  { %9144 = vmatpush.bf16.msra.mxu1 %v18710_v46 }
 0x57b   :  { %7890 = vmatmul.bf16.gmra.mxu2 %v18629_v40 }
 0x57c   :  { %v8247_v39 = vpop.f32.mrf.mxu3  ;;  %v21726_v14 = vpop.f32.mrf.mxu0 }
 0x57d   :  { %v8328_v35 = vadd.f32 %v8247_v39, %v7912_v57  ;;  %v21771_v57 = vld [vmem:[#allocation2 + $0xa0] sm:$0xff] }
 0x57e   :  { %v21724_v34 = vpop.f32.mrf.mxu2  ;;  %v21728_v52 = vpop.f32.mrf.mxu1  ;;  %v7321_v39 = vrot.slane %v21771_v57, 3  ;;  %v21813_v57 = vld [vmem:[#allocation2 + $0x2c] sm:$0xff] }
 0x57f   :  { %8364 = vst [vmem:[#allocation3 + $0x30] sm:$0xff] %v8328_v35  ;;  %v8584_v35 = vrot.slane %v21774_v60, 1 }
 0x584   :  { %v8249_v7 = vpop.f32.mrf.mxu3  ;;  %v21747_v54 = vpop.f32.mrf.mxu0 }
 0x585   :  { %v8329_v48 = vadd.f32 %v8249_v7, %v7913_v37  ;;  %v7322_v7 = vsel %vm2881_vm3, %v7319_v9, %v7321_v39 }
 0x586   :  { %v21745_v58 = vpop.f32.mrf.mxu2  ;;  %v21749_v44 = vpop.f32.mrf.mxu1 }
 0x587   :  { %8365 = vst [vmem:[#allocation3 + $0x38] sm:$0xff] %v8329_v48  ;;  %8698 = vmatmul.bf16.gmra.mxu0 %v8583_v47  ;;  %v18653_v48 = vld [vmem:[#allocation2 + $0x8c] sm:$0xff] }
 0x589   :  { %7474 = vmatmul.bf16.gmra.mxu1 %v7320_v26  ;;  %8291 = vmatmul.bf16.gmra.mxu3 %v18652_v8  ;;  %v8585_v26 = vsel %vm1965_vm2, %v8582_v61, %v8584_v35  ;;  %v6659_v8 = vld [vmem:[#allocation3 + $0x58] sm:$0xff] }
 0x58a   :  { %v7044_v47 = vadd.f32 %v21561_v49, %v6659_v8  ;;  %v8586_v49 = vrot.slane %v18671_v36, 1  ;;  %v21837_v8 = vld [vmem:[#allocation2 + $0x54] sm:$0xff] }
 0x58b   :  { %7895 = vmatmul.bf16.gmra.mxu2 %v18630_v19  ;;  %v7177_v19 = vld [vmem:[#allocation2 + $0xa8] sm:$0x7]  ;;  %v6662_v36 = vld [vmem:[#allocation3 + $0x70] sm:$0xff] }
 0x58c   :  { %v8252_v40 = vpop.f32.mrf.mxu3  ;;  %v21767_v16 = vpop.f32.mrf.mxu0  ;;  %v7268_v9 = vunpack.c.l.b16 %v7177_v19  ;;  %v6661_v19 = vld [vmem:[#allocation3 + $0x68] sm:$0xff] }
 0x58d   :  { %v8330_v28 = vadd.f32 %v8252_v40, %v7914_v22  ;;  %v7501_v40 = vadd.f32 %v21690_v50, %v7044_v47  ;;  %v18654_v50 = vld [vmem:[#allocation2 + $0x94] sm:$0xff]  ;;  %v7046_v45 = vadd.f32 %v21593_v23, %v6661_v19  ;;  %v21839_v47 = vld [vmem:[#allocation2 + $0x2c] sm:$0xff] }
 0x58e   :  { %v21765_v27 = vpop.f32.mrf.mxu2  ;;  %v21769_v63 = vpop.f32.mrf.mxu1  ;;  %v7287_v33 = vpack.c.b16 %v7268_v9, %v7268_v9 }
 0x58f   :  { %8366 = vst [vmem:[#allocation3 + $0x40] sm:$0xff] %v8330_v28  ;;  %v18718_v28 = vld [vmem:[#allocation2 + $0x24] sm:$0xf0]  ;;  %v7917_v60 = vadd.f32 %v21672_v2, %v7501_v40  ;;  %v8588_v40 = vrot.slane %v21837_v8, 1 }
 0x590   :  { %v7323_v12 = vrot.slane %v7287_v33, 3  ;;  %v16571_v10 = vor.u32 %v18718_v28, %v16570_v18 }
 0x592   :  { %v9491_v51 = vrot.slane %v16571_v10, 3  ;;  %v18655_v10 = vld [vmem:[#allocation2 + $0x9c] sm:$0xff] }
 0x594   :  { %v8254_v31 = vpop.f32.mrf.mxu3  ;;  %v21791_v4 = vpop.f32.mrf.mxu0 }
 0x595   :  { %v8331_v37 = vadd.f32 %v8254_v31, %v7915_v21  ;;  %v7045_v21 = vadd.f32 %v21573_v55, %v6660_v41 }
 0x596   :  { %v21789_v20 = vpop.f32.mrf.mxu2  ;;  %v21793_v15 = vpop.f32.mrf.mxu1 }
 0x597   :  { %8367 = vst [vmem:[#allocation3 + $0x48] sm:$0xff] %v8331_v37  ;;  %8703 = vmatmul.bf16.gmra.mxu0 %v8585_v26  ;;  %v9492_v37 = vrot.slane %v21813_v57, 3  ;;  %v7502_v2 = vadd.f32 %v21711_v38, %v7045_v21  ;;  %v9035_v57 = vrot.slane %v21839_v47, 2  ;;  %v6664_v47 = vld [vmem:[#allocation3 + $0x80] sm:$0xff] }
 0x599   :  { %7479 = vmatmul.bf16.gmra.mxu1 %v7322_v7  ;;  %8296 = vmatmul.bf16.gmra.mxu3 %v18653_v48  ;;  %v8587_v48 = vsel %vm1965_vm2, %v8584_v35, %v8586_v49  ;;  %v9493_v55 = vsel %vm2881_vm3, %v9491_v51, %v9492_v37  ;;  %v7918_v26 = vadd.f32 %v21686_v13, %v7502_v2  ;;  %v16450_v13 = vld [vmem:[#allocation2 + $0x24] sm:$0xc] }
 0x59a   :  { %v7503_v35 = vadd.f32 %v21728_v52, %v7046_v45  ;;  %v7047_v52 = vadd.f32 %v21602_v3, %v6662_v36  ;;  %v18792_v3 = vld [vmem:[%s23323_s3 + $0x520] sm:$0xff] }
 0x59b   :  { %7900 = vmatmul.bf16.gmra.mxu2 %v18631_v6  ;;  %v7324_v6 = vsel %vm2881_vm3, %v7321_v39, %v7323_v12  ;;  %10429 = vmatpush.bf16.msra.mxu0 %v18792_v3  ;;  %v18673_v45 = vld [vmem:[#allocation2 + $0x5c] sm:$0xff]  ;;  %v6665_v3 = vld [vmem:[#allocation3 + $0x88] sm:$0xff] }
 0x59c   :  { %v8257_v61 = vpop.f32.mrf.mxu3  ;;  %v21808_v25 = vpop.f32.mrf.mxu0  ;;  %v7919_v23 = vadd.f32 %v21707_v53, %v7503_v35  ;;  %v7504_v53 = vadd.f32 %v21749_v44, %v7047_v52  ;;  %v18765_v44 = vld [vmem:[%s23323_s3 + $0x4d8] sm:$0xff] }
 0x59d   :  { %v8332_v42 = vadd.f32 %v8257_v61, %v7916_v1  ;;  %v18692_v61 = vld [vmem:[#allocation2 + $0x24] sm:$0xf0]  ;;  %10014 = vmatpush.bf16.msra.mxu3 %v18765_v44  ;;  %v18721_v35 = vld [vmem:[#allocation2 + $0x3c] sm:$0xff] }
 0x59e   :  { %v21806_v0 = vpop.f32.mrf.mxu2  ;;  %v21810_v22 = vpop.f32.mrf.mxu1  ;;  %v16451_v33 = vor.u32 %v18692_v61, %v16450_v13  ;;  %v7920_v2 = vadd.f32 %v21724_v34, %v7504_v53  ;;  %v18764_v34 = vld [vmem:[%s23323_s3 + $0x4d0] sm:$0xff]  ;;  %v8590_v61 = vrot.slane %v18673_v45, 1  ;;  %v9496_v52 = vrot.slane %v18721_v35, 3 }
 0x59f   :  { %8368 = vst [vmem:[#allocation3 + $0x50] sm:$0xff] %v8332_v42  ;;  %v21841_v42 = vld [vmem:[#allocation2 + $0x34] sm:$0xff] }
 0x5a0   :  { %v9494_v41 = vrot.slane %v21841_v42, 3  ;;  %v9034_v21 = vrot.slane %v16451_v33, 2 }
 0x5a1   :  { %10015 = vmatpush.bf16.msra.mxu3 %v18764_v34 }
 0x5a2   :  { %v9497_v53 = vsel %vm2881_vm3, %v9494_v41, %v9496_v52 }
 0x5a4   :  { %v8259_v5 = vpop.f32.mrf.mxu3  ;;  %v21819_v17 = vpop.f32.mrf.mxu0 }
 0x5a5   :  { %v8333_v31 = vadd.f32 %v8259_v5, %v7917_v60 }
 0x5a6   :  { %v21817_v24 = vpop.f32.mrf.mxu2  ;;  %v21822_v7 = vpop.f32.mrf.mxu1 }
 0x5a7   :  { %8369 = vst [vmem:[#allocation3 + $0x58] sm:$0xff] %v8333_v31  ;;  %8708 = vmatmul.bf16.gmra.mxu0 %v8587_v48  ;;  %v8589_v31 = vsel %vm1965_vm2, %v8586_v49, %v8588_v40  ;;  %v6663_v49 = vld [vmem:[#allocation3 + $0x78] sm:$0xff] }
 0x5a8   :  { %v7048_v51 = vadd.f32 %v21613_v29, %v6663_v49  ;;  %v18763_v29 = vld [vmem:[%s23323_s3 + $0x4c8] sm:$0xff] }
 0x5a9   :  { %7484 = vmatmul.bf16.gmra.mxu1 %v7324_v6  ;;  %8301 = vmatmul.bf16.gmra.mxu3 %v18654_v50  ;;  %v9036_v50 = vsel %vm2423_vm1, %v9034_v21, %v9035_v57  ;;  %v9495_v6 = vsel %vm2881_vm3, %v9492_v37, %v9494_v41  ;;  %v18762_v21 = vld [vmem:[%s23323_s3 + $0x4c0] sm:$0xff] }
 0x5aa   :  { %v7505_v37 = vadd.f32 %v21769_v63, %v7048_v51  ;;  %v7049_v63 = vadd.f32 %v21622_v11, %v6664_v47  ;;  %10016 = vmatpush.bf16.msra.mxu3 %v18763_v29  ;;  %v18674_v49 = vld [vmem:[#allocation2 + $0x64] sm:$0xff]  ;;  %v18695_v41 = vld [vmem:[#allocation2 + $0x3c] sm:$0xff]  ;;  %v18657_v29 = vld [vmem:[#allocation2 + $0xac] sm:$0xff] }
 0x5ab   :  { %9602 = vmatmul.bf16.vlgmr.msrb.gmra.mxu2 %v9493_v55  ;;  %v9039_v45 = vrot.slane %v18695_v41, 2 }
 0x5ac   :  { %v8262_v46 = vpop.f32.mrf.mxu3  ;;  %v21832_v38 = vpop.f32.mrf.mxu0  ;;  %v7921_v8 = vadd.f32 %v21745_v58, %v7505_v37  ;;  %v8591_v58 = vsel %vm1965_vm2, %v8588_v40, %v8590_v61 }
 0x5ad   :  { %v8334_v39 = vadd.f32 %v8262_v46, %v7918_v26 }
 0x5ae   :  { %v21830_v9 = vpop.f32.mrf.mxu2  ;;  %v21834_v1 = vpop.f32.mrf.mxu1  ;;  %10017 = vmatpush.bf16.msra.mxu3 %v18762_v21 }
 0x5af   :  { %8370 = vst [vmem:[#allocation3 + $0x60] sm:$0xff] %v8334_v39  ;;  %v18694_v39 = vld [vmem:[#allocation2 + $0x34] sm:$0xff] }
 0x5b0   :  { %v9037_v42 = vrot.slane %v18694_v39, 2 }
 0x5b2   :  { %v9038_v11 = vsel %vm2423_vm1, %v9035_v57, %v9037_v42 }
 0x5b4   :  { %v8264_v28 = vpop.f32.mrf.mxu3  ;;  %v21849_v60 = vpop.f32.mrf.mxu0 }
 0x5b5   :  { %v8335_v18 = vadd.f32 %v8264_v28, %v7919_v23  ;;  %v18656_v28 = vld [vmem:[#allocation2 + $0xa4] sm:$0xff] }
 0x5b6   :  { %v21847_v12 = vpop.f32.mrf.mxu2  ;;  %v21852_v5 = vpop.f32.mrf.mxu1 }
 0x5b7   :  { %8371 = vst [vmem:[#allocation3 + $0x68] sm:$0xff] %v8335_v18  ;;  %8713 = vmatmul.bf16.gmra.mxu0 %v8589_v31 }
 0x5b9   :  { %8306 = vmatmul.bf16.gmra.mxu3 %v18655_v10  ;;  %9145 = vmatmul.bf16.vlgmr.msra.gmra.mxu1 %v9036_v50  ;;  %v7506_v10 = vadd.f32 %v21793_v15, %v7049_v63  ;;  %v7050_v50 = vadd.f32 %v21639_v56, %v6665_v3  ;;  %v18791_v63 = vld [vmem:[%s23323_s3 + $0x518] sm:$0xff] }
 0x5ba   :  { %10430 = vmatpush.bf16.msra.mxu0 %v18791_v63  ;;  %v18724_v63 = vld [vmem:[#allocation2 + $0x54] sm:$0xff] }
 0x5bb   :  { %9607 = vmatmul.bf16.gmra.mxu2 %v9495_v6  ;;  %v7922_v31 = vadd.f32 %v21765_v27, %v7506_v10  ;;  %v7507_v57 = vadd.f32 %v21810_v22, %v7050_v50  ;;  %v8592_v27 = vrot.slane %v18674_v49, 1 }
 0x5bc   :  { %v8267_v48 = vpop.f32.mrf.mxu3  ;;  %v21868_v19 = vpop.f32.mrf.mxu0 }
 0x5bd   :  { %v8336_v26 = vadd.f32 %v8267_v48, %v7920_v2  ;;  %v18722_v48 = vld [vmem:[#allocation2 + $0x44] sm:$0xff]  ;;  %v7923_v51 = vadd.f32 %v21789_v20, %v7507_v57  ;;  %v8593_v20 = vsel %vm1965_vm2, %v8590_v61, %v8592_v27 }
 0x5be   :  { %v21866_v55 = vpop.f32.mrf.mxu2  ;;  %v21870_v46 = vpop.f32.mrf.mxu1 }
 0x5bf   :  { %8372 = vst [vmem:[#allocation3 + $0x70] sm:$0xff] %v8336_v26  ;;  %v6666_v26 = vld [vmem:[#allocation3 + $0x90] sm:$0xff] }
 0x5c0   :  { %v7051_v56 = vadd.f32 %v21654_v62, %v6666_v26 }
 0x5c2   :  { %v7508_v47 = vadd.f32 %v21822_v7, %v7051_v56 }
 0x5c4   :  { %v8269_v13 = vpop.f32.mrf.mxu3  ;;  %v21883_v36 = vpop.f32.mrf.mxu0 }
 0x5c5   :  { %v8337_v23 = vadd.f32 %v8269_v13, %v7921_v8  ;;  %v9498_v8 = vrot.slane %v18722_v48, 3  ;;  %v9040_v13 = vsel %vm2423_vm1, %v9037_v42, %v9039_v45 }
 0x5c6   :  { %v21881_v33 = vpop.f32.mrf.mxu2  ;;  %v21885_v18 = vpop.f32.mrf.mxu1 }
 0x5c7   :  { %8373 = vst [vmem:[#allocation3 + $0x78] sm:$0xff] %v8337_v23  ;;  %8718 = vmatmul.bf16.gmra.mxu0 %v8591_v58  ;;  %v9499_v62 = vsel %vm2881_vm3, %v9496_v52, %v9498_v8  ;;  %v7924_v23 = vadd.f32 %v21806_v0, %v7508_v47 }
 0x5c9   :  { %8311 = vmatmul.bf16.gmra.mxu3 %v18656_v28  ;;  %9150 = vmatmul.bf16.gmra.mxu1 %v9038_v11  ;;  %v6667_v28 = vld [vmem:[#allocation3 + $0x98] sm:$0xff]  ;;  %v18675_v11 = vld [vmem:[#allocation2 + $0x6c] sm:$0xff] }
 0x5ca   :  { %v7052_v7 = vadd.f32 %v21665_v59, %v6667_v28  ;;  %v8594_v3 = vrot.slane %v18675_v11, 1  ;;  %v6670_v28 = vld [vmem:[#allocation3 + $0xb0] sm:$0xff] }
 0x5cb   :  { %9612 = vmatmul.bf16.gmra.mxu2 %v9497_v53  ;;  %v18696_v53 = vld [vmem:[#allocation2 + $0x44] sm:$0xff] }
 0x5cc   :  { %v8272_v15 = vpop.f32.mrf.mxu3  ;;  %v21898_v44 = vpop.f32.mrf.mxu0  ;;  %v7509_v52 = vadd.f32 %v21834_v1, %v7052_v7  ;;  %v8595_v26 = vsel %vm1965_vm2, %v8592_v27, %v8594_v3 }
 0x5cd   :  { %v8338_v6 = vadd.f32 %v8272_v15, %v7922_v31  ;;  %v18723_v31 = vld [vmem:[#allocation2 + $0x4c] sm:$0xff]  ;;  %v6668_v15 = vld [vmem:[#allocation3 + $0xa0] sm:$0xff] }
 0x5ce   :  { %v21896_v40 = vpop.f32.mrf.mxu2  ;;  %v21900_v2 = vpop.f32.mrf.mxu1  ;;  %v7925_v0 = vadd.f32 %v21817_v24, %v7509_v52  ;;  %v7053_v59 = vadd.f32 %v21674_v30, %v6668_v15  ;;  %v9500_v48 = vrot.slane %v18723_v31, 3  ;;  %v18744_v24 = vld [vmem:[#allocation2 + $0x28] sm:$0xff] }
 0x5cf   :  { %8374 = vst [vmem:[#allocation3 + $0x80] sm:$0xff] %v8338_v6  ;;  %v9041_v6 = vrot.slane %v18696_v53, 2  ;;  %v9502_v53 = vrot.slane %v18724_v63, 3 }
 0x5d0   :  { %v7510_v1 = vadd.f32 %v21852_v5, %v7053_v59  ;;  %v9501_v30 = vsel %vm2881_vm3, %v9498_v8, %v9500_v48  ;;  %v18697_v8 = vld [vmem:[#allocation2 + $0x4c] sm:$0xff]  ;;  %v6671_v59 = vld [vmem:[#allocation3 + $0xb8] sm:$0xff] }
 0x5d1   :  { %v9043_v7 = vrot.slane %v18697_v8, 2 }
 0x5d2   :  { %v7926_v56 = vadd.f32 %v21830_v9, %v7510_v1  ;;  %v7056_v1 = vadd.f32 %v21726_v14, %v6671_v59 }
 0x5d3   :  { %v9044_v15 = vsel %vm2423_vm1, %v9041_v6, %v9043_v7 }
 0x5d4   :  { %v8274_v37 = vpop.f32.mrf.mxu3  ;;  %v21907_v35 = vpop.f32.mrf.mxu0 }
 0x5d5   :  { %v8339_v39 = vadd.f32 %v8274_v37, %v7923_v51  ;;  %v9042_v37 = vsel %vm2423_vm1, %v9039_v45, %v9041_v6  ;;  %v7513_v6 = vadd.f32 %v21900_v2, %v7056_v1 }
 0x5d6   :  { %v21905_v34 = vpop.f32.mrf.mxu2  ;;  %v21909_v22 = vpop.f32.mrf.mxu1 }
 0x5d7   :  { %8375 = vst [vmem:[#allocation3 + $0x88] sm:$0xff] %v8339_v39  ;;  %8723 = vmatmul.bf16.gmra.mxu0 %v8593_v20  ;;  %v6669_v39 = vld [vmem:[#allocation3 + $0xa8] sm:$0xff]  ;;  %v7929_v14 = vadd.f32 %v21881_v33, %v7513_v6  ;;  %v18746_v33 = vld [vmem:[#allocation2 + $0x38] sm:$0xff] }
 0x5d8   :  { %v7054_v47 = vadd.f32 %v21688_v43, %v6669_v39  ;;  %v7055_v43 = vadd.f32 %v21709_v32, %v6670_v28  ;;  %v9503_v32 = vsel %vm2881_vm3, %v9500_v48, %v9502_v53  ;;  %v18790_v48 = vld [vmem:[%s23323_s3 + $0x510] sm:$0xff]  ;;  %v6672_v39 = vld [vmem:[#allocation3 + $0xc0] sm:$0xff] }
 0x5d9   :  { %8316 = vmatmul.bf16.gmra.mxu3 %v18657_v29  ;;  %9155 = vmatmul.bf16.gmra.mxu1 %v9040_v13 }
 0x5da   :  { %v7511_v45 = vadd.f32 %v21870_v46, %v7054_v47  ;;  %v7512_v46 = vadd.f32 %v21885_v18, %v7055_v43  ;;  %10431 = vmatpush.bf16.msra.mxu0 %v18790_v48 }
 0x5db   :  { %9617 = vmatmul.bf16.gmra.mxu2 %v9499_v62  ;;  %v18676_v62 = vld [vmem:[#allocation2 + $0x74] sm:$0xff] }
 0x5dc   :  { %v8277_v10 = vpop.f32.mrf.mxu3  ;;  %v21922_v42 = vpop.f32.mrf.mxu0  ;;  %v8596_v9 = vrot.slane %v18676_v62, 1 }
 0x5dd   :  { %v8340_v58 = vadd.f32 %v8277_v10, %v7924_v23  ;;  %v7927_v23 = vadd.f32 %v21847_v12, %v7511_v45  ;;  %v18745_v12 = vld [vmem:[#allocation2 + $0x30] sm:$0xff] }
 0x5de   :  { %v21920_v61 = vpop.f32.mrf.mxu2  ;;  %v21924_v21 = vpop.f32.mrf.mxu1 }
 0x5df   :  { %8376 = vst [vmem:[#allocation3 + $0x90] sm:$0xff] %v8340_v58 }
 0x5e4   :  { %v8279_v50 = vpop.f32.mrf.mxu3  ;;  %v21931_v41 = vpop.f32.mrf.mxu0 }
 0x5e5   :  { %v8341_v49 = vadd.f32 %v8279_v50, %v7925_v0  ;;  %v8597_v0 = vsel %vm1965_vm2, %v8594_v3, %v8596_v9  ;;  %v7928_v50 = vadd.f32 %v21866_v55, %v7512_v46  ;;  %v18698_v55 = vld [vmem:[#allocation2 + $0x54] sm:$0xff] }
 0x5e6   :  { %v21929_v57 = vpop.f32.mrf.mxu2  ;;  %v21933_v51 = vpop.f32.mrf.mxu1  ;;  %v9045_v47 = vrot.slane %v18698_v55, 2 }
 0x5e7   :  { %8377 = vst [vmem:[#allocation3 + $0x98] sm:$0xff] %v8341_v49  ;;  %8728 = vmatmul.bf16.gmra.mxu0 %v8595_v26 }
 0x5e9   :  { %9160 = vmatmul.bf16.gmra.mxu1 %v9042_v37  ;;  %10018 = vmatmul.bf16.vlgmr.msra.gmra.mxu3 %v18744_v24  ;;  %v18677_v37 = vld [vmem:[#allocation2 + $0x7c] sm:$0xff] }
 0x5eb   :  { %9622 = vmatmul.bf16.gmra.mxu2 %v9501_v30  ;;  %v18725_v30 = vld [vmem:[#allocation2 + $0x5c] sm:$0xff] }
 0x5ec   :  { %v8282_v29 = vpop.f32.mrf.mxu3  ;;  %v21943_v13 = vpop.f32.mrf.mxu0  ;;  %v9504_v8 = vrot.slane %v18725_v30, 3 }
 0x5ed   :  { %v8342_v5 = vadd.f32 %v8282_v29, %v7926_v56  ;;  %v8598_v56 = vrot.slane %v18677_v37, 1 }
 0x5ee   :  { %v21941_v20 = vpop.f32.mrf.mxu2  ;;  %v21945_v27 = vpop.f32.mrf.mxu1 }
 0x5ef   :  { %8378 = vst [vmem:[#allocation3 + $0xa0] sm:$0xff] %v8342_v5  ;;  %v7057_v5 = vadd.f32 %v21747_v54, %v6672_v39  ;;  %v8599_v28 = vsel %vm1965_vm2, %v8596_v9, %v8598_v56  ;;  %v9505_v54 = vsel %vm2881_vm3, %v9502_v53, %v9504_v8  ;;  %v18699_v53 = vld [vmem:[#allocation2 + $0x5c] sm:$0xff] }
 0x5f4   :  { %v8284_v10 = vpop.f32.mrf.mxu3  ;;  %v21952_v11 = vpop.f32.mrf.mxu0 }
 0x5f5   :  { %v8343_v52 = vadd.f32 %v8284_v10, %v7927_v23  ;;  %v7514_v23 = vadd.f32 %v21909_v22, %v7057_v5  ;;  %v9046_v10 = vsel %vm2423_vm1, %v9043_v7, %v9045_v47  ;;  %v6675_v5 = vld [vmem:[#allocation3 + $0xd8] sm:$0xff] }
 0x5f6   :  { %v21950_v58 = vpop.f32.mrf.mxu2  ;;  %v21954_v31 = vpop.f32.mrf.mxu1 }
 0x5f7   :  { %8379 = vst [vmem:[#allocation3 + $0xa8] sm:$0xff] %v8343_v52  ;;  %8733 = vmatmul.bf16.gmra.mxu0 %v8597_v0  ;;  %v7930_v43 = vadd.f32 %v21896_v40, %v7514_v23  ;;  %v6673_v52 = vld [vmem:[#allocation3 + $0xc8] sm:$0xff]  ;;  %v7060_v23 = vadd.f32 %v21808_v25, %v6675_v5 }
 0x5f8   :  { %v7058_v0 = vadd.f32 %v21767_v16, %v6673_v52  ;;  %v6676_v52 = vld [vmem:[#allocation3 + $0xe0] sm:$0xff] }
 0x5f9   :  { %9165 = vmatmul.bf16.gmra.mxu1 %v9044_v15  ;;  %10023 = vmatmul.bf16.gmra.mxu3 %v18745_v12 }
 0x5fa   :  { %v7515_v7 = vadd.f32 %v21924_v21, %v7058_v0 }
 0x5fb   :  { %9627 = vmatmul.bf16.gmra.mxu2 %v9503_v32  ;;  %v18678_v32 = vld [vmem:[#allocation2 + $0x84] sm:$0xff] }
 0x5fc   :  { %v8287_v49 = vpop.f32.mrf.mxu3  ;;  %v21964_v24 = vpop.f32.mrf.mxu0  ;;  %v7931_v59 = vadd.f32 %v21905_v34, %v7515_v7  ;;  %v8600_v40 = vrot.slane %v18678_v32, 1  ;;  %v18747_v34 = vld [vmem:[#allocation2 + $0x40] sm:$0xff] }
 0x5fd   :  { %v8344_v18 = vadd.f32 %v8287_v49, %v7928_v50  ;;  %v18726_v50 = vld [vmem:[#allocation2 + $0x64] sm:$0xff]  ;;  %v6674_v49 = vld [vmem:[#allocation3 + $0xd0] sm:$0xff] }
 0x5fe   :  { %v21962_v26 = vpop.f32.mrf.mxu2  ;;  %v21966_v3 = vpop.f32.mrf.mxu1  ;;  %v7059_v16 = vadd.f32 %v21791_v4, %v6674_v49  ;;  %v9506_v55 = vrot.slane %v18726_v50, 3 }
 0x5ff   :  { %8380 = vst [vmem:[#allocation3 + $0xb0] sm:$0xff] %v8344_v18  ;;  %v9047_v18 = vrot.slane %v18699_v53, 2 }
 0x600   :  { %v7516_v21 = vadd.f32 %v21933_v51, %v7059_v16  ;;  %v9507_v4 = vsel %vm2881_vm3, %v9504_v8, %v9506_v55  ;;  %v18789_v8 = vld [vmem:[%s23323_s3 + $0x508] sm:$0xff] }
 0x601   :  { %v9048_v39 = vsel %vm2423_vm1, %v9045_v47, %v9047_v18  ;;  %v7517_v47 = vadd.f32 %v21945_v27, %v7060_v23  ;;  %10432 = vmatpush.bf16.msra.mxu0 %v18789_v8 }
 0x603   :  { %v7933_v25 = vadd.f32 %v21929_v57, %v7517_v47  ;;  %v18748_v57 = vld [vmem:[#allocation2 + $0x48] sm:$0xff] }
 0x604   :  { %v8289_v29 = vpop.f32.mrf.mxu3  ;;  %v21976_v62 = vpop.f32.mrf.mxu0 }
 0x605   :  { %v8345_v2 = vadd.f32 %v8289_v29, %v7929_v14  ;;  %v8601_v14 = vsel %vm1965_vm2, %v8598_v56, %v8600_v40  ;;  %v7932_v29 = vadd.f32 %v21920_v61, %v7516_v21  ;;  %v18700_v61 = vld [vmem:[#allocation2 + $0x64] sm:$0xff] }
 0x606   :  { %v21974_v45 = vpop.f32.mrf.mxu2  ;;  %v21978_v63 = vpop.f32.mrf.mxu1  ;;  %v9049_v0 = vrot.slane %v18700_v61, 2 }
 0x607   :  { %8381 = vst [vmem:[#allocation3 + $0xb8] sm:$0xff] %v8345_v2  ;;  %8738 = vmatmul.bf16.gmra.mxu0 %v8599_v28 }
 0x609   :  { %9170 = vmatmul.bf16.gmra.mxu1 %v9046_v10  ;;  %10028 = vmatmul.bf16.gmra.mxu3 %v18746_v33  ;;  %v18679_v10 = vld [vmem:[#allocation2 + $0x8c] sm:$0xff] }
 0x60b   :  { %9632 = vmatmul.bf16.gmra.mxu2 %v9505_v54  ;;  %v18727_v54 = vld [vmem:[#allocation2 + $0x6c] sm:$0xff] }
 0x60c   :  { %v8292_v46 = vpop.f32.mrf.mxu3  ;;  %v21988_v15 = vpop.f32.mrf.mxu0  ;;  %v9508_v53 = vrot.slane %v18727_v54, 3 }
 0x60d   :  { %v8346_v22 = vadd.f32 %v8292_v46, %v7930_v43  ;;  %v8602_v43 = vrot.slane %v18679_v10, 1 }
 0x60e   :  { %v21986_v12 = vpop.f32.mrf.mxu2  ;;  %v21990_v9 = vpop.f32.mrf.mxu1 }
 0x60f   :  { %8382 = vst [vmem:[#allocation3 + $0xc0] sm:$0xff] %v8346_v22  ;;  %v7061_v22 = vadd.f32 %v21819_v17, %v6676_v52  ;;  %v8603_v49 = vsel %vm1965_vm2, %v8600_v40, %v8602_v43  ;;  %v9509_v17 = vsel %vm2881_vm3, %v9506_v55, %v9508_v53  ;;  %v18701_v55 = vld [vmem:[#allocation2 + $0x6c] sm:$0xff] }
 0x614   :  { %v8294_v1 = vpop.f32.mrf.mxu3  ;;  %v21997_v48 = vpop.f32.mrf.mxu0 }
 0x615   :  { %v8347_v37 = vadd.f32 %v8294_v1, %v7931_v59  ;;  %v7518_v59 = vadd.f32 %v21954_v31, %v7061_v22  ;;  %v9050_v1 = vsel %vm2423_vm1, %v9047_v18, %v9049_v0  ;;  %v6679_v22 = vld [vmem:[#allocation3 + $0xf8] sm:$0xff] }
 0x616   :  { %v21995_v6 = vpop.f32.mrf.mxu2  ;;  %v21999_v30 = vpop.f32.mrf.mxu1 }
 0x617   :  { %8383 = vst [vmem:[#allocation3 + $0xc8] sm:$0xff] %v8347_v37  ;;  %8743 = vmatmul.bf16.gmra.mxu0 %v8601_v14  ;;  %v7934_v16 = vadd.f32 %v21941_v20, %v7518_v59  ;;  %v6677_v37 = vld [vmem:[#allocation3 + $0xe8] sm:$0xff]  ;;  %v7064_v59 = vadd.f32 %v21868_v19, %v6679_v22 }
 0x618   :  { %v7062_v14 = vadd.f32 %v21832_v38, %v6677_v37  ;;  %v6680_v37 = vld [vmem:[#allocation3 + $0x100] sm:$0xff] }
 0x619   :  { %9175 = vmatmul.bf16.gmra.mxu1 %v9048_v39  ;;  %10033 = vmatmul.bf16.gmra.mxu3 %v18747_v34 }
 0x61a   :  { %v7519_v18 = vadd.f32 %v21966_v3, %v7062_v14 }
 0x61b   :  { %9637 = vmatmul.bf16.gmra.mxu2 %v9507_v4  ;;  %v18680_v4 = vld [vmem:[#allocation2 + $0x94] sm:$0xff] }
 0x61c   :  { %v8297_v2 = vpop.f32.mrf.mxu3  ;;  %v22009_v33 = vpop.f32.mrf.mxu0  ;;  %v7935_v5 = vadd.f32 %v21950_v58, %v7519_v18  ;;  %v8604_v20 = vrot.slane %v18680_v4, 1  ;;  %v18749_v58 = vld [vmem:[#allocation2 + $0x50] sm:$0xff] }
 0x61d   :  { %v8348_v51 = vadd.f32 %v8297_v2, %v7932_v29  ;;  %v18728_v29 = vld [vmem:[#allocation2 + $0x74] sm:$0xff] }
 0x61e   :  { %v22007_v28 = vpop.f32.mrf.mxu2  ;;  %v22011_v56 = vpop.f32.mrf.mxu1  ;;  %v6678_v2 = vld [vmem:[#allocation3 + $0xf0] sm:$0xff]  ;;  %v9510_v61 = vrot.slane %v18728_v29, 3 }
 0x61f   :  { %8384 = vst [vmem:[#allocation3 + $0xd0] sm:$0xff] %v8348_v51  ;;  %v9051_v51 = vrot.slane %v18701_v55, 2  ;;  %v7063_v38 = vadd.f32 %v21849_v60, %v6678_v2 }
 0x620   :  { %v9511_v60 = vsel %vm2881_vm3, %v9508_v53, %v9510_v61  ;;  %v18821_v53 = vld [vmem:[%s23323_s3 + $0x578] sm:$0xff] }
 0x621   :  { %v7520_v3 = vadd.f32 %v21978_v63, %v7063_v38  ;;  %v9052_v52 = vsel %vm2423_vm1, %v9049_v0, %v9051_v51  ;;  %v7521_v0 = vadd.f32 %v21990_v9, %v7064_v59  ;;  %10883 = vmatpush.bf16.msrb.mxu1 %v18821_v53 }
 0x623   :  { %v7937_v19 = vadd.f32 %v21974_v45, %v7521_v0  ;;  %v18788_v45 = vld [vmem:[%s23323_s3 + $0x500] sm:$0xff] }
 0x624   :  { %v8299_v46 = vpop.f32.mrf.mxu3  ;;  %v22021_v32 = vpop.f32.mrf.mxu0  ;;  %10433 = vmatpush.bf16.msra.mxu0 %v18788_v45 }
 0x625   :  { %v8349_v27 = vadd.f32 %v8299_v46, %v7933_v25  ;;  %v8605_v25 = vsel %vm1965_vm2, %v8602_v43, %v8604_v20  ;;  %v7936_v46 = vadd.f32 %v21962_v26, %v7520_v3  ;;  %v18681_v43 = vld [vmem:[#allocation2 + $0x9c] sm:$0xff]  ;;  %v18702_v26 = vld [vmem:[#allocation2 + $0x74] sm:$0xff]  ;;  %v6681_v3 = vld [vmem:[#allocation3 + $0x108] sm:$0xff] }
 0x626   :  { %v22019_v7 = vpop.f32.mrf.mxu2  ;;  %v22023_v50 = vpop.f32.mrf.mxu1  ;;  %v9053_v14 = vrot.slane %v18702_v26, 2 }
 0x627   :  { %8385 = vst [vmem:[#allocation3 + $0xd8] sm:$0xff] %v8349_v27  ;;  %8748 = vmatmul.bf16.gmra.mxu0 %v8603_v49 }
 0x629   :  { %9180 = vmatmul.bf16.gmra.mxu1 %v9050_v1  ;;  %10038 = vmatmul.bf16.gmra.mxu3 %v18748_v57 }
 0x62b   :  { %9642 = vmatmul.bf16.gmra.mxu2 %v9509_v17  ;;  %v8606_v17 = vrot.slane %v18681_v43, 1  ;;  %v6682_v43 = vld [vmem:[#allocation3 + $0x110] sm:$0xff] }
 0x62c   :  { %v8302_v21 = vpop.f32.mrf.mxu3  ;;  %v22033_v39 = vpop.f32.mrf.mxu0 }
 0x62d   :  { %v8350_v34 = vadd.f32 %v8302_v21, %v7934_v16  ;;  %v18729_v16 = vld [vmem:[#allocation2 + $0x7c] sm:$0xff]  ;;  %v8607_v55 = vsel %vm1965_vm2, %v8604_v20, %v8606_v17 }
 0x62e   :  { %v22031_v31 = vpop.f32.mrf.mxu2  ;;  %v22035_v40 = vpop.f32.mrf.mxu1  ;;  %v9512_v29 = vrot.slane %v18729_v16, 3  ;;  %v18847_v20 = vld [vmem:[%s23323_s3 + $0x5b8] sm:$0xff] }
 0x62f   :  { %8386 = vst [vmem:[#allocation3 + $0xe0] sm:$0xff] %v8350_v34  ;;  %v7065_v34 = vadd.f32 %v21883_v36, %v6680_v37  ;;  %v9054_v36 = vsel %vm2423_vm1, %v9051_v51, %v9053_v14  ;;  %11340 = vmatpush.bf16.msra.mxu2 %v18847_v20  ;;  %v7066_v51 = vadd.f32 %v21898_v44, %v6681_v3  ;;  %v8394_v3 = vld [vmem:[#allocation3] sm:$0xff] }
 0x630   :  { %v9513_v38 = vsel %vm2881_vm3, %v9510_v61, %v9512_v29  ;;  %v7067_v44 = vadd.f32 %v21907_v35, %v6682_v43  ;;  %v18752_v43 = vld [vmem:[#allocation2 + $0x68] sm:$0xff] }
 0x631   :  { %v7522_v2 = vadd.f32 %v21999_v30, %v7065_v34  ;;  %v18873_v30 = vld [vmem:[%s23323_s3 + $0x5f8] sm:$0xff]  ;;  %v7523_v22 = vadd.f32 %v22011_v56, %v7066_v51  ;;  %v8779_v51 = vadd.f32 %v21931_v41, %v8394_v3  ;;  %v18820_v41 = vld [vmem:[%s23323_s3 + $0x570] sm:$0xff] }
 0x632   :  { %11797 = vmatpush.bf16.msrb.mxu3 %v18873_v30  ;;  %v7524_v34 = vadd.f32 %v22023_v50, %v7067_v44  ;;  %10884 = vmatpush.bf16.msrb.mxu1 %v18820_v41  ;;  %v8397_v41 = vld [vmem:[#allocation3 + $0x18] sm:$0xff] }
 0x634   :  { %v8304_v23 = vpop.f32.mrf.mxu3  ;;  %v22042_v8 = vpop.f32.mrf.mxu0 }
 0x635   :  { %v8351_v47 = vadd.f32 %v8304_v23, %v7935_v5  ;;  %v18750_v23 = vld [vmem:[#allocation2 + $0x58] sm:$0xff] }
 0x636   :  { %v22040_v10 = vpop.f32.mrf.mxu2  ;;  %v22044_v54 = vpop.f32.mrf.mxu1 }
 0x637   :  { %8387 = vst [vmem:[#allocation3 + $0xe8] sm:$0xff] %v8351_v47  ;;  %8753 = vmatmul.bf16.gmra.mxu0 %v8605_v25  ;;  %v7938_v47 = vadd.f32 %v21986_v12, %v7522_v2  ;;  %v18730_v12 = vld [vmem:[#allocation2 + $0x84] sm:$0xff]  ;;  %v6683_v2 = vld [vmem:[#allocation3 + $0x118] sm:$0xff] }
 0x639   :  { %9185 = vmatmul.bf16.gmra.mxu1 %v9052_v52  ;;  %10043 = vmatmul.bf16.gmra.mxu3 %v18749_v58 }
 0x63b   :  { %9647 = vmatmul.bf16.gmra.mxu2 %v9511_v60  ;;  %v18682_v60 = vld [vmem:[#allocation2 + $0xa4] sm:$0xff] }
 0x63c   :  { %v8307_v27 = vpop.f32.mrf.mxu3  ;;  %v22054_v57 = vpop.f32.mrf.mxu0  ;;  %v8608_v59 = vrot.slane %v18682_v60, 1 }
 0x63d   :  { %v8352_v49 = vadd.f32 %v8307_v27, %v7936_v46  ;;  %v18703_v27 = vld [vmem:[#allocation2 + $0x7c] sm:$0xff] }
 0x63e   :  { %v22052_v63 = vpop.f32.mrf.mxu2  ;;  %v22056_v1 = vpop.f32.mrf.mxu1  ;;  %v9055_v53 = vrot.slane %v18703_v27, 2  ;;  %v8609_v37 = vsel %vm1965_vm2, %v8606_v17, %v8608_v59  ;;  %v7068_v17 = vadd.f32 %v21922_v42, %v6683_v2 }
 0x63f   :  { %8388 = vst [vmem:[#allocation3 + $0xf0] sm:$0xff] %v8352_v49  ;;  %v7939_v49 = vadd.f32 %v21995_v6, %v7523_v22 }
 0x640   :  { %v9056_v6 = vsel %vm2423_vm1, %v9053_v14, %v9055_v53  ;;  %v7525_v14 = vadd.f32 %v22035_v40, %v7068_v17 }
 0x644   :  { %v8309_v21 = vpop.f32.mrf.mxu3  ;;  %v22066_v9 = vpop.f32.mrf.mxu0 }
 0x645   :  { %v8353_v18 = vadd.f32 %v8309_v21, %v7937_v19  ;;  %v9514_v21 = vrot.slane %v18730_v12, 3 }
 0x646   :  { %v22064_v4 = vpop.f32.mrf.mxu2  ;;  %v22069_v5 = vpop.f32.mrf.mxu1 }
 0x647   :  { %8389 = vst [vmem:[#allocation3 + $0xf8] sm:$0xff] %v8353_v18  ;;  %8758 = vmatmul.bf16.gmra.mxu0 %v8607_v55  ;;  %v18751_v18 = vld [vmem:[#allocation2 + $0x60] sm:$0xff]  ;;  %v9515_v35 = vsel %vm2881_vm3, %v9512_v29, %v9514_v21  ;;  %v7940_v55 = vadd.f32 %v22007_v28, %v7524_v34  ;;  %v7941_v28 = vadd.f32 %v22019_v7, %v7525_v14  ;;  %v8396_v14 = vld [vmem:[#allocation3 + $0x10] sm:$0xff] }
 0x648   :  { %v22113_v29 = vld [vmem:[#allocation2 + $0x84] sm:$0xff]  ;;  %v9236_v7 = vadd.f32 %v22044_v54, %v8779_v51  ;;  %v18899_v54 = vld [vmem:[%s23323_s3 + $0x638] sm:$0xff] }
 0x649   :  { %9190 = vmatmul.bf16.gmra.mxu1 %v9054_v36  ;;  %10048 = vmatmul.bf16.gmra.mxu3 %v18750_v23 }
 0x64a   :  { %12213 = vmatpush.bf16.msrb.mxu0 %v18899_v54 }
 0x64b   :  { %9652 = vmatmul.bf16.gmra.mxu2 %v9513_v38  ;;  %v18683_v38 = vld [vmem:[#allocation2 + $0xac] sm:$0xff] }
 0x64c   :  { %v8312_v25 = vpop.f32.mrf.mxu3  ;;  %v22087_v52 = vpop.f32.mrf.mxu0  ;;  %v8610_v30 = vrot.slane %v18683_v38, 1 }
 0x64d   :  { %v8354_v61 = vadd.f32 %v8312_v25, %v7938_v47  ;;  %v22115_v47 = vld [vmem:[#allocation2 + $0x8c] sm:$0xff]  ;;  %v9057_v25 = vrot.slane %v22113_v29, 2 }
 0x64e   :  { %v22085_v58 = vpop.f32.mrf.mxu2  ;;  %v22089_v46 = vpop.f32.mrf.mxu1  ;;  %v8611_v40 = vsel %vm1965_vm2, %v8608_v59, %v8610_v30  ;;  %v9516_v27 = vrot.slane %v22115_v47, 3 }
 0x64f   :  { %8390 = vst [vmem:[#allocation3 + $0x100] sm:$0xff] %v8354_v61 }
 0x650   :  { %v9517_v44 = vsel %vm2881_vm3, %v9514_v21, %v9516_v27 }
 0x654   :  { %v8314_v0 = vpop.f32.mrf.mxu3  ;;  %v22096_v19 = vpop.f32.mrf.mxu0 }
 0x655   :  { %v8355_v26 = vadd.f32 %v8314_v0, %v7939_v49  ;;  %v8466_v49 = vld [vmem:[#allocation2 + $0xb4] sm:$0x1]  ;;  %v9058_v0 = vsel %vm2423_vm1, %v9055_v53, %v9057_v25 }
 0x656   :  { %v22094_v16 = vpop.f32.mrf.mxu2  ;;  %v22099_v56 = vpop.f32.mrf.mxu1  ;;  %v8557_v59 = vunpack.c.l.b16 %v8466_v49 }
 0x657   :  { %8391 = vst [vmem:[#allocation3 + $0x108] sm:$0xff] %v8355_v26  ;;  %8763 = vmatmul.bf16.gmra.mxu0 %v8609_v37  ;;  %v9693_v26 = vadd.f32 %v22031_v31, %v9236_v7  ;;  %v8395_v37 = vld [vmem:[#allocation3 + $0x8] sm:$0xff] }
 0x658   :  { %v8576_v21 = vpack.c.b16 %v8557_v59, %v8557_v59  ;;  %v18846_v31 = vld [vmem:[%s23323_s3 + $0x5b0] sm:$0xff] }
 0x659   :  { %9195 = vmatmul.bf16.gmra.mxu1 %v9056_v6  ;;  %10053 = vmatmul.bf16.gmra.mxu3 %v18751_v18  ;;  %v8780_v18 = vadd.f32 %v21943_v13, %v8395_v37  ;;  %v18705_v13 = vld [vmem:[#allocation2 + $0x8c] sm:$0xff] }
 0x65a   :  { %v8612_v17 = vrot.slane %v8576_v21, 1  ;;  %11341 = vmatpush.bf16.msra.mxu2 %v18846_v31  ;;  %v9059_v47 = vrot.slane %v18705_v13, 2  ;;  %v18753_v7 = vld [vmem:[#allocation2 + $0x70] sm:$0xff] }
 0x65b   :  { %9657 = vmatmul.bf16.gmra.mxu2 %v9515_v35  ;;  %v9237_v2 = vadd.f32 %v22056_v1, %v8780_v18  ;;  %v8781_v1 = vadd.f32 %v21952_v11, %v8396_v14  ;;  %v18770_v13 = vld [vmem:[#allocation2 + $0x30] sm:$0xff] }
 0x65c   :  { %v8317_v23 = vpop.f32.mrf.mxu3  ;;  %v22108_v50 = vpop.f32.mrf.mxu0  ;;  %v8613_v51 = vsel %vm1965_vm2, %v8610_v30, %v8612_v17  ;;  %v8782_v30 = vadd.f32 %v21964_v24, %v8397_v41  ;;  %v8399_v14 = vld [vmem:[#allocation3 + $0x28] sm:$0xff]  ;;  %v8400_v41 = vld [vmem:[#allocation3 + $0x30] sm:$0xff] }
 0x65d   :  { %v8356_v45 = vadd.f32 %v8317_v23, %v7940_v55  ;;  %v18872_v23 = vld [vmem:[%s23323_s3 + $0x5f0] sm:$0xff]  ;;  %v9694_v38 = vadd.f32 %v22040_v10, %v9237_v2  ;;  %v9238_v49 = vadd.f32 %v22069_v5, %v8781_v1  ;;  %v9060_v10 = vsel %vm2423_vm1, %v9057_v25, %v9059_v47 }
 0x65e   :  { %v22106_v36 = vpop.f32.mrf.mxu2  ;;  %v22110_v20 = vpop.f32.mrf.mxu1  ;;  %11798 = vmatpush.bf16.msrb.mxu3 %v18872_v23  ;;  %v9239_v25 = vadd.f32 %v22089_v46, %v8782_v30  ;;  %v8785_v30 = vadd.f32 %v21997_v48, %v8400_v41  ;;  %v18844_v48 = vld [vmem:[%s23323_s3 + $0x5a0] sm:$0xff] }
 0x65f   :  { %8392 = vst [vmem:[#allocation3 + $0x110] sm:$0xff] %v8356_v45  ;;  %v18732_v45 = vld [vmem:[#allocation2 + $0x94] sm:$0xff] }
 0x660   :  { %v9696_v37 = vadd.f32 %v22064_v4, %v9239_v25  ;;  %v18754_v4 = vld [vmem:[#allocation2 + $0x78] sm:$0xff] }
 0x664   :  { %v8319_v42 = vpop.f32.mrf.mxu3  ;;  %v22122_v22 = vpop.f32.mrf.mxu0 }
 0x665   :  { %v8357_v61 = vadd.f32 %v8319_v42, %v7941_v28 }
 0x666   :  { %v22120_v60 = vpop.f32.mrf.mxu2  ;;  %v22126_v12 = vpop.f32.mrf.mxu1 }
 0x667   :  { %8393 = vst [vmem:[#allocation3 + $0x118] sm:$0xff] %v8357_v61  ;;  %8768 = vmatmul.bf16.gmra.mxu0 %v8611_v40  ;;  %v9518_v61 = vrot.slane %v18732_v45, 3 }
 0x669   :  { %9200 = vmatmul.bf16.gmra.mxu1 %v9058_v0  ;;  %10058 = vmatmul.bf16.gmra.mxu3 %v18752_v43  ;;  %v9519_v11 = vsel %vm2881_vm3, %v9516_v27, %v9518_v61  ;;  %v9695_v43 = vadd.f32 %v22052_v63, %v9238_v49  ;;  %v18706_v27 = vld [vmem:[#allocation2 + $0x94] sm:$0xff]  ;;  %v8398_v63 = vld [vmem:[#allocation3 + $0x20] sm:$0xff] }
 0x66a   :  { %v8783_v24 = vadd.f32 %v21976_v62, %v8398_v63  ;;  %v18819_v62 = vld [vmem:[%s23323_s3 + $0x568] sm:$0xff]  ;;  %v18771_v63 = vld [vmem:[#allocation2 + $0x38] sm:$0xff] }
 0x66b   :  { %9662 = vmatmul.bf16.gmra.mxu2 %v9517_v44  ;;  %10885 = vmatpush.bf16.msrb.mxu1 %v18819_v62  ;;  %v22195_v49 = vld [vmem:[#allocation2 + $0xa4] sm:$0xff] }
 0x66c   :  { %v10019_v34 = vpop.f32.mrf.mxu3  ;;  %v22141_v35 = vpop.f32.mrf.mxu0  ;;  %v9240_v46 = vadd.f32 %v22099_v56, %v8783_v24  ;;  %v8784_v56 = vadd.f32 %v21988_v15, %v8399_v14  ;;  %v18845_v15 = vld [vmem:[%s23323_s3 + $0x5a8] sm:$0xff]  ;;  %v18755_v24 = vld [vmem:[#allocation2 + $0x80] sm:$0xff]  ;;  %v18842_v14 = vld [vmem:[%s23323_s3 + $0x590] sm:$0xff] }
 0x66d   :  { %v10109_v53 = vadd.f32 %v10019_v34, %v9693_v26  ;;  %v18733_v26 = vld [vmem:[#allocation2 + $0x9c] sm:$0xff]  ;;  %11342 = vmatpush.bf16.msra.mxu2 %v18845_v15  ;;  %v22233_v62 = vld [vmem:[#allocation2 + $0xa4] sm:$0xff] }
 0x66e   :  { %v22139_v6 = vpop.f32.mrf.mxu2  ;;  %v22143_v55 = vpop.f32.mrf.mxu1  ;;  %v9520_v34 = vrot.slane %v18733_v26, 3 }
 0x66f   :  { %10145 = vst [vmem:[#allocation3] sm:$0xff] %v10109_v53  ;;  %v9061_v53 = vrot.slane %v18706_v27, 2 }
 0x670   :  { %v9521_v17 = vsel %vm2881_vm3, %v9518_v61, %v9520_v34  ;;  %v18707_v61 = vld [vmem:[#allocation2 + $0x9c] sm:$0xff] }
 0x671   :  { %v9062_v45 = vsel %vm2423_vm1, %v9059_v47, %v9061_v53  ;;  %11343 = vmatpush.bf16.msra.mxu2 %v18844_v48 }
 0x674   :  { %v10021_v29 = vpop.f32.mrf.mxu3  ;;  %v22156_v42 = vpop.f32.mrf.mxu0 }
 0x675   :  { %v10110_v3 = vadd.f32 %v10021_v29, %v9694_v38  ;;  %v9697_v38 = vadd.f32 %v22085_v58, %v9240_v46  ;;  %v18898_v58 = vld [vmem:[%s23323_s3 + $0x630] sm:$0xff] }
 0x676   :  { %v22154_v28 = vpop.f32.mrf.mxu2  ;;  %v22159_v40 = vpop.f32.mrf.mxu1  ;;  %12214 = vmatpush.bf16.msrb.mxu0 %v18898_v58 }
 0x677   :  { %10146 = vst [vmem:[#allocation3 + $0x8] sm:$0xff] %v10110_v3  ;;  %8773 = vmatmul.bf16.gmra.mxu0 %v8613_v51 }
 0x679   :  { %9205 = vmatmul.bf16.gmra.mxu1 %v9060_v10  ;;  %10063 = vmatmul.bf16.gmra.mxu3 %v18753_v7  ;;  %v9241_v7 = vadd.f32 %v22110_v20, %v8784_v56  ;;  %v18871_v10 = vld [vmem:[%s23323_s3 + $0x5e8] sm:$0xff]  ;;  %v9522_v20 = vrot.slane %v22195_v49, 3 }
 0x67a   :  { %11799 = vmatpush.bf16.msrb.mxu3 %v18871_v10 }
 0x67b   :  { %9667 = vmatmul.bf16.gmra.mxu2 %v9519_v11  ;;  %v9063_v11 = vrot.slane %v18707_v61, 2 }
 0x67c   :  { %v10024_v0 = vpop.f32.mrf.mxu3  ;;  %v22168_v5 = vpop.f32.mrf.mxu0 }
 0x67d   :  { %v10111_v59 = vadd.f32 %v10024_v0, %v9695_v43  ;;  %v9698_v43 = vadd.f32 %v22094_v16, %v9241_v7  ;;  %v9523_v16 = vsel %vm2881_vm3, %v9520_v34, %v9522_v20 }
 0x67e   :  { %v22166_v44 = vpop.f32.mrf.mxu2  ;;  %v22170_v54 = vpop.f32.mrf.mxu1 }
 0x67f   :  { %10147 = vst [vmem:[#allocation3 + $0x10] sm:$0xff] %v10111_v59 }
 0x684   :  { %v10026_v18 = vpop.f32.mrf.mxu3  ;;  %v22177_v31 = vpop.f32.mrf.mxu0 }
 0x685   :  { %v10112_v2 = vadd.f32 %v10026_v18, %v9696_v37  ;;  %v9064_v37 = vsel %vm2423_vm1, %v9061_v53, %v9063_v11  ;;  %v9242_v18 = vadd.f32 %v22126_v12, %v8785_v30  ;;  %v18843_v53 = vld [vmem:[%s23323_s3 + $0x598] sm:$0xff]  ;;  %v18756_v30 = vld [vmem:[#allocation2 + $0x88] sm:$0xff] }
 0x686   :  { %v22175_v21 = vpop.f32.mrf.mxu2  ;;  %v22179_v23 = vpop.f32.mrf.mxu1  ;;  %v8401_v12 = vld [vmem:[#allocation3 + $0x38] sm:$0xff]  ;;  %11344 = vmatpush.bf16.msra.mxu2 %v18843_v53 }
 0x687   :  { %10148 = vst [vmem:[#allocation3 + $0x18] sm:$0xff] %v10112_v2  ;;  %10434 = vmatmul.bf16.vlgmr.msra.gmra.mxu0 %v18770_v13  ;;  %v9699_v2 = vadd.f32 %v22106_v36, %v9242_v18  ;;  %v8786_v34 = vadd.f32 %v22009_v33, %v8401_v12  ;;  %v9065_v33 = vrot.slane %v22233_v62, 2  ;;  %v22276_v12 = vld [vmem:[#allocation2 + $0xac] sm:$0xff] }
 0x688   :  { %v18815_v62 = vld [vmem:[%s23323_s3 + $0x548] sm:$0xff] }
 0x689   :  { %9210 = vmatmul.bf16.gmra.mxu1 %v9062_v45  ;;  %10068 = vmatmul.bf16.gmra.mxu3 %v18754_v4  ;;  %v9243_v36 = vadd.f32 %v22143_v55, %v8786_v34  ;;  %v8402_v55 = vld [vmem:[#allocation3 + $0x40] sm:$0xff]  ;;  %v18816_v34 = vld [vmem:[%s23323_s3 + $0x550] sm:$0xff] }
 0x68a   :  { %11345 = vmatpush.bf16.msra.mxu2 %v18842_v14  ;;  %v8787_v49 = vadd.f32 %v22021_v32, %v8402_v55  ;;  %v18818_v32 = vld [vmem:[%s23323_s3 + $0x560] sm:$0xff]  ;;  %v8404_v14 = vld [vmem:[#allocation3 + $0x50] sm:$0xff] }
 0x68b   :  { %9672 = vmatmul.bf16.gmra.mxu2 %v9521_v17  ;;  %10886 = vmatpush.bf16.msrb.mxu1 %v18818_v32  ;;  %v18870_v32 = vld [vmem:[%s23323_s3 + $0x5e0] sm:$0xff] }
 0x68c   :  { %v10029_v29 = vpop.f32.mrf.mxu3  ;;  %v22191_v51 = vpop.f32.mrf.mxu0  ;;  %v9244_v41 = vadd.f32 %v22159_v40, %v8787_v49  ;;  %v18817_v40 = vld [vmem:[%s23323_s3 + $0x558] sm:$0xff]  ;;  %11800 = vmatpush.bf16.msrb.mxu3 %v18870_v32 }
 0x68d   :  { %v10113_v3 = vadd.f32 %v10029_v29, %v9697_v38  ;;  %v22236_v38 = vld [vmem:[#allocation2 + $0xac] sm:$0xff]  ;;  %v9700_v29 = vadd.f32 %v22120_v60, %v9243_v36  ;;  %v9066_v60 = vsel %vm2423_vm1, %v9063_v11, %v9065_v33  ;;  %v9380_v11 = vld [vmem:[#allocation2 + $0xb4] sm:$0x7] }
 0x68e   :  { %v22189_v1 = vpop.f32.mrf.mxu2  ;;  %v22193_v47 = vpop.f32.mrf.mxu1  ;;  %v9524_v56 = vrot.slane %v22236_v38, 3  ;;  %v8405_v38 = vld [vmem:[#allocation3 + $0x58] sm:$0xff] }
 0x68f   :  { %10149 = vst [vmem:[#allocation3 + $0x20] sm:$0xff] %v10113_v3  ;;  %v18841_v3 = vld [vmem:[%s23323_s3 + $0x588] sm:$0xff]  ;;  %10887 = vmatpush.bf16.msrb.mxu1 %v18817_v40 }
 0x690   :  { %11346 = vmatpush.bf16.msra.mxu2 %v18841_v3  ;;  %v8789_v3 = vadd.f32 %v22042_v8, %v8404_v14  ;;  %v8923_v8 = vld [vmem:[#allocation2 + $0xb4] sm:$0x3]  ;;  %v18758_v14 = vld [vmem:[#allocation2 + $0x98] sm:$0xff] }
 0x693   :  { %10888 = vmatpush.bf16.msrb.mxu1 %v18816_v34  ;;  %v8406_v34 = vld [vmem:[#allocation3 + $0x60] sm:$0xff] }
 0x694   :  { %v10031_v0 = vpop.f32.mrf.mxu3  ;;  %v22212_v26 = vpop.f32.mrf.mxu0 }
 0x695   :  { %v10114_v25 = vadd.f32 %v10031_v0, %v9698_v43  ;;  %v18772_v43 = vld [vmem:[#allocation2 + $0x40] sm:$0xff]  ;;  %v9525_v0 = vsel %vm2881_vm3, %v9522_v20, %v9524_v56  ;;  %v9701_v20 = vadd.f32 %v22139_v6, %v9244_v41  ;;  %v18773_v41 = vld [vmem:[#allocation2 + $0x48] sm:$0xff] }
 0x696   :  { %v22210_v59 = vpop.f32.mrf.mxu2  ;;  %v22214_v27 = vpop.f32.mrf.mxu1 }
 0x697   :  { %10150 = vst [vmem:[#allocation3 + $0x28] sm:$0xff] %v10114_v25  ;;  %10439 = vmatmul.bf16.gmra.mxu0 %v18771_v63  ;;  %v18840_v25 = vld [vmem:[%s23323_s3 + $0x580] sm:$0xff]  ;;  %v8403_v63 = vld [vmem:[#allocation3 + $0x48] sm:$0xff]  ;;  %10889 = vmatpush.bf16.msrb.mxu1 %v18815_v62 }
 0x698   :  { %11347 = vmatpush.bf16.msra.mxu2 %v18840_v25  ;;  %v8790_v25 = vadd.f32 %v22054_v57, %v8405_v38  ;;  %v18797_v38 = vld [vmem:[#allocation2 + $0x38] sm:$0xff] }
 0x699   :  { %9215 = vmatmul.bf16.gmra.mxu1 %v9064_v37  ;;  %10073 = vmatmul.bf16.gmra.mxu3 %v18755_v24  ;;  %v9471_v37 = vunpack.c.l.b16 %v9380_v11 }
 0x69b   :  { %9677 = vmatmul.bf16.gmra.mxu2 %v9523_v16  ;;  %v8788_v16 = vadd.f32 %v22033_v39, %v8403_v63  ;;  %v9490_v6 = vpack.c.b16 %v9471_v37, %v9471_v37  ;;  %v18897_v39 = vld [vmem:[%s23323_s3 + $0x628] sm:$0xff] }
 0x69c   :  { %v10034_v13 = vpop.f32.mrf.mxu3  ;;  %v22229_v4 = vpop.f32.mrf.mxu0  ;;  %12215 = vmatpush.bf16.msrb.mxu0 %v18897_v39  ;;  %v8791_v39 = vadd.f32 %v22066_v9, %v8406_v34 }
 0x69d   :  { %v10115_v17 = vadd.f32 %v10034_v13, %v9699_v2  ;;  %v9245_v13 = vadd.f32 %v22170_v54, %v8788_v16  ;;  %v9526_v36 = vrot.slane %v9490_v6, 3  ;;  %v17050_v16 = vld [vmem:[#allocation2 + $0x30] sm:$0xc] }
 0x69e   :  { %v22227_v46 = vpop.f32.mrf.mxu2  ;;  %v22231_v45 = vpop.f32.mrf.mxu1 }
 0x69f   :  { %10151 = vst [vmem:[#allocation3 + $0x30] sm:$0xff] %v10115_v17  ;;  %v9067_v17 = vrot.slane %v22276_v12, 2  ;;  %v9702_v54 = vadd.f32 %v22154_v28, %v9245_v13  ;;  %v9527_v28 = vsel %vm2881_vm3, %v9524_v56, %v9526_v36  ;;  %v18823_v12 = vld [vmem:[#allocation2 + $0x38] sm:$0xff] }
 0x6a4   :  { %v10036_v61 = vpop.f32.mrf.mxu3  ;;  %v22250_v15 = vpop.f32.mrf.mxu0 }
 0x6a5   :  { %v10116_v58 = vadd.f32 %v10036_v61, %v9700_v29 }
 0x6a6   :  { %v22248_v7 = vpop.f32.mrf.mxu2  ;;  %v22252_v10 = vpop.f32.mrf.mxu1 }
 0x6a7   :  { %10152 = vst [vmem:[#allocation3 + $0x38] sm:$0xff] %v10116_v58  ;;  %10444 = vmatmul.bf16.gmra.mxu0 %v18772_v43  ;;  %v18757_v58 = vld [vmem:[#allocation2 + $0x90] sm:$0xff]  ;;  %v9068_v43 = vsel %vm2423_vm1, %v9065_v33, %v9067_v17  ;;  %v9014_v33 = vunpack.c.l.b16 %v8923_v8 }
 0x6a9   :  { %9220 = vmatmul.bf16.gmra.mxu1 %v9066_v60  ;;  %10078 = vmatmul.bf16.gmra.mxu3 %v18756_v30  ;;  %v18814_v30 = vld [vmem:[%s23323_s3 + $0x540] sm:$0xff]  ;;  %v9033_v63 = vpack.c.b16 %v9014_v33, %v9014_v33  ;;  %v16930_v33 = vld [vmem:[#allocation2 + $0x30] sm:$0xe] }
 0x6aa   :  { %10890 = vmatpush.bf16.msrb.mxu1 %v18814_v30 }
 0x6ab   :  { %9682 = vmatmul.bf16.gmra.mxu2 %v9525_v0  ;;  %v9246_v0 = vadd.f32 %v22179_v23, %v8789_v3 }
 0x6ac   :  { %v10039_v18 = vpop.f32.mrf.mxu3  ;;  %v22272_v2 = vpop.f32.mrf.mxu0 }
 0x6ad   :  { %v10117_v48 = vadd.f32 %v10039_v18, %v9701_v20  ;;  %v9703_v23 = vadd.f32 %v22166_v44, %v9246_v0  ;;  %v9247_v18 = vadd.f32 %v22193_v47, %v8790_v25  ;;  %v9069_v44 = vrot.slane %v9033_v63, 2 }
 0x6ae   :  { %v22270_v24 = vpop.f32.mrf.mxu2  ;;  %v22274_v53 = vpop.f32.mrf.mxu1  ;;  %v10781_v63 = vrot.slane %v18797_v38, 1 }
 0x6af   :  { %10153 = vst [vmem:[#allocation3 + $0x40] sm:$0xff] %v10117_v48  ;;  %v18822_v48 = vld [vmem:[#allocation2 + $0x30] sm:$0xf0]  ;;  %v9704_v13 = vadd.f32 %v22175_v21, %v9247_v18  ;;  %v9070_v3 = vsel %vm2423_vm1, %v9067_v17, %v9069_v44 }
 0x6b0   :  { %v17051_v6 = vor.u32 %v18822_v48, %v17050_v16 }
 0x6b2   :  { %v11237_v21 = vrot.slane %v17051_v6, 2  ;;  %v18775_v6 = vld [vmem:[#allocation2 + $0x58] sm:$0xff] }
 0x6b4   :  { %v10041_v29 = vpop.f32.mrf.mxu3  ;;  %v22293_v49 = vpop.f32.mrf.mxu0 }
 0x6b5   :  { %v10118_v61 = vadd.f32 %v10041_v29, %v9702_v54  ;;  %v11238_v29 = vrot.slane %v18823_v12, 2 }
 0x6b6   :  { %v22291_v55 = vpop.f32.mrf.mxu2  ;;  %v22295_v60 = vpop.f32.mrf.mxu1 }
 0x6b7   :  { %10154 = vst [vmem:[#allocation3 + $0x48] sm:$0xff] %v10118_v61  ;;  %10449 = vmatmul.bf16.gmra.mxu0 %v18773_v41  ;;  %v18774_v61 = vld [vmem:[#allocation2 + $0x50] sm:$0xff]  ;;  %v11239_v9 = vsel %vm2423_vm1, %v11237_v21, %v11238_v29 }
 0x6b8   :  { %v8407_v41 = vld [vmem:[#allocation3 + $0x68] sm:$0xff] }
 0x6b9   :  { %9225 = vmatmul.bf16.gmra.mxu1 %v9068_v43  ;;  %10083 = vmatmul.bf16.gmra.mxu3 %v18757_v58  ;;  %v9248_v58 = vadd.f32 %v22214_v27, %v8791_v39 }
 0x6bb   :  { %9687 = vmatmul.bf16.gmra.mxu2 %v9527_v28  ;;  %v9705_v43 = vadd.f32 %v22189_v1, %v9248_v58  ;;  %v8792_v28 = vadd.f32 %v22087_v52, %v8407_v41  ;;  %v18868_v41 = vld [vmem:[%s23323_s3 + $0x5d0] sm:$0xff] }
 0x6bc   :  { %v10044_v56 = vpop.f32.mrf.mxu3  ;;  %v22312_v20 = vpop.f32.mrf.mxu0 }
 0x6bd   :  { %v10119_v40 = vadd.f32 %v10044_v56, %v9703_v23  ;;  %v9249_v32 = vadd.f32 %v22231_v45, %v8792_v28  ;;  %v18796_v23 = vld [vmem:[#allocation2 + $0x30] sm:$0xf0]  ;;  %v22337_v56 = vld [vmem:[#allocation2 + $0x40] sm:$0xff] }
 0x6be   :  { %v22310_v11 = vpop.f32.mrf.mxu2  ;;  %v22314_v37 = vpop.f32.mrf.mxu1  ;;  %v16931_v1 = vor.u32 %v18796_v23, %v16930_v33  ;;  %v18759_v45 = vld [vmem:[#allocation2 + $0xa0] sm:$0xff]  ;;  %v11240_v44 = vrot.slane %v22337_v56, 2 }
 0x6bf   :  { %10155 = vst [vmem:[#allocation3 + $0x50] sm:$0xff] %v10119_v40  ;;  %v9706_v25 = vadd.f32 %v22210_v59, %v9249_v32  ;;  %v8408_v40 = vld [vmem:[#allocation3 + $0x70] sm:$0xff]  ;;  %v18896_v59 = vld [vmem:[%s23323_s3 + $0x620] sm:$0xff] }
 0x6c0   :  { %v8793_v18 = vadd.f32 %v22096_v19, %v8408_v40  ;;  %v10780_v34 = vrot.slane %v16931_v1, 1  ;;  %v11241_v39 = vsel %vm2423_vm1, %v11238_v29, %v11240_v44  ;;  %12216 = vmatpush.bf16.msrb.mxu0 %v18896_v59  ;;  %v18760_v1 = vld [vmem:[#allocation2 + $0xa8] sm:$0xff] }
 0x6c2   :  { %v10782_v19 = vsel %vm1965_vm2, %v10780_v34, %v10781_v63 }
 0x6c4   :  { %v10046_v57 = vpop.f32.mrf.mxu3  ;;  %v22321_v36 = vpop.f32.mrf.mxu0 }
 0x6c5   :  { %v10120_v54 = vadd.f32 %v10046_v57, %v9704_v13  ;;  %v9250_v57 = vadd.f32 %v22252_v10, %v8793_v18 }
 0x6c6   :  { %v22319_v62 = vpop.f32.mrf.mxu2  ;;  %v22323_v47 = vpop.f32.mrf.mxu1 }
 0x6c7   :  { %10156 = vst [vmem:[#allocation3 + $0x58] sm:$0xff] %v10120_v54  ;;  %10454 = vmatmul.bf16.gmra.mxu0 %v18774_v61  ;;  %v18869_v54 = vld [vmem:[%s23323_s3 + $0x5d8] sm:$0xff]  ;;  %v9707_v10 = vadd.f32 %v22227_v46, %v9250_v57  ;;  %v18798_v46 = vld [vmem:[#allocation2 + $0x40] sm:$0xff] }
 0x6c8   :  { %11801 = vmatpush.bf16.msrb.mxu3 %v18869_v54  ;;  %v10783_v33 = vrot.slane %v18798_v46, 1  ;;  %v18799_v54 = vld [vmem:[#allocation2 + $0x48] sm:$0xff] }
 0x6c9   :  { %9230 = vmatmul.bf16.gmra.mxu1 %v9070_v3  ;;  %10088 = vmatmul.bf16.gmra.mxu3 %v18758_v14  ;;  %v8409_v14 = vld [vmem:[#allocation3 + $0x78] sm:$0xff] }
 0x6ca   :  { %v8794_v61 = vadd.f32 %v22108_v50, %v8409_v14  ;;  %v18867_v50 = vld [vmem:[%s23323_s3 + $0x5c8] sm:$0xff]  ;;  %v8412_v14 = vld [vmem:[#allocation3 + $0x90] sm:$0xff] }
 0x6cb   :  { %11348 = vmatmul.bf16.vlgmr.msra.gmra.mxu2 %v11239_v9 }
 0x6cc   :  { %v10049_v0 = vpop.f32.mrf.mxu3  ;;  %v22332_v30 = vpop.f32.mrf.mxu0  ;;  %v9251_v29 = vadd.f32 %v22274_v53, %v8794_v61  ;;  %11802 = vmatpush.bf16.msrb.mxu3 %v18868_v41  ;;  %v8797_v61 = vadd.f32 %v22156_v42, %v8412_v14  ;;  %v18761_v41 = vld [vmem:[#allocation2 + $0xb0] sm:$0xff] }
 0x6cd   :  { %v10121_v17 = vadd.f32 %v10049_v0, %v9705_v43  ;;  %v18825_v0 = vld [vmem:[#allocation2 + $0x48] sm:$0xff] }
 0x6ce   :  { %v22330_v8 = vpop.f32.mrf.mxu2  ;;  %v22334_v27 = vpop.f32.mrf.mxu1  ;;  %v9708_v28 = vadd.f32 %v22248_v7, %v9251_v29  ;;  %v18866_v7 = vld [vmem:[%s23323_s3 + $0x5c0] sm:$0xff] }
 0x6cf   :  { %10157 = vst [vmem:[#allocation3 + $0x60] sm:$0xff] %v10121_v17  ;;  %v8410_v17 = vld [vmem:[#allocation3 + $0x80] sm:$0xff] }
 0x6d0   :  { %v8795_v23 = vadd.f32 %v22122_v22, %v8410_v17  ;;  %11803 = vmatpush.bf16.msrb.mxu3 %v18867_v50  ;;  %v10784_v22 = vsel %vm1965_vm2, %v10781_v63, %v10783_v33  ;;  %v9254_v50 = vadd.f32 %v22323_v47, %v8797_v61 }
 0x6d2   :  { %v9252_v18 = vadd.f32 %v22295_v60, %v8795_v23  ;;  %v9711_v17 = vadd.f32 %v22310_v11, %v9254_v50  ;;  %v18827_v11 = vld [vmem:[#allocation2 + $0x58] sm:$0xff]  ;;  %v8415_v50 = vld [vmem:[#allocation3 + $0xa8] sm:$0xff] }
 0x6d4   :  { %v10051_v52 = vpop.f32.mrf.mxu3  ;;  %v22343_v12 = vpop.f32.mrf.mxu0  ;;  %11804 = vmatpush.bf16.msrb.mxu3 %v18866_v7  ;;  %v18848_v7 = vld [vmem:[#allocation2 + $0x30] sm:$0xf0] }
 0x6d5   :  { %v10122_v48 = vadd.f32 %v10051_v52, %v9706_v25  ;;  %v11242_v25 = vrot.slane %v18825_v0, 2  ;;  %v18776_v52 = vld [vmem:[#allocation2 + $0x60] sm:$0xff] }
 0x6d6   :  { %v22341_v16 = vpop.f32.mrf.mxu2  ;;  %v22346_v13 = vpop.f32.mrf.mxu1 }
 0x6d7   :  { %10158 = vst [vmem:[#allocation3 + $0x68] sm:$0xff] %v10122_v48  ;;  %10459 = vmatmul.bf16.gmra.mxu0 %v18775_v6  ;;  %v11243_v48 = vsel %vm2423_vm1, %v11240_v44, %v11242_v25  ;;  %v8411_v6 = vld [vmem:[#allocation3 + $0x88] sm:$0xff] }
 0x6d8   :  { %v8796_v60 = vadd.f32 %v22141_v35, %v8411_v6  ;;  %v18826_v44 = vld [vmem:[#allocation2 + $0x50] sm:$0xff] }
 0x6d9   :  { %10093 = vmatmul.bf16.gmra.mxu3 %v18759_v45  ;;  %10891 = vmatmul.bf16.vlgmr.msrb.gmra.mxu1 %v10782_v19  ;;  %v9709_v45 = vadd.f32 %v22270_v24, %v9252_v18  ;;  %v11244_v46 = vrot.slane %v18826_v44, 2  ;;  %v17170_v18 = vld [vmem:[#allocation2 + $0x30] sm:$0x8] }
 0x6da   :  { %v9253_v63 = vadd.f32 %v22314_v37, %v8796_v60  ;;  %v18777_v37 = vld [vmem:[#allocation2 + $0x68] sm:$0xff] }
 0x6db   :  { %11353 = vmatmul.bf16.gmra.mxu2 %v11241_v39  ;;  %v11245_v42 = vsel %vm2423_vm1, %v11242_v25, %v11244_v46 }
 0x6dc   :  { %v10054_v3 = vpop.f32.mrf.mxu3  ;;  %v22361_v9 = vpop.f32.mrf.mxu0 }
 0x6dd   :  { %v10123_v21 = vadd.f32 %v10054_v3, %v9707_v10  ;;  %v9710_v10 = vadd.f32 %v22291_v55, %v9253_v63  ;;  %v10785_v3 = vrot.slane %v18799_v54, 1 }
 0x6de   :  { %v22359_v58 = vpop.f32.mrf.mxu2  ;;  %v22363_v43 = vpop.f32.mrf.mxu1 }
 0x6df   :  { %10159 = vst [vmem:[#allocation3 + $0x70] sm:$0xff] %v10123_v21  ;;  %v10786_v55 = vsel %vm1965_vm2, %v10783_v33, %v10785_v3 }
 0x6e4   :  { %v10056_v32 = vpop.f32.mrf.mxu3  ;;  %v22376_v56 = vpop.f32.mrf.mxu0 }
 0x6e5   :  { %v10124_v38 = vadd.f32 %v10056_v32, %v9708_v28  ;;  %v18895_v28 = vld [vmem:[%s23323_s3 + $0x618] sm:$0xff] }
 0x6e6   :  { %v22374_v53 = vpop.f32.mrf.mxu2  ;;  %v22378_v40 = vpop.f32.mrf.mxu1  ;;  %v8413_v32 = vld [vmem:[#allocation3 + $0x98] sm:$0xff]  ;;  %12217 = vmatpush.bf16.msrb.mxu0 %v18895_v28 }
 0x6e7   :  { %10160 = vst [vmem:[#allocation3 + $0x78] sm:$0xff] %v10124_v38  ;;  %10464 = vmatmul.bf16.gmra.mxu0 %v18776_v52  ;;  %v8798_v47 = vadd.f32 %v22168_v5, %v8413_v32 }
 0x6e9   :  { %10098 = vmatmul.bf16.gmra.mxu3 %v18760_v1  ;;  %10896 = vmatmul.bf16.gmra.mxu1 %v10784_v22  ;;  %v9255_v25 = vadd.f32 %v22334_v27, %v8798_v47  ;;  %v18800_v22 = vld [vmem:[#allocation2 + $0x50] sm:$0xff]  ;;  %v11246_v27 = vrot.slane %v18827_v11, 2  ;;  %v18828_v47 = vld [vmem:[#allocation2 + $0x60] sm:$0xff] }
 0x6ea   :  { %v10787_v60 = vrot.slane %v18800_v22, 1 }
 0x6eb   :  { %11358 = vmatmul.bf16.gmra.mxu2 %v11243_v48  ;;  %v18849_v48 = vld [vmem:[#allocation2 + $0x38] sm:$0xff]  ;;  %v9712_v6 = vadd.f32 %v22319_v62, %v9255_v25 }
 0x6ec   :  { %v10059_v34 = vpop.f32.mrf.mxu3  ;;  %v22390_v19 = vpop.f32.mrf.mxu0  ;;  %v10788_v62 = vsel %vm1965_vm2, %v10785_v3, %v10787_v60 }
 0x6ed   :  { %v10125_v59 = vadd.f32 %v10059_v34, %v9709_v45  ;;  %v17171_v45 = vor.u32 %v18848_v7, %v17170_v18  ;;  %v8414_v34 = vld [vmem:[#allocation3 + $0xa0] sm:$0xff] }
 0x6ee   :  { %v22388_v57 = vpop.f32.mrf.mxu2  ;;  %v22392_v39 = vpop.f32.mrf.mxu1  ;;  %v8799_v63 = vadd.f32 %v22177_v31, %v8414_v34  ;;  %v11247_v31 = vsel %vm2423_vm1, %v11244_v46, %v11246_v27  ;;  %v18850_v46 = vld [vmem:[#allocation2 + $0x40] sm:$0xff] }
 0x6ef   :  { %10161 = vst [vmem:[#allocation3 + $0x80] sm:$0xff] %v10125_v59  ;;  %v11695_v59 = vrot.slane %v18849_v48, 3  ;;  %v11694_v61 = vrot.slane %v17171_v45, 3  ;;  %v11697_v7 = vrot.slane %v18850_v46, 3  ;;  %v11248_v45 = vrot.slane %v18828_v47, 2 }
 0x6f4   :  { %v10061_v24 = vpop.f32.mrf.mxu3  ;;  %v22399_v29 = vpop.f32.mrf.mxu0 }
 0x6f5   :  { %v10126_v21 = vadd.f32 %v10061_v24, %v9710_v10  ;;  %v18778_v24 = vld [vmem:[#allocation2 + $0x70] sm:$0xff] }
 0x6f6   :  { %v22397_v35 = vpop.f32.mrf.mxu2  ;;  %v22401_v0 = vpop.f32.mrf.mxu1 }
 0x6f7   :  { %10162 = vst [vmem:[#allocation3 + $0x88] sm:$0xff] %v10126_v21  ;;  %10469 = vmatmul.bf16.gmra.mxu0 %v18777_v37  ;;  %v9256_v21 = vadd.f32 %v22346_v13, %v8799_v63 }
 0x6f9   :  { %10103 = vmatmul.bf16.gmra.mxu3 %v18761_v41  ;;  %10901 = vmatmul.bf16.gmra.mxu1 %v10786_v55  ;;  %v11696_v41 = vsel %vm2881_vm3, %v11694_v61, %v11695_v59  ;;  %v9713_v37 = vadd.f32 %v22330_v8, %v9256_v21  ;;  %v8416_v8 = vld [vmem:[#allocation3 + $0xb0] sm:$0xff] }
 0x6fb   :  { %11363 = vmatmul.bf16.gmra.mxu2 %v11245_v42  ;;  %v8800_v42 = vadd.f32 %v22191_v51, %v8415_v50  ;;  %v8801_v51 = vadd.f32 %v22212_v26, %v8416_v8  ;;  %v11249_v26 = vsel %vm2423_vm1, %v11246_v27, %v11248_v45  ;;  %v18802_v27 = vld [vmem:[#allocation2 + $0x60] sm:$0xff] }
 0x6fc   :  { %v10064_v23 = vpop.f32.mrf.mxu3  ;;  %v22413_v33 = vpop.f32.mrf.mxu0 }
 0x6fd   :  { %v10127_v1 = vadd.f32 %v10064_v23, %v9711_v17  ;;  %v9257_v3 = vadd.f32 %v22363_v43, %v8800_v42  ;;  %v18801_v23 = vld [vmem:[#allocation2 + $0x58] sm:$0xff]  ;;  %v9258_v34 = vadd.f32 %v22378_v40, %v8801_v51 }
 0x6fe   :  { %v22411_v38 = vpop.f32.mrf.mxu2  ;;  %v22415_v52 = vpop.f32.mrf.mxu1  ;;  %v10789_v18 = vrot.slane %v18801_v23, 1  ;;  %v18779_v43 = vld [vmem:[#allocation2 + $0x78] sm:$0xff] }
 0x6ff   :  { %10163 = vst [vmem:[#allocation3 + $0x90] sm:$0xff] %v10127_v1  ;;  %v9714_v1 = vadd.f32 %v22341_v16, %v9257_v3  ;;  %v9715_v63 = vadd.f32 %v22359_v58, %v9258_v34  ;;  %v18851_v58 = vld [vmem:[#allocation2 + $0x48] sm:$0xff] }
 0x700   :  { %v10790_v16 = vsel %vm1965_vm2, %v10787_v60, %v10789_v18  ;;  %v11699_v42 = vrot.slane %v18851_v58, 3 }
 0x704   :  { %v10066_v5 = vpop.f32.mrf.mxu3  ;;  %v22422_v10 = vpop.f32.mrf.mxu0 }
 0x705   :  { %v10128_v44 = vadd.f32 %v10066_v5, %v9712_v6  ;;  %v11698_v5 = vsel %vm2881_vm3, %v11695_v59, %v11697_v7  ;;  %v18894_v59 = vld [vmem:[%s23323_s3 + $0x610] sm:$0xff] }
 0x706   :  { %v22420_v54 = vpop.f32.mrf.mxu2  ;;  %v22424_v14 = vpop.f32.mrf.mxu1  ;;  %12218 = vmatpush.bf16.msrb.mxu0 %v18894_v59 }
 0x707   :  { %10164 = vst [vmem:[#allocation3 + $0x98] sm:$0xff] %v10128_v44  ;;  %10474 = vmatmul.bf16.gmra.mxu0 %v18778_v24  ;;  %v8417_v44 = vld [vmem:[#allocation3 + $0xb8] sm:$0xff] }
 0x708   :  { %v8802_v61 = vadd.f32 %v22229_v4, %v8417_v44 }
 0x709   :  { %10906 = vmatmul.bf16.gmra.mxu1 %v10788_v62  ;;  %11805 = vmatmul.bf16.vlgmr.msrb.gmra.mxu3 %v11696_v41 }
 0x70a   :  { %v9259_v60 = vadd.f32 %v22392_v39, %v8802_v61 }
 0x70b   :  { %11368 = vmatmul.bf16.gmra.mxu2 %v11247_v31  ;;  %v18829_v31 = vld [vmem:[#allocation2 + $0x68] sm:$0xff] }
 0x70c   :  { %v10069_v55 = vpop.f32.mrf.mxu3  ;;  %v22434_v17 = vpop.f32.mrf.mxu0  ;;  %v9716_v4 = vadd.f32 %v22374_v53, %v9259_v60  ;;  %v11250_v46 = vrot.slane %v18829_v31, 2 }
 0x70d   :  { %v10129_v13 = vadd.f32 %v10069_v55, %v9713_v37  ;;  %v8418_v37 = vld [vmem:[#allocation3 + $0xc0] sm:$0xff]  ;;  %v10791_v55 = vrot.slane %v18802_v27, 1 }
 0x70e   :  { %v22432_v28 = vpop.f32.mrf.mxu2  ;;  %v22436_v32 = vpop.f32.mrf.mxu1 }
 0x70f   :  { %10165 = vst [vmem:[#allocation3 + $0xa0] sm:$0xff] %v10129_v13  ;;  %v8803_v13 = vadd.f32 %v22250_v15, %v8418_v37  ;;  %v10792_v53 = vsel %vm1965_vm2, %v10789_v18, %v10791_v55  ;;  %v11251_v15 = vsel %vm2423_vm1, %v11248_v45, %v11250_v46  ;;  %v18852_v45 = vld [vmem:[#allocation2 + $0x50] sm:$0xff] }
 0x711   :  { %v9260_v8 = vadd.f32 %v22401_v0, %v8803_v13  ;;  %v8421_v13 = vld [vmem:[#allocation3 + $0xd8] sm:$0xff] }
 0x713   :  { %v9717_v51 = vadd.f32 %v22388_v57, %v9260_v8  ;;  %v8420_v57 = vld [vmem:[#allocation3 + $0xd0] sm:$0xff] }
 0x714   :  { %v10071_v25 = vpop.f32.mrf.mxu3  ;;  %v22443_v11 = vpop.f32.mrf.mxu0 }
 0x715   :  { %v10130_v48 = vadd.f32 %v10071_v25, %v9714_v1  ;;  %v18780_v1 = vld [vmem:[#allocation2 + $0x80] sm:$0xff]  ;;  %v11700_v25 = vsel %vm2881_vm3, %v11697_v7, %v11699_v42  ;;  %v18803_v7 = vld [vmem:[#allocation2 + $0x68] sm:$0xff] }
 0x716   :  { %v22441_v22 = vpop.f32.mrf.mxu2  ;;  %v22445_v6 = vpop.f32.mrf.mxu1  ;;  %v10793_v61 = vrot.slane %v18803_v7, 1 }
 0x717   :  { %10166 = vst [vmem:[#allocation3 + $0xa8] sm:$0xff] %v10130_v48  ;;  %10479 = vmatmul.bf16.gmra.mxu0 %v18779_v43  ;;  %v8419_v48 = vld [vmem:[#allocation3 + $0xc8] sm:$0xff] }
 0x718   :  { %v8804_v34 = vadd.f32 %v22272_v2, %v8419_v48  ;;  %v8805_v2 = vadd.f32 %v22293_v49, %v8420_v57 }
 0x719   :  { %10911 = vmatmul.bf16.gmra.mxu1 %v10790_v16  ;;  %11810 = vmatmul.bf16.gmra.mxu3 %v11698_v5 }
 0x71a   :  { %v9261_v18 = vadd.f32 %v22415_v52, %v8804_v34  ;;  %v18781_v52 = vld [vmem:[#allocation2 + $0x88] sm:$0xff] }
 0x71b   :  { %11373 = vmatmul.bf16.gmra.mxu2 %v11249_v26 }
 0x71c   :  { %v10074_v24 = vpop.f32.mrf.mxu3  ;;  %v22455_v62 = vpop.f32.mrf.mxu0  ;;  %v9718_v44 = vadd.f32 %v22397_v35, %v9261_v18  ;;  %v10794_v35 = vsel %vm1965_vm2, %v10791_v55, %v10793_v61 }
 0x71d   :  { %v10131_v40 = vadd.f32 %v10074_v24, %v9715_v63  ;;  %v18830_v63 = vld [vmem:[#allocation2 + $0x70] sm:$0xff] }
 0x71e   :  { %v22453_v21 = vpop.f32.mrf.mxu2  ;;  %v22457_v41 = vpop.f32.mrf.mxu1  ;;  %v11252_v58 = vrot.slane %v18830_v63, 2 }
 0x71f   :  { %10167 = vst [vmem:[#allocation3 + $0xb0] sm:$0xff] %v10131_v40  ;;  %v11701_v40 = vrot.slane %v18852_v45, 3 }
 0x720   :  { %v11253_v49 = vsel %vm2423_vm1, %v11250_v46, %v11252_v58  ;;  %v18804_v46 = vld [vmem:[#allocation2 + $0x70] sm:$0xff] }
 0x721   :  { %v11702_v37 = vsel %vm2881_vm3, %v11699_v42, %v11701_v40  ;;  %v18893_v42 = vld [vmem:[%s23323_s3 + $0x608] sm:$0xff]  ;;  %v10795_v34 = vrot.slane %v18804_v46, 1 }
 0x722   :  { %12219 = vmatpush.bf16.msrb.mxu0 %v18893_v42 }
 0x724   :  { %v10076_v50 = vpop.f32.mrf.mxu3  ;;  %v22467_v23 = vpop.f32.mrf.mxu0 }
 0x725   :  { %v10132_v39 = vadd.f32 %v10076_v50, %v9716_v4  ;;  %v9262_v4 = vadd.f32 %v22424_v14, %v8805_v2 }
 0x726   :  { %v22465_v3 = vpop.f32.mrf.mxu2  ;;  %v22469_v47 = vpop.f32.mrf.mxu1 }
 0x727   :  { %10168 = vst [vmem:[#allocation3 + $0xb8] sm:$0xff] %v10132_v39  ;;  %10484 = vmatmul.bf16.gmra.mxu0 %v18780_v1  ;;  %v9719_v50 = vadd.f32 %v22411_v38, %v9262_v4  ;;  %v8806_v1 = vadd.f32 %v22312_v20, %v8421_v13  ;;  %v18853_v38 = vld [vmem:[#allocation2 + $0x58] sm:$0xff] }
 0x729   :  { %10916 = vmatmul.bf16.gmra.mxu1 %v10792_v53  ;;  %11815 = vmatmul.bf16.gmra.mxu3 %v11700_v25  ;;  %v9263_v55 = vadd.f32 %v22436_v32, %v8806_v1  ;;  %v18783_v1 = vld [vmem:[#allocation2 + $0x98] sm:$0xff] }
 0x72b   :  { %11378 = vmatmul.bf16.gmra.mxu2 %v11251_v15  ;;  %v18831_v15 = vld [vmem:[#allocation2 + $0x78] sm:$0xff]  ;;  %v9720_v20 = vadd.f32 %v22420_v54, %v9263_v55  ;;  %v10796_v54 = vsel %vm1965_vm2, %v10793_v61, %v10795_v34 }
 0x72c   :  { %v10079_v43 = vpop.f32.mrf.mxu3  ;;  %v22479_v5 = vpop.f32.mrf.mxu0  ;;  %v11254_v63 = vrot.slane %v18831_v15, 2 }
 0x72d   :  { %v10133_v0 = vadd.f32 %v10079_v43, %v9717_v51  ;;  %v8422_v51 = vld [vmem:[#allocation3 + $0xe0] sm:$0xff]  ;;  %v18782_v43 = vld [vmem:[#allocation2 + $0x90] sm:$0xff] }
 0x72e   :  { %v22477_v16 = vpop.f32.mrf.mxu2  ;;  %v22481_v26 = vpop.f32.mrf.mxu1  ;;  %v8807_v18 = vadd.f32 %v22321_v36, %v8422_v51  ;;  %v11255_v2 = vsel %vm2423_vm1, %v11252_v58, %v11254_v63  ;;  %v18854_v58 = vld [vmem:[#allocation2 + $0x60] sm:$0xff] }
 0x72f   :  { %10169 = vst [vmem:[#allocation3 + $0xc0] sm:$0xff] %v10133_v0  ;;  %v11703_v0 = vrot.slane %v18853_v38, 3 }
 0x730   :  { %v9264_v57 = vadd.f32 %v22445_v6, %v8807_v18 }
 0x732   :  { %v9721_v36 = vadd.f32 %v22432_v28, %v9264_v57  ;;  %v8424_v28 = vld [vmem:[#allocation3 + $0xf0] sm:$0xff] }
 0x733   :  { %v8809_v55 = vadd.f32 %v22343_v12, %v8424_v28 }
 0x734   :  { %v10081_v24 = vpop.f32.mrf.mxu3  ;;  %v22488_v27 = vpop.f32.mrf.mxu0 }
 0x735   :  { %v10134_v59 = vadd.f32 %v10081_v24, %v9718_v44  ;;  %v11704_v24 = vsel %vm2881_vm3, %v11701_v40, %v11703_v0  ;;  %v18805_v40 = vld [vmem:[#allocation2 + $0x78] sm:$0xff] }
 0x736   :  { %v22486_v60 = vpop.f32.mrf.mxu2  ;;  %v22490_v31 = vpop.f32.mrf.mxu1 }
 0x737   :  { %10170 = vst [vmem:[#allocation3 + $0xc8] sm:$0xff] %v10134_v59  ;;  %10489 = vmatmul.bf16.gmra.mxu0 %v18781_v52  ;;  %v8423_v59 = vld [vmem:[#allocation3 + $0xe8] sm:$0xff] }
 0x738   :  { %v8808_v4 = vadd.f32 %v22332_v30, %v8423_v59  ;;  %v11705_v30 = vrot.slane %v18854_v58, 3 }
 0x739   :  { %10921 = vmatmul.bf16.gmra.mxu1 %v10794_v35  ;;  %11820 = vmatmul.bf16.gmra.mxu3 %v11702_v37 }
 0x73a   :  { %v9265_v61 = vadd.f32 %v22457_v41, %v8808_v4  ;;  %v11706_v51 = vsel %vm2881_vm3, %v11703_v0, %v11705_v30  ;;  %v18915_v0 = vld [vmem:[%s23325_s5 + $0x78] sm:$0xff] }
 0x73b   :  { %11383 = vmatmul.bf16.gmra.mxu2 %v11253_v49  ;;  %12489 = vmatpush.bf16.msra.mxu1 %v18915_v0  ;;  %v18785_v0 = vld [vmem:[#allocation2 + $0xa8] sm:$0xff] }
 0x73c   :  { %v10084_v39 = vpop.f32.mrf.mxu3  ;;  %v22500_v53 = vpop.f32.mrf.mxu0  ;;  %v9722_v13 = vadd.f32 %v22441_v22, %v9265_v61 }
 0x73d   :  { %v10135_v14 = vadd.f32 %v10084_v39, %v9719_v50  ;;  %v18832_v50 = vld [vmem:[#allocation2 + $0x80] sm:$0xff] }
 0x73e   :  { %v22498_v8 = vpop.f32.mrf.mxu2  ;;  %v22502_v25 = vpop.f32.mrf.mxu1  ;;  %v11256_v15 = vrot.slane %v18832_v50, 2 }
 0x73f   :  { %10171 = vst [vmem:[#allocation3 + $0xd0] sm:$0xff] %v10135_v14  ;;  %v10797_v14 = vrot.slane %v18805_v40, 1 }
 0x741   :  { %v10798_v22 = vsel %vm1965_vm2, %v10795_v34, %v10797_v14 }
 0x744   :  { %v10086_v48 = vpop.f32.mrf.mxu3  ;;  %v22512_v45 = vpop.f32.mrf.mxu0 }
 0x745   :  { %v10136_v32 = vadd.f32 %v10086_v48, %v9720_v20  ;;  %v9266_v20 = vadd.f32 %v22469_v47, %v8809_v55  ;;  %v11257_v48 = vsel %vm2423_vm1, %v11254_v63, %v11256_v15  ;;  %v18806_v63 = vld [vmem:[#allocation2 + $0x80] sm:$0xff]  ;;  %v18907_v55 = vld [vmem:[%s23325_s5 + $0x38] sm:$0xff] }
 0x746   :  { %v22510_v7 = vpop.f32.mrf.mxu2  ;;  %v22514_v44 = vpop.f32.mrf.mxu1  ;;  %v10799_v4 = vrot.slane %v18806_v63, 1  ;;  %12550 = vmatpush.bf16.msrb.mxu2 %v18907_v55 }
 0x747   :  { %10172 = vst [vmem:[#allocation3 + $0xd8] sm:$0xff] %v10136_v32  ;;  %10494 = vmatmul.bf16.gmra.mxu0 %v18782_v43  ;;  %v9723_v12 = vadd.f32 %v22453_v21, %v9266_v20  ;;  %v8425_v43 = vld [vmem:[#allocation3 + $0xf8] sm:$0xff]  ;;  %v18855_v21 = vld [vmem:[#allocation2 + $0x68] sm:$0xff] }
 0x748   :  { %v8810_v32 = vadd.f32 %v22361_v9, %v8425_v43  ;;  %v18807_v43 = vld [vmem:[#allocation2 + $0x88] sm:$0xff] }
 0x749   :  { %10926 = vmatmul.bf16.gmra.mxu1 %v10796_v54  ;;  %11825 = vmatmul.bf16.gmra.mxu3 %v11704_v24  ;;  %v10801_v63 = vrot.slane %v18807_v43, 1 }
 0x74a   :  { %v9267_v34 = vadd.f32 %v22481_v26, %v8810_v32  ;;  %v18834_v32 = vld [vmem:[#allocation2 + $0x90] sm:$0xff] }
 0x74b   :  { %11388 = vmatmul.bf16.gmra.mxu2 %v11255_v2  ;;  %v18833_v2 = vld [vmem:[#allocation2 + $0x88] sm:$0xff] }
 0x74c   :  { %v10089_v52 = vpop.f32.mrf.mxu3  ;;  %v22524_v6 = vpop.f32.mrf.mxu0  ;;  %v9724_v9 = vadd.f32 %v22465_v3, %v9267_v34  ;;  %v11258_v50 = vrot.slane %v18833_v2, 2  ;;  %v18892_v3 = vld [vmem:[%s23323_s3 + $0x600] sm:$0xff] }
 0x74d   :  { %v10137_v35 = vadd.f32 %v10089_v52, %v9721_v36  ;;  %v8426_v36 = vld [vmem:[#allocation3 + $0x100] sm:$0xff]  ;;  %12220 = vmatpush.bf16.msrb.mxu0 %v18892_v3 }
 0x74e   :  { %v22522_v37 = vpop.f32.mrf.mxu2  ;;  %v22526_v49 = vpop.f32.mrf.mxu1  ;;  %v18784_v52 = vld [vmem:[#allocation2 + $0xa0] sm:$0xff]  ;;  %v8811_v61 = vadd.f32 %v22376_v56, %v8426_v36 }
 0x74f   :  { %10173 = vst [vmem:[#allocation3 + $0xe0] sm:$0xff] %v10137_v35  ;;  %v11707_v35 = vrot.slane %v18855_v21, 3 }
 0x750   :  { %v9268_v28 = vadd.f32 %v22490_v31, %v8811_v61  ;;  %v18923_v31 = vld [vmem:[%s23325_s5 + $0xb8] sm:$0xff] }
 0x751   :  { %v11708_v56 = vsel %vm2881_vm3, %v11705_v30, %v11707_v35  ;;  %12638 = vmatpush.bf16.msra.mxu3 %v18923_v31  ;;  %v18857_v31 = vld [vmem:[#allocation2 + $0x78] sm:$0xff] }
 0x754   :  { %v10091_v39 = vpop.f32.mrf.mxu3  ;;  %v22533_v38 = vpop.f32.mrf.mxu0 }
 0x755   :  { %v10138_v42 = vadd.f32 %v10091_v39, %v9722_v13  ;;  %v10800_v39 = vsel %vm1965_vm2, %v10797_v14, %v10799_v4  ;;  %v8427_v14 = vld [vmem:[#allocation3 + $0x108] sm:$0xff] }
 0x756   :  { %v22531_v46 = vpop.f32.mrf.mxu2  ;;  %v22535_v41 = vpop.f32.mrf.mxu1  ;;  %v8812_v20 = vadd.f32 %v22390_v19, %v8427_v14  ;;  %v10181_v14 = vld [vmem:[#allocation3] sm:$0xff] }
 0x757   :  { %10174 = vst [vmem:[#allocation3 + $0xe8] sm:$0xff] %v10138_v42  ;;  %10499 = vmatmul.bf16.gmra.mxu0 %v18783_v1  ;;  %v11259_v1 = vsel %vm2423_vm1, %v11256_v15, %v11258_v50  ;;  %v9725_v42 = vadd.f32 %v22477_v16, %v9268_v28  ;;  %v8429_v28 = vld [vmem:[#allocation3 + $0x118] sm:$0xff] }
 0x759   :  { %10931 = vmatmul.bf16.gmra.mxu1 %v10798_v22  ;;  %11830 = vmatmul.bf16.gmra.mxu3 %v11706_v51 }
 0x75b   :  { %11393 = vmatmul.bf16.gmra.mxu2 %v11257_v48 }
 0x75c   :  { %v10094_v18 = vpop.f32.mrf.mxu3  ;;  %v22545_v47 = vpop.f32.mrf.mxu0 }
 0x75d   :  { %v10139_v57 = vadd.f32 %v10094_v18, %v9723_v12  ;;  %v9269_v12 = vadd.f32 %v22502_v25, %v8812_v20  ;;  %v18856_v18 = vld [vmem:[#allocation2 + $0x70] sm:$0xff] }
 0x75e   :  { %v22543_v54 = vpop.f32.mrf.mxu2  ;;  %v22547_v24 = vpop.f32.mrf.mxu1  ;;  %v11709_v19 = vrot.slane %v18856_v18, 3  ;;  %v18786_v20 = vld [vmem:[#allocation2 + $0xb0] sm:$0xff] }
 0x75f   :  { %10175 = vst [vmem:[#allocation3 + $0xf0] sm:$0xff] %v10139_v57  ;;  %v9726_v16 = vadd.f32 %v22486_v60, %v9269_v12  ;;  %v8428_v57 = vld [vmem:[#allocation3 + $0x110] sm:$0xff]  ;;  %v10802_v60 = vsel %vm1965_vm2, %v10799_v4, %v10801_v63  ;;  %v10525_v12 = vadd.f32 %v22422_v10, %v10181_v14 }
 0x760   :  { %v8813_v21 = vadd.f32 %v22399_v29, %v8428_v57  ;;  %v11710_v61 = vsel %vm2881_vm3, %v11707_v35, %v11709_v19  ;;  %v18835_v35 = vld [vmem:[#allocation2 + $0x98] sm:$0xff]  ;;  %v18914_v57 = vld [vmem:[%s23325_s5 + $0x70] sm:$0xff] }
 0x761   :  { %12490 = vmatpush.bf16.msra.mxu1 %v18914_v57 }
 0x764   :  { %v10096_v59 = vpop.f32.mrf.mxu3  ;;  %v22557_v58 = vpop.f32.mrf.mxu0 }
 0x765   :  { %v10140_v40 = vadd.f32 %v10096_v59, %v9724_v9  ;;  %v11260_v59 = vrot.slane %v18834_v32, 2 }
 0x766   :  { %v22555_v26 = vpop.f32.mrf.mxu2  ;;  %v22559_v13 = vpop.f32.mrf.mxu1 }
 0x767   :  { %10176 = vst [vmem:[#allocation3 + $0xf8] sm:$0xff] %v10140_v40  ;;  %10504 = vmatmul.bf16.gmra.mxu0 %v18784_v52  ;;  %v9270_v52 = vadd.f32 %v22514_v44, %v8813_v21  ;;  %v11261_v40 = vsel %vm2423_vm1, %v11258_v50, %v11260_v59  ;;  %v18808_v50 = vld [vmem:[#allocation2 + $0x90] sm:$0xff] }
 0x768   :  { %v10182_v21 = vld [vmem:[#allocation3 + $0x8] sm:$0xff] }
 0x769   :  { %10936 = vmatmul.bf16.gmra.mxu1 %v10800_v39  ;;  %11835 = vmatmul.bf16.gmra.mxu3 %v11708_v56  ;;  %v9727_v29 = vadd.f32 %v22498_v8, %v9270_v52  ;;  %v8814_v39 = vadd.f32 %v22413_v33, %v8429_v28  ;;  %v11262_v8 = vrot.slane %v18835_v35, 2  ;;  %v10803_v33 = vrot.slane %v18808_v50, 1 }
 0x76b   :  { %11398 = vmatmul.bf16.gmra.mxu2 %v11259_v1  ;;  %v9271_v4 = vadd.f32 %v22526_v49, %v8814_v39 }
 0x76c   :  { %v10099_v30 = vpop.f32.mrf.mxu3  ;;  %v22578_v51 = vpop.f32.mrf.mxu0 }
 0x76d   :  { %v10141_v15 = vadd.f32 %v10099_v30, %v9725_v42  ;;  %v9728_v42 = vadd.f32 %v22510_v7, %v9271_v4  ;;  %v11263_v7 = vsel %vm2423_vm1, %v11260_v59, %v11262_v8 }
 0x76e   :  { %v22576_v22 = vpop.f32.mrf.mxu2  ;;  %v22580_v48 = vpop.f32.mrf.mxu1 }
 0x76f   :  { %10177 = vst [vmem:[#allocation3 + $0x100] sm:$0xff] %v10141_v15  ;;  %v11711_v15 = vrot.slane %v18857_v31, 3 }
 0x771   :  { %v11712_v10 = vsel %vm2881_vm3, %v11709_v19, %v11711_v15 }
 0x774   :  { %v10101_v34 = vpop.f32.mrf.mxu3  ;;  %v22587_v36 = vpop.f32.mrf.mxu0 }
 0x775   :  { %v10142_v2 = vadd.f32 %v10101_v34, %v9726_v16  ;;  %v10982_v16 = vadd.f32 %v22535_v41, %v10525_v12  ;;  %v10804_v34 = vsel %vm1965_vm2, %v10801_v63, %v10803_v33  ;;  %v18809_v63 = vld [vmem:[#allocation2 + $0x98] sm:$0xff] }
 0x776   :  { %v22585_v9 = vpop.f32.mrf.mxu2  ;;  %v22589_v25 = vpop.f32.mrf.mxu1  ;;  %v10805_v28 = vrot.slane %v18809_v63, 1 }
 0x777   :  { %10178 = vst [vmem:[#allocation3 + $0x108] sm:$0xff] %v10142_v2  ;;  %10509 = vmatmul.bf16.gmra.mxu0 %v18785_v0  ;;  %v11439_v0 = vadd.f32 %v22522_v37, %v10982_v16  ;;  %v10526_v2 = vadd.f32 %v22434_v17, %v10182_v21  ;;  %v18906_v37 = vld [vmem:[%s23325_s5 + $0x30] sm:$0xff]  ;;  %v10184_v16 = vld [vmem:[#allocation3 + $0x18] sm:$0xff]  ;;  %v18859_v21 = vld [vmem:[#allocation2 + $0x88] sm:$0xff] }
 0x778   :  { %v18922_v17 = vld [vmem:[%s23325_s5 + $0xb0] sm:$0xff]  ;;  %12551 = vmatpush.bf16.msrb.mxu2 %v18906_v37  ;;  %v10528_v57 = vadd.f32 %v22455_v62, %v10184_v16  ;;  %v11715_v62 = vrot.slane %v18859_v21, 3 }
 0x779   :  { %10941 = vmatmul.bf16.gmra.mxu1 %v10802_v60  ;;  %11840 = vmatmul.bf16.gmra.mxu3 %v11710_v61  ;;  %v10983_v19 = vadd.f32 %v22547_v24, %v10526_v2  ;;  %v18787_v24 = vld [vmem:[#allocation2 + $0xb8] sm:$0xff] }
 0x77a   :  { %12639 = vmatpush.bf16.msra.mxu3 %v18922_v17 }
 0x77b   :  { %11403 = vmatmul.bf16.gmra.mxu2 %v11261_v40  ;;  %v18836_v40 = vld [vmem:[#allocation2 + $0xa0] sm:$0xff] }
 0x77c   :  { %v10104_v3 = vpop.f32.mrf.mxu3  ;;  %v22599_v44 = vpop.f32.mrf.mxu0  ;;  %v11264_v39 = vrot.slane %v18836_v40, 2 }
 0x77d   :  { %v10143_v56 = vadd.f32 %v10104_v3, %v9727_v29  ;;  %v18858_v29 = vld [vmem:[#allocation2 + $0x80] sm:$0xff]  ;;  %v11440_v3 = vadd.f32 %v22531_v46, %v10983_v19 }
 0x77e   :  { %v22597_v1 = vpop.f32.mrf.mxu2  ;;  %v22601_v55 = vpop.f32.mrf.mxu1  ;;  %v11713_v35 = vrot.slane %v18858_v29, 3  ;;  %v11265_v46 = vsel %vm2423_vm1, %v11262_v8, %v11264_v39  ;;  %v18810_v8 = vld [vmem:[#allocation2 + $0xa0] sm:$0xff] }
 0x77f   :  { %10179 = vst [vmem:[#allocation3 + $0x110] sm:$0xff] %v10143_v56  ;;  %v10183_v56 = vld [vmem:[#allocation3 + $0x10] sm:$0xff] }
 0x780   :  { %v10527_v50 = vadd.f32 %v22443_v11, %v10183_v56 }
 0x782   :  { %v10984_v12 = vadd.f32 %v22559_v13, %v10527_v50 }
 0x784   :  { %v10106_v30 = vpop.f32.mrf.mxu3  ;;  %v22608_v32 = vpop.f32.mrf.mxu0  ;;  %v11441_v11 = vadd.f32 %v22543_v54, %v10984_v12  ;;  %v18811_v12 = vld [vmem:[#allocation2 + $0xa8] sm:$0xff] }
 0x785   :  { %v10144_v43 = vadd.f32 %v10106_v30, %v9728_v42  ;;  %v10809_v16 = vrot.slane %v18811_v12, 1  ;;  %v10189_v12 = vld [vmem:[#allocation3 + $0x40] sm:$0xff] }
 0x786   :  { %v22606_v18 = vpop.f32.mrf.mxu2  ;;  %v22610_v49 = vpop.f32.mrf.mxu1 }
 0x787   :  { %10180 = vst [vmem:[#allocation3 + $0x118] sm:$0xff] %v10144_v43  ;;  %10514 = vmatmul.bf16.gmra.mxu0 %v18786_v20  ;;  %v10806_v20 = vsel %vm1965_vm2, %v10803_v33, %v10805_v28  ;;  %v11714_v43 = vsel %vm2881_vm3, %v11711_v15, %v11713_v35  ;;  %v18837_v15 = vld [vmem:[#allocation2 + $0xa8] sm:$0xff] }
 0x788   :  { %v11266_v2 = vrot.slane %v18837_v15, 2 }
 0x789   :  { %10946 = vmatmul.bf16.gmra.mxu1 %v10804_v34  ;;  %11845 = vmatmul.bf16.gmra.mxu3 %v11712_v10 }
 0x78b   :  { %11408 = vmatmul.bf16.gmra.mxu2 %v11263_v7 }
 0x78c   :  { %v11806_v41 = vpop.f32.mrf.mxu3  ;;  %v22623_v60 = vpop.f32.mrf.mxu0 }
 0x78d   :  { %v11896_v52 = vadd.f32 %v11806_v41, %v11439_v0  ;;  %v10985_v0 = vadd.f32 %v22580_v48, %v10528_v57  ;;  %v10807_v41 = vrot.slane %v18810_v8, 1 }
 0x78e   :  { %v22621_v59 = vpop.f32.mrf.mxu2  ;;  %v22625_v61 = vpop.f32.mrf.mxu1 }
 0x78f   :  { %11932 = vst [vmem:[#allocation3] sm:$0xff] %v11896_v52  ;;  %v11442_v54 = vadd.f32 %v22555_v26, %v10985_v0  ;;  %v10185_v52 = vld [vmem:[#allocation3 + $0x20] sm:$0xff]  ;;  %v10808_v48 = vsel %vm1965_vm2, %v10805_v28, %v10807_v41  ;;  %v11267_v26 = vsel %vm2423_vm1, %v11264_v39, %v11266_v2  ;;  %v10186_v28 = vld [vmem:[#allocation3 + $0x28] sm:$0xff] }
 0x790   :  { %v10529_v19 = vadd.f32 %v22467_v23, %v10185_v52  ;;  %v18913_v23 = vld [vmem:[%s23325_s5 + $0x68] sm:$0xff] }
 0x791   :  { %12491 = vmatpush.bf16.msra.mxu1 %v18913_v23 }
 0x792   :  { %v10986_v56 = vadd.f32 %v22589_v25, %v10529_v19  ;;  %v10530_v25 = vadd.f32 %v22479_v5, %v10186_v28  ;;  %v18921_v5 = vld [vmem:[%s23325_s5 + $0xa8] sm:$0xff]  ;;  %v18875_v19 = vld [vmem:[#allocation2 + $0x3c] sm:$0xff] }
 0x793   :  { %12640 = vmatpush.bf16.msra.mxu3 %v18921_v5  ;;  %v18839_v28 = vld [vmem:[#allocation2 + $0xb8] sm:$0xff] }
 0x794   :  { %v11808_v4 = vpop.f32.mrf.mxu3  ;;  %v22638_v14 = vpop.f32.mrf.mxu0 }
 0x795   :  { %v11897_v42 = vadd.f32 %v11808_v4, %v11440_v3  ;;  %v18874_v3 = vld [vmem:[#allocation2 + $0x34] sm:$0xff]  ;;  %v11716_v4 = vsel %vm2881_vm3, %v11713_v35, %v11715_v62 }
 0x796   :  { %v22636_v31 = vpop.f32.mrf.mxu2  ;;  %v22640_v30 = vpop.f32.mrf.mxu1 }
 0x797   :  { %11933 = vst [vmem:[#allocation3 + $0x8] sm:$0xff] %v11897_v42  ;;  %10519 = vmatmul.bf16.gmra.mxu0 %v18787_v24  ;;  %v11443_v24 = vadd.f32 %v22576_v22, %v10986_v56  ;;  %v18905_v22 = vld [vmem:[%s23325_s5 + $0x28] sm:$0xff] }
 0x798   :  { %12552 = vmatpush.bf16.msrb.mxu2 %v18905_v22 }
 0x799   :  { %10951 = vmatmul.bf16.gmra.mxu1 %v10806_v20  ;;  %11850 = vmatmul.bf16.gmra.mxu3 %v11714_v43  ;;  %v18838_v43 = vld [vmem:[#allocation2 + $0xb0] sm:$0xff] }
 0x79a   :  { %v11268_v57 = vrot.slane %v18838_v43, 2 }
 0x79b   :  { %11413 = vmatmul.bf16.gmra.mxu2 %v11265_v46  ;;  %v10987_v46 = vadd.f32 %v22601_v55, %v10530_v25 }
 0x79c   :  { %v11811_v7 = vpop.f32.mrf.mxu3  ;;  %v22650_v10 = vpop.f32.mrf.mxu0 }
 0x79d   :  { %v11898_v33 = vadd.f32 %v11811_v7, %v11441_v11  ;;  %v18860_v11 = vld [vmem:[#allocation2 + $0x90] sm:$0xff]  ;;  %v11444_v7 = vadd.f32 %v22585_v9, %v10987_v46  ;;  %v11269_v9 = vsel %vm2423_vm1, %v11266_v2, %v11268_v57  ;;  %v10533_v46 = vadd.f32 %v22512_v45, %v10189_v12 }
 0x79e   :  { %v22648_v34 = vpop.f32.mrf.mxu2  ;;  %v22652_v13 = vpop.f32.mrf.mxu1  ;;  %v11717_v55 = vrot.slane %v18860_v11, 3  ;;  %v18812_v2 = vld [vmem:[#allocation2 + $0xb0] sm:$0xff] }
 0x79f   :  { %11934 = vst [vmem:[#allocation3 + $0x10] sm:$0xff] %v11898_v33  ;;  %v10187_v33 = vld [vmem:[#allocation3 + $0x30] sm:$0xff] }
 0x7a0   :  { %v10531_v0 = vadd.f32 %v22488_v27, %v10187_v33  ;;  %v18876_v33 = vld [vmem:[#allocation2 + $0x44] sm:$0xff] }
 0x7a4   :  { %v11813_v63 = vpop.f32.mrf.mxu3  ;;  %v22659_v17 = vpop.f32.mrf.mxu0 }
 0x7a5   :  { %v11899_v37 = vadd.f32 %v11813_v63, %v11442_v54  ;;  %v10810_v63 = vsel %vm1965_vm2, %v10807_v41, %v10809_v16 }
 0x7a6   :  { %v22657_v40 = vpop.f32.mrf.mxu2  ;;  %v22661_v29 = vpop.f32.mrf.mxu1 }
 0x7a7   :  { %11935 = vst [vmem:[#allocation3 + $0x18] sm:$0xff] %v11899_v37  ;;  %12221 = vmatmul.bf16.vlgmr.msrb.gmra.mxu0 %v18874_v3  ;;  %v10988_v37 = vadd.f32 %v22610_v49, %v10531_v0  ;;  %v10188_v3 = vld [vmem:[#allocation3 + $0x38] sm:$0xff] }
 0x7a8   :  { %v11126_v0 = vld [vmem:[#allocation2 + $0xc0] sm:$0x3] }
 0x7a9   :  { %10956 = vmatmul.bf16.gmra.mxu1 %v10808_v48  ;;  %11855 = vmatmul.bf16.gmra.mxu3 %v11716_v4  ;;  %v11718_v48 = vsel %vm2881_vm3, %v11715_v62, %v11717_v55  ;;  %v11445_v27 = vadd.f32 %v22597_v1, %v10988_v37 }
 0x7ab   :  { %11418 = vmatmul.bf16.gmra.mxu2 %v11267_v26  ;;  %v10532_v26 = vadd.f32 %v22500_v53, %v10188_v3 }
 0x7ac   :  { %v11816_v50 = vpop.f32.mrf.mxu3  ;;  %v22674_v20 = vpop.f32.mrf.mxu0 }
 0x7ad   :  { %v11900_v39 = vadd.f32 %v11816_v50, %v11443_v24  ;;  %v18861_v24 = vld [vmem:[#allocation2 + $0x98] sm:$0xff]  ;;  %v10989_v62 = vadd.f32 %v22625_v61, %v10532_v26  ;;  %v10811_v50 = vrot.slane %v18812_v2, 1 }
 0x7ae   :  { %v22672_v42 = vpop.f32.mrf.mxu2  ;;  %v22676_v35 = vpop.f32.mrf.mxu1  ;;  %v11719_v25 = vrot.slane %v18861_v24, 3  ;;  %v10191_v2 = vld [vmem:[#allocation3 + $0x50] sm:$0xff] }
 0x7af   :  { %11936 = vst [vmem:[#allocation3 + $0x20] sm:$0xff] %v11900_v39  ;;  %v11446_v1 = vadd.f32 %v22606_v18, %v10989_v62  ;;  %v11270_v39 = vrot.slane %v18839_v28, 2  ;;  %v10812_v61 = vsel %vm1965_vm2, %v10809_v16, %v10811_v50  ;;  %v10535_v62 = vadd.f32 %v22533_v38, %v10191_v2  ;;  %v18904_v38 = vld [vmem:[%s23325_s5 + $0x20] sm:$0xff] }
 0x7b0   :  { %12553 = vmatpush.bf16.msrb.mxu2 %v18904_v38 }
 0x7b1   :  { %v11271_v18 = vsel %vm2423_vm1, %v11268_v57, %v11270_v39  ;;  %v18813_v57 = vld [vmem:[#allocation2 + $0xb8] sm:$0xff] }
 0x7b4   :  { %v11818_v8 = vpop.f32.mrf.mxu3  ;;  %v22689_v54 = vpop.f32.mrf.mxu0 }
 0x7b5   :  { %v11901_v21 = vadd.f32 %v11818_v8, %v11444_v7  ;;  %v11720_v7 = vsel %vm2881_vm3, %v11717_v55, %v11719_v25  ;;  %v10990_v8 = vadd.f32 %v22640_v30, %v10533_v46 }
 0x7b6   :  { %v22687_v15 = vpop.f32.mrf.mxu2  ;;  %v22691_v52 = vpop.f32.mrf.mxu1 }
 0x7b7   :  { %11937 = vst [vmem:[#allocation3 + $0x28] sm:$0xff] %v11901_v21  ;;  %12226 = vmatmul.bf16.gmra.mxu0 %v18875_v19  ;;  %v11447_v45 = vadd.f32 %v22621_v59, %v10990_v8  ;;  %v10190_v21 = vld [vmem:[#allocation3 + $0x48] sm:$0xff]  ;;  %v11217_v19 = vunpack.c.l.b16 %v11126_v0  ;;  %v18912_v59 = vld [vmem:[%s23325_s5 + $0x60] sm:$0xff] }
 0x7b8   :  { %v10534_v16 = vadd.f32 %v22524_v6, %v10190_v21  ;;  %12492 = vmatpush.bf16.msra.mxu1 %v18912_v59 }
 0x7b9   :  { %10961 = vmatmul.bf16.gmra.mxu1 %v10810_v63  ;;  %11860 = vmatmul.bf16.gmra.mxu3 %v11718_v48  ;;  %v18862_v48 = vld [vmem:[#allocation2 + $0xa0] sm:$0xff]  ;;  %v11236_v3 = vpack.c.b16 %v11217_v19, %v11217_v19  ;;  %v18863_v19 = vld [vmem:[#allocation2 + $0xa8] sm:$0xff] }
 0x7ba   :  { %v11721_v6 = vrot.slane %v18862_v48, 3  ;;  %v10193_v48 = vld [vmem:[#allocation3 + $0x60] sm:$0xff] }
 0x7bb   :  { %11423 = vmatmul.bf16.gmra.mxu2 %v11269_v9 }
 0x7bc   :  { %v11821_v56 = vpop.f32.mrf.mxu3  ;;  %v22701_v23 = vpop.f32.mrf.mxu0  ;;  %v11722_v46 = vsel %vm2881_vm3, %v11719_v25, %v11721_v6  ;;  %v10192_v25 = vld [vmem:[#allocation3 + $0x58] sm:$0xff] }
 0x7bd   :  { %v11902_v41 = vadd.f32 %v11821_v56, %v11445_v27  ;;  %v10991_v27 = vadd.f32 %v22652_v13, %v10534_v16  ;;  %v10813_v56 = vrot.slane %v18813_v57, 1  ;;  %v11723_v57 = vrot.slane %v18863_v19, 3  ;;  %v10196_v19 = vld [vmem:[#allocation3 + $0x78] sm:$0xff] }
 0x7be   :  { %v22699_v4 = vpop.f32.mrf.mxu2  ;;  %v22703_v49 = vpop.f32.mrf.mxu1 }
 0x7bf   :  { %11938 = vst [vmem:[#allocation3 + $0x30] sm:$0xff] %v11902_v41  ;;  %v11448_v26 = vadd.f32 %v22636_v31, %v10991_v27  ;;  %v11272_v41 = vrot.slane %v11236_v3, 2  ;;  %v10669_v31 = vld [vmem:[#allocation2 + $0xc0] sm:$0x1] }
 0x7c4   :  { %v11823_v53 = vpop.f32.mrf.mxu3  ;;  %v22710_v5 = vpop.f32.mrf.mxu0 }
 0x7c5   :  { %v11903_v22 = vadd.f32 %v11823_v53, %v11446_v1  ;;  %v10814_v53 = vsel %vm1965_vm2, %v10811_v50, %v10813_v56  ;;  %v10760_v50 = vunpack.c.l.b16 %v10669_v31  ;;  %v18911_v31 = vld [vmem:[%s23325_s5 + $0x58] sm:$0xff] }
 0x7c6   :  { %v22708_v43 = vpop.f32.mrf.mxu2  ;;  %v22712_v11 = vpop.f32.mrf.mxu1  ;;  %12493 = vmatpush.bf16.msra.mxu1 %v18911_v31 }
 0x7c7   :  { %11939 = vst [vmem:[#allocation3 + $0x38] sm:$0xff] %v11903_v22  ;;  %12231 = vmatmul.bf16.gmra.mxu0 %v18876_v33  ;;  %v18877_v22 = vld [vmem:[#allocation2 + $0x4c] sm:$0xff]  ;;  %v18920_v33 = vld [vmem:[%s23325_s5 + $0xa0] sm:$0xff] }
 0x7c8   :  { %12641 = vmatpush.bf16.msra.mxu3 %v18920_v33 }
 0x7c9   :  { %10966 = vmatmul.bf16.gmra.mxu1 %v10812_v61  ;;  %11865 = vmatmul.bf16.gmra.mxu3 %v11720_v7  ;;  %v10992_v61 = vadd.f32 %v22661_v29, %v10535_v62  ;;  %v11273_v7 = vsel %vm2423_vm1, %v11270_v39, %v11272_v41  ;;  %v10536_v39 = vadd.f32 %v22545_v47, %v10192_v25 }
 0x7ca   :  { %v10537_v47 = vadd.f32 %v22557_v58, %v10193_v48 }
 0x7cb   :  { %11428 = vmatmul.bf16.gmra.mxu2 %v11271_v18  ;;  %v11449_v29 = vadd.f32 %v22648_v34, %v10992_v61  ;;  %v10993_v16 = vadd.f32 %v22676_v35, %v10536_v39  ;;  %v11724_v35 = vsel %vm2881_vm3, %v11721_v6, %v11723_v57  ;;  %v18864_v6 = vld [vmem:[#allocation2 + $0xb0] sm:$0xff]  ;;  %v18879_v39 = vld [vmem:[#allocation2 + $0x5c] sm:$0xff] }
 0x7cc   :  { %v11826_v63 = vpop.f32.mrf.mxu3  ;;  %v22722_v9 = vpop.f32.mrf.mxu0  ;;  %v10994_v62 = vadd.f32 %v22691_v52, %v10537_v47 }
 0x7cd   :  { %v11904_v55 = vadd.f32 %v11826_v63, %v11447_v45  ;;  %v10779_v63 = vpack.c.b16 %v10760_v50, %v10760_v50  ;;  %v11450_v34 = vadd.f32 %v22657_v40, %v10993_v16  ;;  %v10194_v40 = vld [vmem:[#allocation3 + $0x68] sm:$0xff] }
 0x7ce   :  { %v22720_v37 = vpop.f32.mrf.mxu2  ;;  %v22724_v30 = vpop.f32.mrf.mxu1  ;;  %v11451_v58 = vadd.f32 %v22672_v42, %v10994_v62  ;;  %v11725_v42 = vrot.slane %v18864_v6, 3 }
 0x7cf   :  { %11940 = vst [vmem:[#allocation3 + $0x40] sm:$0xff] %v11904_v55  ;;  %v10815_v55 = vrot.slane %v10779_v63, 1 }
 0x7d1   :  { %v10816_v2 = vsel %vm1965_vm2, %v10813_v56, %v10815_v55  ;;  %v10540_v55 = vadd.f32 %v22599_v44, %v10196_v19 }
 0x7d3   :  { %v10997_v47 = vadd.f32 %v22724_v30, %v10540_v55  ;;  %v10200_v55 = vld [vmem:[#allocation3 + $0x98] sm:$0xff] }
 0x7d4   :  { %v11828_v24 = vpop.f32.mrf.mxu3  ;;  %v22734_v13 = vpop.f32.mrf.mxu0 }
 0x7d5   :  { %v11905_v1 = vadd.f32 %v11828_v24, %v11448_v26  ;;  %v18878_v24 = vld [vmem:[#allocation2 + $0x54] sm:$0xff] }
 0x7d6   :  { %v22732_v28 = vpop.f32.mrf.mxu2  ;;  %v22736_v12 = vpop.f32.mrf.mxu1 }
 0x7d7   :  { %11941 = vst [vmem:[#allocation3 + $0x48] sm:$0xff] %v11905_v1  ;;  %12236 = vmatmul.bf16.gmra.mxu0 %v18877_v22 }
 0x7d9   :  { %10971 = vmatmul.bf16.gmra.mxu1 %v10814_v53  ;;  %11870 = vmatmul.bf16.gmra.mxu3 %v11722_v46  ;;  %v10538_v53 = vadd.f32 %v22578_v51, %v10194_v40  ;;  %v10195_v51 = vld [vmem:[#allocation3 + $0x70] sm:$0xff] }
 0x7da   :  { %v10539_v33 = vadd.f32 %v22587_v36, %v10195_v51  ;;  %v18919_v36 = vld [vmem:[%s23325_s5 + $0x98] sm:$0xff] }
 0x7db   :  { %11433 = vmatmul.bf16.gmra.mxu2 %v11273_v7  ;;  %v10995_v52 = vadd.f32 %v22703_v49, %v10538_v53  ;;  %v11726_v49 = vsel %vm2881_vm3, %v11723_v57, %v11725_v42  ;;  %12642 = vmatpush.bf16.msra.mxu3 %v18919_v36  ;;  %v18880_v53 = vld [vmem:[#allocation2 + $0x64] sm:$0xff] }
 0x7dc   :  { %v11831_v8 = vpop.f32.mrf.mxu3  ;;  %v22752_v0 = vpop.f32.mrf.mxu0 }
 0x7dd   :  { %v11906_v45 = vadd.f32 %v11831_v8, %v11449_v29  ;;  %v11452_v7 = vadd.f32 %v22687_v15, %v10995_v52  ;;  %v18903_v15 = vld [vmem:[%s23325_s5 + $0x18] sm:$0xff] }
 0x7de   :  { %v22750_v18 = vpop.f32.mrf.mxu2  ;;  %v22754_v21 = vpop.f32.mrf.mxu1  ;;  %12554 = vmatpush.bf16.msrb.mxu2 %v18903_v15 }
 0x7df   :  { %11942 = vst [vmem:[#allocation3 + $0x50] sm:$0xff] %v11906_v45  ;;  %v10996_v45 = vadd.f32 %v22712_v11, %v10539_v33 }
 0x7e1   :  { %v11453_v63 = vadd.f32 %v22699_v4, %v10996_v45  ;;  %v11454_v4 = vadd.f32 %v22708_v43, %v10997_v47 }
 0x7e4   :  { %v11833_v27 = vpop.f32.mrf.mxu3  ;;  %v22761_v26 = vpop.f32.mrf.mxu0 }
 0x7e5   :  { %v11907_v59 = vadd.f32 %v11833_v27, %v11450_v34  ;;  %v18865_v27 = vld [vmem:[#allocation2 + $0xb8] sm:$0xff] }
 0x7e6   :  { %v22759_v3 = vpop.f32.mrf.mxu2  ;;  %v22763_v41 = vpop.f32.mrf.mxu1 }
 0x7e7   :  { %11943 = vst [vmem:[#allocation3 + $0x58] sm:$0xff] %v11907_v59  ;;  %12241 = vmatmul.bf16.gmra.mxu0 %v18878_v24  ;;  %v11727_v59 = vrot.slane %v18865_v27, 3  ;;  %v10544_v27 = vadd.f32 %v22650_v10, %v10200_v55  ;;  %v18918_v10 = vld [vmem:[%s23325_s5 + $0x90] sm:$0xff] }
 0x7e8   :  { %12643 = vmatpush.bf16.msra.mxu3 %v18918_v10 }
 0x7e9   :  { %10976 = vmatmul.bf16.gmra.mxu1 %v10816_v2  ;;  %11875 = vmatmul.bf16.gmra.mxu3 %v11724_v35  ;;  %v10197_v2 = vld [vmem:[#allocation3 + $0x80] sm:$0xff] }
 0x7ea   :  { %v10541_v24 = vadd.f32 %v22608_v32, %v10197_v2  ;;  %v10198_v32 = vld [vmem:[#allocation3 + $0x88] sm:$0xff] }
 0x7eb   :  { %v10542_v31 = vadd.f32 %v22623_v60, %v10198_v32 }
 0x7ec   :  { %v11836_v1 = vpop.f32.mrf.mxu3  ;;  %v22772_v61 = vpop.f32.mrf.mxu0  ;;  %v10998_v30 = vadd.f32 %v22736_v12, %v10541_v24 }
 0x7ed   :  { %v11908_v22 = vadd.f32 %v11836_v1, %v11451_v58  ;;  %v11728_v1 = vsel %vm2881_vm3, %v11725_v42, %v11727_v59  ;;  %v10999_v12 = vadd.f32 %v22754_v21, %v10542_v31  ;;  %v18882_v31 = vld [vmem:[#allocation2 + $0x74] sm:$0xff] }
 0x7ee   :  { %v22770_v46 = vpop.f32.mrf.mxu2  ;;  %v22774_v56 = vpop.f32.mrf.mxu1  ;;  %v11455_v6 = vadd.f32 %v22720_v37, %v10998_v30 }
 0x7ef   :  { %11944 = vst [vmem:[#allocation3 + $0x60] sm:$0xff] %v11908_v22  ;;  %v11583_v22 = vld [vmem:[#allocation2 + $0xc0] sm:$0x7]  ;;  %v11001_v2 = vadd.f32 %v22774_v56, %v10544_v27 }
 0x7f0   :  { %v11674_v43 = vunpack.c.l.b16 %v11583_v22  ;;  %v18908_v56 = vld [vmem:[%s23325_s5 + $0x40] sm:$0xff] }
 0x7f1   :  { %v11458_v24 = vadd.f32 %v22759_v3, %v11001_v2  ;;  %v11968_v22 = vld [vmem:[#allocation3] sm:$0xff]  ;;  %v18931_v3 = vld [vmem:[%s23325_s5 + $0xf8] sm:$0xff] }
 0x7f2   :  { %v11693_v33 = vpack.c.b16 %v11674_v43, %v11674_v43 }
 0x7f4   :  { %v11838_v38 = vpop.f32.mrf.mxu3  ;;  %v22784_v25 = vpop.f32.mrf.mxu0 }
 0x7f5   :  { %v11909_v29 = vadd.f32 %v11838_v38, %v11452_v7 }
 0x7f6   :  { %v22782_v50 = vpop.f32.mrf.mxu2  ;;  %v22786_v8 = vpop.f32.mrf.mxu1 }
 0x7f7   :  { %11945 = vst [vmem:[#allocation3 + $0x68] sm:$0xff] %v11909_v29  ;;  %12246 = vmatmul.bf16.gmra.mxu0 %v18879_v39  ;;  %v11729_v29 = vrot.slane %v11693_v33, 3  ;;  %v10199_v39 = vld [vmem:[#allocation3 + $0x90] sm:$0xff] }
 0x7f8   :  { %v10543_v45 = vadd.f32 %v22638_v14, %v10199_v39 }
 0x7f9   :  { %11880 = vmatmul.bf16.gmra.mxu3 %v11726_v49  ;;  %v11456_v49 = vadd.f32 %v22732_v28, %v10999_v12  ;;  %v11730_v19 = vsel %vm2881_vm3, %v11727_v59, %v11729_v29  ;;  %v18910_v28 = vld [vmem:[%s23325_s5 + $0x50] sm:$0xff] }
 0x7fa   :  { %v11000_v21 = vadd.f32 %v22763_v41, %v10543_v45  ;;  %12494 = vmatpush.bf16.msra.mxu1 %v18910_v28  ;;  %v10202_v12 = vld [vmem:[#allocation3 + $0xa8] sm:$0xff] }
 0x7fc   :  { %v11841_v16 = vpop.f32.mrf.mxu3  ;;  %v22800_v34 = vpop.f32.mrf.mxu0  ;;  %v11457_v14 = vadd.f32 %v22750_v18, %v11000_v21  ;;  %v18909_v18 = vld [vmem:[%s23325_s5 + $0x48] sm:$0xff]  ;;  %v18900_v21 = vld [vmem:[%s23325_s5] sm:$0xff] }
 0x7fd   :  { %v11910_v57 = vadd.f32 %v11841_v16, %v11453_v63  ;;  %v18881_v16 = vld [vmem:[#allocation2 + $0x6c] sm:$0xff] }
 0x7fe   :  { %v22798_v11 = vpop.f32.mrf.mxu2  ;;  %v22802_v48 = vpop.f32.mrf.mxu1  ;;  %12495 = vmatpush.bf16.msra.mxu1 %v18909_v18 }
 0x7ff   :  { %11946 = vst [vmem:[#allocation3 + $0x70] sm:$0xff] %v11910_v57 }
 0x802   :  { %12496 = vmatpush.bf16.msra.mxu1 %v18908_v56  ;;  %v18883_v56 = vld [vmem:[#allocation2 + $0x7c] sm:$0xff] }
 0x804   :  { %v11843_v35 = vpop.f32.mrf.mxu3  ;;  %v22809_v58 = vpop.f32.mrf.mxu0 }
 0x805   :  { %v11911_v44 = vadd.f32 %v11843_v35, %v11454_v4  ;;  %v18902_v35 = vld [vmem:[%s23325_s5 + $0x10] sm:$0xff] }
 0x806   :  { %v22807_v62 = vpop.f32.mrf.mxu2  ;;  %v22811_v40 = vpop.f32.mrf.mxu1  ;;  %12555 = vmatpush.bf16.msrb.mxu2 %v18902_v35  ;;  %12727 = vmatpush.bf16.msrb.mxu1 %v18931_v3 }
 0x807   :  { %11947 = vst [vmem:[#allocation3 + $0x78] sm:$0xff] %v11911_v44  ;;  %12251 = vmatmul.bf16.gmra.mxu0 %v18880_v53  ;;  %v10201_v44 = vld [vmem:[#allocation3 + $0xa0] sm:$0xff] }
 0x808   :  { %v10545_v53 = vadd.f32 %v22659_v17, %v10201_v44  ;;  %v18930_v17 = vld [vmem:[%s23325_s5 + $0xf0] sm:$0xff]  ;;  %v18939_v44 = vld [vmem:[%s23325_s5 + $0x138] sm:$0xff] }
 0x809   :  { %11885 = vmatmul.bf16.gmra.mxu3 %v11728_v1 }
 0x80a   :  { %12728 = vmatpush.bf16.msrb.mxu1 %v18930_v17 }
 0x80c   :  { %v11846_v52 = vpop.f32.mrf.mxu3  ;;  %v22817_v51 = vpop.f32.mrf.mxu0 }
 0x80d   :  { %v11912_v7 = vadd.f32 %v11846_v52, %v11455_v6 }
 0x80e   :  { %v22819_v38 = vpop.f32.mrf.mxu2  ;;  %v22821_v42 = vpop.f32.mrf.mxu1 }
 0x80f   :  { %11948 = vst [vmem:[#allocation3 + $0x80] sm:$0xff] %v11912_v7  ;;  %v11002_v7 = vadd.f32 %v22786_v8, %v10545_v53  ;;  %v11969_v8 = vld [vmem:[#allocation3 + $0x8] sm:$0xff] }
 0x810   :  { %v18938_v53 = vld [vmem:[%s23325_s5 + $0x130] sm:$0xff] }
 0x811   :  { %v11459_v33 = vadd.f32 %v22770_v46, %v11002_v7  ;;  %v18901_v46 = vld [vmem:[%s23325_s5 + $0x8] sm:$0xff]  ;;  %v11971_v7 = vld [vmem:[#allocation3 + $0x18] sm:$0xff] }
 0x812   :  { %12556 = vmatpush.bf16.msrb.mxu2 %v18901_v46 }
 0x814   :  { %v11848_v37 = vpop.f32.mrf.mxu3  ;;  %v22826_v60 = vpop.f32.mrf.mxu0 }
 0x815   :  { %v11913_v15 = vadd.f32 %v11848_v37, %v11456_v49  ;;  %v10546_v49 = vadd.f32 %v22674_v20, %v10202_v12  ;;  %v18929_v20 = vld [vmem:[%s23325_s5 + $0xe8] sm:$0xff] }
 0x816   :  { %v22828_v36 = vpop.f32.mrf.mxu2  ;;  %v22830_v63 = vpop.f32.mrf.mxu1  ;;  %12729 = vmatpush.bf16.msrb.mxu1 %v18929_v20  ;;  %12557 = vmatpush.bf16.msrb.mxu2 %v18900_v21  ;;  %v11972_v20 = vld [vmem:[#allocation3 + $0x20] sm:$0xff] }
 0x817   :  { %11949 = vst [vmem:[#allocation3 + $0x88] sm:$0xff] %v11913_v15  ;;  %12256 = vmatmul.bf16.gmra.mxu0 %v18881_v16  ;;  %v11003_v16 = vadd.f32 %v22802_v48, %v10546_v49  ;;  %v18928_v48 = vld [vmem:[%s23325_s5 + $0xe0] sm:$0xff] }
 0x818   :  { %v18924_v49 = vld [vmem:[%s23325_s5 + $0xc0] sm:$0xff] }
 0x819   :  { %11890 = vmatmul.bf16.gmra.mxu3 %v11730_v19  ;;  %v11460_v28 = vadd.f32 %v22782_v50, %v11003_v16  ;;  %v18917_v50 = vld [vmem:[%s23325_s5 + $0x88] sm:$0xff] }
 0x81a   :  { %12730 = vmatpush.bf16.msrb.mxu1 %v18928_v48  ;;  %12644 = vmatpush.bf16.msra.mxu3 %v18917_v50 }
 0x81b   :  { %12816 = vmatpush.bf16.msra.mxu2 %v18939_v44 }
 0x81c   :  { %v11851_v57 = vpop.f32.mrf.mxu3  ;;  %v22839_v4 = vpop.f32.mrf.mxu0 }
 0x81d   :  { %v11914_v47 = vadd.f32 %v11851_v57, %v11457_v14  ;;  %v10203_v14 = vld [vmem:[#allocation3 + $0xb0] sm:$0xff] }
 0x81e   :  { %v22841_v59 = vpop.f32.mrf.mxu2  ;;  %v22843_v41 = vpop.f32.mrf.mxu1  ;;  %v10547_v57 = vadd.f32 %v22689_v54, %v10203_v14  ;;  %v18927_v54 = vld [vmem:[%s23325_s5 + $0xd8] sm:$0xff] }
 0x81f   :  { %11950 = vst [vmem:[#allocation3 + $0x90] sm:$0xff] %v11914_v47  ;;  %v11970_v47 = vld [vmem:[#allocation3 + $0x10] sm:$0xff]  ;;  %12731 = vmatpush.bf16.msrb.mxu1 %v18927_v54  ;;  %12817 = vmatpush.bf16.msra.mxu2 %v18938_v53 }
 0x820   :  { %v18946_v53 = vld [vmem:[%s23325_s5 + $0x170] sm:$0xff] }
 0x824   :  { %v11853_v1 = vpop.f32.mrf.mxu3  ;;  %v12222_v43 = vpop.f32.mrf.mxu0 }
 0x825   :  { %v11915_v30 = vadd.f32 %v11853_v1, %v11458_v24  ;;  %v12312_v52 = vadd.f32 %v12222_v43, %v11968_v22  ;;  %v11004_v24 = vadd.f32 %v22811_v40, %v10547_v57  ;;  %v18916_v40 = vld [vmem:[%s23325_s5 + $0x80] sm:$0xff]  ;;  %v18926_v1 = vld [vmem:[%s23325_s5 + $0xd0] sm:$0xff] }
 0x826   :  { %v22860_v6 = vpop.f32.mrf.mxu2  ;;  %v22862_v32 = vpop.f32.mrf.mxu1  ;;  %v10204_v22 = vld [vmem:[#allocation3 + $0xb8] sm:$0xff]  ;;  %12645 = vmatpush.bf16.msra.mxu3 %v18916_v40  ;;  %12732 = vmatpush.bf16.msrb.mxu1 %v18926_v1 }
 0x827   :  { %11951 = vst [vmem:[#allocation3 + $0x98] sm:$0xff] %v11915_v30  ;;  %12261 = vmatmul.bf16.gmra.mxu0 %v18882_v31  ;;  %v11461_v30 = vadd.f32 %v22798_v11, %v11004_v24  ;;  %v18925_v11 = vld [vmem:[%s23325_s5 + $0xc8] sm:$0xff]  ;;  %v22941_v57 = vld [vmem:[%s23324_s4] ss:$0 sm:$0xff]  ;;  %v18935_v40 = vld [vmem:[%s23325_s5 + $0x118] sm:$0xff] }
 0x828   :  { %12348 = vst [vmem:[#allocation3] sm:$0xff] %v12312_v52  ;;  %v10548_v52 = vadd.f32 %v22701_v23, %v10204_v22  ;;  %v18937_v23 = vld [vmem:[%s23325_s5 + $0x128] sm:$0xff]  ;;  %v18934_v22 = vld [vmem:[%s23325_s5 + $0x110] sm:$0xff] }
 0x829   :  { %12818 = vmatpush.bf16.msra.mxu2 %v18937_v23 }
 0x82a   :  { %12733 = vmatpush.bf16.msrb.mxu1 %v18925_v11  ;;  %v11973_v11 = vld [vmem:[#allocation3 + $0x28] sm:$0xff] }
 0x82c   :  { %v11856_v29 = vpop.f32.mrf.mxu3  ;;  %v12224_v37 = vpop.f32.mrf.mxu0 }
 0x82d   :  { %v11916_v39 = vadd.f32 %v11856_v29, %v11459_v33  ;;  %v12313_v19 = vadd.f32 %v12224_v37, %v11969_v8  ;;  %v11005_v29 = vadd.f32 %v22821_v42, %v10548_v52  ;;  %v18936_v42 = vld [vmem:[%s23325_s5 + $0x120] sm:$0xff] }
 0x82e   :  { %v22873_v45 = vpop.f32.mrf.mxu2  ;;  %v22875_v15 = vpop.f32.mrf.mxu1  ;;  %v10205_v8 = vld [vmem:[#allocation3 + $0xc0] sm:$0xff]  ;;  %12734 = vmatpush.bf16.msrb.mxu1 %v18924_v49  ;;  %12819 = vmatpush.bf16.msra.mxu2 %v18936_v42 }
 0x82f   :  { %11952 = vst [vmem:[#allocation3 + $0xa0] sm:$0xff] %v11916_v39  ;;  %v11462_v39 = vadd.f32 %v22807_v62, %v11005_v29  ;;  %v10549_v16 = vadd.f32 %v22710_v5, %v10205_v8  ;;  %v12414_v48 = vld [vmem:[#allocation3 + $0x4] sm:$0x3]  ;;  %v12385_v62 = vld [vmem:[#allocation3] sm:$0x3] }
 0x830   :  { %12349 = vst [vmem:[#allocation3 + $0x8] sm:$0xff] %v12313_v19  ;;  %v18884_v19 = vld [vmem:[#allocation2 + $0x84] sm:$0xff] }
 0x832   :  { %12820 = vmatpush.bf16.msra.mxu2 %v18935_v40 }
 0x834   :  { %v11858_v55 = vpop.f32.mrf.mxu3  ;;  %v12227_v2 = vpop.f32.mrf.mxu0 }
 0x835   :  { %v11917_v27 = vadd.f32 %v11858_v55, %v11460_v28  ;;  %v12314_v10 = vadd.f32 %v12227_v2, %v11970_v47  ;;  %v12415_v28 = vld [vmem:[#allocation3 + $0x6] sm:$0x3]  ;;  %v11006_v47 = vadd.f32 %v22830_v63, %v10549_v16 }
 0x836   :  { %v22892_v35 = vpop.f32.mrf.mxu2  ;;  %v22894_v18 = vpop.f32.mrf.mxu1  ;;  %12821 = vmatpush.bf16.msra.mxu2 %v18934_v22 }
 0x837   :  { %11953 = vst [vmem:[#allocation3 + $0xa8] sm:$0xff] %v11917_v27  ;;  %12266 = vmatmul.bf16.gmra.mxu0 %v18883_v56  ;;  %v12386_v27 = vld [vmem:[#allocation3 + $0x2] sm:$0x3]  ;;  %v12416_v56 = vmax.f32 %v12414_v48, %v12415_v28  ;;  %v12563_v42 = vld [vmem:[#allocation3 + $0x8] sm:$0x3] }
 0x838   :  { %12350 = vst [vmem:[#allocation3 + $0x10] sm:$0xff] %v12314_v10  ;;  %v18947_v10 = vld [vmem:[%s23325_s5 + $0x178] sm:$0xff]  ;;  %v12387_v63 = vmax.f32 %v12385_v62, %v12386_v27  ;;  %v12653_v16 = vld [vmem:[#allocation3 + $0xe] sm:$0x3] }
 0x839   :  { %12905 = vmatpush.bf16.msrb.mxu3 %v18947_v10  ;;  %v18933_v10 = vld [vmem:[%s23325_s5 + $0x108] sm:$0xff] }
 0x83a   :  { %12822 = vmatpush.bf16.msra.mxu2 %v18933_v10 }
 0x83c   :  { %v11861_v43 = vpop.f32.mrf.mxu3  ;;  %v12229_v3 = vpop.f32.mrf.mxu0 }
 0x83d   :  { %v11918_v31 = vadd.f32 %v11861_v43, %v11461_v30  ;;  %v12315_v33 = vadd.f32 %v12229_v3, %v11971_v7  ;;  %v11463_v43 = vadd.f32 %v22819_v38, %v11006_v47  ;;  %12906 = vmatpush.bf16.msrb.mxu3 %v18946_v53  ;;  %v12652_v38 = vld [vmem:[#allocation3 + $0xc] sm:$0x3]  ;;  %v18945_v47 = vld [vmem:[%s23325_s5 + $0x168] sm:$0xff] }
 0x83e   :  { %v22917_v17 = vpop.f32.mrf.mxu1  ;;  %v22919_v12 = vpop.f32.mrf.mxu2  ;;  %v10213_v53 = vld [vmem:[#allocation3 + $0x100] sm:$0xff] }
 0x83f   :  { %11954 = vst [vmem:[#allocation3 + $0xb0] sm:$0xff] %v11918_v31  ;;  %v10206_v31 = vld [vmem:[#allocation3 + $0xc8] sm:$0xff] }
 0x840   :  { %12351 = vst [vmem:[#allocation3 + $0x18] sm:$0xff] %v12315_v33  ;;  %v10550_v33 = vadd.f32 %v22722_v9, %v10206_v31 }
 0x841   :  { %12907 = vmatpush.bf16.msrb.mxu3 %v18945_v47 }
 0x844   :  { %v11863_v37 = vpop.f32.mrf.mxu3  ;;  %v12232_v21 = vpop.f32.mrf.mxu0 }
 0x845   :  { %v11919_v46 = vadd.f32 %v11863_v37, %v11462_v39  ;;  %v12316_v55 = vadd.f32 %v12232_v21, %v11972_v20  ;;  %v12564_v39 = vld [vmem:[#allocation3 + $0xa] sm:$0x3] }
 0x846   :  { %v22936_v14 = vpop.f32.mrf.mxu1  ;;  %v22947_v44 = vpop.f32.mrf.mxu2  ;;  %v12565_v28 = vmax.f32 %v12563_v42, %v12564_v39 }
 0x847   :  { %11955 = vst [vmem:[#allocation3 + $0xb8] sm:$0xff] %v11919_v46  ;;  %v12417_v5 = vld [vmem:[#allocation3 + $0x1c] sm:$0x3]  ;;  %v12418_v2 = vld [vmem:[#allocation3 + $0x1e] sm:$0x3]  ;;  %12271 = vmatmul.bf16.gmra.mxu0 %v18884_v19  ;;  %v11007_v46 = vadd.f32 %v22843_v41, %v10550_v33  ;;  %v18955_v41 = vld [vmem:[%s23325_s5 + $0x1b8] sm:$0xff] }
 0x848   :  { %12352 = vst [vmem:[#allocation3 + $0x20] sm:$0xff] %v12316_v55  ;;  %v12419_v24 = vmax.f32 %v12417_v5, %v12418_v2  ;;  %v12388_v50 = vld [vmem:[#allocation3 + $0x18] sm:$0x3]  ;;  %v12389_v54 = vld [vmem:[#allocation3 + $0x1a] sm:$0x3] }
 0x849   :  { %v12390_v1 = vmax.f32 %v12388_v50, %v12389_v54  ;;  %v12654_v50 = vmax.f32 %v12652_v38, %v12653_v16  ;;  %v18944_v54 = vld [vmem:[%s23325_s5 + $0x160] sm:$0xff]  ;;  %v11464_v40 = vadd.f32 %v22828_v36, %v11007_v46  ;;  %v10557_v36 = vadd.f32 %v22809_v58, %v10213_v53  ;;  %v18963_v58 = vld [vmem:[%s23325_s5 + $0x1f8] sm:$0xff]  ;;  %v18962_v16 = vld [vmem:[%s23325_s5 + $0x1f0] sm:$0xff] }
 0x84a   :  { %v12420_v30 = vmax.f32 %v12416_v56, %v12419_v24  ;;  %12908 = vmatpush.bf16.msrb.mxu3 %v18944_v54  ;;  %v18950_v53 = vld [vmem:[%s23325_s5 + $0x190] sm:$0xff] }
 0x84b   :  { %v12391_v52 = vmax.f32 %v12387_v63, %v12390_v1  ;;  %v18954_v63 = vld [vmem:[%s23325_s5 + $0x1b0] sm:$0xff] }
 0x84c   :  { %v11866_v7 = vpop.f32.mrf.mxu3  ;;  %v12421_v3 = vadd.f32 %v22941_v57, %v12420_v30  ;;  %v12234_v23 = vpop.f32.mrf.mxu0  ;;  %v10207_v1 = vld [vmem:[#allocation3 + $0xd0] sm:$0xff] }
 0x84d   :  { %v11920_v29 = vadd.f32 %v11866_v7, %v11463_v43  ;;  %v12395_v49 = vadd.f32 %v22941_v57, %v12391_v52  ;;  %v12317_v37 = vadd.f32 %v12234_v23, %v11973_v11  ;;  %v18932_v52 = vld [vmem:[%s23325_s5 + $0x100] sm:$0xff]  ;;  %v10551_v31 = vadd.f32 %v22734_v13, %v10207_v1  ;;  %v18885_v23 = vld [vmem:[#allocation2 + $0x8c] sm:$0xff] }
 0x84e   :  { %v22962_v8 = vpop.f32.mrf.mxu1  ;;  %v12422_v19 = vmax.f32 %v12421_v3, 0.0  ;;  %v11429_v24 = vpop.f32.mrf.mxu2  ;;  %v11974_v3 = vld [vmem:[#allocation3 + $0x30] sm:$0xff]  ;;  %v18953_v13 = vld [vmem:[%s23325_s5 + $0x1a8] sm:$0xff]  ;;  %12823 = vmatpush.bf16.msra.mxu2 %v18932_v52  ;;  %v18940_v1 = vld [vmem:[%s23325_s5 + $0x140] sm:$0xff] }
 0x84f   :  { %11956 = vst [vmem:[#allocation3 + $0xc0] sm:$0xff] %v11920_v29  ;;  %v12396_v20 = vmax.f32 %v12395_v49, 0.0  ;;  %v12566_v9 = vld [vmem:[#allocation3 + $0x20] sm:$0x3]  ;;  %v12567_v21 = vld [vmem:[#allocation3 + $0x22] sm:$0x3]  ;;  %v11008_v42 = vadd.f32 %v22862_v32, %v10551_v31 }
 0x850   :  { %12353 = vst [vmem:[#allocation3 + $0x28] sm:$0xff] %v12317_v37  ;;  %v12423_v48 = vpack.c.bf16 %v12422_v19, %v12422_v19  ;;  %v12568_v55 = vmax.f32 %v12566_v9, %v12567_v21  ;;  %v12655_v62 = vld [vmem:[#allocation3 + $0x24] sm:$0x3]  ;;  %v12656_v27 = vld [vmem:[#allocation3 + $0x26] sm:$0x3]  ;;  %v18943_v37 = vld [vmem:[%s23325_s5 + $0x158] sm:$0xff] }
 0x851   :  { %v12397_v5 = vpack.c.bf16 %v12396_v20, %v12396_v20  ;;  %v12657_v2 = vmax.f32 %v12655_v62, %v12656_v27  ;;  %v11465_v46 = vadd.f32 %v22841_v59, %v11008_v42  ;;  %12909 = vmatpush.bf16.msrb.mxu3 %v18943_v37  ;;  %v18942_v20 = vld [vmem:[%s23325_s5 + $0x150] sm:$0xff]  ;;  %v18952_v9 = vld [vmem:[%s23325_s5 + $0x1a0] sm:$0xff]  ;;  %v18949_v42 = vld [vmem:[%s23325_s5 + $0x188] sm:$0xff] }
 0x852   :  { %12497 = vmatmul.bf16.vlgmr.msra.gmra.mxu1 %v12423_v48  ;;  %v12569_v56 = vmax.f32 %v12565_v28, %v12568_v55  ;;  %v10208_v21 = vld [vmem:[#allocation3 + $0xd8] sm:$0xff]  ;;  %v10214_v48 = vld [vmem:[#allocation3 + $0x108] sm:$0xff]  ;;  %v18886_v52 = vld [vmem:[#allocation2 + $0x94] sm:$0xff] }
 0x853   :  { %12558 = vmatmul.bf16.vlgmr.msrb.gmra.mxu2 %v12397_v5  ;;  %12994 = vmatpush.bf16.msra.mxu1 %v18955_v41  ;;  %v12658_v43 = vmax.f32 %v12654_v50, %v12657_v2  ;;  %v10552_v27 = vadd.f32 %v22752_v0, %v10208_v21  ;;  %v10558_v47 = vadd.f32 %v22817_v51, %v10214_v48  ;;  %v11975_v5 = vld [vmem:[#allocation3 + $0x38] sm:$0xff]  ;;  %v18941_v50 = vld [vmem:[%s23325_s5 + $0x148] sm:$0xff]  ;;  %v18970_v37 = vld [vmem:[%s23325_s5 + $0x230] sm:$0xff] }
 0x854   :  { %v11868_v30 = vpop.f32.mrf.mxu3  ;;  %v12570_v22 = vadd.f32 %v22941_v57, %v12569_v56  ;;  %v12237_v33 = vpop.f32.mrf.mxu0  ;;  %13083 = vmatpush.bf16.msrb.mxu2 %v18963_v58  ;;  %v18951_v0 = vld [vmem:[%s23325_s5 + $0x198] sm:$0xff]  ;;  %v18961_v51 = vld [vmem:[%s23325_s5 + $0x1e8] sm:$0xff]  ;;  %v18948_v58 = vld [vmem:[%s23325_s5 + $0x180] sm:$0xff] }
 0x855   :  { %v11921_v7 = vadd.f32 %v11868_v30, %v11464_v40  ;;  %v12318_v11 = vadd.f32 %v12237_v33, %v11974_v3  ;;  %v12659_v32 = vadd.f32 %v22941_v57, %v12658_v43  ;;  %v11009_v56 = vadd.f32 %v22875_v15, %v10552_v27  ;;  %12910 = vmatpush.bf16.msrb.mxu3 %v18942_v20  ;;  %v18960_v15 = vld [vmem:[%s23325_s5 + $0x1e0] sm:$0xff]  ;;  %v11977_v20 = vld [vmem:[#allocation3 + $0x48] sm:$0xff] }
 0x856   :  { %v10972_v29 = vpop.f32.mrf.mxu1  ;;  %v12571_v49 = vmax.f32 %v12570_v22, 0.0  ;;  %v11431_v62 = vpop.f32.mrf.mxu2  ;;  %v10209_v30 = vld [vmem:[#allocation3 + $0xe0] sm:$0xff]  ;;  %v10215_v22 = vld [vmem:[#allocation3 + $0x110] sm:$0xff] }
 0x857   :  { %11957 = vst [vmem:[#allocation3 + $0xc8] sm:$0xff] %v11921_v7  ;;  %v11014_v39 = vadd.f32 %v10972_v29, %v10557_v36  ;;  %12995 = vmatpush.bf16.msra.mxu1 %v18954_v63  ;;  %12276 = vmatmul.bf16.gmra.mxu0 %v18885_v23  ;;  %v12660_v55 = vmax.f32 %v12659_v32, 0.0  ;;  %v11466_v63 = vadd.f32 %v22860_v6, %v11009_v56  ;;  %v11976_v6 = vld [vmem:[#allocation3 + $0x40] sm:$0xff] }
 0x858   :  { %12354 = vst [vmem:[#allocation3 + $0x30] sm:$0xff] %v12318_v11  ;;  %v12572_v19 = vpack.c.bf16 %v12571_v49, %v12571_v49  ;;  %13084 = vmatpush.bf16.msrb.mxu2 %v18962_v16  ;;  %v10553_v31 = vadd.f32 %v22761_v26, %v10209_v30  ;;  %v10559_v36 = vadd.f32 %v22826_v60, %v10215_v22  ;;  %v18959_v26 = vld [vmem:[%s23325_s5 + $0x1d8] sm:$0xff]  ;;  %v18957_v21 = vld [vmem:[%s23325_s5 + $0x1c8] sm:$0xff] }
 0x859   :  { %v22998_v38 = vadd.f32 %v11429_v24, %v11014_v39  ;;  %v12661_v54 = vpack.c.bf16 %v12660_v55, %v12660_v55  ;;  %12911 = vmatpush.bf16.msrb.mxu3 %v18941_v50  ;;  %v18971_v60 = vld [vmem:[%s23325_s5 + $0x238] sm:$0xff]  ;;  %v18968_v55 = vld [vmem:[%s23325_s5 + $0x220] sm:$0xff] }
 0x85a   :  { %12646 = vmatmul.bf16.vlgmr.msra.gmra.mxu3 %v12572_v19  ;;  %v11010_v23 = vadd.f32 %v22894_v18, %v10553_v31  ;;  %v18958_v18 = vld [vmem:[%s23325_s5 + $0x1d0] sm:$0xff]  ;;  %v18967_v30 = vld [vmem:[%s23325_s5 + $0x218] sm:$0xff] }
 0x85b   :  { %12996 = vmatpush.bf16.msra.mxu1 %v18953_v13  ;;  %v10210_v19 = vld [vmem:[#allocation3 + $0xe8] sm:$0xff] }
 0x85c   :  { %v11871_v28 = vpop.f32.mrf.mxu3  ;;  %v12239_v2 = vpop.f32.mrf.mxu0  ;;  %13085 = vmatpush.bf16.msrb.mxu2 %v18961_v51  ;;  %v11467_v13 = vadd.f32 %v22873_v45, %v11010_v23  ;;  %v10554_v16 = vadd.f32 %v22772_v61, %v10210_v19  ;;  %v18956_v61 = vld [vmem:[%s23325_s5 + $0x1c0] sm:$0xff]  ;;  %v18966_v31 = vld [vmem:[%s23325_s5 + $0x210] sm:$0xff]  ;;  %v18987_v19 = vld [vmem:[%s23325_s5 + $0x2b8] sm:$0xff] }
 0x85d   :  { %v11922_v59 = vadd.f32 %v11871_v28, %v11465_v46  ;;  %v12319_v10 = vadd.f32 %v12239_v2, %v11975_v5  ;;  %12912 = vmatpush.bf16.msrb.mxu3 %v18940_v1  ;;  %v18969_v28 = vld [vmem:[%s23325_s5 + $0x228] sm:$0xff] }
 0x85e   :  { %v10974_v41 = vpop.f32.mrf.mxu1  ;;  %v11434_v11 = vpop.f32.mrf.mxu2  ;;  %v11011_v45 = vadd.f32 %v22917_v17, %v10554_v16  ;;  %v10211_v17 = vld [vmem:[#allocation3 + $0xf0] sm:$0xff] }
 0x85f   :  { %11958 = vst [vmem:[#allocation3 + $0xd0] sm:$0xff] %v11922_v59  ;;  %v11015_v24 = vadd.f32 %v10974_v41, %v10558_v47  ;;  %12997 = vmatpush.bf16.msra.mxu1 %v18952_v9  ;;  %v11978_v47 = vld [vmem:[#allocation3 + $0x50] sm:$0xff]  ;;  %v18887_v59 = vld [vmem:[#allocation2 + $0x9c] sm:$0xff]  ;;  %v10555_v5 = vadd.f32 %v22784_v25, %v10211_v17 }
 0x860   :  { %12355 = vst [vmem:[#allocation3 + $0x38] sm:$0xff] %v12319_v10  ;;  %13086 = vmatpush.bf16.msrb.mxu2 %v18960_v15  ;;  %v12741_v10 = vld [vmem:[#allocation3 + $0x30] sm:$0x3]  ;;  %v12742_v56 = vld [vmem:[#allocation3 + $0x32] sm:$0x3] }
 0x861   :  { %v23022_v40 = vadd.f32 %v11431_v62, %v11015_v24  ;;  %13172 = vmatpush.bf16.msra.mxu3 %v18971_v60  ;;  %v11468_v62 = vadd.f32 %v22892_v35, %v11011_v45  ;;  %v18979_v24 = vld [vmem:[%s23325_s5 + $0x278] sm:$0xff]  ;;  %v11012_v35 = vadd.f32 %v22936_v14, %v10555_v5  ;;  %v12743_v25 = vmax.f32 %v12741_v10, %v12742_v56  ;;  %v18978_v14 = vld [vmem:[%s23325_s5 + $0x270] sm:$0xff] }
 0x862   :  { %12735 = vmatmul.bf16.vlgmr.msrb.gmra.mxu1 %v12661_v54  ;;  %v12831_v51 = vld [vmem:[#allocation3 + $0x36] sm:$0x3] }
 0x863   :  { %12998 = vmatpush.bf16.msra.mxu1 %v18951_v0  ;;  %v12830_v0 = vld [vmem:[#allocation3 + $0x34] sm:$0x3] }
 0x864   :  { %v11873_v43 = vpop.f32.mrf.mxu3  ;;  %v12242_v3 = vpop.f32.mrf.mxu0  ;;  %13087 = vmatpush.bf16.msrb.mxu2 %v18959_v26  ;;  %v12832_v22 = vmax.f32 %v12830_v0, %v12831_v51  ;;  %v18975_v0 = vld [vmem:[%s23325_s5 + $0x258] sm:$0xff] }
 0x865   :  { %v11923_v7 = vadd.f32 %v11873_v43, %v11466_v63  ;;  %v12320_v29 = vadd.f32 %v12242_v3, %v11976_v6  ;;  %13173 = vmatpush.bf16.msra.mxu3 %v18970_v37  ;;  %v10212_v6 = vld [vmem:[#allocation3 + $0xf8] sm:$0xff] }
 0x866   :  { %v10977_v33 = vpop.f32.mrf.mxu1 }
 0x867   :  { %11959 = vst [vmem:[#allocation3 + $0xd8] sm:$0xff] %v11923_v7  ;;  %v11016_v49 = vadd.f32 %v10977_v33, %v10559_v36  ;;  %12999 = vmatpush.bf16.msra.mxu1 %v18950_v53  ;;  %12281 = vmatmul.bf16.gmra.mxu0 %v18886_v52  ;;  %v11469_v36 = vadd.f32 %v22919_v12, %v11012_v35  ;;  %v11979_v33 = vld [vmem:[#allocation3 + $0x58] sm:$0xff] }
 0x868   :  { %12356 = vst [vmem:[#allocation3 + $0x40] sm:$0xff] %v12320_v29  ;;  %13088 = vmatpush.bf16.msrb.mxu2 %v18958_v18  ;;  %v12919_v26 = vld [vmem:[#allocation3 + $0x38] sm:$0x3]  ;;  %v12920_v60 = vld [vmem:[#allocation3 + $0x3a] sm:$0x3]  ;;  %v18977_v18 = vld [vmem:[%s23325_s5 + $0x268] sm:$0xff] }
 0x869   :  { %v23046_v39 = vadd.f32 %v11434_v11, %v11016_v49  ;;  %13174 = vmatpush.bf16.msra.mxu3 %v18969_v28  ;;  %v10556_v11 = vadd.f32 %v22800_v34, %v10212_v6  ;;  %v18965_v28 = vld [vmem:[%s23325_s5 + $0x208] sm:$0xff]  ;;  %v18983_v6 = vld [vmem:[%s23325_s5 + $0x298] sm:$0xff] }
 0x86b   :  { %13000 = vmatpush.bf16.msra.mxu1 %v18949_v42  ;;  %v11013_v34 = vadd.f32 %v22962_v8, %v10556_v11  ;;  %v18976_v8 = vld [vmem:[%s23325_s5 + $0x260] sm:$0xff]  ;;  %v18991_v11 = vld [vmem:[%s23325_s5 + $0x2d8] sm:$0xff] }
 0x86c   :  { %v11876_v32 = vpop.f32.mrf.mxu3  ;;  %v12244_v9 = vpop.f32.mrf.mxu0  ;;  %13089 = vmatpush.bf16.msrb.mxu2 %v18957_v21 }
 0x86d   :  { %v11924_v46 = vadd.f32 %v11876_v32, %v11467_v13  ;;  %v12321_v48 = vadd.f32 %v12244_v9, %v11977_v20  ;;  %13175 = vmatpush.bf16.msra.mxu3 %v18968_v55  ;;  %v13008_v13 = vld [vmem:[#allocation3 + $0x3c] sm:$0x3]  ;;  %v12921_v9 = vmax.f32 %v12919_v26, %v12920_v60  ;;  %v11982_v26 = vld [vmem:[#allocation3 + $0x70] sm:$0xff] }
 0x86f   :  { %11960 = vst [vmem:[#allocation3 + $0xe0] sm:$0xff] %v11924_v46  ;;  %13001 = vmatpush.bf16.msra.mxu1 %v18948_v58  ;;  %v13009_v58 = vld [vmem:[#allocation3 + $0x3e] sm:$0x3] }
 0x870   :  { %12357 = vst [vmem:[#allocation3 + $0x48] sm:$0xff] %v12321_v48  ;;  %13090 = vmatpush.bf16.msrb.mxu2 %v18956_v61  ;;  %v13010_v17 = vmax.f32 %v13008_v13, %v13009_v58  ;;  %v19002_v13 = vld [vmem:[%s23325_s5 + $0x330] sm:$0xff]  ;;  %v18980_v58 = vld [vmem:[%s23325_s5 + $0x280] sm:$0xff] }
 0x871   :  { %13176 = vmatpush.bf16.msra.mxu3 %v18967_v30  ;;  %v18993_v30 = vld [vmem:[%s23325_s5 + $0x2e8] sm:$0xff] }
 0x873   :  { %13261 = vmatpush.bf16.msrb.mxu1 %v18979_v24  ;;  %v11980_v24 = vld [vmem:[#allocation3 + $0x60] sm:$0xff] }
 0x874   :  { %v11878_v27 = vpop.f32.mrf.mxu3  ;;  %v12247_v41 = vpop.f32.mrf.mxu0 }
 0x875   :  { %v11925_v2 = vadd.f32 %v11878_v27, %v11468_v62  ;;  %v12322_v50 = vadd.f32 %v12247_v41, %v11978_v47  ;;  %13177 = vmatpush.bf16.msra.mxu3 %v18966_v31  ;;  %v18964_v27 = vld [vmem:[%s23325_s5 + $0x200] sm:$0xff]  ;;  %v11470_v47 = vadd.f32 %v22947_v44, %v11013_v34  ;;  %v18995_v44 = vld [vmem:[%s23325_s5 + $0x2f8] sm:$0xff]  ;;  %v11981_v31 = vld [vmem:[#allocation3 + $0x68] sm:$0xff] }
 0x876   :  { %v10216_v34 = vld [vmem:[#allocation3 + $0x118] sm:$0xff] }
 0x877   :  { %11961 = vst [vmem:[#allocation3 + $0xe8] sm:$0xff] %v11925_v2  ;;  %v12744_v54 = vld [vmem:[#allocation3 + $0x48] sm:$0x3]  ;;  %v12745_v15 = vld [vmem:[#allocation3 + $0x4a] sm:$0x3]  ;;  %12286 = vmatmul.bf16.gmra.mxu0 %v18887_v59  ;;  %13262 = vmatpush.bf16.msrb.mxu1 %v18978_v14  ;;  %v18986_v59 = vld [vmem:[%s23325_s5 + $0x2b0] sm:$0xff] }
 0x878   :  { %12358 = vst [vmem:[#allocation3 + $0x50] sm:$0xff] %v12322_v50  ;;  %v12746_v63 = vmax.f32 %v12744_v54, %v12745_v15  ;;  %v12833_v1 = vld [vmem:[#allocation3 + $0x4c] sm:$0x3]  ;;  %v12834_v53 = vld [vmem:[#allocation3 + $0x4e] sm:$0x3]  ;;  %v18888_v2 = vld [vmem:[#allocation2 + $0xa4] sm:$0xff] }
 0x879   :  { %v12835_v43 = vmax.f32 %v12833_v1, %v12834_v53  ;;  %13178 = vmatpush.bf16.msra.mxu3 %v18965_v28  ;;  %v18985_v54 = vld [vmem:[%s23325_s5 + $0x2a8] sm:$0xff]  ;;  %v18994_v1 = vld [vmem:[%s23325_s5 + $0x2f0] sm:$0xff]  ;;  %v18984_v53 = vld [vmem:[%s23325_s5 + $0x2a0] sm:$0xff]  ;;  %v11436_v28 = vpop.f32.mrf.mxu2 }
 0x87a   :  { %v12747_v52 = vmax.f32 %v12743_v25, %v12746_v63  ;;  %v18974_v63 = vld [vmem:[%s23325_s5 + $0x250] sm:$0xff]  ;;  %v18973_v14 = vld [vmem:[%s23325_s5 + $0x248] sm:$0xff] }
 0x87b   :  { %v12836_v7 = vmax.f32 %v12832_v22, %v12835_v43  ;;  %13263 = vmatpush.bf16.msrb.mxu1 %v18977_v18 }
 0x87c   :  { %v11881_v3 = vpop.f32.mrf.mxu3  ;;  %v12748_v29 = vadd.f32 %v22941_v57, %v12747_v52  ;;  %v12249_v49 = vpop.f32.mrf.mxu0 }
 0x87d   :  { %v11926_v23 = vadd.f32 %v11881_v3, %v11469_v36  ;;  %v12837_v42 = vadd.f32 %v22941_v57, %v12836_v7  ;;  %v12323_v12 = vadd.f32 %v12249_v49, %v11979_v33  ;;  %13179 = vmatpush.bf16.msra.mxu3 %v18964_v27  ;;  %v18972_v33 = vld [vmem:[%s23325_s5 + $0x240] sm:$0xff]  ;;  %v18889_v49 = vld [vmem:[#allocation2 + $0xac] sm:$0xff] }
 0x87e   :  { %v12749_v37 = vmax.f32 %v12748_v29, 0.0  ;;  %v18982_v29 = vld [vmem:[%s23325_s5 + $0x290] sm:$0xff] }
 0x87f   :  { %11962 = vst [vmem:[#allocation3 + $0xf0] sm:$0xff] %v11926_v23  ;;  %v12838_v32 = vmax.f32 %v12837_v42, 0.0  ;;  %v12922_v16 = vld [vmem:[#allocation3 + $0x50] sm:$0x3]  ;;  %v12923_v46 = vld [vmem:[#allocation3 + $0x52] sm:$0x3]  ;;  %13264 = vmatpush.bf16.msrb.mxu1 %v18976_v8 }
 0x880   :  { %12359 = vst [vmem:[#allocation3 + $0x58] sm:$0xff] %v12323_v12  ;;  %v12750_v20 = vpack.c.bf16 %v12749_v37, %v12749_v37  ;;  %v12924_v21 = vmax.f32 %v12922_v16, %v12923_v46  ;;  %v13011_v48 = vld [vmem:[#allocation3 + $0x54] sm:$0x3]  ;;  %v13012_v45 = vld [vmem:[#allocation3 + $0x56] sm:$0x3]  ;;  %v18981_v12 = vld [vmem:[%s23325_s5 + $0x288] sm:$0xff]  ;;  %v10560_v46 = vadd.f32 %v22839_v4, %v10216_v34 }
 0x881   :  { %v12839_v61 = vpack.c.bf16 %v12838_v32, %v12838_v32  ;;  %v13013_v55 = vmax.f32 %v13011_v48, %v13012_v45  ;;  %v19003_v37 = vld [vmem:[%s23325_s5 + $0x338] sm:$0xff]  ;;  %v10979_v32 = vpop.f32.mrf.mxu1  ;;  %v18988_v4 = vld [vmem:[%s23325_s5 + $0x2c0] sm:$0xff] }
 0x882   :  { %12824 = vmatmul.bf16.vlgmr.msra.gmra.mxu2 %v12750_v20  ;;  %v12925_v62 = vmax.f32 %v12921_v9, %v12924_v21  ;;  %v11983_v9 = vld [vmem:[#allocation3 + $0x78] sm:$0xff]  ;;  %v11017_v45 = vadd.f32 %v10979_v32, %v10560_v46 }
 0x883   :  { %12913 = vmatmul.bf16.vlgmr.msrb.gmra.mxu3 %v12839_v61  ;;  %13350 = vmatpush.bf16.msra.mxu2 %v18987_v19  ;;  %v13014_v10 = vmax.f32 %v13010_v17, %v13013_v55  ;;  %v18989_v19 = vld [vmem:[%s23325_s5 + $0x2c8] sm:$0xff]  ;;  %v19011_v55 = vld [vmem:[%s23325_s5 + $0x378] sm:$0xff]  ;;  %v19008_v34 = vld [vmem:[%s23325_s5 + $0x360] sm:$0xff] }
 0x884   :  { %v11883_v5 = vpop.f32.mrf.mxu3  ;;  %v12926_v41 = vadd.f32 %v22941_v57, %v12925_v62  ;;  %v12252_v50 = vpop.f32.mrf.mxu0  ;;  %13439 = vmatpush.bf16.msrb.mxu3 %v18995_v44  ;;  %13265 = vmatpush.bf16.msrb.mxu1 %v18975_v0  ;;  %v19001_v61 = vld [vmem:[%s23325_s5 + $0x328] sm:$0xff]  ;;  %v11474_v8 = vadd.f32 %v11436_v28, %v11017_v45  ;;  %v18890_v17 = vld [vmem:[#allocation2 + $0xb4] sm:$0xff]  ;;  %v18996_v46 = vld [vmem:[%s23325_s5 + $0x300] sm:$0xff] }
 0x885   :  { %v11927_v56 = vadd.f32 %v11883_v5, %v11470_v47  ;;  %v12324_v51 = vadd.f32 %v12252_v50, %v11980_v24  ;;  %v13015_v25 = vadd.f32 %v22941_v57, %v13014_v10  ;;  %v11984_v47 = vld [vmem:[#allocation3 + $0x80] sm:$0xff] }
 0x886   :  { %v12927_v35 = vmax.f32 %v12926_v41, 0.0 }
 0x887   :  { %11963 = vst [vmem:[#allocation3 + $0xf8] sm:$0xff] %v11927_v56  ;;  %13351 = vmatpush.bf16.msra.mxu2 %v18986_v59  ;;  %12291 = vmatmul.bf16.gmra.mxu0 %v18888_v2  ;;  %v13016_v43 = vmax.f32 %v13015_v25, 0.0 }
 0x888   :  { %12360 = vst [vmem:[#allocation3 + $0x60] sm:$0xff] %v12324_v51  ;;  %v12928_v15 = vpack.c.bf16 %v12927_v35, %v12927_v35  ;;  %13440 = vmatpush.bf16.msrb.mxu3 %v18994_v1  ;;  %13266 = vmatpush.bf16.msrb.mxu1 %v18974_v63 }
 0x889   :  { %v13017_v3 = vpack.c.bf16 %v13016_v43, %v13016_v43 }
 0x88a   :  { %13002 = vmatmul.bf16.vlgmr.msra.gmra.mxu1 %v12928_v15  ;;  %v19010_v15 = vld [vmem:[%s23325_s5 + $0x370] sm:$0xff] }
 0x88b   :  { %13352 = vmatpush.bf16.msra.mxu2 %v18985_v54  ;;  %v18999_v54 = vld [vmem:[%s23325_s5 + $0x318] sm:$0xff] }
 0x88c   :  { %v11886_v22 = vpop.f32.mrf.mxu3  ;;  %v12254_v36 = vpop.f32.mrf.mxu0  ;;  %13441 = vmatpush.bf16.msrb.mxu3 %v18993_v30  ;;  %13267 = vmatpush.bf16.msrb.mxu1 %v18973_v14  ;;  %v19009_v30 = vld [vmem:[%s23325_s5 + $0x368] sm:$0xff] }
 0x88d   :  { %v23138_v52 = vadd.f32 %v11886_v22, %v22998_v38  ;;  %v12325_v7 = vadd.f32 %v12254_v36, %v11981_v31  ;;  %v18992_v38 = vld [vmem:[%s23325_s5 + $0x2e0] sm:$0xff]  ;;  %v11985_v14 = vld [vmem:[#allocation3 + $0x88] sm:$0xff] }
 0x88f   :  { %13353 = vmatpush.bf16.msra.mxu2 %v18984_v53  ;;  %12361 = vst [vmem:[#allocation3 + $0x68] sm:$0xff] %v12325_v7  ;;  %v13097_v5 = vld [vmem:[#allocation3 + $0x60] sm:$0x3]  ;;  %v13098_v2 = vld [vmem:[#allocation3 + $0x62] sm:$0x3]  ;;  %v18998_v53 = vld [vmem:[%s23325_s5 + $0x310] sm:$0xff] }
 0x890   :  { %13442 = vmatpush.bf16.msrb.mxu3 %v18992_v38  ;;  %13268 = vmatpush.bf16.msrb.mxu1 %v18972_v33  ;;  %v13186_v10 = vld [vmem:[#allocation3 + $0x64] sm:$0x3]  ;;  %v13187_v56 = vld [vmem:[#allocation3 + $0x66] sm:$0x3]  ;;  %v13099_v44 = vmax.f32 %v13097_v5, %v13098_v2  ;;  %v19026_v5 = vld [vmem:[%s23325_s5 + $0x3f0] sm:$0xff] }
 0x891   :  { %v13188_v25 = vmax.f32 %v13186_v10, %v13187_v56  ;;  %v19016_v2 = vld [vmem:[%s23325_s5 + $0x3a0] sm:$0xff]  ;;  %v19005_v56 = vld [vmem:[%s23325_s5 + $0x348] sm:$0xff] }
 0x892   :  { %13091 = vmatmul.bf16.vlgmr.msrb.gmra.mxu2 %v13017_v3 }
 0x893   :  { %13354 = vmatpush.bf16.msra.mxu2 %v18983_v6 }
 0x894   :  { %v11888_v23 = vpop.f32.mrf.mxu3  ;;  %v12257_v60 = vpop.f32.mrf.mxu0  ;;  %13443 = vmatpush.bf16.msrb.mxu3 %v18991_v11  ;;  %13528 = vmatpush.bf16.msra.mxu1 %v19003_v37 }
 0x895   :  { %v23156_v42 = vadd.f32 %v11888_v23, %v23022_v40  ;;  %v12326_v18 = vadd.f32 %v12257_v60, %v11982_v26  ;;  %v18990_v40 = vld [vmem:[%s23325_s5 + $0x2d0] sm:$0xff]  ;;  %v19019_v26 = vld [vmem:[%s23325_s5 + $0x3b8] sm:$0xff] }
 0x896   :  { %v13275_v7 = vld [vmem:[#allocation3 + $0x68] sm:$0x3]  ;;  %v13276_v6 = vld [vmem:[#allocation3 + $0x6a] sm:$0x3]  ;;  %v13364_v38 = vld [vmem:[#allocation3 + $0x6c] sm:$0x3] }
 0x897   :  { %13355 = vmatpush.bf16.msra.mxu2 %v18982_v29  ;;  %12362 = vst [vmem:[#allocation3 + $0x70] sm:$0xff] %v12326_v18  ;;  %12296 = vmatmul.bf16.gmra.mxu0 %v18889_v49  ;;  %v13365_v29 = vld [vmem:[#allocation3 + $0x6e] sm:$0x3]  ;;  %v13277_v18 = vmax.f32 %v13275_v7, %v13276_v6 }
 0x898   :  { %13444 = vmatpush.bf16.msrb.mxu3 %v18990_v40  ;;  %13529 = vmatpush.bf16.msra.mxu1 %v19002_v13  ;;  %v18997_v13 = vld [vmem:[%s23325_s5 + $0x308] sm:$0xff] }
 0x89b   :  { %13356 = vmatpush.bf16.msra.mxu2 %v18981_v12 }
 0x89c   :  { %v11891_v16 = vpop.f32.mrf.mxu3  ;;  %v12259_v21 = vpop.f32.mrf.mxu0  ;;  %13445 = vmatpush.bf16.msrb.mxu3 %v18989_v19  ;;  %13530 = vmatpush.bf16.msra.mxu1 %v19001_v61  ;;  %v19007_v61 = vld [vmem:[%s23325_s5 + $0x358] sm:$0xff] }
 0x89d   :  { %v23178_v20 = vadd.f32 %v11891_v16, %v23046_v39  ;;  %v12327_v48 = vadd.f32 %v12259_v21, %v11983_v9  ;;  %v19000_v39 = vld [vmem:[%s23325_s5 + $0x320] sm:$0xff]  ;;  %v13366_v16 = vmax.f32 %v13364_v38, %v13365_v29  ;;  %v19018_v9 = vld [vmem:[%s23325_s5 + $0x3b0] sm:$0xff]  ;;  %v19027_v21 = vld [vmem:[%s23325_s5 + $0x3f8] sm:$0xff] }
 0x89f   :  { %13357 = vmatpush.bf16.msra.mxu2 %v18980_v58  ;;  %12363 = vst [vmem:[#allocation3 + $0x78] sm:$0xff] %v12327_v48  ;;  %v18891_v48 = vld [vmem:[#allocation2 + $0xbc] sm:$0xff] }
 0x8a0   :  { %13446 = vmatpush.bf16.msrb.mxu3 %v18988_v4  ;;  %13531 = vmatpush.bf16.msra.mxu1 %v19000_v39  ;;  %v11986_v4 = vld [vmem:[#allocation3 + $0x90] sm:$0xff] }
 0x8a3   :  { %13617 = vmatpush.bf16.msrb.mxu2 %v19011_v55 }
 0x8a4   :  { %v11893_v62 = vpop.f32.mrf.mxu3  ;;  %v12262_v59 = vpop.f32.mrf.mxu0  ;;  %13532 = vmatpush.bf16.msra.mxu1 %v18999_v54  ;;  %v19024_v54 = vld [vmem:[%s23325_s5 + $0x3e0] sm:$0xff] }
 0x8a5   :  { %v23192_v27 = vadd.f32 %v11893_v62, %v11474_v8  ;;  %v12328_v41 = vadd.f32 %v12262_v59, %v11984_v47  ;;  %v19017_v62 = vld [vmem:[%s23325_s5 + $0x3a8] sm:$0xff]  ;;  %v19006_v59 = vld [vmem:[%s23325_s5 + $0x350] sm:$0xff] }
 0x8a6   :  { %v13100_v24 = vld [vmem:[#allocation3 + $0x78] sm:$0x3]  ;;  %v13101_v50 = vld [vmem:[#allocation3 + $0x7a] sm:$0x3]  ;;  %v13189_v0 = vld [vmem:[#allocation3 + $0x7c] sm:$0x3] }
 0x8a7   :  { %12364 = vst [vmem:[#allocation3 + $0x80] sm:$0xff] %v12328_v41  ;;  %12301 = vmatmul.bf16.gmra.mxu0 %v18890_v17  ;;  %v13102_v51 = vmax.f32 %v13100_v24, %v13101_v50  ;;  %v13190_v35 = vld [vmem:[#allocation3 + $0x7e] sm:$0x3]  ;;  %13618 = vmatpush.bf16.msrb.mxu2 %v19010_v15  ;;  %v19025_v41 = vld [vmem:[%s23325_s5 + $0x3e8] sm:$0xff]  ;;  %v19014_v15 = vld [vmem:[%s23325_s5 + $0x390] sm:$0xff] }
 0x8a8   :  { %v13191_v63 = vmax.f32 %v13189_v0, %v13190_v35  ;;  %13533 = vmatpush.bf16.msra.mxu1 %v18998_v53  ;;  %v11987_v24 = vld [vmem:[#allocation3 + $0x98] sm:$0xff] }
 0x8a9   :  { %v13103_v1 = vmax.f32 %v13099_v44, %v13102_v51  ;;  %v19015_v44 = vld [vmem:[%s23325_s5 + $0x398] sm:$0xff]  ;;  %v19004_v35 = vld [vmem:[%s23325_s5 + $0x340] sm:$0xff] }
 0x8aa   :  { %v13192_v22 = vmax.f32 %v13188_v25, %v13191_v63  ;;  %v19023_v25 = vld [vmem:[%s23325_s5 + $0x3d8] sm:$0xff]  ;;  %v11988_v63 = vld [vmem:[#allocation3 + $0xa0] sm:$0xff] }
 0x8ab   :  { %v13104_v43 = vadd.f32 %v22941_v57, %v13103_v1  ;;  %13619 = vmatpush.bf16.msrb.mxu2 %v19009_v30  ;;  %v19013_v30 = vld [vmem:[%s23325_s5 + $0x388] sm:$0xff] }
 0x8ac   :  { %v12264_v31 = vpop.f32.mrf.mxu0  ;;  %v13193_v36 = vadd.f32 %v22941_v57, %v13192_v22  ;;  %13534 = vmatpush.bf16.msra.mxu1 %v18997_v13  ;;  %v19022_v22 = vld [vmem:[%s23325_s5 + $0x3d0] sm:$0xff] }
 0x8ad   :  { %v12329_v3 = vadd.f32 %v12264_v31, %v11985_v14  ;;  %v13105_v33 = vmax.f32 %v13104_v43, 0.0  ;;  %v19012_v43 = vld [vmem:[%s23325_s5 + $0x380] sm:$0xff]  ;;  %v19021_v14 = vld [vmem:[%s23325_s5 + $0x3c8] sm:$0xff] }
 0x8ae   :  { %v13194_v11 = vmax.f32 %v13193_v36, 0.0  ;;  %v13278_v23 = vld [vmem:[#allocation3 + $0x80] sm:$0x3]  ;;  %v13279_v49 = vld [vmem:[#allocation3 + $0x82] sm:$0x3]  ;;  %v11989_v31 = vld [vmem:[#allocation3 + $0xa8] sm:$0xff] }
 0x8af   :  { %12365 = vst [vmem:[#allocation3 + $0x88] sm:$0xff] %v12329_v3  ;;  %v13106_v60 = vpack.c.bf16 %v13105_v33, %v13105_v33  ;;  %v13280_v12 = vmax.f32 %v13278_v23, %v13279_v49  ;;  %v13367_v37 = vld [vmem:[#allocation3 + $0x84] sm:$0x3]  ;;  %v13368_v40 = vld [vmem:[#allocation3 + $0x86] sm:$0x3]  ;;  %13620 = vmatpush.bf16.msrb.mxu2 %v19008_v34  ;;  %v19020_v3 = vld [vmem:[%s23325_s5 + $0x3c0] sm:$0xff] }
 0x8b0   :  { %v13195_v58 = vpack.c.bf16 %v13194_v11, %v13194_v11  ;;  %v13369_v19 = vmax.f32 %v13367_v37, %v13368_v40  ;;  %13535 = vmatpush.bf16.msra.mxu1 %v18996_v46  ;;  %v11990_v33 = vld [vmem:[#allocation3 + $0xb0] sm:$0xff] }
 0x8b1   :  { %13180 = vmatmul.bf16.vlgmr.msra.gmra.mxu3 %v13106_v60  ;;  %v13281_v32 = vmax.f32 %v13277_v18, %v13280_v12 }
 0x8b2   :  { %13269 = vmatmul.bf16.vlgmr.msrb.gmra.mxu1 %v13195_v58  ;;  %13706 = vmatpush.bf16.msra.mxu3 %v19019_v26  ;;  %v13370_v28 = vmax.f32 %v13366_v16, %v13369_v19 }
 0x8b3   :  { %v13282_v45 = vadd.f32 %v22941_v57, %v13281_v32  ;;  %13621 = vmatpush.bf16.msrb.mxu2 %v19007_v61  ;;  %v19158_v61 = vld [vmem:[%s23324_s4] ss:$0 sm:$0xff] }
 0x8b4   :  { %v12267_v39 = vpop.f32.mrf.mxu0  ;;  %13795 = vmatpush.bf16.msrb.mxu1 %v19027_v21  ;;  %v13371_v47 = vadd.f32 %v22941_v57, %v13370_v28 }
 0x8b5   :  { %v12330_v55 = vadd.f32 %v12267_v39, %v11986_v4  ;;  %v13283_v8 = vmax.f32 %v13282_v45, 0.0 }
 0x8b6   :  { %13707 = vmatpush.bf16.msra.mxu3 %v19018_v9  ;;  %v13372_v10 = vmax.f32 %v13371_v47, 0.0 }
 0x8b7   :  { %12366 = vst [vmem:[#allocation3 + $0x90] sm:$0xff] %v12330_v55  ;;  %12306 = vmatmul.bf16.gmra.mxu0 %v18891_v48  ;;  %v13284_v17 = vpack.c.bf16 %v13283_v8, %v13283_v8  ;;  %13622 = vmatpush.bf16.msrb.mxu2 %v19006_v59  ;;  %v11991_v48 = vld [vmem:[#allocation3 + $0xb8] sm:$0xff] }
 0x8b8   :  { %13796 = vmatpush.bf16.msrb.mxu1 %v19026_v5  ;;  %v13373_v51 = vpack.c.bf16 %v13372_v10, %v13372_v10 }
 0x8b9   :  { %13358 = vmatmul.bf16.vlgmr.msra.gmra.mxu2 %v13284_v17 }
 0x8ba   :  { %13708 = vmatpush.bf16.msra.mxu3 %v19017_v62 }
 0x8bb   :  { %13623 = vmatpush.bf16.msrb.mxu2 %v19005_v56 }
 0x8bc   :  { %v12269_v50 = vpop.f32.mrf.mxu0  ;;  %13797 = vmatpush.bf16.msrb.mxu1 %v19025_v41 }
 0x8bd   :  { %v12331_v0 = vadd.f32 %v12269_v50, %v11987_v24 }
 0x8be   :  { %13709 = vmatpush.bf16.msra.mxu3 %v19016_v2  ;;  %v13453_v29 = vld [vmem:[#allocation3 + $0x90] sm:$0x3]  ;;  %v13454_v11 = vld [vmem:[#allocation3 + $0x92] sm:$0x3]  ;;  %v13542_v26 = vld [vmem:[#allocation3 + $0x94] sm:$0x3] }
 0x8bf   :  { %12367 = vst [vmem:[#allocation3 + $0x98] sm:$0xff] %v12331_v0  ;;  %13624 = vmatpush.bf16.msrb.mxu2 %v19004_v35  ;;  %v13543_v60 = vld [vmem:[#allocation3 + $0x96] sm:$0x3]  ;;  %v13455_v58 = vmax.f32 %v13453_v29, %v13454_v11 }
 0x8c0   :  { %13798 = vmatpush.bf16.msrb.mxu1 %v19024_v54  ;;  %v13544_v32 = vmax.f32 %v13542_v26, %v13543_v60  ;;  %v11994_v11 = vld [vmem:[#allocation3 + $0xd0] sm:$0xff]  ;;  %v11995_v26 = vld [vmem:[#allocation3 + $0xd8] sm:$0xff] }
 0x8c1   :  { %13447 = vmatmul.bf16.vlgmr.msrb.gmra.mxu3 %v13373_v51 }
 0x8c2   :  { %13710 = vmatpush.bf16.msra.mxu3 %v19015_v44 }
 0x8c4   :  { %v12272_v1 = vpop.f32.mrf.mxu0  ;;  %13799 = vmatpush.bf16.msrb.mxu1 %v19023_v25 }
 0x8c5   :  { %v12332_v53 = vadd.f32 %v12272_v1, %v11988_v63 }
 0x8c6   :  { %13711 = vmatpush.bf16.msra.mxu3 %v19014_v15  ;;  %v13631_v39 = vld [vmem:[#allocation3 + $0x98] sm:$0x3]  ;;  %v13632_v55 = vld [vmem:[#allocation3 + $0x9a] sm:$0x3]  ;;  %v13720_v59 = vld [vmem:[#allocation3 + $0x9c] sm:$0x3] }
 0x8c7   :  { %12368 = vst [vmem:[#allocation3 + $0xa0] sm:$0xff] %v12332_v53  ;;  %v13721_v5 = vld [vmem:[#allocation3 + $0x9e] sm:$0x3]  ;;  %v13633_v50 = vmax.f32 %v13631_v39, %v13632_v55  ;;  %v11992_v53 = vld [vmem:[#allocation3 + $0xc0] sm:$0xff] }
 0x8c8   :  { %13800 = vmatpush.bf16.msrb.mxu1 %v19022_v22  ;;  %v13722_v25 = vmax.f32 %v13720_v59, %v13721_v5 }
 0x8ca   :  { %13712 = vmatpush.bf16.msra.mxu3 %v19013_v30 }
 0x8cc   :  { %v12274_v36 = vpop.f32.mrf.mxu0  ;;  %13801 = vmatpush.bf16.msrb.mxu1 %v19021_v14 }
 0x8cd   :  { %v12333_v7 = vadd.f32 %v12274_v36, %v11989_v31 }
 0x8ce   :  { %13713 = vmatpush.bf16.msra.mxu3 %v19012_v43 }
 0x8cf   :  { %v12498_v6 = vpop.f32.mrf.mxu1  ;;  %12369 = vst [vmem:[#allocation3 + $0xa8] sm:$0xff] %v12333_v7 }
 0x8d0   :  { %13802 = vmatpush.bf16.msrb.mxu1 %v19020_v3  ;;  %v11993_v3 = vld [vmem:[#allocation3 + $0xc8] sm:$0xff] }
 0x8d4   :  { %v12277_v38 = vpop.f32.mrf.mxu0 }
 0x8d5   :  { %v12334_v23 = vadd.f32 %v12277_v38, %v11990_v33 }
 0x8d6   :  { %v12559_v49 = vpop.f32.mrf.mxu2  ;;  %v13456_v37 = vld [vmem:[#allocation3 + $0xa8] sm:$0x3]  ;;  %v13457_v40 = vld [vmem:[#allocation3 + $0xaa] sm:$0x3]  ;;  %v13545_v13 = vld [vmem:[#allocation3 + $0xac] sm:$0x3] }
 0x8d7   :  { %v12560_v18 = vadd.f32 %v12559_v49, %v12498_v6  ;;  %v12500_v12 = vpop.f32.mrf.mxu1  ;;  %12370 = vst [vmem:[#allocation3 + $0xb0] sm:$0xff] %v12334_v23  ;;  %v13458_v19 = vmax.f32 %v13456_v37, %v13457_v40  ;;  %v13546_v34 = vld [vmem:[#allocation3 + $0xae] sm:$0x3] }
 0x8d8   :  { %v13547_v16 = vmax.f32 %v13545_v13, %v13546_v34  ;;  %v11996_v12 = vld [vmem:[#allocation3 + $0xe0] sm:$0xff] }
 0x8d9   :  { %v13459_v46 = vmax.f32 %v13455_v58, %v13458_v19 }
 0x8da   :  { %v13548_v9 = vmax.f32 %v13544_v32, %v13547_v16 }
 0x8db   :  { %v13460_v21 = vadd.f32 %v22941_v57, %v13459_v46  ;;  %v11997_v46 = vld [vmem:[#allocation3 + $0xe8] sm:$0xff] }
 0x8dc   :  { %v12279_v45 = vpop.f32.mrf.mxu0  ;;  %v13549_v4 = vadd.f32 %v19158_v61, %v13548_v9 }
 0x8dd   :  { %v12647_v28 = vpop.f32.mrf.mxu3  ;;  %v12335_v8 = vadd.f32 %v12279_v45, %v11991_v48  ;;  %v13461_v47 = vmax.f32 %v13460_v21, 0.0 }
 0x8de   :  { %v12561_v62 = vpop.f32.mrf.mxu2  ;;  %v12651_v17 = vadd.f32 %v12647_v28, %v12560_v18  ;;  %v13550_v41 = vmax.f32 %v13549_v4, 0.0  ;;  %v13634_v10 = vld [vmem:[#allocation3 + $0xb0] sm:$0x3]  ;;  %v13635_v57 = vld [vmem:[#allocation3 + $0xb2] sm:$0x3] }
 0x8df   :  { %v12736_v2 = vpop.f32.mrf.mxu1  ;;  %12371 = vst [vmem:[#allocation3 + $0xb8] sm:$0xff] %v12335_v8  ;;  %v13462_v24 = vpack.c.bf16 %v13461_v47, %v13461_v47  ;;  %v13636_v0 = vmax.f32 %v13634_v10, %v13635_v57  ;;  %v13723_v44 = vld [vmem:[#allocation3 + $0xb4] sm:$0x3]  ;;  %v13724_v51 = vld [vmem:[#allocation3 + $0xb6] sm:$0x3]  ;;  %v11999_v62 = vld [vmem:[#allocation3 + $0xf8] sm:$0xff] }
 0x8e0   :  { %v12740_v56 = vadd.f32 %v12736_v2, %v12651_v17  ;;  %v13551_v35 = vpack.c.bf16 %v13550_v41, %v13550_v41  ;;  %v13725_v54 = vmax.f32 %v13723_v44, %v13724_v51  ;;  %v19035_v10 = vld [vmem:[%s23327_s7 + $0x38] sm:$0xff] }
 0x8e1   :  { %13536 = vmatmul.bf16.vlgmr.msra.gmra.mxu1 %v13462_v24  ;;  %v13637_v15 = vmax.f32 %v13633_v50, %v13636_v0  ;;  %13884 = vmatpush.bf16.msra.mxu2 %v19035_v10 }
 0x8e2   :  { %13625 = vmatmul.bf16.vlgmr.msrb.gmra.mxu2 %v13551_v35  ;;  %v13726_v1 = vmax.f32 %v13722_v25, %v13725_v54 }
 0x8e3   :  { %v13638_v63 = vadd.f32 %v19158_v61, %v13637_v15 }
 0x8e4   :  { %v12282_v30 = vpop.f32.mrf.mxu0  ;;  %v13727_v7 = vadd.f32 %v19158_v61, %v13726_v1  ;;  %v11998_v61 = vld [vmem:[#allocation3 + $0xf0] sm:$0xff]  ;;  %v19032_v1 = vld [vmem:[%s23327_s7 + $0x20] sm:$0xff] }
 0x8e5   :  { %v12649_v22 = vpop.f32.mrf.mxu3  ;;  %v12336_v43 = vadd.f32 %v12282_v30, %v11992_v53  ;;  %v13639_v14 = vmax.f32 %v13638_v63, 0.0  ;;  %v19029_v30 = vld [vmem:[%s23327_s7 + $0x8] sm:$0xff] }
 0x8e6   :  { %v13728_v6 = vmax.f32 %v13727_v7, 0.0  ;;  %v19028_v22 = vld [vmem:[%s23327_s7] sm:$0xff] }
 0x8e7   :  { %v12738_v31 = vpop.f32.mrf.mxu1  ;;  %12372 = vst [vmem:[#allocation3 + $0xc0] sm:$0xff] %v12336_v43  ;;  %v13640_v36 = vpack.c.bf16 %v13639_v14, %v13639_v14 }
 0x8e8   :  { %v13729_v29 = vpack.c.bf16 %v13728_v6, %v13728_v6 }
 0x8e9   :  { %13714 = vmatmul.bf16.vlgmr.msra.gmra.mxu3 %v13640_v36 }
 0x8ec   :  { %v12284_v33 = vpop.f32.mrf.mxu0 }
 0x8ed   :  { %v12337_v38 = vadd.f32 %v12284_v33, %v11993_v3 }
 0x8ef   :  { %12373 = vst [vmem:[#allocation3 + $0xc8] sm:$0xff] %v12337_v38 }
 0x8f1   :  { %13803 = vmatmul.bf16.vlgmr.msrb.gmra.mxu1 %v13729_v29 }
 0x8f4   :  { %v12287_v23 = vpop.f32.mrf.mxu0 }
 0x8f5   :  { %v12338_v49 = vadd.f32 %v12287_v23, %v11994_v11 }
 0x8f7   :  { %12374 = vst [vmem:[#allocation3 + $0xd0] sm:$0xff] %v12338_v49  ;;  %v19151_v49 = vld [vmem:[%s23326_s6] ss:$0 sm:$0xff]  ;;  %s19186_s6 = smov [#allocation4]  }
 0x8fc   :  { %v12289_v60 = vpop.f32.mrf.mxu0 }
 0x8fd   :  { %v12339_v18 = vadd.f32 %v12289_v60, %v11995_v26 }
 0x8ff   :  { %12375 = vst [vmem:[#allocation3 + $0xd8] sm:$0xff] %v12339_v18 }
 0x904   :  { %v12292_v37 = vpop.f32.mrf.mxu0 }
 0x905   :  { %v12825_v40 = vpop.f32.mrf.mxu2  ;;  %v12340_v13 = vadd.f32 %v12292_v37, %v11996_v12 }
 0x906   :  { %v12829_v58 = vadd.f32 %v12825_v40, %v12740_v56  ;;  %v12914_v19 = vpop.f32.mrf.mxu3  ;;  %v19034_v56 = vld [vmem:[%s23327_s7 + $0x30] sm:$0xff] }
 0x907   :  { %v13003_v34 = vpop.f32.mrf.mxu1  ;;  %12376 = vst [vmem:[#allocation3 + $0xe0] sm:$0xff] %v12340_v13  ;;  %13885 = vmatpush.bf16.msra.mxu2 %v19034_v56 }
 0x908   :  { %v12918_v32 = vadd.f32 %v12914_v19, %v12829_v58  ;;  %v13897_v58 = vlaneseq }
 0x90a   :  { %v13007_v16 = vadd.f32 %v13003_v34, %v12918_v32  ;;  %v13898_v19 = vand.u32 127, %v13897_v58  ;;  %v19152_v34 = vld [vmem:[%s23328_s8] ss:$0 sm:$0xff]  ;;  %s13921_s8 = sshll.u32 %s19186_s6, 4  ;;  %s13922_s8 = int_to_ptr.vmem [resolvable:$true] %s13921_s8 }
 0x90c   :  { %v12294_v9 = vpop.f32.mrf.mxu0  ;;  %vm13899_vm4 = vcmp.lt.s32.totalorder %v13898_v19, 10 }
 0x90d   :  { %v12827_v21 = vpop.f32.mrf.mxu2  ;;  %v12341_v48 = vadd.f32 %v12294_v9, %v11997_v46 }
 0x90e   :  { %v12916_v45 = vpop.f32.mrf.mxu3 }
 0x90f   :  { %v13005_v28 = vpop.f32.mrf.mxu1  ;;  %12377 = vst [vmem:[#allocation3 + $0xe8] sm:$0xff] %v12341_v48 }
 0x914   :  { %v12297_v4 = vpop.f32.mrf.mxu0 }
 0x915   :  { %v13092_v39 = vpop.f32.mrf.mxu2  ;;  %v12342_v55 = vadd.f32 %v12297_v4, %v11998_v61 }
 0x916   :  { %v13096_v8 = vadd.f32 %v13092_v39, %v13007_v16 }
 0x917   :  { %12378 = vst [vmem:[#allocation3 + $0xf0] sm:$0xff] %v12342_v55 }
 0x91c   :  { %v12299_v17 = vpop.f32.mrf.mxu0 }
 0x91d   :  { %v13094_v47 = vpop.f32.mrf.mxu2  ;;  %v12343_v59 = vadd.f32 %v12299_v17, %v11999_v62 }
 0x91f   :  { %12379 = vst [vmem:[#allocation3 + $0xf8] sm:$0xff] %v12343_v59 }
 0x924   :  { %v12302_v5 = vpop.f32.mrf.mxu0 }
 0x925   :  { %v12344_v2 = vadd.f32 %v12302_v5, %v23138_v52 }
 0x927   :  { %12380 = vst [vmem:[#allocation3 + $0x100] sm:$0xff] %v12344_v2 }
 0x92c   :  { %v12304_v41 = vpop.f32.mrf.mxu0 }
 0x92d   :  { %v12345_v57 = vadd.f32 %v12304_v41, %v23156_v42  ;;  %v19033_v42 = vld [vmem:[%s23327_s7 + $0x28] sm:$0xff] }
 0x92e   :  { %13886 = vmatpush.bf16.msra.mxu2 %v19033_v42 }
 0x92f   :  { %12381 = vst [vmem:[#allocation3 + $0x108] sm:$0xff] %v12345_v57  ;;  %v13270_v24 = vpop.f32.mrf.mxu1 }
 0x932   :  { %13887 = vmatpush.bf16.msra.mxu2 %v19032_v1 }
 0x934   :  { %v12307_v50 = vpop.f32.mrf.mxu0  ;;  %v13181_v0 = vpop.f32.mrf.mxu3 }
 0x935   :  { %v12346_v52 = vadd.f32 %v12307_v50, %v23178_v20  ;;  %v19031_v20 = vld [vmem:[%s23327_s7 + $0x18] sm:$0xff]  ;;  %v13185_v14 = vadd.f32 %v13181_v0, %v13096_v8 }
 0x936   :  { %13888 = vmatpush.bf16.msra.mxu2 %v19031_v20 }
 0x937   :  { %12382 = vst [vmem:[#allocation3 + $0x110] sm:$0xff] %v12346_v52  ;;  %v13272_v44 = vpop.f32.mrf.mxu1  ;;  %v13274_v31 = vadd.f32 %v13270_v24, %v13185_v14 }
 0x93c   :  { %v12309_v51 = vpop.f32.mrf.mxu0  ;;  %v13183_v35 = vpop.f32.mrf.mxu3 }
 0x93d   :  { %v12347_v54 = vadd.f32 %v12309_v51, %v23192_v27  ;;  %v13359_v15 = vpop.f32.mrf.mxu2  ;;  %v19030_v27 = vld [vmem:[%s23327_s7 + $0x10] sm:$0xff] }
 0x93e   :  { %13889 = vmatpush.bf16.msra.mxu2 %v19030_v27  ;;  %v13363_v36 = vadd.f32 %v13359_v15, %v13274_v31 }
 0x93f   :  { %12383 = vst [vmem:[#allocation3 + $0x118] sm:$0xff] %v12347_v54 }
 0x942   :  { %13890 = vmatpush.bf16.msra.mxu2 %v19029_v30 }
 0x944   :  { %v13448_v25 = vpop.f32.mrf.mxu3 }
 0x945   :  { %v13361_v63 = vpop.f32.mrf.mxu2  ;;  %v13452_v3 = vadd.f32 %v13448_v25, %v13363_v36 }
 0x946   :  { %13891 = vmatpush.bf16.msra.mxu2 %v19028_v22 }
 0x94c   :  { %v13450_v53 = vpop.f32.mrf.mxu3 }
 0x95e   :  { %v13537_v43 = vpop.f32.mrf.mxu1 }
 0x95f   :  { %v13541_v33 = vadd.f32 %v13537_v43, %v13452_v3 }
 0x965   :  { %v13626_v7 = vpop.f32.mrf.mxu2 }
 0x966   :  { %v13539_v6 = vpop.f32.mrf.mxu1  ;;  %v13630_v38 = vadd.f32 %v13626_v7, %v13541_v33 }
 0x96c   :  { %v13715_v29 = vpop.f32.mrf.mxu3 }
 0x96d   :  { %v13628_v11 = vpop.f32.mrf.mxu2  ;;  %v13719_v23 = vadd.f32 %v13715_v29, %v13630_v38 }
 0x96e   :  { %v13804_v26 = vpop.f32.mrf.mxu1 }
 0x96f   :  { %v13808_v60 = vadd.f32 %v13804_v26, %v13719_v23 }
 0x971   :  { %v13813_v18 = vadd.f32 %v19151_v49, %v13808_v60 }
 0x973   :  { %v13814_v12 = vmax.f32 %v13813_v18, 0.0 }
 0x974   :  { %v13717_v37 = vpop.f32.mrf.mxu3 }
 0x975   :  { %v13815_v40 = vpack.c.bf16 %v13814_v12, %v13814_v12 }
 0x976   :  { %v13806_v13 = vpop.f32.mrf.mxu1 }
 0x977   :  { %13892 = vmatmul.bf16.vlgmr.msra.gmra.mxu2 %v13815_v40 }
 0x9fa   :  { %v13893_v32 = vpop.f32.mrf.mxu2 }
 0x9fb   :  { %v13894_v16 = vadd.f32 %v19152_v34, %v13893_v32 }
 0x9fd   :  { %v13900_v46 = vsel %vm13899_vm4, %v13894_v16, -inf }
 0x9fe   :  { %v13902_v9 = vsel %vm13901_vm5, %v13900_v46, -inf }
 0x9ff   :  { %13903 = vmax.xlane.f32.xlu0 %v13902_v9 }
 0xa02   :  { %v13895_v21 = vpop.f32.mrf.mxu2 }
 0xa72   :  { %v13904_v48 = vpop.xlane.xlu0 %13903 }
 0xa73   :  { %v13905_v45 = vsub.f32 %v13900_v46, %v13904_v48  ;;  %v13913_v8 = vsub.f32 %v13894_v16, %v13904_v48 }
 0xa75   :  { %v13906_v28 = vmul.f32 1.442695, %v13905_v45 }
 0xa77   :  { %19153 = vpow2.f32 %v13906_v28 }
 0xa7d   :  { %v19154_v61 = vpop.eup %19153 }
 0xa7e   :  { %v13908_v4 = vsel %vm13901_vm5, %v19154_v61, 0.0 }
 0xa7f   :  { %13909 = vadd.xlane.f32.xlu0 %v13908_v4 }
 0xaf2   :  { %v13910_v39 = vpop.xlane.xlu0 %13909 }
 0xaf3   :  { %19155 = vlog2.f32 %v13910_v39 }
 0xaf9   :  { %v19156_v55 = vpop.eup %19155 }
 0xafa   :  { %v13912_v62 = vmul.f32 0.6931472, %v19156_v55 }
 0xafc   :  { %v13914_v17 = vsub.f32 %v13913_v8, %v13912_v62 }
 0xafe   :  { %13915 = vst [vmem:[#allocation4] sm:$0x3] %v13914_v17 }
 0xaff   :  { %13926 = dma.vmem_to_hbm [thread:$0]  %s13922_s8, 32, %s13924_s30, [#allocation5]  }
 0xb00   :  { %19183 = dma.done.wait [#allocation5], 32  }
 0xb01   :  { %19184 = vsyncadd [#allocation5], 4294967264 }
 0xb02   :  { %13931 = vsyncpa [#allocation5], 1 }

</bundles_post_ra>
